<compile_context>
chip_gen: v6e
topology: v6e:2x2x1
jax: 0.10.0
libtpu: 0.0.40
codegen_flags: <defaults>
</compile_context>

<pallas_src>
import functools

import numpy as np
import jax
import jax.numpy as jnp
from jax.experimental import pallas as pl
from jax.experimental.pallas import tpu as pltpu

MESH_RES = 5          # grid resolution N -> N*N corner verts + (N-1)^2 center verts
N_POINTS = 4096       # number of query points in the demo
BATCH = 1             # TutteLayer hard-codes parameter batch_size = 1

LANES = 128
TILE_SUBLANES = 16    # 16 x 128 = 2048 points per grid step (full (8,128) vregs)
TILE_POINTS = TILE_SUBLANES * LANES


# ----------------------------------------------------------------------------
# Synthetic mesh / lap_dict construction (matches the grid used by find_simplex)
# ----------------------------------------------------------------------------
def build_mesh(N):
    interval = 1.0 / (N - 1)
    verts = []
    for x in range(N):
        for y in range(N):
            verts.append((2.0 * (y * interval) - 1.0, 2.0 * (1.0 - x * interval) - 1.0))
    for x in range(N - 1):
        for y in range(N - 1):
            verts.append((2.0 * ((y + 0.5) * interval) - 1.0,
                          2.0 * (1.0 - (x + 0.5) * interval) - 1.0))
    verts = np.asarray(verts, np.float32)

    und = set()

    def add(i, j):
        und.add((min(i, j), max(i, j)))

    for x in range(N):
        for y in range(N - 1):
            add(x * N + y, x * N + y + 1)
    for x in range(N - 1):
        for y in range(N):
            add(x * N + y, (x + 1) * N + y)
    for x in range(N - 1):
        for y in range(N - 1):
            c = N * N + x * (N - 1) + y
            for corner in (x * N + y, x * N + y + 1, (x + 1) * N + y, (x + 1) * N + y + 1):
                add(c, corner)
    und = sorted(und)
    edges = np.asarray([[i, j] for i, j in und] + [[j, i] for i, j in und], np.int32).T

    bound = []
    for y in range(N - 1):
        bound.append((N - 1) * N + y)                 # bottom row, left -> right
    for x in range(N - 1, 0, -1):
        bound.append(x * N + (N - 1))                 # right column, bottom -> top
    for y in range(N - 1, 0, -1):
        bound.append(y)                               # top row, right -> left
    for x in range(0, N - 1):
        bound.append(x * N)                           # left column, top -> bottom
    bound_verts = np.asarray(bound, np.int32)

    n_vert = verts.shape[0]
    is_bound = np.zeros(n_vert, bool)
    is_bound[bound_verts] = True
    interior_verts = np.arange(n_vert, dtype=np.int32)[~is_bound]

    return {
        "N": int(N),
        "interval": float(interval),
        "n_vert": int(n_vert),
        "vertices": verts,
        "edges": edges,
        "bound_verts": bound_verts,
        "interior_verts": interior_verts,
    }


# ----------------------------------------------------------------------------
# JAX glue: Tutte embedding (parameter setup, point-count independent)
# ----------------------------------------------------------------------------
def tutte_embedding_dense(w_var, angle_var, mesh):
    # Equivalent to TutteLayer.tutte_embedding_sparse (square boundary map,
    # Laplacian interior solve).
    n_vert = mesh["n_vert"]
    edges = mesh["edges"]
    bound = mesh["bound_verts"]
    inter = mesh["interior_verts"]

    w = jax.nn.sigmoid(w_var) * (1.0 - 0.4) + 0.2                 # [1, nE]
    av = jax.nn.sigmoid(angle_var) * (1.0 - 0.4) + 0.2
    av = av / jnp.sum(av, axis=1, keepdims=True)
    ang = (jnp.cumsum(av, axis=1) * 2.0 * jnp.pi).reshape(-1)     # [nB]

    pi = jnp.pi
    m1 = (ang > 7 * pi / 4) | (ang <= pi / 4)
    m2 = (ang > pi / 4) & (ang <= 3 * pi / 4)
    m3 = (ang > 3 * pi / 4) & (ang <= 5 * pi / 4)
    t = jnp.tan(ang)
    bx = jnp.where(m1, 1.0, jnp.where(m2, 1.0 / t, jnp.where(m3, -1.0, -1.0 / t)))
    by = jnp.where(m1, t, jnp.where(m2, 1.0, jnp.where(m3, -t, -1.0)))
    bound_pos = jnp.stack([bx, by], axis=-1)[None].astype(jnp.float32)   # [1, nB, 2]

    row, col = edges[0], edges[1]
    L = jnp.zeros((1, n_vert, n_vert), jnp.float32)
    L = L.at[:, row, col].add(-w)
    deg = jnp.zeros((1, n_vert), jnp.float32).at[:, row].add(w)
    diag = jnp.arange(n_vert)
    L = L.at[:, diag, diag].add(deg)

    A = L[:, inter][:, :, inter]
    rhs = -jnp.einsum("bij,bjk->bik", L[:, inter][:, :, bound], bound_pos)
    # TODO(synk): reference uses a torch.sparse COO float64 solve; dense float32 here.
    xsol = jnp.linalg.solve(A, rhs)

    out = jnp.zeros((1, n_vert, 2), jnp.float32)
    out = out.at[:, bound].set(bound_pos)
    out = out.at[:, inter].set(xsol)
    return out


# ----------------------------------------------------------------------------
# Fused Pallas kernel: the entire triplane forward for one tile of points
# ----------------------------------------------------------------------------
def _tutte_triplane_kernel(vt_ref, pts_ref,
                           np1_ref, np2_ref, np3_ref,
                           d1_ref, d2_ref, d3_ref, dt_ref,
                           *, N, interval, n_vert):
    """
    vt_ref : (6, n_vert) f32 in SMEM -- rows 2*l / 2*l+1 are x / y of the embedded
             vertices of layer l.
    pts_ref: (3, S, 128) f32 in VMEM -- input points, channel-first, lane-dense.
    """
    n_corner = N * N

    def tutte_layer(px, py, layer_idx):
        # ---- find_simplex on the regular grid (same arithmetic as the reference) ----
        pnx = px * 0.5 + 0.5
        pny = py * 0.5 + 0.5
        y_idf = jnp.floor(pnx / interval)
        x_idf = jnp.floor((1.0 - pny) / interval)
        # identical to the reference for in-domain points; keeps corner indices on the
        # grid for points exactly on / past the boundary.
        y_idf = jnp.clip(y_idf, 0.0, float(N - 2))
        x_idf = jnp.clip(x_idf, 0.0, float(N - 2))
        # reference clamps the [0,1]-normalized coordinates to [-0.95, 0.95]
        pcx = jnp.clip(pnx, -0.95, 0.95)
        pcy = jnp.clip(pny, -0.95, 0.95)

        cxn = (y_idf + 0.5) * interval               # cell center (normalized coords)
        cyn = 1.0 - (x_idf + 0.5) * interval
        dx = pcx - cxn
        dy = pcy - cyn
        tan = dy / (dx + 1e-5)                       # same epsilon as the reference
        in_band = (tan <= 1.0) & (tan > -1.0)
        m1 = (dx >= 0.0) & in_band
        m2 = (dy >= 0.0) & jnp.logical_not(in_band)
        m3 = (dx < 0.0) & in_band

        xi = x_idf.astype(jnp.int32)
        yi = y_idf.astype(jnp.int32)
        tl = xi * N + yi
        tr = tl + 1
        bl = tl + N
        br = bl + 1
        cid = xi * (N - 1) + yi + n_corner
        node1 = jnp.where(m1, tr, jnp.where(m2, tl, jnp.where(m3, bl, br)))
        node2 = jnp.where(m1, br, jnp.where(m2, tr, jnp.where(m3, tl, bl)))

        # ---- analytic ORIGINAL corner positions of the regular grid (in [-1,1]^2) ----
        tlx = 2.0 * (y_idf * interval) - 1.0
        tly = 2.0 * (1.0 - x_idf * interval) - 1.0
        trx = tlx + 2.0 * interval
        bly = tly - 2.0 * interval
        oax = 2.0 * cxn - 1.0
        oay = 2.0 * cyn - 1.0
        obx = jnp.where(m1, trx, jnp.where(m2, tlx, jnp.where(m3, tlx, trx)))
        oby = jnp.where(m1, tly, jnp.where(m2, tly, jnp.where(m3, bly, bly)))
        ocx = jnp.where(m1, trx, jnp.where(m2, trx, jnp.where(m3, tlx, tlx)))
        ocy = jnp.where(m1, bly, jnp.where(m2, tly, jnp.where(m3, tly, bly)))

        # ---- get_areas (reference uses the unclamped query point) ----
        area_a = jnp.abs((px - obx) * (py - ocy) - (py - oby) * (px - ocx)) * 0.5
        area_b = jnp.abs((px - oax) * (py - ocy) - (py - oay) * (px - ocx)) * 0.5
        area_c = jnp.abs((px - oax) * (py - oby) - (py - oay) * (px - obx)) * 0.5

        # ---- in-kernel gather of the EMBEDDED corner positions from the SMEM table.
        #      cid only hits center vertices, node1/node2 only grid-corner vertices,
        #      so each unrolled select loop covers just its own index range. ----
        xr = 2 * layer_idx
        yr = xr + 1
        zero = jnp.zeros_like(px)
        nax = zero
        nay = zero
        for v in range(n_corner, n_vert):            # center vertices
            sel = cid == v
            nax = jnp.where(sel, vt_ref[xr, v], nax)
            nay = jnp.where(sel, vt_ref[yr, v], nay)
        nbx = zero
        nby = zero
        ncx = zero
        ncy = zero
        for v in range(n_corner):                    # grid-corner vertices
            vx = vt_ref[xr, v]
            vy = vt_ref[yr, v]
            sb = node1 == v
            sc = node2 == v
            nbx = jnp.where(sb, vx, nbx)
            nby = jnp.where(sb, vy, nby)
            ncx = jnp.where(sc, vx, ncx)
            ncy = jnp.where(sc, vy, ncy)

        # ---- get_tutte_from_triangle (barycentric interpolation) ----
        inv_total = pl.reciprocal(area_a + area_b + area_c, approx=True)
        predx = (nax * area_a + nbx * area_b + ncx * area_c) * inv_total
        predy = (nay * area_a + nby * area_b + ncy * area_c) * inv_total

        # ---- compute_distortion: closed form of the reference 6x6 solve, D = E_new E_old^-1 ----
        eo00 = obx - oax; eo01 = ocx - oax
        eo10 = oby - oay; eo11 = ocy - oay
        en00 = nbx - nax; en01 = ncx - nax
        en10 = nby - nay; en11 = ncy - nay
        inv_det = pl.reciprocal(eo00 * eo11 - eo01 * eo10, approx=True)
        d00 = (en00 * eo11 - en01 * eo10) * inv_det
        d01 = (en01 * eo00 - en00 * eo01) * inv_det
        d10 = (en10 * eo11 - en11 * eo10) * inv_det
        d11 = (en11 * eo00 - en10 * eo01) * inv_det
        return predx, predy, (d00, d01, d10, d11)

    x = pts_ref[0]
    y = pts_ref[1]
    z = pts_ref[2]

    # layer 1 acts on (x, y); layer 2 on (x', z); layer 3 on (y', z')
    p1x, p1y, a = tutte_layer(x, y, 0)
    p2x, p2y, b = tutte_layer(p1x, z, 1)
    p3x, p3y, c = tutte_layer(p1y, p2y, 2)

    # single lane-dense whole-block store per output (unmasked vst on full vregs)
    np1_ref[...] = jnp.stack([p1x, p1y, z], axis=0)
    np2_ref[...] = jnp.stack([p2x, p1y, p2y], axis=0)
    np3_ref[...] = jnp.stack([p2x, p3x, p3y], axis=0)
    d1_ref[...] = jnp.stack(a, axis=0)
    d2_ref[...] = jnp.stack(b, axis=0)
    d3_ref[...] = jnp.stack(c, axis=0)

    # total distortion = J3 @ J2 @ J1 of the embedded 3D map
    a00, a01, a10, a11 = a
    b00, b01, b10, b11 = b
    c00, c01, c10, c11 = c
    dt_ref[...] = jnp.stack([
        b00 * a00, b00 * a01, b01,
        c00 * a10 + c01 * b10 * a00, c00 * a11 + c01 * b10 * a01, c01 * b11,
        c10 * a10 + c11 * b10 * a00, c10 * a11 + c11 * b10 * a01, c11 * b11,
    ], axis=0)


# ----------------------------------------------------------------------------
# Wrapper: one fused pallas_call for the whole triplane forward
# ----------------------------------------------------------------------------
def triplane_forward(input_points, params, mesh, prefix=""):
    batch, n_pts, _ = input_points.shape
    assert batch == 1, "TutteLayer hard-codes parameter batch_size = 1"
    N = mesh["N"]
    interval = mesh["interval"]
    n_vert = mesh["n_vert"]

    # --- parameter setup (point-count independent): Tutte embeddings of the 3 layers ---
    verts = [tutte_embedding_dense(w, a, mesh)[0] for (w, a) in params]      # (n_vert, 2)
    vt = jnp.concatenate([v.T for v in verts], axis=0).astype(jnp.float32)   # (6, n_vert)

    # --- channel-first, lane-dense point layout: (3, n_sublanes, 128) ---
    pts = input_points[0].astype(jnp.float32)
    pad = (-n_pts) % TILE_POINTS
    if pad:
        pts = jnp.concatenate([pts, jnp.zeros((pad, 3), jnp.float32)], axis=0)
    n_tot = n_pts + pad
    s_tot = n_tot // LANES
    pts_cf = pts.T.reshape(3, s_tot, LANES)

    grid = (s_tot // TILE_SUBLANES,)

    def tile_spec(c):
        return pl.BlockSpec((c, TILE_SUBLANES, LANES), lambda i: (0, i, 0))

    kernel = functools.partial(_tutte_triplane_kernel, N=N, interval=interval, n_vert=n_vert)
    out_channels = (3, 3, 3, 4, 4, 4, 9)
    np1, np2, np3, d1, d2, d3, dt = pl.pallas_call(
        kernel,
        grid=grid,
        in_specs=[pl.BlockSpec(memory_space=pltpu.MemorySpace.SMEM),   # vertex tables
                  tile_spec(3)],                                       # points
        out_specs=tuple(tile_spec(c) for c in out_channels),
        out_shape=tuple(jax.ShapeDtypeStruct((c, s_tot, LANES), jnp.float32)
                        for c in out_channels),
        compiler_params=pltpu.CompilerParams(dimension_semantics=("parallel",)),
    )(vt, pts_cf)

    # boundary layout only (one transpose per returned tensor)
    def to_points(cf):       # (3, s_tot, 128) -> (1, n_pts, 3)
        return jnp.transpose(cf.reshape(3, n_tot), (1, 0))[:n_pts][None]

    def to_mats(cf, r, c):   # (r*c, s_tot, 128) -> (n_pts, r, c)
        return jnp.transpose(cf.reshape(r * c, n_tot), (1, 0))[:n_pts].reshape(n_pts, r, c)

    new_points1 = to_points(np1)
    new_points2 = to_points(np2)
    new_points3 = to_points(np3)
    return_dict = {
        prefix + "pred_points1": new_points1,
        prefix + "distortion1": to_mats(d1, 2, 2),
        prefix + "pred_points2": new_points2,
        prefix + "distortion2": to_mats(d2, 2, 2),
        prefix + "pred_points3": new_points3,
        prefix + "distortion3": to_mats(d3, 2, 2),
        prefix + "distortion": to_mats(dt, 3, 3),
    }
    return new_points3, return_dict


# ----------------------------------------------------------------------------
if __name__ == "__main__":
    mesh_np = build_mesh(MESH_RES)
    mesh = {
        "N": mesh_np["N"],
        "interval": mesh_np["interval"],
        "n_vert": mesh_np["n_vert"],
        "edges": jnp.asarray(mesh_np["edges"], jnp.int32),
        "bound_verts": jnp.asarray(mesh_np["bound_verts"], jnp.int32),
        "interior_verts": jnp.asarray(mesh_np["interior_verts"], jnp.int32),
    }

    n_edges = mesh_np["edges"].shape[1]
    n_bound = mesh_np["bound_verts"].shape[0]

    key = jax.random.PRNGKey(0)
    params = []
    for _ in range(3):   # three TutteLayers, uniform init like torch.nn.init.uniform_
        key, k1, k2 = jax.random.split(key, 3)
        params.append((jax.random.uniform(k1, (1, n_edges), jnp.float32),
                       jax.random.uniform(k2, (1, n_bound), jnp.float32)))

    key, kp = jax.random.split(key)
    input_points = jax.random.uniform(
        kp, (BATCH, N_POINTS, 3), jnp.float32, minval=-0.9, maxval=0.9)

    fwd = jax.jit(functools.partial(triplane_forward, mesh=mesh))
    new_points3, out_dict = fwd(input_points, params)
    jax.block_until_ready(new_points3)
    jax.block_until_ready(out_dict)

    ok = new_points3.shape == (BATCH, N_POINTS, 3)
    ok = ok and out_dict["distortion"].shape == (BATCH * N_POINTS, 3, 3)
    ok = ok and bool(jnp.all(jnp.isfinite(new_points3)))
    ok = ok and bool(jnp.all(jnp.isfinite(out_dict["distortion"])))
    print("KERNEL_OK" if ok else "KERNEL_FAILED")
</pallas_src>

<mosaic_0001>
module attributes {stable_mosaic.version = 11 : i64} {
  func.func private @main(%arg0: i32) attributes {dimension_semantics = [#tpu.dimension_semantics<core_parallel>], iteration_bounds = array<i64: 2>, tpu.core_type = #tpu.core_type<sc_scalar_subcore>, window_params = []} {
    return
  }
}

module attributes {stable_mosaic.version = 11 : i64} {
  func.func private @main(%arg0: i32) attributes {dimension_semantics = [#tpu.dimension_semantics<core_parallel>], iteration_bounds = array<i64: 2>, tpu.core_type = #tpu.core_type<sc_scalar_subcore>, window_params = []} {
    return
  }
}

module attributes {stable_mosaic.version = 11 : i64} {
  func.func @_tutte_triplane_kernel(%arg0: i32, %arg1: memref<6x41xf32, #tpu.memory_space<smem>>, %arg2: memref<3x16x128xf32, #tpu.memory_space<vmem>>, %arg3: memref<3x16x128xf32, #tpu.memory_space<vmem>>, %arg4: memref<3x16x128xf32, #tpu.memory_space<vmem>>, %arg5: memref<3x16x128xf32, #tpu.memory_space<vmem>>, %arg6: memref<4x16x128xf32, #tpu.memory_space<vmem>>, %arg7: memref<4x16x128xf32, #tpu.memory_space<vmem>>, %arg8: memref<4x16x128xf32, #tpu.memory_space<vmem>>, %arg9: memref<9x16x128xf32, #tpu.memory_space<vmem>>) attributes {dimension_semantics = [#tpu.dimension_semantics<parallel>], iteration_bounds = array<i64: 2>, scalar_prefetch = 0 : i64, scratch_operands = 0 : i64, tpu.core_type = #tpu.core_type<tc>, window_params = [{transform_indices = @transform_0, window_bounds = array<i64: 6, 41>}, {transform_indices = @transform_1, window_bounds = array<i64: 3, 16, 128>}, {transform_indices = @transform_2, window_bounds = array<i64: 3, 16, 128>}, {transform_indices = @transform_3, window_bounds = array<i64: 3, 16, 128>}, {transform_indices = @transform_4, window_bounds = array<i64: 3, 16, 128>}, {transform_indices = @transform_5, window_bounds = array<i64: 4, 16, 128>}, {transform_indices = @transform_6, window_bounds = array<i64: 4, 16, 128>}, {transform_indices = @transform_7, window_bounds = array<i64: 4, 16, 128>}, {transform_indices = @transform_8, window_bounds = array<i64: 9, 16, 128>}]} {
    %c0 = arith.constant 0 : index
    %c0_0 = arith.constant 0 : index
    %c0_1 = arith.constant 0 : index
    %0 = vector.load %arg2[%c0, %c0_0, %c0_1] : memref<3x16x128xf32, #tpu.memory_space<vmem>>, vector<1x16x128xf32>
    %1 = vector.shape_cast %0 : vector<1x16x128xf32> to vector<16x128xf32>
    %c1 = arith.constant 1 : index
    %c0_2 = arith.constant 0 : index
    %c0_3 = arith.constant 0 : index
    %2 = vector.load %arg2[%c1, %c0_2, %c0_3] : memref<3x16x128xf32, #tpu.memory_space<vmem>>, vector<1x16x128xf32>
    %3 = vector.shape_cast %2 : vector<1x16x128xf32> to vector<16x128xf32>
    %c2 = arith.constant 2 : index
    %c0_4 = arith.constant 0 : index
    %c0_5 = arith.constant 0 : index
    %4 = vector.load %arg2[%c2, %c0_4, %c0_5] : memref<3x16x128xf32, #tpu.memory_space<vmem>>, vector<1x16x128xf32>
    %5 = vector.shape_cast %4 : vector<1x16x128xf32> to vector<16x128xf32>
    %cst = arith.constant 5.000000e-01 : f32
    %6 = vector.broadcast %cst : f32 to vector<16x128xf32>
    %7 = arith.mulf %1, %6 : vector<16x128xf32>
    %cst_6 = arith.constant 5.000000e-01 : f32
    %8 = vector.broadcast %cst_6 : f32 to vector<16x128xf32>
    %9 = arith.addf %7, %8 : vector<16x128xf32>
    %cst_7 = arith.constant 5.000000e-01 : f32
    %10 = vector.broadcast %cst_7 : f32 to vector<16x128xf32>
    %11 = arith.mulf %3, %10 : vector<16x128xf32>
    %cst_8 = arith.constant 5.000000e-01 : f32
    %12 = vector.broadcast %cst_8 : f32 to vector<16x128xf32>
    %13 = arith.addf %11, %12 : vector<16x128xf32>
    %cst_9 = arith.constant 2.500000e-01 : f32
    %14 = vector.broadcast %cst_9 : f32 to vector<16x128xf32>
    %15 = arith.divf %9, %14 : vector<16x128xf32>
    %16 = math.floor %15 : vector<16x128xf32>
    %cst_10 = arith.constant 1.000000e+00 : f32
    %17 = vector.broadcast %cst_10 : f32 to vector<16x128xf32>
    %18 = arith.subf %17, %13 : vector<16x128xf32>
    %cst_11 = arith.constant 2.500000e-01 : f32
    %19 = vector.broadcast %cst_11 : f32 to vector<16x128xf32>
    %20 = arith.divf %18, %19 : vector<16x128xf32>
    %21 = math.floor %20 : vector<16x128xf32>
    %cst_12 = arith.constant 0.000000e+00 : f32
    %cst_13 = arith.constant 3.000000e+00 : f32
    %22 = vector.broadcast %cst_12 : f32 to vector<16x128xf32>
    %23 = arith.maximumf %22, %16 : vector<16x128xf32>
    %24 = vector.broadcast %cst_13 : f32 to vector<16x128xf32>
    %25 = arith.minimumf %24, %23 : vector<16x128xf32>
    %cst_14 = arith.constant 0.000000e+00 : f32
    %cst_15 = arith.constant 3.000000e+00 : f32
    %26 = vector.broadcast %cst_14 : f32 to vector<16x128xf32>
    %27 = arith.maximumf %26, %21 : vector<16x128xf32>
    %28 = vector.broadcast %cst_15 : f32 to vector<16x128xf32>
    %29 = arith.minimumf %28, %27 : vector<16x128xf32>
    %cst_16 = arith.constant -0.949999988 : f32
    %cst_17 = arith.constant 0.949999988 : f32
    %30 = vector.broadcast %cst_16 : f32 to vector<16x128xf32>
    %31 = arith.maximumf %30, %9 : vector<16x128xf32>
    %32 = vector.broadcast %cst_17 : f32 to vector<16x128xf32>
    %33 = arith.minimumf %32, %31 : vector<16x128xf32>
    %cst_18 = arith.constant -0.949999988 : f32
    %cst_19 = arith.constant 0.949999988 : f32
    %34 = vector.broadcast %cst_18 : f32 to vector<16x128xf32>
    %35 = arith.maximumf %34, %13 : vector<16x128xf32>
    %36 = vector.broadcast %cst_19 : f32 to vector<16x128xf32>
    %37 = arith.minimumf %36, %35 : vector<16x128xf32>
    %cst_20 = arith.constant 5.000000e-01 : f32
    %38 = vector.broadcast %cst_20 : f32 to vector<16x128xf32>
    %39 = arith.addf %25, %38 : vector<16x128xf32>
    %cst_21 = arith.constant 2.500000e-01 : f32
    %40 = vector.broadcast %cst_21 : f32 to vector<16x128xf32>
    %41 = arith.mulf %39, %40 : vector<16x128xf32>
    %cst_22 = arith.constant 5.000000e-01 : f32
    %42 = vector.broadcast %cst_22 : f32 to vector<16x128xf32>
    %43 = arith.addf %29, %42 : vector<16x128xf32>
    %cst_23 = arith.constant 2.500000e-01 : f32
    %44 = vector.broadcast %cst_23 : f32 to vector<16x128xf32>
    %45 = arith.mulf %43, %44 : vector<16x128xf32>
    %cst_24 = arith.constant 1.000000e+00 : f32
    %46 = vector.broadcast %cst_24 : f32 to vector<16x128xf32>
    %47 = arith.subf %46, %45 : vector<16x128xf32>
    %48 = arith.subf %33, %41 : vector<16x128xf32>
    %49 = arith.subf %37, %47 : vector<16x128xf32>
    %cst_25 = arith.constant 9.99999974E-6 : f32
    %50 = vector.broadcast %cst_25 : f32 to vector<16x128xf32>
    %51 = arith.addf %48, %50 : vector<16x128xf32>
    %52 = arith.divf %49, %51 : vector<16x128xf32>
    %cst_26 = arith.constant 1.000000e+00 : f32
    %53 = vector.broadcast %cst_26 : f32 to vector<16x128xf32>
    %54 = arith.cmpf ole, %52, %53 : vector<16x128xf32>
    %cst_27 = arith.constant -1.000000e+00 : f32
    %55 = vector.broadcast %cst_27 : f32 to vector<16x128xf32>
    %56 = arith.cmpf ogt, %52, %55 : vector<16x128xf32>
    %57 = arith.andi %54, %56 : vector<16x128xi1>
    %cst_28 = arith.constant 0.000000e+00 : f32
    %58 = vector.broadcast %cst_28 : f32 to vector<16x128xf32>
    %59 = arith.cmpf oge, %48, %58 : vector<16x128xf32>
    %60 = arith.andi %59, %57 : vector<16x128xi1>
    %cst_29 = arith.constant 0.000000e+00 : f32
    %61 = vector.broadcast %cst_29 : f32 to vector<16x128xf32>
    %62 = arith.cmpf oge, %49, %61 : vector<16x128xf32>
    %cst_30 = arith.constant dense<true> : vector<16x128xi1>
    %63 = arith.xori %57, %cst_30 : vector<16x128xi1>
    %64 = arith.andi %62, %63 : vector<16x128xi1>
    %cst_31 = arith.constant 0.000000e+00 : f32
    %65 = vector.broadcast %cst_31 : f32 to vector<16x128xf32>
    %66 = arith.cmpf olt, %48, %65 : vector<16x128xf32>
    %67 = arith.andi %66, %57 : vector<16x128xi1>
    %68 = arith.fptosi %29 : vector<16x128xf32> to vector<16x128xi32>
    %69 = arith.fptosi %25 : vector<16x128xf32> to vector<16x128xi32>
    %c5_i32 = arith.constant 5 : i32
    %70 = vector.broadcast %c5_i32 : i32 to vector<16x128xi32>
    %71 = arith.muli %68, %70 : vector<16x128xi32>
    %72 = arith.addi %71, %69 : vector<16x128xi32>
    %c1_i32 = arith.constant 1 : i32
    %73 = vector.broadcast %c1_i32 : i32 to vector<16x128xi32>
    %74 = arith.addi %72, %73 : vector<16x128xi32>
    %c5_i32_32 = arith.constant 5 : i32
    %75 = vector.broadcast %c5_i32_32 : i32 to vector<16x128xi32>
    %76 = arith.addi %72, %75 : vector<16x128xi32>
    %c1_i32_33 = arith.constant 1 : i32
    %77 = vector.broadcast %c1_i32_33 : i32 to vector<16x128xi32>
    %78 = arith.addi %76, %77 : vector<16x128xi32>
    %c4_i32 = arith.constant 4 : i32
    %79 = vector.broadcast %c4_i32 : i32 to vector<16x128xi32>
    %80 = arith.muli %68, %79 : vector<16x128xi32>
    %81 = arith.addi %80, %69 : vector<16x128xi32>
    %c25_i32 = arith.constant 25 : i32
    %82 = vector.broadcast %c25_i32 : i32 to vector<16x128xi32>
    %83 = arith.addi %81, %82 : vector<16x128xi32>
    %84 = arith.select %67, %76, %78 : vector<16x128xi1>, vector<16x128xi32>
    %85 = arith.select %64, %72, %84 : vector<16x128xi1>, vector<16x128xi32>
    %86 = arith.select %60, %74, %85 : vector<16x128xi1>, vector<16x128xi32>
    %87 = arith.select %67, %72, %76 : vector<16x128xi1>, vector<16x128xi32>
    %88 = arith.select %64, %74, %87 : vector<16x128xi1>, vector<16x128xi32>
    %89 = arith.select %60, %78, %88 : vector<16x128xi1>, vector<16x128xi32>
    %cst_34 = arith.constant 2.500000e-01 : f32
    %90 = vector.broadcast %cst_34 : f32 to vector<16x128xf32>
    %91 = arith.mulf %25, %90 : vector<16x128xf32>
    %cst_35 = arith.constant 2.000000e+00 : f32
    %92 = vector.broadcast %cst_35 : f32 to vector<16x128xf32>
    %93 = arith.mulf %92, %91 : vector<16x128xf32>
    %cst_36 = arith.constant 1.000000e+00 : f32
    %94 = vector.broadcast %cst_36 : f32 to vector<16x128xf32>
    %95 = arith.subf %93, %94 : vector<16x128xf32>
    %cst_37 = arith.constant 2.500000e-01 : f32
    %96 = vector.broadcast %cst_37 : f32 to vector<16x128xf32>
    %97 = arith.mulf %29, %96 : vector<16x128xf32>
    %cst_38 = arith.constant 1.000000e+00 : f32
    %98 = vector.broadcast %cst_38 : f32 to vector<16x128xf32>
    %99 = arith.subf %98, %97 : vector<16x128xf32>
    %cst_39 = arith.constant 2.000000e+00 : f32
    %100 = vector.broadcast %cst_39 : f32 to vector<16x128xf32>
    %101 = arith.mulf %100, %99 : vector<16x128xf32>
    %cst_40 = arith.constant 1.000000e+00 : f32
    %102 = vector.broadcast %cst_40 : f32 to vector<16x128xf32>
    %103 = arith.subf %101, %102 : vector<16x128xf32>
    %cst_41 = arith.constant 5.000000e-01 : f32
    %104 = vector.broadcast %cst_41 : f32 to vector<16x128xf32>
    %105 = arith.addf %95, %104 : vector<16x128xf32>
    %cst_42 = arith.constant 5.000000e-01 : f32
    %106 = vector.broadcast %cst_42 : f32 to vector<16x128xf32>
    %107 = arith.subf %103, %106 : vector<16x128xf32>
    %cst_43 = arith.constant 2.000000e+00 : f32
    %108 = vector.broadcast %cst_43 : f32 to vector<16x128xf32>
    %109 = arith.mulf %108, %41 : vector<16x128xf32>
    %cst_44 = arith.constant 1.000000e+00 : f32
    %110 = vector.broadcast %cst_44 : f32 to vector<16x128xf32>
    %111 = arith.subf %109, %110 : vector<16x128xf32>
    %cst_45 = arith.constant 2.000000e+00 : f32
    %112 = vector.broadcast %cst_45 : f32 to vector<16x128xf32>
    %113 = arith.mulf %112, %47 : vector<16x128xf32>
    %cst_46 = arith.constant 1.000000e+00 : f32
    %114 = vector.broadcast %cst_46 : f32 to vector<16x128xf32>
    %115 = arith.subf %113, %114 : vector<16x128xf32>
    %116 = arith.select %67, %95, %105 : vector<16x128xi1>, vector<16x128xf32>
    %117 = arith.select %64, %95, %116 : vector<16x128xi1>, vector<16x128xf32>
    %118 = arith.select %60, %105, %117 : vector<16x128xi1>, vector<16x128xf32>
    %119 = arith.select %67, %107, %107 : vector<16x128xi1>, vector<16x128xf32>
    %120 = arith.select %64, %103, %119 : vector<16x128xi1>, vector<16x128xf32>
    %121 = arith.select %60, %103, %120 : vector<16x128xi1>, vector<16x128xf32>
    %122 = arith.select %67, %95, %95 : vector<16x128xi1>, vector<16x128xf32>
    %123 = arith.select %64, %105, %122 : vector<16x128xi1>, vector<16x128xf32>
    %124 = arith.select %60, %105, %123 : vector<16x128xi1>, vector<16x128xf32>
    %125 = arith.select %67, %103, %107 : vector<16x128xi1>, vector<16x128xf32>
    %126 = arith.select %64, %103, %125 : vector<16x128xi1>, vector<16x128xf32>
    %127 = arith.select %60, %107, %126 : vector<16x128xi1>, vector<16x128xf32>
    %128 = arith.subf %1, %118 : vector<16x128xf32>
    %129 = arith.subf %3, %127 : vector<16x128xf32>
    %130 = arith.mulf %128, %129 : vector<16x128xf32>
    %131 = arith.subf %3, %121 : vector<16x128xf32>
    %132 = arith.subf %1, %124 : vector<16x128xf32>
    %133 = arith.mulf %131, %132 : vector<16x128xf32>
    %134 = arith.subf %130, %133 : vector<16x128xf32>
    %135 = math.absf %134 : vector<16x128xf32>
    %cst_47 = arith.constant 5.000000e-01 : f32
    %136 = vector.broadcast %cst_47 : f32 to vector<16x128xf32>
    %137 = arith.mulf %135, %136 : vector<16x128xf32>
    %138 = arith.subf %1, %111 : vector<16x128xf32>
    %139 = arith.subf %3, %127 : vector<16x128xf32>
    %140 = arith.mulf %138, %139 : vector<16x128xf32>
    %141 = arith.subf %3, %115 : vector<16x128xf32>
    %142 = arith.subf %1, %124 : vector<16x128xf32>
    %143 = arith.mulf %141, %142 : vector<16x128xf32>
    %144 = arith.subf %140, %143 : vector<16x128xf32>
    %145 = math.absf %144 : vector<16x128xf32>
    %cst_48 = arith.constant 5.000000e-01 : f32
    %146 = vector.broadcast %cst_48 : f32 to vector<16x128xf32>
    %147 = arith.mulf %145, %146 : vector<16x128xf32>
    %148 = arith.subf %1, %111 : vector<16x128xf32>
    %149 = arith.subf %3, %121 : vector<16x128xf32>
    %150 = arith.mulf %148, %149 : vector<16x128xf32>
    %151 = arith.subf %3, %115 : vector<16x128xf32>
    %152 = arith.subf %1, %118 : vector<16x128xf32>
    %153 = arith.mulf %151, %152 : vector<16x128xf32>
    %154 = arith.subf %150, %153 : vector<16x128xf32>
    %155 = math.absf %154 : vector<16x128xf32>
    %cst_49 = arith.constant 5.000000e-01 : f32
    %156 = vector.broadcast %cst_49 : f32 to vector<16x128xf32>
    %157 = arith.mulf %155, %156 : vector<16x128xf32>
    %cst_50 = arith.constant 0.000000e+00 : f32
    %158 = vector.broadcast %cst_50 : f32 to vector<16x128xf32>
    %c25_i32_51 = arith.constant 25 : i32
    %159 = vector.broadcast %c25_i32_51 : i32 to vector<16x128xi32>
    %160 = arith.cmpi eq, %83, %159 : vector<16x128xi32>
    %c0_52 = arith.constant 0 : index
    %c25 = arith.constant 25 : index
    %161 = memref.load %arg1[%c0_52, %c25] : memref<6x41xf32, #tpu.memory_space<smem>>
    %162 = vector.broadcast %161 : f32 to vector<16x128xf32>
    %163 = arith.select %160, %162, %158 : vector<16x128xi1>, vector<16x128xf32>
    %c1_53 = arith.constant 1 : index
    %c25_54 = arith.constant 25 : index
    %164 = memref.load %arg1[%c1_53, %c25_54] : memref<6x41xf32, #tpu.memory_space<smem>>
    %165 = vector.broadcast %164 : f32 to vector<16x128xf32>
    %166 = arith.select %160, %165, %158 : vector<16x128xi1>, vector<16x128xf32>
    %c26_i32 = arith.constant 26 : i32
    %167 = vector.broadcast %c26_i32 : i32 to vector<16x128xi32>
    %168 = arith.cmpi eq, %83, %167 : vector<16x128xi32>
    %c0_55 = arith.constant 0 : index
    %c26 = arith.constant 26 : index
    %169 = memref.load %arg1[%c0_55, %c26] : memref<6x41xf32, #tpu.memory_space<smem>>
    %170 = vector.broadcast %169 : f32 to vector<16x128xf32>
    %171 = arith.select %168, %170, %163 : vector<16x128xi1>, vector<16x128xf32>
    %c1_56 = arith.constant 1 : index
    %c26_57 = arith.constant 26 : index
    %172 = memref.load %arg1[%c1_56, %c26_57] : memref<6x41xf32, #tpu.memory_space<smem>>
    %173 = vector.broadcast %172 : f32 to vector<16x128xf32>
    %174 = arith.select %168, %173, %166 : vector<16x128xi1>, vector<16x128xf32>
    %c27_i32 = arith.constant 27 : i32
    %175 = vector.broadcast %c27_i32 : i32 to vector<16x128xi32>
    %176 = arith.cmpi eq, %83, %175 : vector<16x128xi32>
    %c0_58 = arith.constant 0 : index
    %c27 = arith.constant 27 : index
    %177 = memref.load %arg1[%c0_58, %c27] : memref<6x41xf32, #tpu.memory_space<smem>>
    %178 = vector.broadcast %177 : f32 to vector<16x128xf32>
    %179 = arith.select %176, %178, %171 : vector<16x128xi1>, vector<16x128xf32>
    %c1_59 = arith.constant 1 : index
    %c27_60 = arith.constant 27 : index
    %180 = memref.load %arg1[%c1_59, %c27_60] : memref<6x41xf32, #tpu.memory_space<smem>>
    %181 = vector.broadcast %180 : f32 to vector<16x128xf32>
    %182 = arith.select %176, %181, %174 : vector<16x128xi1>, vector<16x128xf32>
    %c28_i32 = arith.constant 28 : i32
    %183 = vector.broadcast %c28_i32 : i32 to vector<16x128xi32>
    %184 = arith.cmpi eq, %83, %183 : vector<16x128xi32>
    %c0_61 = arith.constant 0 : index
    %c28 = arith.constant 28 : index
    %185 = memref.load %arg1[%c0_61, %c28] : memref<6x41xf32, #tpu.memory_space<smem>>
    %186 = vector.broadcast %185 : f32 to vector<16x128xf32>
    %187 = arith.select %184, %186, %179 : vector<16x128xi1>, vector<16x128xf32>
    %c1_62 = arith.constant 1 : index
    %c28_63 = arith.constant 28 : index
    %188 = memref.load %arg1[%c1_62, %c28_63] : memref<6x41xf32, #tpu.memory_space<smem>>
    %189 = vector.broadcast %188 : f32 to vector<16x128xf32>
    %190 = arith.select %184, %189, %182 : vector<16x128xi1>, vector<16x128xf32>
    %c29_i32 = arith.constant 29 : i32
    %191 = vector.broadcast %c29_i32 : i32 to vector<16x128xi32>
    %192 = arith.cmpi eq, %83, %191 : vector<16x128xi32>
    %c0_64 = arith.constant 0 : index
    %c29 = arith.constant 29 : index
    %193 = memref.load %arg1[%c0_64, %c29] : memref<6x41xf32, #tpu.memory_space<smem>>
    %194 = vector.broadcast %193 : f32 to vector<16x128xf32>
    %195 = arith.select %192, %194, %187 : vector<16x128xi1>, vector<16x128xf32>
    %c1_65 = arith.constant 1 : index
    %c29_66 = arith.constant 29 : index
    %196 = memref.load %arg1[%c1_65, %c29_66] : memref<6x41xf32, #tpu.memory_space<smem>>
    %197 = vector.broadcast %196 : f32 to vector<16x128xf32>
    %198 = arith.select %192, %197, %190 : vector<16x128xi1>, vector<16x128xf32>
    %c30_i32 = arith.constant 30 : i32
    %199 = vector.broadcast %c30_i32 : i32 to vector<16x128xi32>
    %200 = arith.cmpi eq, %83, %199 : vector<16x128xi32>
    %c0_67 = arith.constant 0 : index
    %c30 = arith.constant 30 : index
    %201 = memref.load %arg1[%c0_67, %c30] : memref<6x41xf32, #tpu.memory_space<smem>>
    %202 = vector.broadcast %201 : f32 to vector<16x128xf32>
    %203 = arith.select %200, %202, %195 : vector<16x128xi1>, vector<16x128xf32>
    %c1_68 = arith.constant 1 : index
    %c30_69 = arith.constant 30 : index
    %204 = memref.load %arg1[%c1_68, %c30_69] : memref<6x41xf32, #tpu.memory_space<smem>>
    %205 = vector.broadcast %204 : f32 to vector<16x128xf32>
    %206 = arith.select %200, %205, %198 : vector<16x128xi1>, vector<16x128xf32>
    %c31_i32 = arith.constant 31 : i32
    %207 = vector.broadcast %c31_i32 : i32 to vector<16x128xi32>
    %208 = arith.cmpi eq, %83, %207 : vector<16x128xi32>
    %c0_70 = arith.constant 0 : index
    %c31 = arith.constant 31 : index
    %209 = memref.load %arg1[%c0_70, %c31] : memref<6x41xf32, #tpu.memory_space<smem>>
    %210 = vector.broadcast %209 : f32 to vector<16x128xf32>
    %211 = arith.select %208, %210, %203 : vector<16x128xi1>, vector<16x128xf32>
    %c1_71 = arith.constant 1 : index
    %c31_72 = arith.constant 31 : index
    %212 = memref.load %arg1[%c1_71, %c31_72] : memref<6x41xf32, #tpu.memory_space<smem>>
    %213 = vector.broadcast %212 : f32 to vector<16x128xf32>
    %214 = arith.select %208, %213, %206 : vector<16x128xi1>, vector<16x128xf32>
    %c32_i32 = arith.constant 32 : i32
    %215 = vector.broadcast %c32_i32 : i32 to vector<16x128xi32>
    %216 = arith.cmpi eq, %83, %215 : vector<16x128xi32>
    %c0_73 = arith.constant 0 : index
    %c32 = arith.constant 32 : index
    %217 = memref.load %arg1[%c0_73, %c32] : memref<6x41xf32, #tpu.memory_space<smem>>
    %218 = vector.broadcast %217 : f32 to vector<16x128xf32>
    %219 = arith.select %216, %218, %211 : vector<16x128xi1>, vector<16x128xf32>
    %c1_74 = arith.constant 1 : index
    %c32_75 = arith.constant 32 : index
    %220 = memref.load %arg1[%c1_74, %c32_75] : memref<6x41xf32, #tpu.memory_space<smem>>
    %221 = vector.broadcast %220 : f32 to vector<16x128xf32>
    %222 = arith.select %216, %221, %214 : vector<16x128xi1>, vector<16x128xf32>
    %c33_i32 = arith.constant 33 : i32
    %223 = vector.broadcast %c33_i32 : i32 to vector<16x128xi32>
    %224 = arith.cmpi eq, %83, %223 : vector<16x128xi32>
    %c0_76 = arith.constant 0 : index
    %c33 = arith.constant 33 : index
    %225 = memref.load %arg1[%c0_76, %c33] : memref<6x41xf32, #tpu.memory_space<smem>>
    %226 = vector.broadcast %225 : f32 to vector<16x128xf32>
    %227 = arith.select %224, %226, %219 : vector<16x128xi1>, vector<16x128xf32>
    %c1_77 = arith.constant 1 : index
    %c33_78 = arith.constant 33 : index
    %228 = memref.load %arg1[%c1_77, %c33_78] : memref<6x41xf32, #tpu.memory_space<smem>>
    %229 = vector.broadcast %228 : f32 to vector<16x128xf32>
    %230 = arith.select %224, %229, %222 : vector<16x128xi1>, vector<16x128xf32>
    %c34_i32 = arith.constant 34 : i32
    %231 = vector.broadcast %c34_i32 : i32 to vector<16x128xi32>
    %232 = arith.cmpi eq, %83, %231 : vector<16x128xi32>
    %c0_79 = arith.constant 0 : index
    %c34 = arith.constant 34 : index
    %233 = memref.load %arg1[%c0_79, %c34] : memref<6x41xf32, #tpu.memory_space<smem>>
    %234 = vector.broadcast %233 : f32 to vector<16x128xf32>
    %235 = arith.select %232, %234, %227 : vector<16x128xi1>, vector<16x128xf32>
    %c1_80 = arith.constant 1 : index
    %c34_81 = arith.constant 34 : index
    %236 = memref.load %arg1[%c1_80, %c34_81] : memref<6x41xf32, #tpu.memory_space<smem>>
    %237 = vector.broadcast %236 : f32 to vector<16x128xf32>
    %238 = arith.select %232, %237, %230 : vector<16x128xi1>, vector<16x128xf32>
    %c35_i32 = arith.constant 35 : i32
    %239 = vector.broadcast %c35_i32 : i32 to vector<16x128xi32>
    %240 = arith.cmpi eq, %83, %239 : vector<16x128xi32>
    %c0_82 = arith.constant 0 : index
    %c35 = arith.constant 35 : index
    %241 = memref.load %arg1[%c0_82, %c35] : memref<6x41xf32, #tpu.memory_space<smem>>
    %242 = vector.broadcast %241 : f32 to vector<16x128xf32>
    %243 = arith.select %240, %242, %235 : vector<16x128xi1>, vector<16x128xf32>
    %c1_83 = arith.constant 1 : index
    %c35_84 = arith.constant 35 : index
    %244 = memref.load %arg1[%c1_83, %c35_84] : memref<6x41xf32, #tpu.memory_space<smem>>
    %245 = vector.broadcast %244 : f32 to vector<16x128xf32>
    %246 = arith.select %240, %245, %238 : vector<16x128xi1>, vector<16x128xf32>
    %c36_i32 = arith.constant 36 : i32
    %247 = vector.broadcast %c36_i32 : i32 to vector<16x128xi32>
    %248 = arith.cmpi eq, %83, %247 : vector<16x128xi32>
    %c0_85 = arith.constant 0 : index
    %c36 = arith.constant 36 : index
    %249 = memref.load %arg1[%c0_85, %c36] : memref<6x41xf32, #tpu.memory_space<smem>>
    %250 = vector.broadcast %249 : f32 to vector<16x128xf32>
    %251 = arith.select %248, %250, %243 : vector<16x128xi1>, vector<16x128xf32>
    %c1_86 = arith.constant 1 : index
    %c36_87 = arith.constant 36 : index
    %252 = memref.load %arg1[%c1_86, %c36_87] : memref<6x41xf32, #tpu.memory_space<smem>>
    %253 = vector.broadcast %252 : f32 to vector<16x128xf32>
    %254 = arith.select %248, %253, %246 : vector<16x128xi1>, vector<16x128xf32>
    %c37_i32 = arith.constant 37 : i32
    %255 = vector.broadcast %c37_i32 : i32 to vector<16x128xi32>
    %256 = arith.cmpi eq, %83, %255 : vector<16x128xi32>
    %c0_88 = arith.constant 0 : index
    %c37 = arith.constant 37 : index
    %257 = memref.load %arg1[%c0_88, %c37] : memref<6x41xf32, #tpu.memory_space<smem>>
    %258 = vector.broadcast %257 : f32 to vector<16x128xf32>
    %259 = arith.select %256, %258, %251 : vector<16x128xi1>, vector<16x128xf32>
    %c1_89 = arith.constant 1 : index
    %c37_90 = arith.constant 37 : index
    %260 = memref.load %arg1[%c1_89, %c37_90] : memref<6x41xf32, #tpu.memory_space<smem>>
    %261 = vector.broadcast %260 : f32 to vector<16x128xf32>
    %262 = arith.select %256, %261, %254 : vector<16x128xi1>, vector<16x128xf32>
    %c38_i32 = arith.constant 38 : i32
    %263 = vector.broadcast %c38_i32 : i32 to vector<16x128xi32>
    %264 = arith.cmpi eq, %83, %263 : vector<16x128xi32>
    %c0_91 = arith.constant 0 : index
    %c38 = arith.constant 38 : index
    %265 = memref.load %arg1[%c0_91, %c38] : memref<6x41xf32, #tpu.memory_space<smem>>
    %266 = vector.broadcast %265 : f32 to vector<16x128xf32>
    %267 = arith.select %264, %266, %259 : vector<16x128xi1>, vector<16x128xf32>
    %c1_92 = arith.constant 1 : index
    %c38_93 = arith.constant 38 : index
    %268 = memref.load %arg1[%c1_92, %c38_93] : memref<6x41xf32, #tpu.memory_space<smem>>
    %269 = vector.broadcast %268 : f32 to vector<16x128xf32>
    %270 = arith.select %264, %269, %262 : vector<16x128xi1>, vector<16x128xf32>
    %c39_i32 = arith.constant 39 : i32
    %271 = vector.broadcast %c39_i32 : i32 to vector<16x128xi32>
    %272 = arith.cmpi eq, %83, %271 : vector<16x128xi32>
    %c0_94 = arith.constant 0 : index
    %c39 = arith.constant 39 : index
    %273 = memref.load %arg1[%c0_94, %c39] : memref<6x41xf32, #tpu.memory_space<smem>>
    %274 = vector.broadcast %273 : f32 to vector<16x128xf32>
    %275 = arith.select %272, %274, %267 : vector<16x128xi1>, vector<16x128xf32>
    %c1_95 = arith.constant 1 : index
    %c39_96 = arith.constant 39 : index
    %276 = memref.load %arg1[%c1_95, %c39_96] : memref<6x41xf32, #tpu.memory_space<smem>>
    %277 = vector.broadcast %276 : f32 to vector<16x128xf32>
    %278 = arith.select %272, %277, %270 : vector<16x128xi1>, vector<16x128xf32>
    %c40_i32 = arith.constant 40 : i32
    %279 = vector.broadcast %c40_i32 : i32 to vector<16x128xi32>
    %280 = arith.cmpi eq, %83, %279 : vector<16x128xi32>
    %c0_97 = arith.constant 0 : index
    %c40 = arith.constant 40 : index
    %281 = memref.load %arg1[%c0_97, %c40] : memref<6x41xf32, #tpu.memory_space<smem>>
    %282 = vector.broadcast %281 : f32 to vector<16x128xf32>
    %283 = arith.select %280, %282, %275 : vector<16x128xi1>, vector<16x128xf32>
    %c1_98 = arith.constant 1 : index
    %c40_99 = arith.constant 40 : index
    %284 = memref.load %arg1[%c1_98, %c40_99] : memref<6x41xf32, #tpu.memory_space<smem>>
    %285 = vector.broadcast %284 : f32 to vector<16x128xf32>
    %286 = arith.select %280, %285, %278 : vector<16x128xi1>, vector<16x128xf32>
    %c0_100 = arith.constant 0 : index
    %c0_101 = arith.constant 0 : index
    %287 = memref.load %arg1[%c0_100, %c0_101] : memref<6x41xf32, #tpu.memory_space<smem>>
    %c1_102 = arith.constant 1 : index
    %c0_103 = arith.constant 0 : index
    %288 = memref.load %arg1[%c1_102, %c0_103] : memref<6x41xf32, #tpu.memory_space<smem>>
    %c0_i32 = arith.constant 0 : i32
    %289 = vector.broadcast %c0_i32 : i32 to vector<16x128xi32>
    %290 = arith.cmpi eq, %86, %289 : vector<16x128xi32>
    %c0_i32_104 = arith.constant 0 : i32
    %291 = vector.broadcast %c0_i32_104 : i32 to vector<16x128xi32>
    %292 = arith.cmpi eq, %89, %291 : vector<16x128xi32>
    %293 = vector.broadcast %287 : f32 to vector<16x128xf32>
    %294 = arith.select %290, %293, %158 : vector<16x128xi1>, vector<16x128xf32>
    %295 = vector.broadcast %288 : f32 to vector<16x128xf32>
    %296 = arith.select %290, %295, %158 : vector<16x128xi1>, vector<16x128xf32>
    %297 = vector.broadcast %287 : f32 to vector<16x128xf32>
    %298 = arith.select %292, %297, %158 : vector<16x128xi1>, vector<16x128xf32>
    %299 = vector.broadcast %288 : f32 to vector<16x128xf32>
    %300 = arith.select %292, %299, %158 : vector<16x128xi1>, vector<16x128xf32>
    %c0_105 = arith.constant 0 : index
    %c1_106 = arith.constant 1 : index
    %301 = memref.load %arg1[%c0_105, %c1_106] : memref<6x41xf32, #tpu.memory_space<smem>>
    %c1_107 = arith.constant 1 : index
    %c1_108 = arith.constant 1 : index
    %302 = memref.load %arg1[%c1_107, %c1_108] : memref<6x41xf32, #tpu.memory_space<smem>>
    %c1_i32_109 = arith.constant 1 : i32
    %303 = vector.broadcast %c1_i32_109 : i32 to vector<16x128xi32>
    %304 = arith.cmpi eq, %86, %303 : vector<16x128xi32>
    %c1_i32_110 = arith.constant 1 : i32
    %305 = vector.broadcast %c1_i32_110 : i32 to vector<16x128xi32>
    %306 = arith.cmpi eq, %89, %305 : vector<16x128xi32>
    %307 = vector.broadcast %301 : f32 to vector<16x128xf32>
    %308 = arith.select %304, %307, %294 : vector<16x128xi1>, vector<16x128xf32>
    %309 = vector.broadcast %302 : f32 to vector<16x128xf32>
    %310 = arith.select %304, %309, %296 : vector<16x128xi1>, vector<16x128xf32>
    %311 = vector.broadcast %301 : f32 to vector<16x128xf32>
    %312 = arith.select %306, %311, %298 : vector<16x128xi1>, vector<16x128xf32>
    %313 = vector.broadcast %302 : f32 to vector<16x128xf32>
    %314 = arith.select %306, %313, %300 : vector<16x128xi1>, vector<16x128xf32>
    %c0_111 = arith.constant 0 : index
    %c2_112 = arith.constant 2 : index
    %315 = memref.load %arg1[%c0_111, %c2_112] : memref<6x41xf32, #tpu.memory_space<smem>>
    %c1_113 = arith.constant 1 : index
    %c2_114 = arith.constant 2 : index
    %316 = memref.load %arg1[%c1_113, %c2_114] : memref<6x41xf32, #tpu.memory_space<smem>>
    %c2_i32 = arith.constant 2 : i32
    %317 = vector.broadcast %c2_i32 : i32 to vector<16x128xi32>
    %318 = arith.cmpi eq, %86, %317 : vector<16x128xi32>
    %c2_i32_115 = arith.constant 2 : i32
    %319 = vector.broadcast %c2_i32_115 : i32 to vector<16x128xi32>
    %320 = arith.cmpi eq, %89, %319 : vector<16x128xi32>
    %321 = vector.broadcast %315 : f32 to vector<16x128xf32>
    %322 = arith.select %318, %321, %308 : vector<16x128xi1>, vector<16x128xf32>
    %323 = vector.broadcast %316 : f32 to vector<16x128xf32>
    %324 = arith.select %318, %323, %310 : vector<16x128xi1>, vector<16x128xf32>
    %325 = vector.broadcast %315 : f32 to vector<16x128xf32>
    %326 = arith.select %320, %325, %312 : vector<16x128xi1>, vector<16x128xf32>
    %327 = vector.broadcast %316 : f32 to vector<16x128xf32>
    %328 = arith.select %320, %327, %314 : vector<16x128xi1>, vector<16x128xf32>
    %c0_116 = arith.constant 0 : index
    %c3 = arith.constant 3 : index
    %329 = memref.load %arg1[%c0_116, %c3] : memref<6x41xf32, #tpu.memory_space<smem>>
    %c1_117 = arith.constant 1 : index
    %c3_118 = arith.constant 3 : index
    %330 = memref.load %arg1[%c1_117, %c3_118] : memref<6x41xf32, #tpu.memory_space<smem>>
    %c3_i32 = arith.constant 3 : i32
    %331 = vector.broadcast %c3_i32 : i32 to vector<16x128xi32>
    %332 = arith.cmpi eq, %86, %331 : vector<16x128xi32>
    %c3_i32_119 = arith.constant 3 : i32
    %333 = vector.broadcast %c3_i32_119 : i32 to vector<16x128xi32>
    %334 = arith.cmpi eq, %89, %333 : vector<16x128xi32>
    %335 = vector.broadcast %329 : f32 to vector<16x128xf32>
    %336 = arith.select %332, %335, %322 : vector<16x128xi1>, vector<16x128xf32>
    %337 = vector.broadcast %330 : f32 to vector<16x128xf32>
    %338 = arith.select %332, %337, %324 : vector<16x128xi1>, vector<16x128xf32>
    %339 = vector.broadcast %329 : f32 to vector<16x128xf32>
    %340 = arith.select %334, %339, %326 : vector<16x128xi1>, vector<16x128xf32>
    %341 = vector.broadcast %330 : f32 to vector<16x128xf32>
    %342 = arith.select %334, %341, %328 : vector<16x128xi1>, vector<16x128xf32>
    %c0_120 = arith.constant 0 : index
    %c4 = arith.constant 4 : index
    %343 = memref.load %arg1[%c0_120, %c4] : memref<6x41xf32, #tpu.memory_space<smem>>
    %c1_121 = arith.constant 1 : index
    %c4_122 = arith.constant 4 : index
    %344 = memref.load %arg1[%c1_121, %c4_122] : memref<6x41xf32, #tpu.memory_space<smem>>
    %c4_i32_123 = arith.constant 4 : i32
    %345 = vector.broadcast %c4_i32_123 : i32 to vector<16x128xi32>
    %346 = arith.cmpi eq, %86, %345 : vector<16x128xi32>
    %c4_i32_124 = arith.constant 4 : i32
    %347 = vector.broadcast %c4_i32_124 : i32 to vector<16x128xi32>
    %348 = arith.cmpi eq, %89, %347 : vector<16x128xi32>
    %349 = vector.broadcast %343 : f32 to vector<16x128xf32>
    %350 = arith.select %346, %349, %336 : vector<16x128xi1>, vector<16x128xf32>
    %351 = vector.broadcast %344 : f32 to vector<16x128xf32>
    %352 = arith.select %346, %351, %338 : vector<16x128xi1>, vector<16x128xf32>
    %353 = vector.broadcast %343 : f32 to vector<16x128xf32>
    %354 = arith.select %348, %353, %340 : vector<16x128xi1>, vector<16x128xf32>
    %355 = vector.broadcast %344 : f32 to vector<16x128xf32>
    %356 = arith.select %348, %355, %342 : vector<16x128xi1>, vector<16x128xf32>
    %c0_125 = arith.constant 0 : index
    %c5 = arith.constant 5 : index
    %357 = memref.load %arg1[%c0_125, %c5] : memref<6x41xf32, #tpu.memory_space<smem>>
    %c1_126 = arith.constant 1 : index
    %c5_127 = arith.constant 5 : index
    %358 = memref.load %arg1[%c1_126, %c5_127] : memref<6x41xf32, #tpu.memory_space<smem>>
    %c5_i32_128 = arith.constant 5 : i32
    %359 = vector.broadcast %c5_i32_128 : i32 to vector<16x128xi32>
    %360 = arith.cmpi eq, %86, %359 : vector<16x128xi32>
    %c5_i32_129 = arith.constant 5 : i32
    %361 = vector.broadcast %c5_i32_129 : i32 to vector<16x128xi32>
    %362 = arith.cmpi eq, %89, %361 : vector<16x128xi32>
    %363 = vector.broadcast %357 : f32 to vector<16x128xf32>
    %364 = arith.select %360, %363, %350 : vector<16x128xi1>, vector<16x128xf32>
    %365 = vector.broadcast %358 : f32 to vector<16x128xf32>
    %366 = arith.select %360, %365, %352 : vector<16x128xi1>, vector<16x128xf32>
    %367 = vector.broadcast %357 : f32 to vector<16x128xf32>
    %368 = arith.select %362, %367, %354 : vector<16x128xi1>, vector<16x128xf32>
    %369 = vector.broadcast %358 : f32 to vector<16x128xf32>
    %370 = arith.select %362, %369, %356 : vector<16x128xi1>, vector<16x128xf32>
    %c0_130 = arith.constant 0 : index
    %c6 = arith.constant 6 : index
    %371 = memref.load %arg1[%c0_130, %c6] : memref<6x41xf32, #tpu.memory_space<smem>>
    %c1_131 = arith.constant 1 : index
    %c6_132 = arith.constant 6 : index
    %372 = memref.load %arg1[%c1_131, %c6_132] : memref<6x41xf32, #tpu.memory_space<smem>>
    %c6_i32 = arith.constant 6 : i32
    %373 = vector.broadcast %c6_i32 : i32 to vector<16x128xi32>
    %374 = arith.cmpi eq, %86, %373 : vector<16x128xi32>
    %c6_i32_133 = arith.constant 6 : i32
    %375 = vector.broadcast %c6_i32_133 : i32 to vector<16x128xi32>
    %376 = arith.cmpi eq, %89, %375 : vector<16x128xi32>
    %377 = vector.broadcast %371 : f32 to vector<16x128xf32>
    %378 = arith.select %374, %377, %364 : vector<16x128xi1>, vector<16x128xf32>
    %379 = vector.broadcast %372 : f32 to vector<16x128xf32>
    %380 = arith.select %374, %379, %366 : vector<16x128xi1>, vector<16x128xf32>
    %381 = vector.broadcast %371 : f32 to vector<16x128xf32>
    %382 = arith.select %376, %381, %368 : vector<16x128xi1>, vector<16x128xf32>
    %383 = vector.broadcast %372 : f32 to vector<16x128xf32>
    %384 = arith.select %376, %383, %370 : vector<16x128xi1>, vector<16x128xf32>
    %c0_134 = arith.constant 0 : index
    %c7 = arith.constant 7 : index
    %385 = memref.load %arg1[%c0_134, %c7] : memref<6x41xf32, #tpu.memory_space<smem>>
    %c1_135 = arith.constant 1 : index
    %c7_136 = arith.constant 7 : index
    %386 = memref.load %arg1[%c1_135, %c7_136] : memref<6x41xf32, #tpu.memory_space<smem>>
    %c7_i32 = arith.constant 7 : i32
    %387 = vector.broadcast %c7_i32 : i32 to vector<16x128xi32>
    %388 = arith.cmpi eq, %86, %387 : vector<16x128xi32>
    %c7_i32_137 = arith.constant 7 : i32
    %389 = vector.broadcast %c7_i32_137 : i32 to vector<16x128xi32>
    %390 = arith.cmpi eq, %89, %389 : vector<16x128xi32>
    %391 = vector.broadcast %385 : f32 to vector<16x128xf32>
    %392 = arith.select %388, %391, %378 : vector<16x128xi1>, vector<16x128xf32>
    %393 = vector.broadcast %386 : f32 to vector<16x128xf32>
    %394 = arith.select %388, %393, %380 : vector<16x128xi1>, vector<16x128xf32>
    %395 = vector.broadcast %385 : f32 to vector<16x128xf32>
    %396 = arith.select %390, %395, %382 : vector<16x128xi1>, vector<16x128xf32>
    %397 = vector.broadcast %386 : f32 to vector<16x128xf32>
    %398 = arith.select %390, %397, %384 : vector<16x128xi1>, vector<16x128xf32>
    %c0_138 = arith.constant 0 : index
    %c8 = arith.constant 8 : index
    %399 = memref.load %arg1[%c0_138, %c8] : memref<6x41xf32, #tpu.memory_space<smem>>
    %c1_139 = arith.constant 1 : index
    %c8_140 = arith.constant 8 : index
    %400 = memref.load %arg1[%c1_139, %c8_140] : memref<6x41xf32, #tpu.memory_space<smem>>
    %c8_i32 = arith.constant 8 : i32
    %401 = vector.broadcast %c8_i32 : i32 to vector<16x128xi32>
    %402 = arith.cmpi eq, %86, %401 : vector<16x128xi32>
    %c8_i32_141 = arith.constant 8 : i32
    %403 = vector.broadcast %c8_i32_141 : i32 to vector<16x128xi32>
    %404 = arith.cmpi eq, %89, %403 : vector<16x128xi32>
    %405 = vector.broadcast %399 : f32 to vector<16x128xf32>
    %406 = arith.select %402, %405, %392 : vector<16x128xi1>, vector<16x128xf32>
    %407 = vector.broadcast %400 : f32 to vector<16x128xf32>
    %408 = arith.select %402, %407, %394 : vector<16x128xi1>, vector<16x128xf32>
    %409 = vector.broadcast %399 : f32 to vector<16x128xf32>
    %410 = arith.select %404, %409, %396 : vector<16x128xi1>, vector<16x128xf32>
    %411 = vector.broadcast %400 : f32 to vector<16x128xf32>
    %412 = arith.select %404, %411, %398 : vector<16x128xi1>, vector<16x128xf32>
    %c0_142 = arith.constant 0 : index
    %c9 = arith.constant 9 : index
    %413 = memref.load %arg1[%c0_142, %c9] : memref<6x41xf32, #tpu.memory_space<smem>>
    %c1_143 = arith.constant 1 : index
    %c9_144 = arith.constant 9 : index
    %414 = memref.load %arg1[%c1_143, %c9_144] : memref<6x41xf32, #tpu.memory_space<smem>>
    %c9_i32 = arith.constant 9 : i32
    %415 = vector.broadcast %c9_i32 : i32 to vector<16x128xi32>
    %416 = arith.cmpi eq, %86, %415 : vector<16x128xi32>
    %c9_i32_145 = arith.constant 9 : i32
    %417 = vector.broadcast %c9_i32_145 : i32 to vector<16x128xi32>
    %418 = arith.cmpi eq, %89, %417 : vector<16x128xi32>
    %419 = vector.broadcast %413 : f32 to vector<16x128xf32>
    %420 = arith.select %416, %419, %406 : vector<16x128xi1>, vector<16x128xf32>
    %421 = vector.broadcast %414 : f32 to vector<16x128xf32>
    %422 = arith.select %416, %421, %408 : vector<16x128xi1>, vector<16x128xf32>
    %423 = vector.broadcast %413 : f32 to vector<16x128xf32>
    %424 = arith.select %418, %423, %410 : vector<16x128xi1>, vector<16x128xf32>
    %425 = vector.broadcast %414 : f32 to vector<16x128xf32>
    %426 = arith.select %418, %425, %412 : vector<16x128xi1>, vector<16x128xf32>
    %c0_146 = arith.constant 0 : index
    %c10 = arith.constant 10 : index
    %427 = memref.load %arg1[%c0_146, %c10] : memref<6x41xf32, #tpu.memory_space<smem>>
    %c1_147 = arith.constant 1 : index
    %c10_148 = arith.constant 10 : index
    %428 = memref.load %arg1[%c1_147, %c10_148] : memref<6x41xf32, #tpu.memory_space<smem>>
    %c10_i32 = arith.constant 10 : i32
    %429 = vector.broadcast %c10_i32 : i32 to vector<16x128xi32>
    %430 = arith.cmpi eq, %86, %429 : vector<16x128xi32>
    %c10_i32_149 = arith.constant 10 : i32
    %431 = vector.broadcast %c10_i32_149 : i32 to vector<16x128xi32>
    %432 = arith.cmpi eq, %89, %431 : vector<16x128xi32>
    %433 = vector.broadcast %427 : f32 to vector<16x128xf32>
    %434 = arith.select %430, %433, %420 : vector<16x128xi1>, vector<16x128xf32>
    %435 = vector.broadcast %428 : f32 to vector<16x128xf32>
    %436 = arith.select %430, %435, %422 : vector<16x128xi1>, vector<16x128xf32>
    %437 = vector.broadcast %427 : f32 to vector<16x128xf32>
    %438 = arith.select %432, %437, %424 : vector<16x128xi1>, vector<16x128xf32>
    %439 = vector.broadcast %428 : f32 to vector<16x128xf32>
    %440 = arith.select %432, %439, %426 : vector<16x128xi1>, vector<16x128xf32>
    %c0_150 = arith.constant 0 : index
    %c11 = arith.constant 11 : index
    %441 = memref.load %arg1[%c0_150, %c11] : memref<6x41xf32, #tpu.memory_space<smem>>
    %c1_151 = arith.constant 1 : index
    %c11_152 = arith.constant 11 : index
    %442 = memref.load %arg1[%c1_151, %c11_152] : memref<6x41xf32, #tpu.memory_space<smem>>
    %c11_i32 = arith.constant 11 : i32
    %443 = vector.broadcast %c11_i32 : i32 to vector<16x128xi32>
    %444 = arith.cmpi eq, %86, %443 : vector<16x128xi32>
    %c11_i32_153 = arith.constant 11 : i32
    %445 = vector.broadcast %c11_i32_153 : i32 to vector<16x128xi32>
    %446 = arith.cmpi eq, %89, %445 : vector<16x128xi32>
    %447 = vector.broadcast %441 : f32 to vector<16x128xf32>
    %448 = arith.select %444, %447, %434 : vector<16x128xi1>, vector<16x128xf32>
    %449 = vector.broadcast %442 : f32 to vector<16x128xf32>
    %450 = arith.select %444, %449, %436 : vector<16x128xi1>, vector<16x128xf32>
    %451 = vector.broadcast %441 : f32 to vector<16x128xf32>
    %452 = arith.select %446, %451, %438 : vector<16x128xi1>, vector<16x128xf32>
    %453 = vector.broadcast %442 : f32 to vector<16x128xf32>
    %454 = arith.select %446, %453, %440 : vector<16x128xi1>, vector<16x128xf32>
    %c0_154 = arith.constant 0 : index
    %c12 = arith.constant 12 : index
    %455 = memref.load %arg1[%c0_154, %c12] : memref<6x41xf32, #tpu.memory_space<smem>>
    %c1_155 = arith.constant 1 : index
    %c12_156 = arith.constant 12 : index
    %456 = memref.load %arg1[%c1_155, %c12_156] : memref<6x41xf32, #tpu.memory_space<smem>>
    %c12_i32 = arith.constant 12 : i32
    %457 = vector.broadcast %c12_i32 : i32 to vector<16x128xi32>
    %458 = arith.cmpi eq, %86, %457 : vector<16x128xi32>
    %c12_i32_157 = arith.constant 12 : i32
    %459 = vector.broadcast %c12_i32_157 : i32 to vector<16x128xi32>
    %460 = arith.cmpi eq, %89, %459 : vector<16x128xi32>
    %461 = vector.broadcast %455 : f32 to vector<16x128xf32>
    %462 = arith.select %458, %461, %448 : vector<16x128xi1>, vector<16x128xf32>
    %463 = vector.broadcast %456 : f32 to vector<16x128xf32>
    %464 = arith.select %458, %463, %450 : vector<16x128xi1>, vector<16x128xf32>
    %465 = vector.broadcast %455 : f32 to vector<16x128xf32>
    %466 = arith.select %460, %465, %452 : vector<16x128xi1>, vector<16x128xf32>
    %467 = vector.broadcast %456 : f32 to vector<16x128xf32>
    %468 = arith.select %460, %467, %454 : vector<16x128xi1>, vector<16x128xf32>
    %c0_158 = arith.constant 0 : index
    %c13 = arith.constant 13 : index
    %469 = memref.load %arg1[%c0_158, %c13] : memref<6x41xf32, #tpu.memory_space<smem>>
    %c1_159 = arith.constant 1 : index
    %c13_160 = arith.constant 13 : index
    %470 = memref.load %arg1[%c1_159, %c13_160] : memref<6x41xf32, #tpu.memory_space<smem>>
    %c13_i32 = arith.constant 13 : i32
    %471 = vector.broadcast %c13_i32 : i32 to vector<16x128xi32>
    %472 = arith.cmpi eq, %86, %471 : vector<16x128xi32>
    %c13_i32_161 = arith.constant 13 : i32
    %473 = vector.broadcast %c13_i32_161 : i32 to vector<16x128xi32>
    %474 = arith.cmpi eq, %89, %473 : vector<16x128xi32>
    %475 = vector.broadcast %469 : f32 to vector<16x128xf32>
    %476 = arith.select %472, %475, %462 : vector<16x128xi1>, vector<16x128xf32>
    %477 = vector.broadcast %470 : f32 to vector<16x128xf32>
    %478 = arith.select %472, %477, %464 : vector<16x128xi1>, vector<16x128xf32>
    %479 = vector.broadcast %469 : f32 to vector<16x128xf32>
    %480 = arith.select %474, %479, %466 : vector<16x128xi1>, vector<16x128xf32>
    %481 = vector.broadcast %470 : f32 to vector<16x128xf32>
    %482 = arith.select %474, %481, %468 : vector<16x128xi1>, vector<16x128xf32>
    %c0_162 = arith.constant 0 : index
    %c14 = arith.constant 14 : index
    %483 = memref.load %arg1[%c0_162, %c14] : memref<6x41xf32, #tpu.memory_space<smem>>
    %c1_163 = arith.constant 1 : index
    %c14_164 = arith.constant 14 : index
    %484 = memref.load %arg1[%c1_163, %c14_164] : memref<6x41xf32, #tpu.memory_space<smem>>
    %c14_i32 = arith.constant 14 : i32
    %485 = vector.broadcast %c14_i32 : i32 to vector<16x128xi32>
    %486 = arith.cmpi eq, %86, %485 : vector<16x128xi32>
    %c14_i32_165 = arith.constant 14 : i32
    %487 = vector.broadcast %c14_i32_165 : i32 to vector<16x128xi32>
    %488 = arith.cmpi eq, %89, %487 : vector<16x128xi32>
    %489 = vector.broadcast %483 : f32 to vector<16x128xf32>
    %490 = arith.select %486, %489, %476 : vector<16x128xi1>, vector<16x128xf32>
    %491 = vector.broadcast %484 : f32 to vector<16x128xf32>
    %492 = arith.select %486, %491, %478 : vector<16x128xi1>, vector<16x128xf32>
    %493 = vector.broadcast %483 : f32 to vector<16x128xf32>
    %494 = arith.select %488, %493, %480 : vector<16x128xi1>, vector<16x128xf32>
    %495 = vector.broadcast %484 : f32 to vector<16x128xf32>
    %496 = arith.select %488, %495, %482 : vector<16x128xi1>, vector<16x128xf32>
    %c0_166 = arith.constant 0 : index
    %c15 = arith.constant 15 : index
    %497 = memref.load %arg1[%c0_166, %c15] : memref<6x41xf32, #tpu.memory_space<smem>>
    %c1_167 = arith.constant 1 : index
    %c15_168 = arith.constant 15 : index
    %498 = memref.load %arg1[%c1_167, %c15_168] : memref<6x41xf32, #tpu.memory_space<smem>>
    %c15_i32 = arith.constant 15 : i32
    %499 = vector.broadcast %c15_i32 : i32 to vector<16x128xi32>
    %500 = arith.cmpi eq, %86, %499 : vector<16x128xi32>
    %c15_i32_169 = arith.constant 15 : i32
    %501 = vector.broadcast %c15_i32_169 : i32 to vector<16x128xi32>
    %502 = arith.cmpi eq, %89, %501 : vector<16x128xi32>
    %503 = vector.broadcast %497 : f32 to vector<16x128xf32>
    %504 = arith.select %500, %503, %490 : vector<16x128xi1>, vector<16x128xf32>
    %505 = vector.broadcast %498 : f32 to vector<16x128xf32>
    %506 = arith.select %500, %505, %492 : vector<16x128xi1>, vector<16x128xf32>
    %507 = vector.broadcast %497 : f32 to vector<16x128xf32>
    %508 = arith.select %502, %507, %494 : vector<16x128xi1>, vector<16x128xf32>
    %509 = vector.broadcast %498 : f32 to vector<16x128xf32>
    %510 = arith.select %502, %509, %496 : vector<16x128xi1>, vector<16x128xf32>
    %c0_170 = arith.constant 0 : index
    %c16 = arith.constant 16 : index
    %511 = memref.load %arg1[%c0_170, %c16] : memref<6x41xf32, #tpu.memory_space<smem>>
    %c1_171 = arith.constant 1 : index
    %c16_172 = arith.constant 16 : index
    %512 = memref.load %arg1[%c1_171, %c16_172] : memref<6x41xf32, #tpu.memory_space<smem>>
    %c16_i32 = arith.constant 16 : i32
    %513 = vector.broadcast %c16_i32 : i32 to vector<16x128xi32>
    %514 = arith.cmpi eq, %86, %513 : vector<16x128xi32>
    %c16_i32_173 = arith.constant 16 : i32
    %515 = vector.broadcast %c16_i32_173 : i32 to vector<16x128xi32>
    %516 = arith.cmpi eq, %89, %515 : vector<16x128xi32>
    %517 = vector.broadcast %511 : f32 to vector<16x128xf32>
    %518 = arith.select %514, %517, %504 : vector<16x128xi1>, vector<16x128xf32>
    %519 = vector.broadcast %512 : f32 to vector<16x128xf32>
    %520 = arith.select %514, %519, %506 : vector<16x128xi1>, vector<16x128xf32>
    %521 = vector.broadcast %511 : f32 to vector<16x128xf32>
    %522 = arith.select %516, %521, %508 : vector<16x128xi1>, vector<16x128xf32>
    %523 = vector.broadcast %512 : f32 to vector<16x128xf32>
    %524 = arith.select %516, %523, %510 : vector<16x128xi1>, vector<16x128xf32>
    %c0_174 = arith.constant 0 : index
    %c17 = arith.constant 17 : index
    %525 = memref.load %arg1[%c0_174, %c17] : memref<6x41xf32, #tpu.memory_space<smem>>
    %c1_175 = arith.constant 1 : index
    %c17_176 = arith.constant 17 : index
    %526 = memref.load %arg1[%c1_175, %c17_176] : memref<6x41xf32, #tpu.memory_space<smem>>
    %c17_i32 = arith.constant 17 : i32
    %527 = vector.broadcast %c17_i32 : i32 to vector<16x128xi32>
    %528 = arith.cmpi eq, %86, %527 : vector<16x128xi32>
    %c17_i32_177 = arith.constant 17 : i32
    %529 = vector.broadcast %c17_i32_177 : i32 to vector<16x128xi32>
    %530 = arith.cmpi eq, %89, %529 : vector<16x128xi32>
    %531 = vector.broadcast %525 : f32 to vector<16x128xf32>
    %532 = arith.select %528, %531, %518 : vector<16x128xi1>, vector<16x128xf32>
    %533 = vector.broadcast %526 : f32 to vector<16x128xf32>
    %534 = arith.select %528, %533, %520 : vector<16x128xi1>, vector<16x128xf32>
    %535 = vector.broadcast %525 : f32 to vector<16x128xf32>
    %536 = arith.select %530, %535, %522 : vector<16x128xi1>, vector<16x128xf32>
    %537 = vector.broadcast %526 : f32 to vector<16x128xf32>
    %538 = arith.select %530, %537, %524 : vector<16x128xi1>, vector<16x128xf32>
    %c0_178 = arith.constant 0 : index
    %c18 = arith.constant 18 : index
    %539 = memref.load %arg1[%c0_178, %c18] : memref<6x41xf32, #tpu.memory_space<smem>>
    %c1_179 = arith.constant 1 : index
    %c18_180 = arith.constant 18 : index
    %540 = memref.load %arg1[%c1_179, %c18_180] : memref<6x41xf32, #tpu.memory_space<smem>>
    %c18_i32 = arith.constant 18 : i32
    %541 = vector.broadcast %c18_i32 : i32 to vector<16x128xi32>
    %542 = arith.cmpi eq, %86, %541 : vector<16x128xi32>
    %c18_i32_181 = arith.constant 18 : i32
    %543 = vector.broadcast %c18_i32_181 : i32 to vector<16x128xi32>
    %544 = arith.cmpi eq, %89, %543 : vector<16x128xi32>
    %545 = vector.broadcast %539 : f32 to vector<16x128xf32>
    %546 = arith.select %542, %545, %532 : vector<16x128xi1>, vector<16x128xf32>
    %547 = vector.broadcast %540 : f32 to vector<16x128xf32>
    %548 = arith.select %542, %547, %534 : vector<16x128xi1>, vector<16x128xf32>
    %549 = vector.broadcast %539 : f32 to vector<16x128xf32>
    %550 = arith.select %544, %549, %536 : vector<16x128xi1>, vector<16x128xf32>
    %551 = vector.broadcast %540 : f32 to vector<16x128xf32>
    %552 = arith.select %544, %551, %538 : vector<16x128xi1>, vector<16x128xf32>
    %c0_182 = arith.constant 0 : index
    %c19 = arith.constant 19 : index
    %553 = memref.load %arg1[%c0_182, %c19] : memref<6x41xf32, #tpu.memory_space<smem>>
    %c1_183 = arith.constant 1 : index
    %c19_184 = arith.constant 19 : index
    %554 = memref.load %arg1[%c1_183, %c19_184] : memref<6x41xf32, #tpu.memory_space<smem>>
    %c19_i32 = arith.constant 19 : i32
    %555 = vector.broadcast %c19_i32 : i32 to vector<16x128xi32>
    %556 = arith.cmpi eq, %86, %555 : vector<16x128xi32>
    %c19_i32_185 = arith.constant 19 : i32
    %557 = vector.broadcast %c19_i32_185 : i32 to vector<16x128xi32>
    %558 = arith.cmpi eq, %89, %557 : vector<16x128xi32>
    %559 = vector.broadcast %553 : f32 to vector<16x128xf32>
    %560 = arith.select %556, %559, %546 : vector<16x128xi1>, vector<16x128xf32>
    %561 = vector.broadcast %554 : f32 to vector<16x128xf32>
    %562 = arith.select %556, %561, %548 : vector<16x128xi1>, vector<16x128xf32>
    %563 = vector.broadcast %553 : f32 to vector<16x128xf32>
    %564 = arith.select %558, %563, %550 : vector<16x128xi1>, vector<16x128xf32>
    %565 = vector.broadcast %554 : f32 to vector<16x128xf32>
    %566 = arith.select %558, %565, %552 : vector<16x128xi1>, vector<16x128xf32>
    %c0_186 = arith.constant 0 : index
    %c20 = arith.constant 20 : index
    %567 = memref.load %arg1[%c0_186, %c20] : memref<6x41xf32, #tpu.memory_space<smem>>
    %c1_187 = arith.constant 1 : index
    %c20_188 = arith.constant 20 : index
    %568 = memref.load %arg1[%c1_187, %c20_188] : memref<6x41xf32, #tpu.memory_space<smem>>
    %c20_i32 = arith.constant 20 : i32
    %569 = vector.broadcast %c20_i32 : i32 to vector<16x128xi32>
    %570 = arith.cmpi eq, %86, %569 : vector<16x128xi32>
    %c20_i32_189 = arith.constant 20 : i32
    %571 = vector.broadcast %c20_i32_189 : i32 to vector<16x128xi32>
    %572 = arith.cmpi eq, %89, %571 : vector<16x128xi32>
    %573 = vector.broadcast %567 : f32 to vector<16x128xf32>
    %574 = arith.select %570, %573, %560 : vector<16x128xi1>, vector<16x128xf32>
    %575 = vector.broadcast %568 : f32 to vector<16x128xf32>
    %576 = arith.select %570, %575, %562 : vector<16x128xi1>, vector<16x128xf32>
    %577 = vector.broadcast %567 : f32 to vector<16x128xf32>
    %578 = arith.select %572, %577, %564 : vector<16x128xi1>, vector<16x128xf32>
    %579 = vector.broadcast %568 : f32 to vector<16x128xf32>
    %580 = arith.select %572, %579, %566 : vector<16x128xi1>, vector<16x128xf32>
    %c0_190 = arith.constant 0 : index
    %c21 = arith.constant 21 : index
    %581 = memref.load %arg1[%c0_190, %c21] : memref<6x41xf32, #tpu.memory_space<smem>>
    %c1_191 = arith.constant 1 : index
    %c21_192 = arith.constant 21 : index
    %582 = memref.load %arg1[%c1_191, %c21_192] : memref<6x41xf32, #tpu.memory_space<smem>>
    %c21_i32 = arith.constant 21 : i32
    %583 = vector.broadcast %c21_i32 : i32 to vector<16x128xi32>
    %584 = arith.cmpi eq, %86, %583 : vector<16x128xi32>
    %c21_i32_193 = arith.constant 21 : i32
    %585 = vector.broadcast %c21_i32_193 : i32 to vector<16x128xi32>
    %586 = arith.cmpi eq, %89, %585 : vector<16x128xi32>
    %587 = vector.broadcast %581 : f32 to vector<16x128xf32>
    %588 = arith.select %584, %587, %574 : vector<16x128xi1>, vector<16x128xf32>
    %589 = vector.broadcast %582 : f32 to vector<16x128xf32>
    %590 = arith.select %584, %589, %576 : vector<16x128xi1>, vector<16x128xf32>
    %591 = vector.broadcast %581 : f32 to vector<16x128xf32>
    %592 = arith.select %586, %591, %578 : vector<16x128xi1>, vector<16x128xf32>
    %593 = vector.broadcast %582 : f32 to vector<16x128xf32>
    %594 = arith.select %586, %593, %580 : vector<16x128xi1>, vector<16x128xf32>
    %c0_194 = arith.constant 0 : index
    %c22 = arith.constant 22 : index
    %595 = memref.load %arg1[%c0_194, %c22] : memref<6x41xf32, #tpu.memory_space<smem>>
    %c1_195 = arith.constant 1 : index
    %c22_196 = arith.constant 22 : index
    %596 = memref.load %arg1[%c1_195, %c22_196] : memref<6x41xf32, #tpu.memory_space<smem>>
    %c22_i32 = arith.constant 22 : i32
    %597 = vector.broadcast %c22_i32 : i32 to vector<16x128xi32>
    %598 = arith.cmpi eq, %86, %597 : vector<16x128xi32>
    %c22_i32_197 = arith.constant 22 : i32
    %599 = vector.broadcast %c22_i32_197 : i32 to vector<16x128xi32>
    %600 = arith.cmpi eq, %89, %599 : vector<16x128xi32>
    %601 = vector.broadcast %595 : f32 to vector<16x128xf32>
    %602 = arith.select %598, %601, %588 : vector<16x128xi1>, vector<16x128xf32>
    %603 = vector.broadcast %596 : f32 to vector<16x128xf32>
    %604 = arith.select %598, %603, %590 : vector<16x128xi1>, vector<16x128xf32>
    %605 = vector.broadcast %595 : f32 to vector<16x128xf32>
    %606 = arith.select %600, %605, %592 : vector<16x128xi1>, vector<16x128xf32>
    %607 = vector.broadcast %596 : f32 to vector<16x128xf32>
    %608 = arith.select %600, %607, %594 : vector<16x128xi1>, vector<16x128xf32>
    %c0_198 = arith.constant 0 : index
    %c23 = arith.constant 23 : index
    %609 = memref.load %arg1[%c0_198, %c23] : memref<6x41xf32, #tpu.memory_space<smem>>
    %c1_199 = arith.constant 1 : index
    %c23_200 = arith.constant 23 : index
    %610 = memref.load %arg1[%c1_199, %c23_200] : memref<6x41xf32, #tpu.memory_space<smem>>
    %c23_i32 = arith.constant 23 : i32
    %611 = vector.broadcast %c23_i32 : i32 to vector<16x128xi32>
    %612 = arith.cmpi eq, %86, %611 : vector<16x128xi32>
    %c23_i32_201 = arith.constant 23 : i32
    %613 = vector.broadcast %c23_i32_201 : i32 to vector<16x128xi32>
    %614 = arith.cmpi eq, %89, %613 : vector<16x128xi32>
    %615 = vector.broadcast %609 : f32 to vector<16x128xf32>
    %616 = arith.select %612, %615, %602 : vector<16x128xi1>, vector<16x128xf32>
    %617 = vector.broadcast %610 : f32 to vector<16x128xf32>
    %618 = arith.select %612, %617, %604 : vector<16x128xi1>, vector<16x128xf32>
    %619 = vector.broadcast %609 : f32 to vector<16x128xf32>
    %620 = arith.select %614, %619, %606 : vector<16x128xi1>, vector<16x128xf32>
    %621 = vector.broadcast %610 : f32 to vector<16x128xf32>
    %622 = arith.select %614, %621, %608 : vector<16x128xi1>, vector<16x128xf32>
    %c0_202 = arith.constant 0 : index
    %c24 = arith.constant 24 : index
    %623 = memref.load %arg1[%c0_202, %c24] : memref<6x41xf32, #tpu.memory_space<smem>>
    %c1_203 = arith.constant 1 : index
    %c24_204 = arith.constant 24 : index
    %624 = memref.load %arg1[%c1_203, %c24_204] : memref<6x41xf32, #tpu.memory_space<smem>>
    %c24_i32 = arith.constant 24 : i32
    %625 = vector.broadcast %c24_i32 : i32 to vector<16x128xi32>
    %626 = arith.cmpi eq, %86, %625 : vector<16x128xi32>
    %c24_i32_205 = arith.constant 24 : i32
    %627 = vector.broadcast %c24_i32_205 : i32 to vector<16x128xi32>
    %628 = arith.cmpi eq, %89, %627 : vector<16x128xi32>
    %629 = vector.broadcast %623 : f32 to vector<16x128xf32>
    %630 = arith.select %626, %629, %616 : vector<16x128xi1>, vector<16x128xf32>
    %631 = vector.broadcast %624 : f32 to vector<16x128xf32>
    %632 = arith.select %626, %631, %618 : vector<16x128xi1>, vector<16x128xf32>
    %633 = vector.broadcast %623 : f32 to vector<16x128xf32>
    %634 = arith.select %628, %633, %620 : vector<16x128xi1>, vector<16x128xf32>
    %635 = vector.broadcast %624 : f32 to vector<16x128xf32>
    %636 = arith.select %628, %635, %622 : vector<16x128xi1>, vector<16x128xf32>
    %637 = arith.addf %137, %147 : vector<16x128xf32>
    %638 = arith.addf %637, %157 : vector<16x128xf32>
    %639 = tpu.reciprocal %638 {approx = true} : vector<16x128xf32> -> vector<16x128xf32>
    %640 = arith.mulf %283, %137 : vector<16x128xf32>
    %641 = arith.mulf %630, %147 : vector<16x128xf32>
    %642 = arith.addf %640, %641 : vector<16x128xf32>
    %643 = arith.mulf %634, %157 : vector<16x128xf32>
    %644 = arith.addf %642, %643 : vector<16x128xf32>
    %645 = arith.mulf %644, %639 : vector<16x128xf32>
    %646 = arith.mulf %286, %137 : vector<16x128xf32>
    %647 = arith.mulf %632, %147 : vector<16x128xf32>
    %648 = arith.addf %646, %647 : vector<16x128xf32>
    %649 = arith.mulf %636, %157 : vector<16x128xf32>
    %650 = arith.addf %648, %649 : vector<16x128xf32>
    %651 = arith.mulf %650, %639 : vector<16x128xf32>
    %652 = arith.subf %118, %111 : vector<16x128xf32>
    %653 = arith.subf %124, %111 : vector<16x128xf32>
    %654 = arith.subf %121, %115 : vector<16x128xf32>
    %655 = arith.subf %127, %115 : vector<16x128xf32>
    %656 = arith.subf %630, %283 : vector<16x128xf32>
    %657 = arith.subf %634, %283 : vector<16x128xf32>
    %658 = arith.subf %632, %286 : vector<16x128xf32>
    %659 = arith.subf %636, %286 : vector<16x128xf32>
    %660 = arith.mulf %652, %655 : vector<16x128xf32>
    %661 = arith.mulf %653, %654 : vector<16x128xf32>
    %662 = arith.subf %660, %661 : vector<16x128xf32>
    %663 = tpu.reciprocal %662 {approx = true} : vector<16x128xf32> -> vector<16x128xf32>
    %664 = arith.mulf %656, %655 : vector<16x128xf32>
    %665 = arith.mulf %657, %654 : vector<16x128xf32>
    %666 = arith.subf %664, %665 : vector<16x128xf32>
    %667 = arith.mulf %666, %663 : vector<16x128xf32>
    %668 = arith.mulf %657, %652 : vector<16x128xf32>
    %669 = arith.mulf %656, %653 : vector<16x128xf32>
    %670 = arith.subf %668, %669 : vector<16x128xf32>
    %671 = arith.mulf %670, %663 : vector<16x128xf32>
    %672 = arith.mulf %658, %655 : vector<16x128xf32>
    %673 = arith.mulf %659, %654 : vector<16x128xf32>
    %674 = arith.subf %672, %673 : vector<16x128xf32>
    %675 = arith.mulf %674, %663 : vector<16x128xf32>
    %676 = arith.mulf %659, %652 : vector<16x128xf32>
    %677 = arith.mulf %658, %653 : vector<16x128xf32>
    %678 = arith.subf %676, %677 : vector<16x128xf32>
    %679 = arith.mulf %678, %663 : vector<16x128xf32>
    %cst_206 = arith.constant 5.000000e-01 : f32
    %680 = vector.broadcast %cst_206 : f32 to vector<16x128xf32>
    %681 = arith.mulf %645, %680 : vector<16x128xf32>
    %cst_207 = arith.constant 5.000000e-01 : f32
    %682 = vector.broadcast %cst_207 : f32 to vector<16x128xf32>
    %683 = arith.addf %681, %682 : vector<16x128xf32>
    %cst_208 = arith.constant 5.000000e-01 : f32
    %684 = vector.broadcast %cst_208 : f32 to vector<16x128xf32>
    %685 = arith.mulf %5, %684 : vector<16x128xf32>
    %cst_209 = arith.constant 5.000000e-01 : f32
    %686 = vector.broadcast %cst_209 : f32 to vector<16x128xf32>
    %687 = arith.addf %685, %686 : vector<16x128xf32>
    %cst_210 = arith.constant 2.500000e-01 : f32
    %688 = vector.broadcast %cst_210 : f32 to vector<16x128xf32>
    %689 = arith.divf %683, %688 : vector<16x128xf32>
    %690 = math.floor %689 : vector<16x128xf32>
    %cst_211 = arith.constant 1.000000e+00 : f32
    %691 = vector.broadcast %cst_211 : f32 to vector<16x128xf32>
    %692 = arith.subf %691, %687 : vector<16x128xf32>
    %cst_212 = arith.constant 2.500000e-01 : f32
    %693 = vector.broadcast %cst_212 : f32 to vector<16x128xf32>
    %694 = arith.divf %692, %693 : vector<16x128xf32>
    %695 = math.floor %694 : vector<16x128xf32>
    %cst_213 = arith.constant 0.000000e+00 : f32
    %cst_214 = arith.constant 3.000000e+00 : f32
    %696 = vector.broadcast %cst_213 : f32 to vector<16x128xf32>
    %697 = arith.maximumf %696, %690 : vector<16x128xf32>
    %698 = vector.broadcast %cst_214 : f32 to vector<16x128xf32>
    %699 = arith.minimumf %698, %697 : vector<16x128xf32>
    %cst_215 = arith.constant 0.000000e+00 : f32
    %cst_216 = arith.constant 3.000000e+00 : f32
    %700 = vector.broadcast %cst_215 : f32 to vector<16x128xf32>
    %701 = arith.maximumf %700, %695 : vector<16x128xf32>
    %702 = vector.broadcast %cst_216 : f32 to vector<16x128xf32>
    %703 = arith.minimumf %702, %701 : vector<16x128xf32>
    %cst_217 = arith.constant -0.949999988 : f32
    %cst_218 = arith.constant 0.949999988 : f32
    %704 = vector.broadcast %cst_217 : f32 to vector<16x128xf32>
    %705 = arith.maximumf %704, %683 : vector<16x128xf32>
    %706 = vector.broadcast %cst_218 : f32 to vector<16x128xf32>
    %707 = arith.minimumf %706, %705 : vector<16x128xf32>
    %cst_219 = arith.constant -0.949999988 : f32
    %cst_220 = arith.constant 0.949999988 : f32
    %708 = vector.broadcast %cst_219 : f32 to vector<16x128xf32>
    %709 = arith.maximumf %708, %687 : vector<16x128xf32>
    %710 = vector.broadcast %cst_220 : f32 to vector<16x128xf32>
    %711 = arith.minimumf %710, %709 : vector<16x128xf32>
    %cst_221 = arith.constant 5.000000e-01 : f32
    %712 = vector.broadcast %cst_221 : f32 to vector<16x128xf32>
    %713 = arith.addf %699, %712 : vector<16x128xf32>
    %cst_222 = arith.constant 2.500000e-01 : f32
    %714 = vector.broadcast %cst_222 : f32 to vector<16x128xf32>
    %715 = arith.mulf %713, %714 : vector<16x128xf32>
    %cst_223 = arith.constant 5.000000e-01 : f32
    %716 = vector.broadcast %cst_223 : f32 to vector<16x128xf32>
    %717 = arith.addf %703, %716 : vector<16x128xf32>
    %cst_224 = arith.constant 2.500000e-01 : f32
    %718 = vector.broadcast %cst_224 : f32 to vector<16x128xf32>
    %719 = arith.mulf %717, %718 : vector<16x128xf32>
    %cst_225 = arith.constant 1.000000e+00 : f32
    %720 = vector.broadcast %cst_225 : f32 to vector<16x128xf32>
    %721 = arith.subf %720, %719 : vector<16x128xf32>
    %722 = arith.subf %707, %715 : vector<16x128xf32>
    %723 = arith.subf %711, %721 : vector<16x128xf32>
    %cst_226 = arith.constant 9.99999974E-6 : f32
    %724 = vector.broadcast %cst_226 : f32 to vector<16x128xf32>
    %725 = arith.addf %722, %724 : vector<16x128xf32>
    %726 = arith.divf %723, %725 : vector<16x128xf32>
    %cst_227 = arith.constant 1.000000e+00 : f32
    %727 = vector.broadcast %cst_227 : f32 to vector<16x128xf32>
    %728 = arith.cmpf ole, %726, %727 : vector<16x128xf32>
    %cst_228 = arith.constant -1.000000e+00 : f32
    %729 = vector.broadcast %cst_228 : f32 to vector<16x128xf32>
    %730 = arith.cmpf ogt, %726, %729 : vector<16x128xf32>
    %731 = arith.andi %728, %730 : vector<16x128xi1>
    %cst_229 = arith.constant 0.000000e+00 : f32
    %732 = vector.broadcast %cst_229 : f32 to vector<16x128xf32>
    %733 = arith.cmpf oge, %722, %732 : vector<16x128xf32>
    %734 = arith.andi %733, %731 : vector<16x128xi1>
    %cst_230 = arith.constant 0.000000e+00 : f32
    %735 = vector.broadcast %cst_230 : f32 to vector<16x128xf32>
    %736 = arith.cmpf oge, %723, %735 : vector<16x128xf32>
    %cst_231 = arith.constant dense<true> : vector<16x128xi1>
    %737 = arith.xori %731, %cst_231 : vector<16x128xi1>
    %738 = arith.andi %736, %737 : vector<16x128xi1>
    %cst_232 = arith.constant 0.000000e+00 : f32
    %739 = vector.broadcast %cst_232 : f32 to vector<16x128xf32>
    %740 = arith.cmpf olt, %722, %739 : vector<16x128xf32>
    %741 = arith.andi %740, %731 : vector<16x128xi1>
    %742 = arith.fptosi %703 : vector<16x128xf32> to vector<16x128xi32>
    %743 = arith.fptosi %699 : vector<16x128xf32> to vector<16x128xi32>
    %c5_i32_233 = arith.constant 5 : i32
    %744 = vector.broadcast %c5_i32_233 : i32 to vector<16x128xi32>
    %745 = arith.muli %742, %744 : vector<16x128xi32>
    %746 = arith.addi %745, %743 : vector<16x128xi32>
    %c1_i32_234 = arith.constant 1 : i32
    %747 = vector.broadcast %c1_i32_234 : i32 to vector<16x128xi32>
    %748 = arith.addi %746, %747 : vector<16x128xi32>
    %c5_i32_235 = arith.constant 5 : i32
    %749 = vector.broadcast %c5_i32_235 : i32 to vector<16x128xi32>
    %750 = arith.addi %746, %749 : vector<16x128xi32>
    %c1_i32_236 = arith.constant 1 : i32
    %751 = vector.broadcast %c1_i32_236 : i32 to vector<16x128xi32>
    %752 = arith.addi %750, %751 : vector<16x128xi32>
    %c4_i32_237 = arith.constant 4 : i32
    %753 = vector.broadcast %c4_i32_237 : i32 to vector<16x128xi32>
    %754 = arith.muli %742, %753 : vector<16x128xi32>
    %755 = arith.addi %754, %743 : vector<16x128xi32>
    %c25_i32_238 = arith.constant 25 : i32
    %756 = vector.broadcast %c25_i32_238 : i32 to vector<16x128xi32>
    %757 = arith.addi %755, %756 : vector<16x128xi32>
    %758 = arith.select %741, %750, %752 : vector<16x128xi1>, vector<16x128xi32>
    %759 = arith.select %738, %746, %758 : vector<16x128xi1>, vector<16x128xi32>
    %760 = arith.select %734, %748, %759 : vector<16x128xi1>, vector<16x128xi32>
    %761 = arith.select %741, %746, %750 : vector<16x128xi1>, vector<16x128xi32>
    %762 = arith.select %738, %748, %761 : vector<16x128xi1>, vector<16x128xi32>
    %763 = arith.select %734, %752, %762 : vector<16x128xi1>, vector<16x128xi32>
    %cst_239 = arith.constant 2.500000e-01 : f32
    %764 = vector.broadcast %cst_239 : f32 to vector<16x128xf32>
    %765 = arith.mulf %699, %764 : vector<16x128xf32>
    %cst_240 = arith.constant 2.000000e+00 : f32
    %766 = vector.broadcast %cst_240 : f32 to vector<16x128xf32>
    %767 = arith.mulf %766, %765 : vector<16x128xf32>
    %cst_241 = arith.constant 1.000000e+00 : f32
    %768 = vector.broadcast %cst_241 : f32 to vector<16x128xf32>
    %769 = arith.subf %767, %768 : vector<16x128xf32>
    %cst_242 = arith.constant 2.500000e-01 : f32
    %770 = vector.broadcast %cst_242 : f32 to vector<16x128xf32>
    %771 = arith.mulf %703, %770 : vector<16x128xf32>
    %cst_243 = arith.constant 1.000000e+00 : f32
    %772 = vector.broadcast %cst_243 : f32 to vector<16x128xf32>
    %773 = arith.subf %772, %771 : vector<16x128xf32>
    %cst_244 = arith.constant 2.000000e+00 : f32
    %774 = vector.broadcast %cst_244 : f32 to vector<16x128xf32>
    %775 = arith.mulf %774, %773 : vector<16x128xf32>
    %cst_245 = arith.constant 1.000000e+00 : f32
    %776 = vector.broadcast %cst_245 : f32 to vector<16x128xf32>
    %777 = arith.subf %775, %776 : vector<16x128xf32>
    %cst_246 = arith.constant 5.000000e-01 : f32
    %778 = vector.broadcast %cst_246 : f32 to vector<16x128xf32>
    %779 = arith.addf %769, %778 : vector<16x128xf32>
    %cst_247 = arith.constant 5.000000e-01 : f32
    %780 = vector.broadcast %cst_247 : f32 to vector<16x128xf32>
    %781 = arith.subf %777, %780 : vector<16x128xf32>
    %cst_248 = arith.constant 2.000000e+00 : f32
    %782 = vector.broadcast %cst_248 : f32 to vector<16x128xf32>
    %783 = arith.mulf %782, %715 : vector<16x128xf32>
    %cst_249 = arith.constant 1.000000e+00 : f32
    %784 = vector.broadcast %cst_249 : f32 to vector<16x128xf32>
    %785 = arith.subf %783, %784 : vector<16x128xf32>
    %cst_250 = arith.constant 2.000000e+00 : f32
    %786 = vector.broadcast %cst_250 : f32 to vector<16x128xf32>
    %787 = arith.mulf %786, %721 : vector<16x128xf32>
    %cst_251 = arith.constant 1.000000e+00 : f32
    %788 = vector.broadcast %cst_251 : f32 to vector<16x128xf32>
    %789 = arith.subf %787, %788 : vector<16x128xf32>
    %790 = arith.select %741, %769, %779 : vector<16x128xi1>, vector<16x128xf32>
    %791 = arith.select %738, %769, %790 : vector<16x128xi1>, vector<16x128xf32>
    %792 = arith.select %734, %779, %791 : vector<16x128xi1>, vector<16x128xf32>
    %793 = arith.select %741, %781, %781 : vector<16x128xi1>, vector<16x128xf32>
    %794 = arith.select %738, %777, %793 : vector<16x128xi1>, vector<16x128xf32>
    %795 = arith.select %734, %777, %794 : vector<16x128xi1>, vector<16x128xf32>
    %796 = arith.select %741, %769, %769 : vector<16x128xi1>, vector<16x128xf32>
    %797 = arith.select %738, %779, %796 : vector<16x128xi1>, vector<16x128xf32>
    %798 = arith.select %734, %779, %797 : vector<16x128xi1>, vector<16x128xf32>
    %799 = arith.select %741, %777, %781 : vector<16x128xi1>, vector<16x128xf32>
    %800 = arith.select %738, %777, %799 : vector<16x128xi1>, vector<16x128xf32>
    %801 = arith.select %734, %781, %800 : vector<16x128xi1>, vector<16x128xf32>
    %802 = arith.subf %645, %792 : vector<16x128xf32>
    %803 = arith.subf %5, %801 : vector<16x128xf32>
    %804 = arith.mulf %802, %803 : vector<16x128xf32>
    %805 = arith.subf %5, %795 : vector<16x128xf32>
    %806 = arith.subf %645, %798 : vector<16x128xf32>
    %807 = arith.mulf %805, %806 : vector<16x128xf32>
    %808 = arith.subf %804, %807 : vector<16x128xf32>
    %809 = math.absf %808 : vector<16x128xf32>
    %cst_252 = arith.constant 5.000000e-01 : f32
    %810 = vector.broadcast %cst_252 : f32 to vector<16x128xf32>
    %811 = arith.mulf %809, %810 : vector<16x128xf32>
    %812 = arith.subf %645, %785 : vector<16x128xf32>
    %813 = arith.subf %5, %801 : vector<16x128xf32>
    %814 = arith.mulf %812, %813 : vector<16x128xf32>
    %815 = arith.subf %5, %789 : vector<16x128xf32>
    %816 = arith.subf %645, %798 : vector<16x128xf32>
    %817 = arith.mulf %815, %816 : vector<16x128xf32>
    %818 = arith.subf %814, %817 : vector<16x128xf32>
    %819 = math.absf %818 : vector<16x128xf32>
    %cst_253 = arith.constant 5.000000e-01 : f32
    %820 = vector.broadcast %cst_253 : f32 to vector<16x128xf32>
    %821 = arith.mulf %819, %820 : vector<16x128xf32>
    %822 = arith.subf %645, %785 : vector<16x128xf32>
    %823 = arith.subf %5, %795 : vector<16x128xf32>
    %824 = arith.mulf %822, %823 : vector<16x128xf32>
    %825 = arith.subf %5, %789 : vector<16x128xf32>
    %826 = arith.subf %645, %792 : vector<16x128xf32>
    %827 = arith.mulf %825, %826 : vector<16x128xf32>
    %828 = arith.subf %824, %827 : vector<16x128xf32>
    %829 = math.absf %828 : vector<16x128xf32>
    %cst_254 = arith.constant 5.000000e-01 : f32
    %830 = vector.broadcast %cst_254 : f32 to vector<16x128xf32>
    %831 = arith.mulf %829, %830 : vector<16x128xf32>
    %cst_255 = arith.constant 0.000000e+00 : f32
    %832 = vector.broadcast %cst_255 : f32 to vector<16x128xf32>
    %c25_i32_256 = arith.constant 25 : i32
    %833 = vector.broadcast %c25_i32_256 : i32 to vector<16x128xi32>
    %834 = arith.cmpi eq, %757, %833 : vector<16x128xi32>
    %c2_257 = arith.constant 2 : index
    %c25_258 = arith.constant 25 : index
    %835 = memref.load %arg1[%c2_257, %c25_258] : memref<6x41xf32, #tpu.memory_space<smem>>
    %836 = vector.broadcast %835 : f32 to vector<16x128xf32>
    %837 = arith.select %834, %836, %832 : vector<16x128xi1>, vector<16x128xf32>
    %c3_259 = arith.constant 3 : index
    %c25_260 = arith.constant 25 : index
    %838 = memref.load %arg1[%c3_259, %c25_260] : memref<6x41xf32, #tpu.memory_space<smem>>
    %839 = vector.broadcast %838 : f32 to vector<16x128xf32>
    %840 = arith.select %834, %839, %832 : vector<16x128xi1>, vector<16x128xf32>
    %c26_i32_261 = arith.constant 26 : i32
    %841 = vector.broadcast %c26_i32_261 : i32 to vector<16x128xi32>
    %842 = arith.cmpi eq, %757, %841 : vector<16x128xi32>
    %c2_262 = arith.constant 2 : index
    %c26_263 = arith.constant 26 : index
    %843 = memref.load %arg1[%c2_262, %c26_263] : memref<6x41xf32, #tpu.memory_space<smem>>
    %844 = vector.broadcast %843 : f32 to vector<16x128xf32>
    %845 = arith.select %842, %844, %837 : vector<16x128xi1>, vector<16x128xf32>
    %c3_264 = arith.constant 3 : index
    %c26_265 = arith.constant 26 : index
    %846 = memref.load %arg1[%c3_264, %c26_265] : memref<6x41xf32, #tpu.memory_space<smem>>
    %847 = vector.broadcast %846 : f32 to vector<16x128xf32>
    %848 = arith.select %842, %847, %840 : vector<16x128xi1>, vector<16x128xf32>
    %c27_i32_266 = arith.constant 27 : i32
    %849 = vector.broadcast %c27_i32_266 : i32 to vector<16x128xi32>
    %850 = arith.cmpi eq, %757, %849 : vector<16x128xi32>
    %c2_267 = arith.constant 2 : index
    %c27_268 = arith.constant 27 : index
    %851 = memref.load %arg1[%c2_267, %c27_268] : memref<6x41xf32, #tpu.memory_space<smem>>
    %852 = vector.broadcast %851 : f32 to vector<16x128xf32>
    %853 = arith.select %850, %852, %845 : vector<16x128xi1>, vector<16x128xf32>
    %c3_269 = arith.constant 3 : index
    %c27_270 = arith.constant 27 : index
    %854 = memref.load %arg1[%c3_269, %c27_270] : memref<6x41xf32, #tpu.memory_space<smem>>
    %855 = vector.broadcast %854 : f32 to vector<16x128xf32>
    %856 = arith.select %850, %855, %848 : vector<16x128xi1>, vector<16x128xf32>
    %c28_i32_271 = arith.constant 28 : i32
    %857 = vector.broadcast %c28_i32_271 : i32 to vector<16x128xi32>
    %858 = arith.cmpi eq, %757, %857 : vector<16x128xi32>
    %c2_272 = arith.constant 2 : index
    %c28_273 = arith.constant 28 : index
    %859 = memref.load %arg1[%c2_272, %c28_273] : memref<6x41xf32, #tpu.memory_space<smem>>
    %860 = vector.broadcast %859 : f32 to vector<16x128xf32>
    %861 = arith.select %858, %860, %853 : vector<16x128xi1>, vector<16x128xf32>
    %c3_274 = arith.constant 3 : index
    %c28_275 = arith.constant 28 : index
    %862 = memref.load %arg1[%c3_274, %c28_275] : memref<6x41xf32, #tpu.memory_space<smem>>
    %863 = vector.broadcast %862 : f32 to vector<16x128xf32>
    %864 = arith.select %858, %863, %856 : vector<16x128xi1>, vector<16x128xf32>
    %c29_i32_276 = arith.constant 29 : i32
    %865 = vector.broadcast %c29_i32_276 : i32 to vector<16x128xi32>
    %866 = arith.cmpi eq, %757, %865 : vector<16x128xi32>
    %c2_277 = arith.constant 2 : index
    %c29_278 = arith.constant 29 : index
    %867 = memref.load %arg1[%c2_277, %c29_278] : memref<6x41xf32, #tpu.memory_space<smem>>
    %868 = vector.broadcast %867 : f32 to vector<16x128xf32>
    %869 = arith.select %866, %868, %861 : vector<16x128xi1>, vector<16x128xf32>
    %c3_279 = arith.constant 3 : index
    %c29_280 = arith.constant 29 : index
    %870 = memref.load %arg1[%c3_279, %c29_280] : memref<6x41xf32, #tpu.memory_space<smem>>
    %871 = vector.broadcast %870 : f32 to vector<16x128xf32>
    %872 = arith.select %866, %871, %864 : vector<16x128xi1>, vector<16x128xf32>
    %c30_i32_281 = arith.constant 30 : i32
    %873 = vector.broadcast %c30_i32_281 : i32 to vector<16x128xi32>
    %874 = arith.cmpi eq, %757, %873 : vector<16x128xi32>
    %c2_282 = arith.constant 2 : index
    %c30_283 = arith.constant 30 : index
    %875 = memref.load %arg1[%c2_282, %c30_283] : memref<6x41xf32, #tpu.memory_space<smem>>
    %876 = vector.broadcast %875 : f32 to vector<16x128xf32>
    %877 = arith.select %874, %876, %869 : vector<16x128xi1>, vector<16x128xf32>
    %c3_284 = arith.constant 3 : index
    %c30_285 = arith.constant 30 : index
    %878 = memref.load %arg1[%c3_284, %c30_285] : memref<6x41xf32, #tpu.memory_space<smem>>
    %879 = vector.broadcast %878 : f32 to vector<16x128xf32>
    %880 = arith.select %874, %879, %872 : vector<16x128xi1>, vector<16x128xf32>
    %c31_i32_286 = arith.constant 31 : i32
    %881 = vector.broadcast %c31_i32_286 : i32 to vector<16x128xi32>
    %882 = arith.cmpi eq, %757, %881 : vector<16x128xi32>
    %c2_287 = arith.constant 2 : index
    %c31_288 = arith.constant 31 : index
    %883 = memref.load %arg1[%c2_287, %c31_288] : memref<6x41xf32, #tpu.memory_space<smem>>
    %884 = vector.broadcast %883 : f32 to vector<16x128xf32>
    %885 = arith.select %882, %884, %877 : vector<16x128xi1>, vector<16x128xf32>
    %c3_289 = arith.constant 3 : index
    %c31_290 = arith.constant 31 : index
    %886 = memref.load %arg1[%c3_289, %c31_290] : memref<6x41xf32, #tpu.memory_space<smem>>
    %887 = vector.broadcast %886 : f32 to vector<16x128xf32>
    %888 = arith.select %882, %887, %880 : vector<16x128xi1>, vector<16x128xf32>
    %c32_i32_291 = arith.constant 32 : i32
    %889 = vector.broadcast %c32_i32_291 : i32 to vector<16x128xi32>
    %890 = arith.cmpi eq, %757, %889 : vector<16x128xi32>
    %c2_292 = arith.constant 2 : index
    %c32_293 = arith.constant 32 : index
    %891 = memref.load %arg1[%c2_292, %c32_293] : memref<6x41xf32, #tpu.memory_space<smem>>
    %892 = vector.broadcast %891 : f32 to vector<16x128xf32>
    %893 = arith.select %890, %892, %885 : vector<16x128xi1>, vector<16x128xf32>
    %c3_294 = arith.constant 3 : index
    %c32_295 = arith.constant 32 : index
    %894 = memref.load %arg1[%c3_294, %c32_295] : memref<6x41xf32, #tpu.memory_space<smem>>
    %895 = vector.broadcast %894 : f32 to vector<16x128xf32>
    %896 = arith.select %890, %895, %888 : vector<16x128xi1>, vector<16x128xf32>
    %c33_i32_296 = arith.constant 33 : i32
    %897 = vector.broadcast %c33_i32_296 : i32 to vector<16x128xi32>
    %898 = arith.cmpi eq, %757, %897 : vector<16x128xi32>
    %c2_297 = arith.constant 2 : index
    %c33_298 = arith.constant 33 : index
    %899 = memref.load %arg1[%c2_297, %c33_298] : memref<6x41xf32, #tpu.memory_space<smem>>
    %900 = vector.broadcast %899 : f32 to vector<16x128xf32>
    %901 = arith.select %898, %900, %893 : vector<16x128xi1>, vector<16x128xf32>
    %c3_299 = arith.constant 3 : index
    %c33_300 = arith.constant 33 : index
    %902 = memref.load %arg1[%c3_299, %c33_300] : memref<6x41xf32, #tpu.memory_space<smem>>
    %903 = vector.broadcast %902 : f32 to vector<16x128xf32>
    %904 = arith.select %898, %903, %896 : vector<16x128xi1>, vector<16x128xf32>
    %c34_i32_301 = arith.constant 34 : i32
    %905 = vector.broadcast %c34_i32_301 : i32 to vector<16x128xi32>
    %906 = arith.cmpi eq, %757, %905 : vector<16x128xi32>
    %c2_302 = arith.constant 2 : index
    %c34_303 = arith.constant 34 : index
    %907 = memref.load %arg1[%c2_302, %c34_303] : memref<6x41xf32, #tpu.memory_space<smem>>
    %908 = vector.broadcast %907 : f32 to vector<16x128xf32>
    %909 = arith.select %906, %908, %901 : vector<16x128xi1>, vector<16x128xf32>
    %c3_304 = arith.constant 3 : index
    %c34_305 = arith.constant 34 : index
    %910 = memref.load %arg1[%c3_304, %c34_305] : memref<6x41xf32, #tpu.memory_space<smem>>
    %911 = vector.broadcast %910 : f32 to vector<16x128xf32>
    %912 = arith.select %906, %911, %904 : vector<16x128xi1>, vector<16x128xf32>
    %c35_i32_306 = arith.constant 35 : i32
    %913 = vector.broadcast %c35_i32_306 : i32 to vector<16x128xi32>
    %914 = arith.cmpi eq, %757, %913 : vector<16x128xi32>
    %c2_307 = arith.constant 2 : index
    %c35_308 = arith.constant 35 : index
    %915 = memref.load %arg1[%c2_307, %c35_308] : memref<6x41xf32, #tpu.memory_space<smem>>
    %916 = vector.broadcast %915 : f32 to vector<16x128xf32>
    %917 = arith.select %914, %916, %909 : vector<16x128xi1>, vector<16x128xf32>
    %c3_309 = arith.constant 3 : index
    %c35_310 = arith.constant 35 : index
    %918 = memref.load %arg1[%c3_309, %c35_310] : memref<6x41xf32, #tpu.memory_space<smem>>
    %919 = vector.broadcast %918 : f32 to vector<16x128xf32>
    %920 = arith.select %914, %919, %912 : vector<16x128xi1>, vector<16x128xf32>
    %c36_i32_311 = arith.constant 36 : i32
    %921 = vector.broadcast %c36_i32_311 : i32 to vector<16x128xi32>
    %922 = arith.cmpi eq, %757, %921 : vector<16x128xi32>
    %c2_312 = arith.constant 2 : index
    %c36_313 = arith.constant 36 : index
    %923 = memref.load %arg1[%c2_312, %c36_313] : memref<6x41xf32, #tpu.memory_space<smem>>
    %924 = vector.broadcast %923 : f32 to vector<16x128xf32>
    %925 = arith.select %922, %924, %917 : vector<16x128xi1>, vector<16x128xf32>
    %c3_314 = arith.constant 3 : index
    %c36_315 = arith.constant 36 : index
    %926 = memref.load %arg1[%c3_314, %c36_315] : memref<6x41xf32, #tpu.memory_space<smem>>
    %927 = vector.broadcast %926 : f32 to vector<16x128xf32>
    %928 = arith.select %922, %927, %920 : vector<16x128xi1>, vector<16x128xf32>
    %c37_i32_316 = arith.constant 37 : i32
    %929 = vector.broadcast %c37_i32_316 : i32 to vector<16x128xi32>
    %930 = arith.cmpi eq, %757, %929 : vector<16x128xi32>
    %c2_317 = arith.constant 2 : index
    %c37_318 = arith.constant 37 : index
    %931 = memref.load %arg1[%c2_317, %c37_318] : memref<6x41xf32, #tpu.memory_space<smem>>
    %932 = vector.broadcast %931 : f32 to vector<16x128xf32>
    %933 = arith.select %930, %932, %925 : vector<16x128xi1>, vector<16x128xf32>
    %c3_319 = arith.constant 3 : index
    %c37_320 = arith.constant 37 : index
    %934 = memref.load %arg1[%c3_319, %c37_320] : memref<6x41xf32, #tpu.memory_space<smem>>
    %935 = vector.broadcast %934 : f32 to vector<16x128xf32>
    %936 = arith.select %930, %935, %928 : vector<16x128xi1>, vector<16x128xf32>
    %c38_i32_321 = arith.constant 38 : i32
    %937 = vector.broadcast %c38_i32_321 : i32 to vector<16x128xi32>
    %938 = arith.cmpi eq, %757, %937 : vector<16x128xi32>
    %c2_322 = arith.constant 2 : index
    %c38_323 = arith.constant 38 : index
    %939 = memref.load %arg1[%c2_322, %c38_323] : memref<6x41xf32, #tpu.memory_space<smem>>
    %940 = vector.broadcast %939 : f32 to vector<16x128xf32>
    %941 = arith.select %938, %940, %933 : vector<16x128xi1>, vector<16x128xf32>
    %c3_324 = arith.constant 3 : index
    %c38_325 = arith.constant 38 : index
    %942 = memref.load %arg1[%c3_324, %c38_325] : memref<6x41xf32, #tpu.memory_space<smem>>
    %943 = vector.broadcast %942 : f32 to vector<16x128xf32>
    %944 = arith.select %938, %943, %936 : vector<16x128xi1>, vector<16x128xf32>
    %c39_i32_326 = arith.constant 39 : i32
    %945 = vector.broadcast %c39_i32_326 : i32 to vector<16x128xi32>
    %946 = arith.cmpi eq, %757, %945 : vector<16x128xi32>
    %c2_327 = arith.constant 2 : index
    %c39_328 = arith.constant 39 : index
    %947 = memref.load %arg1[%c2_327, %c39_328] : memref<6x41xf32, #tpu.memory_space<smem>>
    %948 = vector.broadcast %947 : f32 to vector<16x128xf32>
    %949 = arith.select %946, %948, %941 : vector<16x128xi1>, vector<16x128xf32>
    %c3_329 = arith.constant 3 : index
    %c39_330 = arith.constant 39 : index
    %950 = memref.load %arg1[%c3_329, %c39_330] : memref<6x41xf32, #tpu.memory_space<smem>>
    %951 = vector.broadcast %950 : f32 to vector<16x128xf32>
    %952 = arith.select %946, %951, %944 : vector<16x128xi1>, vector<16x128xf32>
    %c40_i32_331 = arith.constant 40 : i32
    %953 = vector.broadcast %c40_i32_331 : i32 to vector<16x128xi32>
    %954 = arith.cmpi eq, %757, %953 : vector<16x128xi32>
    %c2_332 = arith.constant 2 : index
    %c40_333 = arith.constant 40 : index
    %955 = memref.load %arg1[%c2_332, %c40_333] : memref<6x41xf32, #tpu.memory_space<smem>>
    %956 = vector.broadcast %955 : f32 to vector<16x128xf32>
    %957 = arith.select %954, %956, %949 : vector<16x128xi1>, vector<16x128xf32>
    %c3_334 = arith.constant 3 : index
    %c40_335 = arith.constant 40 : index
    %958 = memref.load %arg1[%c3_334, %c40_335] : memref<6x41xf32, #tpu.memory_space<smem>>
    %959 = vector.broadcast %958 : f32 to vector<16x128xf32>
    %960 = arith.select %954, %959, %952 : vector<16x128xi1>, vector<16x128xf32>
    %c2_336 = arith.constant 2 : index
    %c0_337 = arith.constant 0 : index
    %961 = memref.load %arg1[%c2_336, %c0_337] : memref<6x41xf32, #tpu.memory_space<smem>>
    %c3_338 = arith.constant 3 : index
    %c0_339 = arith.constant 0 : index
    %962 = memref.load %arg1[%c3_338, %c0_339] : memref<6x41xf32, #tpu.memory_space<smem>>
    %c0_i32_340 = arith.constant 0 : i32
    %963 = vector.broadcast %c0_i32_340 : i32 to vector<16x128xi32>
    %964 = arith.cmpi eq, %760, %963 : vector<16x128xi32>
    %c0_i32_341 = arith.constant 0 : i32
    %965 = vector.broadcast %c0_i32_341 : i32 to vector<16x128xi32>
    %966 = arith.cmpi eq, %763, %965 : vector<16x128xi32>
    %967 = vector.broadcast %961 : f32 to vector<16x128xf32>
    %968 = arith.select %964, %967, %832 : vector<16x128xi1>, vector<16x128xf32>
    %969 = vector.broadcast %962 : f32 to vector<16x128xf32>
    %970 = arith.select %964, %969, %832 : vector<16x128xi1>, vector<16x128xf32>
    %971 = vector.broadcast %961 : f32 to vector<16x128xf32>
    %972 = arith.select %966, %971, %832 : vector<16x128xi1>, vector<16x128xf32>
    %973 = vector.broadcast %962 : f32 to vector<16x128xf32>
    %974 = arith.select %966, %973, %832 : vector<16x128xi1>, vector<16x128xf32>
    %c2_342 = arith.constant 2 : index
    %c1_343 = arith.constant 1 : index
    %975 = memref.load %arg1[%c2_342, %c1_343] : memref<6x41xf32, #tpu.memory_space<smem>>
    %c3_344 = arith.constant 3 : index
    %c1_345 = arith.constant 1 : index
    %976 = memref.load %arg1[%c3_344, %c1_345] : memref<6x41xf32, #tpu.memory_space<smem>>
    %c1_i32_346 = arith.constant 1 : i32
    %977 = vector.broadcast %c1_i32_346 : i32 to vector<16x128xi32>
    %978 = arith.cmpi eq, %760, %977 : vector<16x128xi32>
    %c1_i32_347 = arith.constant 1 : i32
    %979 = vector.broadcast %c1_i32_347 : i32 to vector<16x128xi32>
    %980 = arith.cmpi eq, %763, %979 : vector<16x128xi32>
    %981 = vector.broadcast %975 : f32 to vector<16x128xf32>
    %982 = arith.select %978, %981, %968 : vector<16x128xi1>, vector<16x128xf32>
    %983 = vector.broadcast %976 : f32 to vector<16x128xf32>
    %984 = arith.select %978, %983, %970 : vector<16x128xi1>, vector<16x128xf32>
    %985 = vector.broadcast %975 : f32 to vector<16x128xf32>
    %986 = arith.select %980, %985, %972 : vector<16x128xi1>, vector<16x128xf32>
    %987 = vector.broadcast %976 : f32 to vector<16x128xf32>
    %988 = arith.select %980, %987, %974 : vector<16x128xi1>, vector<16x128xf32>
    %c2_348 = arith.constant 2 : index
    %c2_349 = arith.constant 2 : index
    %989 = memref.load %arg1[%c2_348, %c2_349] : memref<6x41xf32, #tpu.memory_space<smem>>
    %c3_350 = arith.constant 3 : index
    %c2_351 = arith.constant 2 : index
    %990 = memref.load %arg1[%c3_350, %c2_351] : memref<6x41xf32, #tpu.memory_space<smem>>
    %c2_i32_352 = arith.constant 2 : i32
    %991 = vector.broadcast %c2_i32_352 : i32 to vector<16x128xi32>
    %992 = arith.cmpi eq, %760, %991 : vector<16x128xi32>
    %c2_i32_353 = arith.constant 2 : i32
    %993 = vector.broadcast %c2_i32_353 : i32 to vector<16x128xi32>
    %994 = arith.cmpi eq, %763, %993 : vector<16x128xi32>
    %995 = vector.broadcast %989 : f32 to vector<16x128xf32>
    %996 = arith.select %992, %995, %982 : vector<16x128xi1>, vector<16x128xf32>
    %997 = vector.broadcast %990 : f32 to vector<16x128xf32>
    %998 = arith.select %992, %997, %984 : vector<16x128xi1>, vector<16x128xf32>
    %999 = vector.broadcast %989 : f32 to vector<16x128xf32>
    %1000 = arith.select %994, %999, %986 : vector<16x128xi1>, vector<16x128xf32>
    %1001 = vector.broadcast %990 : f32 to vector<16x128xf32>
    %1002 = arith.select %994, %1001, %988 : vector<16x128xi1>, vector<16x128xf32>
    %c2_354 = arith.constant 2 : index
    %c3_355 = arith.constant 3 : index
    %1003 = memref.load %arg1[%c2_354, %c3_355] : memref<6x41xf32, #tpu.memory_space<smem>>
    %c3_356 = arith.constant 3 : index
    %c3_357 = arith.constant 3 : index
    %1004 = memref.load %arg1[%c3_356, %c3_357] : memref<6x41xf32, #tpu.memory_space<smem>>
    %c3_i32_358 = arith.constant 3 : i32
    %1005 = vector.broadcast %c3_i32_358 : i32 to vector<16x128xi32>
    %1006 = arith.cmpi eq, %760, %1005 : vector<16x128xi32>
    %c3_i32_359 = arith.constant 3 : i32
    %1007 = vector.broadcast %c3_i32_359 : i32 to vector<16x128xi32>
    %1008 = arith.cmpi eq, %763, %1007 : vector<16x128xi32>
    %1009 = vector.broadcast %1003 : f32 to vector<16x128xf32>
    %1010 = arith.select %1006, %1009, %996 : vector<16x128xi1>, vector<16x128xf32>
    %1011 = vector.broadcast %1004 : f32 to vector<16x128xf32>
    %1012 = arith.select %1006, %1011, %998 : vector<16x128xi1>, vector<16x128xf32>
    %1013 = vector.broadcast %1003 : f32 to vector<16x128xf32>
    %1014 = arith.select %1008, %1013, %1000 : vector<16x128xi1>, vector<16x128xf32>
    %1015 = vector.broadcast %1004 : f32 to vector<16x128xf32>
    %1016 = arith.select %1008, %1015, %1002 : vector<16x128xi1>, vector<16x128xf32>
    %c2_360 = arith.constant 2 : index
    %c4_361 = arith.constant 4 : index
    %1017 = memref.load %arg1[%c2_360, %c4_361] : memref<6x41xf32, #tpu.memory_space<smem>>
    %c3_362 = arith.constant 3 : index
    %c4_363 = arith.constant 4 : index
    %1018 = memref.load %arg1[%c3_362, %c4_363] : memref<6x41xf32, #tpu.memory_space<smem>>
    %c4_i32_364 = arith.constant 4 : i32
    %1019 = vector.broadcast %c4_i32_364 : i32 to vector<16x128xi32>
    %1020 = arith.cmpi eq, %760, %1019 : vector<16x128xi32>
    %c4_i32_365 = arith.constant 4 : i32
    %1021 = vector.broadcast %c4_i32_365 : i32 to vector<16x128xi32>
    %1022 = arith.cmpi eq, %763, %1021 : vector<16x128xi32>
    %1023 = vector.broadcast %1017 : f32 to vector<16x128xf32>
    %1024 = arith.select %1020, %1023, %1010 : vector<16x128xi1>, vector<16x128xf32>
    %1025 = vector.broadcast %1018 : f32 to vector<16x128xf32>
    %1026 = arith.select %1020, %1025, %1012 : vector<16x128xi1>, vector<16x128xf32>
    %1027 = vector.broadcast %1017 : f32 to vector<16x128xf32>
    %1028 = arith.select %1022, %1027, %1014 : vector<16x128xi1>, vector<16x128xf32>
    %1029 = vector.broadcast %1018 : f32 to vector<16x128xf32>
    %1030 = arith.select %1022, %1029, %1016 : vector<16x128xi1>, vector<16x128xf32>
    %c2_366 = arith.constant 2 : index
    %c5_367 = arith.constant 5 : index
    %1031 = memref.load %arg1[%c2_366, %c5_367] : memref<6x41xf32, #tpu.memory_space<smem>>
    %c3_368 = arith.constant 3 : index
    %c5_369 = arith.constant 5 : index
    %1032 = memref.load %arg1[%c3_368, %c5_369] : memref<6x41xf32, #tpu.memory_space<smem>>
    %c5_i32_370 = arith.constant 5 : i32
    %1033 = vector.broadcast %c5_i32_370 : i32 to vector<16x128xi32>
    %1034 = arith.cmpi eq, %760, %1033 : vector<16x128xi32>
    %c5_i32_371 = arith.constant 5 : i32
    %1035 = vector.broadcast %c5_i32_371 : i32 to vector<16x128xi32>
    %1036 = arith.cmpi eq, %763, %1035 : vector<16x128xi32>
    %1037 = vector.broadcast %1031 : f32 to vector<16x128xf32>
    %1038 = arith.select %1034, %1037, %1024 : vector<16x128xi1>, vector<16x128xf32>
    %1039 = vector.broadcast %1032 : f32 to vector<16x128xf32>
    %1040 = arith.select %1034, %1039, %1026 : vector<16x128xi1>, vector<16x128xf32>
    %1041 = vector.broadcast %1031 : f32 to vector<16x128xf32>
    %1042 = arith.select %1036, %1041, %1028 : vector<16x128xi1>, vector<16x128xf32>
    %1043 = vector.broadcast %1032 : f32 to vector<16x128xf32>
    %1044 = arith.select %1036, %1043, %1030 : vector<16x128xi1>, vector<16x128xf32>
    %c2_372 = arith.constant 2 : index
    %c6_373 = arith.constant 6 : index
    %1045 = memref.load %arg1[%c2_372, %c6_373] : memref<6x41xf32, #tpu.memory_space<smem>>
    %c3_374 = arith.constant 3 : index
    %c6_375 = arith.constant 6 : index
    %1046 = memref.load %arg1[%c3_374, %c6_375] : memref<6x41xf32, #tpu.memory_space<smem>>
    %c6_i32_376 = arith.constant 6 : i32
    %1047 = vector.broadcast %c6_i32_376 : i32 to vector<16x128xi32>
    %1048 = arith.cmpi eq, %760, %1047 : vector<16x128xi32>
    %c6_i32_377 = arith.constant 6 : i32
    %1049 = vector.broadcast %c6_i32_377 : i32 to vector<16x128xi32>
    %1050 = arith.cmpi eq, %763, %1049 : vector<16x128xi32>
    %1051 = vector.broadcast %1045 : f32 to vector<16x128xf32>
    %1052 = arith.select %1048, %1051, %1038 : vector<16x128xi1>, vector<16x128xf32>
    %1053 = vector.broadcast %1046 : f32 to vector<16x128xf32>
    %1054 = arith.select %1048, %1053, %1040 : vector<16x128xi1>, vector<16x128xf32>
    %1055 = vector.broadcast %1045 : f32 to vector<16x128xf32>
    %1056 = arith.select %1050, %1055, %1042 : vector<16x128xi1>, vector<16x128xf32>
    %1057 = vector.broadcast %1046 : f32 to vector<16x128xf32>
    %1058 = arith.select %1050, %1057, %1044 : vector<16x128xi1>, vector<16x128xf32>
    %c2_378 = arith.constant 2 : index
    %c7_379 = arith.constant 7 : index
    %1059 = memref.load %arg1[%c2_378, %c7_379] : memref<6x41xf32, #tpu.memory_space<smem>>
    %c3_380 = arith.constant 3 : index
    %c7_381 = arith.constant 7 : index
    %1060 = memref.load %arg1[%c3_380, %c7_381] : memref<6x41xf32, #tpu.memory_space<smem>>
    %c7_i32_382 = arith.constant 7 : i32
    %1061 = vector.broadcast %c7_i32_382 : i32 to vector<16x128xi32>
    %1062 = arith.cmpi eq, %760, %1061 : vector<16x128xi32>
    %c7_i32_383 = arith.constant 7 : i32
    %1063 = vector.broadcast %c7_i32_383 : i32 to vector<16x128xi32>
    %1064 = arith.cmpi eq, %763, %1063 : vector<16x128xi32>
    %1065 = vector.broadcast %1059 : f32 to vector<16x128xf32>
    %1066 = arith.select %1062, %1065, %1052 : vector<16x128xi1>, vector<16x128xf32>
    %1067 = vector.broadcast %1060 : f32 to vector<16x128xf32>
    %1068 = arith.select %1062, %1067, %1054 : vector<16x128xi1>, vector<16x128xf32>
    %1069 = vector.broadcast %1059 : f32 to vector<16x128xf32>
    %1070 = arith.select %1064, %1069, %1056 : vector<16x128xi1>, vector<16x128xf32>
    %1071 = vector.broadcast %1060 : f32 to vector<16x128xf32>
    %1072 = arith.select %1064, %1071, %1058 : vector<16x128xi1>, vector<16x128xf32>
    %c2_384 = arith.constant 2 : index
    %c8_385 = arith.constant 8 : index
    %1073 = memref.load %arg1[%c2_384, %c8_385] : memref<6x41xf32, #tpu.memory_space<smem>>
    %c3_386 = arith.constant 3 : index
    %c8_387 = arith.constant 8 : index
    %1074 = memref.load %arg1[%c3_386, %c8_387] : memref<6x41xf32, #tpu.memory_space<smem>>
    %c8_i32_388 = arith.constant 8 : i32
    %1075 = vector.broadcast %c8_i32_388 : i32 to vector<16x128xi32>
    %1076 = arith.cmpi eq, %760, %1075 : vector<16x128xi32>
    %c8_i32_389 = arith.constant 8 : i32
    %1077 = vector.broadcast %c8_i32_389 : i32 to vector<16x128xi32>
    %1078 = arith.cmpi eq, %763, %1077 : vector<16x128xi32>
    %1079 = vector.broadcast %1073 : f32 to vector<16x128xf32>
    %1080 = arith.select %1076, %1079, %1066 : vector<16x128xi1>, vector<16x128xf32>
    %1081 = vector.broadcast %1074 : f32 to vector<16x128xf32>
    %1082 = arith.select %1076, %1081, %1068 : vector<16x128xi1>, vector<16x128xf32>
    %1083 = vector.broadcast %1073 : f32 to vector<16x128xf32>
    %1084 = arith.select %1078, %1083, %1070 : vector<16x128xi1>, vector<16x128xf32>
    %1085 = vector.broadcast %1074 : f32 to vector<16x128xf32>
    %1086 = arith.select %1078, %1085, %1072 : vector<16x128xi1>, vector<16x128xf32>
    %c2_390 = arith.constant 2 : index
    %c9_391 = arith.constant 9 : index
    %1087 = memref.load %arg1[%c2_390, %c9_391] : memref<6x41xf32, #tpu.memory_space<smem>>
    %c3_392 = arith.constant 3 : index
    %c9_393 = arith.constant 9 : index
    %1088 = memref.load %arg1[%c3_392, %c9_393] : memref<6x41xf32, #tpu.memory_space<smem>>
    %c9_i32_394 = arith.constant 9 : i32
    %1089 = vector.broadcast %c9_i32_394 : i32 to vector<16x128xi32>
    %1090 = arith.cmpi eq, %760, %1089 : vector<16x128xi32>
    %c9_i32_395 = arith.constant 9 : i32
    %1091 = vector.broadcast %c9_i32_395 : i32 to vector<16x128xi32>
    %1092 = arith.cmpi eq, %763, %1091 : vector<16x128xi32>
    %1093 = vector.broadcast %1087 : f32 to vector<16x128xf32>
    %1094 = arith.select %1090, %1093, %1080 : vector<16x128xi1>, vector<16x128xf32>
    %1095 = vector.broadcast %1088 : f32 to vector<16x128xf32>
    %1096 = arith.select %1090, %1095, %1082 : vector<16x128xi1>, vector<16x128xf32>
    %1097 = vector.broadcast %1087 : f32 to vector<16x128xf32>
    %1098 = arith.select %1092, %1097, %1084 : vector<16x128xi1>, vector<16x128xf32>
    %1099 = vector.broadcast %1088 : f32 to vector<16x128xf32>
    %1100 = arith.select %1092, %1099, %1086 : vector<16x128xi1>, vector<16x128xf32>
    %c2_396 = arith.constant 2 : index
    %c10_397 = arith.constant 10 : index
    %1101 = memref.load %arg1[%c2_396, %c10_397] : memref<6x41xf32, #tpu.memory_space<smem>>
    %c3_398 = arith.constant 3 : index
    %c10_399 = arith.constant 10 : index
    %1102 = memref.load %arg1[%c3_398, %c10_399] : memref<6x41xf32, #tpu.memory_space<smem>>
    %c10_i32_400 = arith.constant 10 : i32
    %1103 = vector.broadcast %c10_i32_400 : i32 to vector<16x128xi32>
    %1104 = arith.cmpi eq, %760, %1103 : vector<16x128xi32>
    %c10_i32_401 = arith.constant 10 : i32
    %1105 = vector.broadcast %c10_i32_401 : i32 to vector<16x128xi32>
    %1106 = arith.cmpi eq, %763, %1105 : vector<16x128xi32>
    %1107 = vector.broadcast %1101 : f32 to vector<16x128xf32>
    %1108 = arith.select %1104, %1107, %1094 : vector<16x128xi1>, vector<16x128xf32>
    %1109 = vector.broadcast %1102 : f32 to vector<16x128xf32>
    %1110 = arith.select %1104, %1109, %1096 : vector<16x128xi1>, vector<16x128xf32>
    %1111 = vector.broadcast %1101 : f32 to vector<16x128xf32>
    %1112 = arith.select %1106, %1111, %1098 : vector<16x128xi1>, vector<16x128xf32>
    %1113 = vector.broadcast %1102 : f32 to vector<16x128xf32>
    %1114 = arith.select %1106, %1113, %1100 : vector<16x128xi1>, vector<16x128xf32>
    %c2_402 = arith.constant 2 : index
    %c11_403 = arith.constant 11 : index
    %1115 = memref.load %arg1[%c2_402, %c11_403] : memref<6x41xf32, #tpu.memory_space<smem>>
    %c3_404 = arith.constant 3 : index
    %c11_405 = arith.constant 11 : index
    %1116 = memref.load %arg1[%c3_404, %c11_405] : memref<6x41xf32, #tpu.memory_space<smem>>
    %c11_i32_406 = arith.constant 11 : i32
    %1117 = vector.broadcast %c11_i32_406 : i32 to vector<16x128xi32>
    %1118 = arith.cmpi eq, %760, %1117 : vector<16x128xi32>
    %c11_i32_407 = arith.constant 11 : i32
    %1119 = vector.broadcast %c11_i32_407 : i32 to vector<16x128xi32>
    %1120 = arith.cmpi eq, %763, %1119 : vector<16x128xi32>
    %1121 = vector.broadcast %1115 : f32 to vector<16x128xf32>
    %1122 = arith.select %1118, %1121, %1108 : vector<16x128xi1>, vector<16x128xf32>
    %1123 = vector.broadcast %1116 : f32 to vector<16x128xf32>
    %1124 = arith.select %1118, %1123, %1110 : vector<16x128xi1>, vector<16x128xf32>
    %1125 = vector.broadcast %1115 : f32 to vector<16x128xf32>
    %1126 = arith.select %1120, %1125, %1112 : vector<16x128xi1>, vector<16x128xf32>
    %1127 = vector.broadcast %1116 : f32 to vector<16x128xf32>
    %1128 = arith.select %1120, %1127, %1114 : vector<16x128xi1>, vector<16x128xf32>
    %c2_408 = arith.constant 2 : index
    %c12_409 = arith.constant 12 : index
    %1129 = memref.load %arg1[%c2_408, %c12_409] : memref<6x41xf32, #tpu.memory_space<smem>>
    %c3_410 = arith.constant 3 : index
    %c12_411 = arith.constant 12 : index
    %1130 = memref.load %arg1[%c3_410, %c12_411] : memref<6x41xf32, #tpu.memory_space<smem>>
    %c12_i32_412 = arith.constant 12 : i32
    %1131 = vector.broadcast %c12_i32_412 : i32 to vector<16x128xi32>
    %1132 = arith.cmpi eq, %760, %1131 : vector<16x128xi32>
    %c12_i32_413 = arith.constant 12 : i32
    %1133 = vector.broadcast %c12_i32_413 : i32 to vector<16x128xi32>
    %1134 = arith.cmpi eq, %763, %1133 : vector<16x128xi32>
    %1135 = vector.broadcast %1129 : f32 to vector<16x128xf32>
    %1136 = arith.select %1132, %1135, %1122 : vector<16x128xi1>, vector<16x128xf32>
    %1137 = vector.broadcast %1130 : f32 to vector<16x128xf32>
    %1138 = arith.select %1132, %1137, %1124 : vector<16x128xi1>, vector<16x128xf32>
    %1139 = vector.broadcast %1129 : f32 to vector<16x128xf32>
    %1140 = arith.select %1134, %1139, %1126 : vector<16x128xi1>, vector<16x128xf32>
    %1141 = vector.broadcast %1130 : f32 to vector<16x128xf32>
    %1142 = arith.select %1134, %1141, %1128 : vector<16x128xi1>, vector<16x128xf32>
    %c2_414 = arith.constant 2 : index
    %c13_415 = arith.constant 13 : index
    %1143 = memref.load %arg1[%c2_414, %c13_415] : memref<6x41xf32, #tpu.memory_space<smem>>
    %c3_416 = arith.constant 3 : index
    %c13_417 = arith.constant 13 : index
    %1144 = memref.load %arg1[%c3_416, %c13_417] : memref<6x41xf32, #tpu.memory_space<smem>>
    %c13_i32_418 = arith.constant 13 : i32
    %1145 = vector.broadcast %c13_i32_418 : i32 to vector<16x128xi32>
    %1146 = arith.cmpi eq, %760, %1145 : vector<16x128xi32>
    %c13_i32_419 = arith.constant 13 : i32
    %1147 = vector.broadcast %c13_i32_419 : i32 to vector<16x128xi32>
    %1148 = arith.cmpi eq, %763, %1147 : vector<16x128xi32>
    %1149 = vector.broadcast %1143 : f32 to vector<16x128xf32>
    %1150 = arith.select %1146, %1149, %1136 : vector<16x128xi1>, vector<16x128xf32>
    %1151 = vector.broadcast %1144 : f32 to vector<16x128xf32>
    %1152 = arith.select %1146, %1151, %1138 : vector<16x128xi1>, vector<16x128xf32>
    %1153 = vector.broadcast %1143 : f32 to vector<16x128xf32>
    %1154 = arith.select %1148, %1153, %1140 : vector<16x128xi1>, vector<16x128xf32>
    %1155 = vector.broadcast %1144 : f32 to vector<16x128xf32>
    %1156 = arith.select %1148, %1155, %1142 : vector<16x128xi1>, vector<16x128xf32>
    %c2_420 = arith.constant 2 : index
    %c14_421 = arith.constant 14 : index
    %1157 = memref.load %arg1[%c2_420, %c14_421] : memref<6x41xf32, #tpu.memory_space<smem>>
    %c3_422 = arith.constant 3 : index
    %c14_423 = arith.constant 14 : index
    %1158 = memref.load %arg1[%c3_422, %c14_423] : memref<6x41xf32, #tpu.memory_space<smem>>
    %c14_i32_424 = arith.constant 14 : i32
    %1159 = vector.broadcast %c14_i32_424 : i32 to vector<16x128xi32>
    %1160 = arith.cmpi eq, %760, %1159 : vector<16x128xi32>
    %c14_i32_425 = arith.constant 14 : i32
    %1161 = vector.broadcast %c14_i32_425 : i32 to vector<16x128xi32>
    %1162 = arith.cmpi eq, %763, %1161 : vector<16x128xi32>
    %1163 = vector.broadcast %1157 : f32 to vector<16x128xf32>
    %1164 = arith.select %1160, %1163, %1150 : vector<16x128xi1>, vector<16x128xf32>
    %1165 = vector.broadcast %1158 : f32 to vector<16x128xf32>
    %1166 = arith.select %1160, %1165, %1152 : vector<16x128xi1>, vector<16x128xf32>
    %1167 = vector.broadcast %1157 : f32 to vector<16x128xf32>
    %1168 = arith.select %1162, %1167, %1154 : vector<16x128xi1>, vector<16x128xf32>
    %1169 = vector.broadcast %1158 : f32 to vector<16x128xf32>
    %1170 = arith.select %1162, %1169, %1156 : vector<16x128xi1>, vector<16x128xf32>
    %c2_426 = arith.constant 2 : index
    %c15_427 = arith.constant 15 : index
    %1171 = memref.load %arg1[%c2_426, %c15_427] : memref<6x41xf32, #tpu.memory_space<smem>>
    %c3_428 = arith.constant 3 : index
    %c15_429 = arith.constant 15 : index
    %1172 = memref.load %arg1[%c3_428, %c15_429] : memref<6x41xf32, #tpu.memory_space<smem>>
    %c15_i32_430 = arith.constant 15 : i32
    %1173 = vector.broadcast %c15_i32_430 : i32 to vector<16x128xi32>
    %1174 = arith.cmpi eq, %760, %1173 : vector<16x128xi32>
    %c15_i32_431 = arith.constant 15 : i32
    %1175 = vector.broadcast %c15_i32_431 : i32 to vector<16x128xi32>
    %1176 = arith.cmpi eq, %763, %1175 : vector<16x128xi32>
    %1177 = vector.broadcast %1171 : f32 to vector<16x128xf32>
    %1178 = arith.select %1174, %1177, %1164 : vector<16x128xi1>, vector<16x128xf32>
    %1179 = vector.broadcast %1172 : f32 to vector<16x128xf32>
    %1180 = arith.select %1174, %1179, %1166 : vector<16x128xi1>, vector<16x128xf32>
    %1181 = vector.broadcast %1171 : f32 to vector<16x128xf32>
    %1182 = arith.select %1176, %1181, %1168 : vector<16x128xi1>, vector<16x128xf32>
    %1183 = vector.broadcast %1172 : f32 to vector<16x128xf32>
    %1184 = arith.select %1176, %1183, %1170 : vector<16x128xi1>, vector<16x128xf32>
    %c2_432 = arith.constant 2 : index
    %c16_433 = arith.constant 16 : index
    %1185 = memref.load %arg1[%c2_432, %c16_433] : memref<6x41xf32, #tpu.memory_space<smem>>
    %c3_434 = arith.constant 3 : index
    %c16_435 = arith.constant 16 : index
    %1186 = memref.load %arg1[%c3_434, %c16_435] : memref<6x41xf32, #tpu.memory_space<smem>>
    %c16_i32_436 = arith.constant 16 : i32
    %1187 = vector.broadcast %c16_i32_436 : i32 to vector<16x128xi32>
    %1188 = arith.cmpi eq, %760, %1187 : vector<16x128xi32>
    %c16_i32_437 = arith.constant 16 : i32
    %1189 = vector.broadcast %c16_i32_437 : i32 to vector<16x128xi32>
    %1190 = arith.cmpi eq, %763, %1189 : vector<16x128xi32>
    %1191 = vector.broadcast %1185 : f32 to vector<16x128xf32>
    %1192 = arith.select %1188, %1191, %1178 : vector<16x128xi1>, vector<16x128xf32>
    %1193 = vector.broadcast %1186 : f32 to vector<16x128xf32>
    %1194 = arith.select %1188, %1193, %1180 : vector<16x128xi1>, vector<16x128xf32>
    %1195 = vector.broadcast %1185 : f32 to vector<16x128xf32>
    %1196 = arith.select %1190, %1195, %1182 : vector<16x128xi1>, vector<16x128xf32>
    %1197 = vector.broadcast %1186 : f32 to vector<16x128xf32>
    %1198 = arith.select %1190, %1197, %1184 : vector<16x128xi1>, vector<16x128xf32>
    %c2_438 = arith.constant 2 : index
    %c17_439 = arith.constant 17 : index
    %1199 = memref.load %arg1[%c2_438, %c17_439] : memref<6x41xf32, #tpu.memory_space<smem>>
    %c3_440 = arith.constant 3 : index
    %c17_441 = arith.constant 17 : index
    %1200 = memref.load %arg1[%c3_440, %c17_441] : memref<6x41xf32, #tpu.memory_space<smem>>
    %c17_i32_442 = arith.constant 17 : i32
    %1201 = vector.broadcast %c17_i32_442 : i32 to vector<16x128xi32>
    %1202 = arith.cmpi eq, %760, %1201 : vector<16x128xi32>
    %c17_i32_443 = arith.constant 17 : i32
    %1203 = vector.broadcast %c17_i32_443 : i32 to vector<16x128xi32>
    %1204 = arith.cmpi eq, %763, %1203 : vector<16x128xi32>
    %1205 = vector.broadcast %1199 : f32 to vector<16x128xf32>
    %1206 = arith.select %1202, %1205, %1192 : vector<16x128xi1>, vector<16x128xf32>
    %1207 = vector.broadcast %1200 : f32 to vector<16x128xf32>
    %1208 = arith.select %1202, %1207, %1194 : vector<16x128xi1>, vector<16x128xf32>
    %1209 = vector.broadcast %1199 : f32 to vector<16x128xf32>
    %1210 = arith.select %1204, %1209, %1196 : vector<16x128xi1>, vector<16x128xf32>
    %1211 = vector.broadcast %1200 : f32 to vector<16x128xf32>
    %1212 = arith.select %1204, %1211, %1198 : vector<16x128xi1>, vector<16x128xf32>
    %c2_444 = arith.constant 2 : index
    %c18_445 = arith.constant 18 : index
    %1213 = memref.load %arg1[%c2_444, %c18_445] : memref<6x41xf32, #tpu.memory_space<smem>>
    %c3_446 = arith.constant 3 : index
    %c18_447 = arith.constant 18 : index
    %1214 = memref.load %arg1[%c3_446, %c18_447] : memref<6x41xf32, #tpu.memory_space<smem>>
    %c18_i32_448 = arith.constant 18 : i32
    %1215 = vector.broadcast %c18_i32_448 : i32 to vector<16x128xi32>
    %1216 = arith.cmpi eq, %760, %1215 : vector<16x128xi32>
    %c18_i32_449 = arith.constant 18 : i32
    %1217 = vector.broadcast %c18_i32_449 : i32 to vector<16x128xi32>
    %1218 = arith.cmpi eq, %763, %1217 : vector<16x128xi32>
    %1219 = vector.broadcast %1213 : f32 to vector<16x128xf32>
    %1220 = arith.select %1216, %1219, %1206 : vector<16x128xi1>, vector<16x128xf32>
    %1221 = vector.broadcast %1214 : f32 to vector<16x128xf32>
    %1222 = arith.select %1216, %1221, %1208 : vector<16x128xi1>, vector<16x128xf32>
    %1223 = vector.broadcast %1213 : f32 to vector<16x128xf32>
    %1224 = arith.select %1218, %1223, %1210 : vector<16x128xi1>, vector<16x128xf32>
    %1225 = vector.broadcast %1214 : f32 to vector<16x128xf32>
    %1226 = arith.select %1218, %1225, %1212 : vector<16x128xi1>, vector<16x128xf32>
    %c2_450 = arith.constant 2 : index
    %c19_451 = arith.constant 19 : index
    %1227 = memref.load %arg1[%c2_450, %c19_451] : memref<6x41xf32, #tpu.memory_space<smem>>
    %c3_452 = arith.constant 3 : index
    %c19_453 = arith.constant 19 : index
    %1228 = memref.load %arg1[%c3_452, %c19_453] : memref<6x41xf32, #tpu.memory_space<smem>>
    %c19_i32_454 = arith.constant 19 : i32
    %1229 = vector.broadcast %c19_i32_454 : i32 to vector<16x128xi32>
    %1230 = arith.cmpi eq, %760, %1229 : vector<16x128xi32>
    %c19_i32_455 = arith.constant 19 : i32
    %1231 = vector.broadcast %c19_i32_455 : i32 to vector<16x128xi32>
    %1232 = arith.cmpi eq, %763, %1231 : vector<16x128xi32>
    %1233 = vector.broadcast %1227 : f32 to vector<16x128xf32>
    %1234 = arith.select %1230, %1233, %1220 : vector<16x128xi1>, vector<16x128xf32>
    %1235 = vector.broadcast %1228 : f32 to vector<16x128xf32>
    %1236 = arith.select %1230, %1235, %1222 : vector<16x128xi1>, vector<16x128xf32>
    %1237 = vector.broadcast %1227 : f32 to vector<16x128xf32>
    %1238 = arith.select %1232, %1237, %1224 : vector<16x128xi1>, vector<16x128xf32>
    %1239 = vector.broadcast %1228 : f32 to vector<16x128xf32>
    %1240 = arith.select %1232, %1239, %1226 : vector<16x128xi1>, vector<16x128xf32>
    %c2_456 = arith.constant 2 : index
    %c20_457 = arith.constant 20 : index
    %1241 = memref.load %arg1[%c2_456, %c20_457] : memref<6x41xf32, #tpu.memory_space<smem>>
    %c3_458 = arith.constant 3 : index
    %c20_459 = arith.constant 20 : index
    %1242 = memref.load %arg1[%c3_458, %c20_459] : memref<6x41xf32, #tpu.memory_space<smem>>
    %c20_i32_460 = arith.constant 20 : i32
    %1243 = vector.broadcast %c20_i32_460 : i32 to vector<16x128xi32>
    %1244 = arith.cmpi eq, %760, %1243 : vector<16x128xi32>
    %c20_i32_461 = arith.constant 20 : i32
    %1245 = vector.broadcast %c20_i32_461 : i32 to vector<16x128xi32>
    %1246 = arith.cmpi eq, %763, %1245 : vector<16x128xi32>
    %1247 = vector.broadcast %1241 : f32 to vector<16x128xf32>
    %1248 = arith.select %1244, %1247, %1234 : vector<16x128xi1>, vector<16x128xf32>
    %1249 = vector.broadcast %1242 : f32 to vector<16x128xf32>
    %1250 = arith.select %1244, %1249, %1236 : vector<16x128xi1>, vector<16x128xf32>
    %1251 = vector.broadcast %1241 : f32 to vector<16x128xf32>
    %1252 = arith.select %1246, %1251, %1238 : vector<16x128xi1>, vector<16x128xf32>
    %1253 = vector.broadcast %1242 : f32 to vector<16x128xf32>
    %1254 = arith.select %1246, %1253, %1240 : vector<16x128xi1>, vector<16x128xf32>
    %c2_462 = arith.constant 2 : index
    %c21_463 = arith.constant 21 : index
    %1255 = memref.load %arg1[%c2_462, %c21_463] : memref<6x41xf32, #tpu.memory_space<smem>>
    %c3_464 = arith.constant 3 : index
    %c21_465 = arith.constant 21 : index
    %1256 = memref.load %arg1[%c3_464, %c21_465] : memref<6x41xf32, #tpu.memory_space<smem>>
    %c21_i32_466 = arith.constant 21 : i32
    %1257 = vector.broadcast %c21_i32_466 : i32 to vector<16x128xi32>
    %1258 = arith.cmpi eq, %760, %1257 : vector<16x128xi32>
    %c21_i32_467 = arith.constant 21 : i32
    %1259 = vector.broadcast %c21_i32_467 : i32 to vector<16x128xi32>
    %1260 = arith.cmpi eq, %763, %1259 : vector<16x128xi32>
    %1261 = vector.broadcast %1255 : f32 to vector<16x128xf32>
    %1262 = arith.select %1258, %1261, %1248 : vector<16x128xi1>, vector<16x128xf32>
    %1263 = vector.broadcast %1256 : f32 to vector<16x128xf32>
    %1264 = arith.select %1258, %1263, %1250 : vector<16x128xi1>, vector<16x128xf32>
    %1265 = vector.broadcast %1255 : f32 to vector<16x128xf32>
    %1266 = arith.select %1260, %1265, %1252 : vector<16x128xi1>, vector<16x128xf32>
    %1267 = vector.broadcast %1256 : f32 to vector<16x128xf32>
    %1268 = arith.select %1260, %1267, %1254 : vector<16x128xi1>, vector<16x128xf32>
    %c2_468 = arith.constant 2 : index
    %c22_469 = arith.constant 22 : index
    %1269 = memref.load %arg1[%c2_468, %c22_469] : memref<6x41xf32, #tpu.memory_space<smem>>
    %c3_470 = arith.constant 3 : index
    %c22_471 = arith.constant 22 : index
    %1270 = memref.load %arg1[%c3_470, %c22_471] : memref<6x41xf32, #tpu.memory_space<smem>>
    %c22_i32_472 = arith.constant 22 : i32
    %1271 = vector.broadcast %c22_i32_472 : i32 to vector<16x128xi32>
    %1272 = arith.cmpi eq, %760, %1271 : vector<16x128xi32>
    %c22_i32_473 = arith.constant 22 : i32
    %1273 = vector.broadcast %c22_i32_473 : i32 to vector<16x128xi32>
    %1274 = arith.cmpi eq, %763, %1273 : vector<16x128xi32>
    %1275 = vector.broadcast %1269 : f32 to vector<16x128xf32>
    %1276 = arith.select %1272, %1275, %1262 : vector<16x128xi1>, vector<16x128xf32>
    %1277 = vector.broadcast %1270 : f32 to vector<16x128xf32>
    %1278 = arith.select %1272, %1277, %1264 : vector<16x128xi1>, vector<16x128xf32>
    %1279 = vector.broadcast %1269 : f32 to vector<16x128xf32>
    %1280 = arith.select %1274, %1279, %1266 : vector<16x128xi1>, vector<16x128xf32>
    %1281 = vector.broadcast %1270 : f32 to vector<16x128xf32>
    %1282 = arith.select %1274, %1281, %1268 : vector<16x128xi1>, vector<16x128xf32>
    %c2_474 = arith.constant 2 : index
    %c23_475 = arith.constant 23 : index
    %1283 = memref.load %arg1[%c2_474, %c23_475] : memref<6x41xf32, #tpu.memory_space<smem>>
    %c3_476 = arith.constant 3 : index
    %c23_477 = arith.constant 23 : index
    %1284 = memref.load %arg1[%c3_476, %c23_477] : memref<6x41xf32, #tpu.memory_space<smem>>
    %c23_i32_478 = arith.constant 23 : i32
    %1285 = vector.broadcast %c23_i32_478 : i32 to vector<16x128xi32>
    %1286 = arith.cmpi eq, %760, %1285 : vector<16x128xi32>
    %c23_i32_479 = arith.constant 23 : i32
    %1287 = vector.broadcast %c23_i32_479 : i32 to vector<16x128xi32>
    %1288 = arith.cmpi eq, %763, %1287 : vector<16x128xi32>
    %1289 = vector.broadcast %1283 : f32 to vector<16x128xf32>
    %1290 = arith.select %1286, %1289, %1276 : vector<16x128xi1>, vector<16x128xf32>
    %1291 = vector.broadcast %1284 : f32 to vector<16x128xf32>
    %1292 = arith.select %1286, %1291, %1278 : vector<16x128xi1>, vector<16x128xf32>
    %1293 = vector.broadcast %1283 : f32 to vector<16x128xf32>
    %1294 = arith.select %1288, %1293, %1280 : vector<16x128xi1>, vector<16x128xf32>
    %1295 = vector.broadcast %1284 : f32 to vector<16x128xf32>
    %1296 = arith.select %1288, %1295, %1282 : vector<16x128xi1>, vector<16x128xf32>
    %c2_480 = arith.constant 2 : index
    %c24_481 = arith.constant 24 : index
    %1297 = memref.load %arg1[%c2_480, %c24_481] : memref<6x41xf32, #tpu.memory_space<smem>>
    %c3_482 = arith.constant 3 : index
    %c24_483 = arith.constant 24 : index
    %1298 = memref.load %arg1[%c3_482, %c24_483] : memref<6x41xf32, #tpu.memory_space<smem>>
    %c24_i32_484 = arith.constant 24 : i32
    %1299 = vector.broadcast %c24_i32_484 : i32 to vector<16x128xi32>
    %1300 = arith.cmpi eq, %760, %1299 : vector<16x128xi32>
    %c24_i32_485 = arith.constant 24 : i32
    %1301 = vector.broadcast %c24_i32_485 : i32 to vector<16x128xi32>
    %1302 = arith.cmpi eq, %763, %1301 : vector<16x128xi32>
    %1303 = vector.broadcast %1297 : f32 to vector<16x128xf32>
    %1304 = arith.select %1300, %1303, %1290 : vector<16x128xi1>, vector<16x128xf32>
    %1305 = vector.broadcast %1298 : f32 to vector<16x128xf32>
    %1306 = arith.select %1300, %1305, %1292 : vector<16x128xi1>, vector<16x128xf32>
    %1307 = vector.broadcast %1297 : f32 to vector<16x128xf32>
    %1308 = arith.select %1302, %1307, %1294 : vector<16x128xi1>, vector<16x128xf32>
    %1309 = vector.broadcast %1298 : f32 to vector<16x128xf32>
    %1310 = arith.select %1302, %1309, %1296 : vector<16x128xi1>, vector<16x128xf32>
    %1311 = arith.addf %811, %821 : vector<16x128xf32>
    %1312 = arith.addf %1311, %831 : vector<16x128xf32>
    %1313 = tpu.reciprocal %1312 {approx = true} : vector<16x128xf32> -> vector<16x128xf32>
    %1314 = arith.mulf %957, %811 : vector<16x128xf32>
    %1315 = arith.mulf %1304, %821 : vector<16x128xf32>
    %1316 = arith.addf %1314, %1315 : vector<16x128xf32>
    %1317 = arith.mulf %1308, %831 : vector<16x128xf32>
    %1318 = arith.addf %1316, %1317 : vector<16x128xf32>
    %1319 = arith.mulf %1318, %1313 : vector<16x128xf32>
    %1320 = arith.mulf %960, %811 : vector<16x128xf32>
    %1321 = arith.mulf %1306, %821 : vector<16x128xf32>
    %1322 = arith.addf %1320, %1321 : vector<16x128xf32>
    %1323 = arith.mulf %1310, %831 : vector<16x128xf32>
    %1324 = arith.addf %1322, %1323 : vector<16x128xf32>
    %1325 = arith.mulf %1324, %1313 : vector<16x128xf32>
    %1326 = arith.subf %792, %785 : vector<16x128xf32>
    %1327 = arith.subf %798, %785 : vector<16x128xf32>
    %1328 = arith.subf %795, %789 : vector<16x128xf32>
    %1329 = arith.subf %801, %789 : vector<16x128xf32>
    %1330 = arith.subf %1304, %957 : vector<16x128xf32>
    %1331 = arith.subf %1308, %957 : vector<16x128xf32>
    %1332 = arith.subf %1306, %960 : vector<16x128xf32>
    %1333 = arith.subf %1310, %960 : vector<16x128xf32>
    %1334 = arith.mulf %1326, %1329 : vector<16x128xf32>
    %1335 = arith.mulf %1327, %1328 : vector<16x128xf32>
    %1336 = arith.subf %1334, %1335 : vector<16x128xf32>
    %1337 = tpu.reciprocal %1336 {approx = true} : vector<16x128xf32> -> vector<16x128xf32>
    %1338 = arith.mulf %1330, %1329 : vector<16x128xf32>
    %1339 = arith.mulf %1331, %1328 : vector<16x128xf32>
    %1340 = arith.subf %1338, %1339 : vector<16x128xf32>
    %1341 = arith.mulf %1340, %1337 : vector<16x128xf32>
    %1342 = arith.mulf %1331, %1326 : vector<16x128xf32>
    %1343 = arith.mulf %1330, %1327 : vector<16x128xf32>
    %1344 = arith.subf %1342, %1343 : vector<16x128xf32>
    %1345 = arith.mulf %1344, %1337 : vector<16x128xf32>
    %1346 = arith.mulf %1332, %1329 : vector<16x128xf32>
    %1347 = arith.mulf %1333, %1328 : vector<16x128xf32>
    %1348 = arith.subf %1346, %1347 : vector<16x128xf32>
    %1349 = arith.mulf %1348, %1337 : vector<16x128xf32>
    %1350 = arith.mulf %1333, %1326 : vector<16x128xf32>
    %1351 = arith.mulf %1332, %1327 : vector<16x128xf32>
    %1352 = arith.subf %1350, %1351 : vector<16x128xf32>
    %1353 = arith.mulf %1352, %1337 : vector<16x128xf32>
    %cst_486 = arith.constant 5.000000e-01 : f32
    %1354 = vector.broadcast %cst_486 : f32 to vector<16x128xf32>
    %1355 = arith.mulf %651, %1354 : vector<16x128xf32>
    %cst_487 = arith.constant 5.000000e-01 : f32
    %1356 = vector.broadcast %cst_487 : f32 to vector<16x128xf32>
    %1357 = arith.addf %1355, %1356 : vector<16x128xf32>
    %cst_488 = arith.constant 5.000000e-01 : f32
    %1358 = vector.broadcast %cst_488 : f32 to vector<16x128xf32>
    %1359 = arith.mulf %1325, %1358 : vector<16x128xf32>
    %cst_489 = arith.constant 5.000000e-01 : f32
    %1360 = vector.broadcast %cst_489 : f32 to vector<16x128xf32>
    %1361 = arith.addf %1359, %1360 : vector<16x128xf32>
    %cst_490 = arith.constant 2.500000e-01 : f32
    %1362 = vector.broadcast %cst_490 : f32 to vector<16x128xf32>
    %1363 = arith.divf %1357, %1362 : vector<16x128xf32>
    %1364 = math.floor %1363 : vector<16x128xf32>
    %cst_491 = arith.constant 1.000000e+00 : f32
    %1365 = vector.broadcast %cst_491 : f32 to vector<16x128xf32>
    %1366 = arith.subf %1365, %1361 : vector<16x128xf32>
    %cst_492 = arith.constant 2.500000e-01 : f32
    %1367 = vector.broadcast %cst_492 : f32 to vector<16x128xf32>
    %1368 = arith.divf %1366, %1367 : vector<16x128xf32>
    %1369 = math.floor %1368 : vector<16x128xf32>
    %cst_493 = arith.constant 0.000000e+00 : f32
    %cst_494 = arith.constant 3.000000e+00 : f32
    %1370 = vector.broadcast %cst_493 : f32 to vector<16x128xf32>
    %1371 = arith.maximumf %1370, %1364 : vector<16x128xf32>
    %1372 = vector.broadcast %cst_494 : f32 to vector<16x128xf32>
    %1373 = arith.minimumf %1372, %1371 : vector<16x128xf32>
    %cst_495 = arith.constant 0.000000e+00 : f32
    %cst_496 = arith.constant 3.000000e+00 : f32
    %1374 = vector.broadcast %cst_495 : f32 to vector<16x128xf32>
    %1375 = arith.maximumf %1374, %1369 : vector<16x128xf32>
    %1376 = vector.broadcast %cst_496 : f32 to vector<16x128xf32>
    %1377 = arith.minimumf %1376, %1375 : vector<16x128xf32>
    %cst_497 = arith.constant -0.949999988 : f32
    %cst_498 = arith.constant 0.949999988 : f32
    %1378 = vector.broadcast %cst_497 : f32 to vector<16x128xf32>
    %1379 = arith.maximumf %1378, %1357 : vector<16x128xf32>
    %1380 = vector.broadcast %cst_498 : f32 to vector<16x128xf32>
    %1381 = arith.minimumf %1380, %1379 : vector<16x128xf32>
    %cst_499 = arith.constant -0.949999988 : f32
    %cst_500 = arith.constant 0.949999988 : f32
    %1382 = vector.broadcast %cst_499 : f32 to vector<16x128xf32>
    %1383 = arith.maximumf %1382, %1361 : vector<16x128xf32>
    %1384 = vector.broadcast %cst_500 : f32 to vector<16x128xf32>
    %1385 = arith.minimumf %1384, %1383 : vector<16x128xf32>
    %cst_501 = arith.constant 5.000000e-01 : f32
    %1386 = vector.broadcast %cst_501 : f32 to vector<16x128xf32>
    %1387 = arith.addf %1373, %1386 : vector<16x128xf32>
    %cst_502 = arith.constant 2.500000e-01 : f32
    %1388 = vector.broadcast %cst_502 : f32 to vector<16x128xf32>
    %1389 = arith.mulf %1387, %1388 : vector<16x128xf32>
    %cst_503 = arith.constant 5.000000e-01 : f32
    %1390 = vector.broadcast %cst_503 : f32 to vector<16x128xf32>
    %1391 = arith.addf %1377, %1390 : vector<16x128xf32>
    %cst_504 = arith.constant 2.500000e-01 : f32
    %1392 = vector.broadcast %cst_504 : f32 to vector<16x128xf32>
    %1393 = arith.mulf %1391, %1392 : vector<16x128xf32>
    %cst_505 = arith.constant 1.000000e+00 : f32
    %1394 = vector.broadcast %cst_505 : f32 to vector<16x128xf32>
    %1395 = arith.subf %1394, %1393 : vector<16x128xf32>
    %1396 = arith.subf %1381, %1389 : vector<16x128xf32>
    %1397 = arith.subf %1385, %1395 : vector<16x128xf32>
    %cst_506 = arith.constant 9.99999974E-6 : f32
    %1398 = vector.broadcast %cst_506 : f32 to vector<16x128xf32>
    %1399 = arith.addf %1396, %1398 : vector<16x128xf32>
    %1400 = arith.divf %1397, %1399 : vector<16x128xf32>
    %cst_507 = arith.constant 1.000000e+00 : f32
    %1401 = vector.broadcast %cst_507 : f32 to vector<16x128xf32>
    %1402 = arith.cmpf ole, %1400, %1401 : vector<16x128xf32>
    %cst_508 = arith.constant -1.000000e+00 : f32
    %1403 = vector.broadcast %cst_508 : f32 to vector<16x128xf32>
    %1404 = arith.cmpf ogt, %1400, %1403 : vector<16x128xf32>
    %1405 = arith.andi %1402, %1404 : vector<16x128xi1>
    %cst_509 = arith.constant 0.000000e+00 : f32
    %1406 = vector.broadcast %cst_509 : f32 to vector<16x128xf32>
    %1407 = arith.cmpf oge, %1396, %1406 : vector<16x128xf32>
    %1408 = arith.andi %1407, %1405 : vector<16x128xi1>
    %cst_510 = arith.constant 0.000000e+00 : f32
    %1409 = vector.broadcast %cst_510 : f32 to vector<16x128xf32>
    %1410 = arith.cmpf oge, %1397, %1409 : vector<16x128xf32>
    %cst_511 = arith.constant dense<true> : vector<16x128xi1>
    %1411 = arith.xori %1405, %cst_511 : vector<16x128xi1>
    %1412 = arith.andi %1410, %1411 : vector<16x128xi1>
    %cst_512 = arith.constant 0.000000e+00 : f32
    %1413 = vector.broadcast %cst_512 : f32 to vector<16x128xf32>
    %1414 = arith.cmpf olt, %1396, %1413 : vector<16x128xf32>
    %1415 = arith.andi %1414, %1405 : vector<16x128xi1>
    %1416 = arith.fptosi %1377 : vector<16x128xf32> to vector<16x128xi32>
    %1417 = arith.fptosi %1373 : vector<16x128xf32> to vector<16x128xi32>
    %c5_i32_513 = arith.constant 5 : i32
    %1418 = vector.broadcast %c5_i32_513 : i32 to vector<16x128xi32>
    %1419 = arith.muli %1416, %1418 : vector<16x128xi32>
    %1420 = arith.addi %1419, %1417 : vector<16x128xi32>
    %c1_i32_514 = arith.constant 1 : i32
    %1421 = vector.broadcast %c1_i32_514 : i32 to vector<16x128xi32>
    %1422 = arith.addi %1420, %1421 : vector<16x128xi32>
    %c5_i32_515 = arith.constant 5 : i32
    %1423 = vector.broadcast %c5_i32_515 : i32 to vector<16x128xi32>
    %1424 = arith.addi %1420, %1423 : vector<16x128xi32>
    %c1_i32_516 = arith.constant 1 : i32
    %1425 = vector.broadcast %c1_i32_516 : i32 to vector<16x128xi32>
    %1426 = arith.addi %1424, %1425 : vector<16x128xi32>
    %c4_i32_517 = arith.constant 4 : i32
    %1427 = vector.broadcast %c4_i32_517 : i32 to vector<16x128xi32>
    %1428 = arith.muli %1416, %1427 : vector<16x128xi32>
    %1429 = arith.addi %1428, %1417 : vector<16x128xi32>
    %c25_i32_518 = arith.constant 25 : i32
    %1430 = vector.broadcast %c25_i32_518 : i32 to vector<16x128xi32>
    %1431 = arith.addi %1429, %1430 : vector<16x128xi32>
    %1432 = arith.select %1415, %1424, %1426 : vector<16x128xi1>, vector<16x128xi32>
    %1433 = arith.select %1412, %1420, %1432 : vector<16x128xi1>, vector<16x128xi32>
    %1434 = arith.select %1408, %1422, %1433 : vector<16x128xi1>, vector<16x128xi32>
    %1435 = arith.select %1415, %1420, %1424 : vector<16x128xi1>, vector<16x128xi32>
    %1436 = arith.select %1412, %1422, %1435 : vector<16x128xi1>, vector<16x128xi32>
    %1437 = arith.select %1408, %1426, %1436 : vector<16x128xi1>, vector<16x128xi32>
    %cst_519 = arith.constant 2.500000e-01 : f32
    %1438 = vector.broadcast %cst_519 : f32 to vector<16x128xf32>
    %1439 = arith.mulf %1373, %1438 : vector<16x128xf32>
    %cst_520 = arith.constant 2.000000e+00 : f32
    %1440 = vector.broadcast %cst_520 : f32 to vector<16x128xf32>
    %1441 = arith.mulf %1440, %1439 : vector<16x128xf32>
    %cst_521 = arith.constant 1.000000e+00 : f32
    %1442 = vector.broadcast %cst_521 : f32 to vector<16x128xf32>
    %1443 = arith.subf %1441, %1442 : vector<16x128xf32>
    %cst_522 = arith.constant 2.500000e-01 : f32
    %1444 = vector.broadcast %cst_522 : f32 to vector<16x128xf32>
    %1445 = arith.mulf %1377, %1444 : vector<16x128xf32>
    %cst_523 = arith.constant 1.000000e+00 : f32
    %1446 = vector.broadcast %cst_523 : f32 to vector<16x128xf32>
    %1447 = arith.subf %1446, %1445 : vector<16x128xf32>
    %cst_524 = arith.constant 2.000000e+00 : f32
    %1448 = vector.broadcast %cst_524 : f32 to vector<16x128xf32>
    %1449 = arith.mulf %1448, %1447 : vector<16x128xf32>
    %cst_525 = arith.constant 1.000000e+00 : f32
    %1450 = vector.broadcast %cst_525 : f32 to vector<16x128xf32>
    %1451 = arith.subf %1449, %1450 : vector<16x128xf32>
    %cst_526 = arith.constant 5.000000e-01 : f32
    %1452 = vector.broadcast %cst_526 : f32 to vector<16x128xf32>
    %1453 = arith.addf %1443, %1452 : vector<16x128xf32>
    %cst_527 = arith.constant 5.000000e-01 : f32
    %1454 = vector.broadcast %cst_527 : f32 to vector<16x128xf32>
    %1455 = arith.subf %1451, %1454 : vector<16x128xf32>
    %cst_528 = arith.constant 2.000000e+00 : f32
    %1456 = vector.broadcast %cst_528 : f32 to vector<16x128xf32>
    %1457 = arith.mulf %1456, %1389 : vector<16x128xf32>
    %cst_529 = arith.constant 1.000000e+00 : f32
    %1458 = vector.broadcast %cst_529 : f32 to vector<16x128xf32>
    %1459 = arith.subf %1457, %1458 : vector<16x128xf32>
    %cst_530 = arith.constant 2.000000e+00 : f32
    %1460 = vector.broadcast %cst_530 : f32 to vector<16x128xf32>
    %1461 = arith.mulf %1460, %1395 : vector<16x128xf32>
    %cst_531 = arith.constant 1.000000e+00 : f32
    %1462 = vector.broadcast %cst_531 : f32 to vector<16x128xf32>
    %1463 = arith.subf %1461, %1462 : vector<16x128xf32>
    %1464 = arith.select %1415, %1443, %1453 : vector<16x128xi1>, vector<16x128xf32>
    %1465 = arith.select %1412, %1443, %1464 : vector<16x128xi1>, vector<16x128xf32>
    %1466 = arith.select %1408, %1453, %1465 : vector<16x128xi1>, vector<16x128xf32>
    %1467 = arith.select %1415, %1455, %1455 : vector<16x128xi1>, vector<16x128xf32>
    %1468 = arith.select %1412, %1451, %1467 : vector<16x128xi1>, vector<16x128xf32>
    %1469 = arith.select %1408, %1451, %1468 : vector<16x128xi1>, vector<16x128xf32>
    %1470 = arith.select %1415, %1443, %1443 : vector<16x128xi1>, vector<16x128xf32>
    %1471 = arith.select %1412, %1453, %1470 : vector<16x128xi1>, vector<16x128xf32>
    %1472 = arith.select %1408, %1453, %1471 : vector<16x128xi1>, vector<16x128xf32>
    %1473 = arith.select %1415, %1451, %1455 : vector<16x128xi1>, vector<16x128xf32>
    %1474 = arith.select %1412, %1451, %1473 : vector<16x128xi1>, vector<16x128xf32>
    %1475 = arith.select %1408, %1455, %1474 : vector<16x128xi1>, vector<16x128xf32>
    %1476 = arith.subf %651, %1466 : vector<16x128xf32>
    %1477 = arith.subf %1325, %1475 : vector<16x128xf32>
    %1478 = arith.mulf %1476, %1477 : vector<16x128xf32>
    %1479 = arith.subf %1325, %1469 : vector<16x128xf32>
    %1480 = arith.subf %651, %1472 : vector<16x128xf32>
    %1481 = arith.mulf %1479, %1480 : vector<16x128xf32>
    %1482 = arith.subf %1478, %1481 : vector<16x128xf32>
    %1483 = math.absf %1482 : vector<16x128xf32>
    %cst_532 = arith.constant 5.000000e-01 : f32
    %1484 = vector.broadcast %cst_532 : f32 to vector<16x128xf32>
    %1485 = arith.mulf %1483, %1484 : vector<16x128xf32>
    %1486 = arith.subf %651, %1459 : vector<16x128xf32>
    %1487 = arith.subf %1325, %1475 : vector<16x128xf32>
    %1488 = arith.mulf %1486, %1487 : vector<16x128xf32>
    %1489 = arith.subf %1325, %1463 : vector<16x128xf32>
    %1490 = arith.subf %651, %1472 : vector<16x128xf32>
    %1491 = arith.mulf %1489, %1490 : vector<16x128xf32>
    %1492 = arith.subf %1488, %1491 : vector<16x128xf32>
    %1493 = math.absf %1492 : vector<16x128xf32>
    %cst_533 = arith.constant 5.000000e-01 : f32
    %1494 = vector.broadcast %cst_533 : f32 to vector<16x128xf32>
    %1495 = arith.mulf %1493, %1494 : vector<16x128xf32>
    %1496 = arith.subf %651, %1459 : vector<16x128xf32>
    %1497 = arith.subf %1325, %1469 : vector<16x128xf32>
    %1498 = arith.mulf %1496, %1497 : vector<16x128xf32>
    %1499 = arith.subf %1325, %1463 : vector<16x128xf32>
    %1500 = arith.subf %651, %1466 : vector<16x128xf32>
    %1501 = arith.mulf %1499, %1500 : vector<16x128xf32>
    %1502 = arith.subf %1498, %1501 : vector<16x128xf32>
    %1503 = math.absf %1502 : vector<16x128xf32>
    %cst_534 = arith.constant 5.000000e-01 : f32
    %1504 = vector.broadcast %cst_534 : f32 to vector<16x128xf32>
    %1505 = arith.mulf %1503, %1504 : vector<16x128xf32>
    %cst_535 = arith.constant 0.000000e+00 : f32
    %1506 = vector.broadcast %cst_535 : f32 to vector<16x128xf32>
    %c25_i32_536 = arith.constant 25 : i32
    %1507 = vector.broadcast %c25_i32_536 : i32 to vector<16x128xi32>
    %1508 = arith.cmpi eq, %1431, %1507 : vector<16x128xi32>
    %c4_537 = arith.constant 4 : index
    %c25_538 = arith.constant 25 : index
    %1509 = memref.load %arg1[%c4_537, %c25_538] : memref<6x41xf32, #tpu.memory_space<smem>>
    %1510 = vector.broadcast %1509 : f32 to vector<16x128xf32>
    %1511 = arith.select %1508, %1510, %1506 : vector<16x128xi1>, vector<16x128xf32>
    %c5_539 = arith.constant 5 : index
    %c25_540 = arith.constant 25 : index
    %1512 = memref.load %arg1[%c5_539, %c25_540] : memref<6x41xf32, #tpu.memory_space<smem>>
    %1513 = vector.broadcast %1512 : f32 to vector<16x128xf32>
    %1514 = arith.select %1508, %1513, %1506 : vector<16x128xi1>, vector<16x128xf32>
    %c26_i32_541 = arith.constant 26 : i32
    %1515 = vector.broadcast %c26_i32_541 : i32 to vector<16x128xi32>
    %1516 = arith.cmpi eq, %1431, %1515 : vector<16x128xi32>
    %c4_542 = arith.constant 4 : index
    %c26_543 = arith.constant 26 : index
    %1517 = memref.load %arg1[%c4_542, %c26_543] : memref<6x41xf32, #tpu.memory_space<smem>>
    %1518 = vector.broadcast %1517 : f32 to vector<16x128xf32>
    %1519 = arith.select %1516, %1518, %1511 : vector<16x128xi1>, vector<16x128xf32>
    %c5_544 = arith.constant 5 : index
    %c26_545 = arith.constant 26 : index
    %1520 = memref.load %arg1[%c5_544, %c26_545] : memref<6x41xf32, #tpu.memory_space<smem>>
    %1521 = vector.broadcast %1520 : f32 to vector<16x128xf32>
    %1522 = arith.select %1516, %1521, %1514 : vector<16x128xi1>, vector<16x128xf32>
    %c27_i32_546 = arith.constant 27 : i32
    %1523 = vector.broadcast %c27_i32_546 : i32 to vector<16x128xi32>
    %1524 = arith.cmpi eq, %1431, %1523 : vector<16x128xi32>
    %c4_547 = arith.constant 4 : index
    %c27_548 = arith.constant 27 : index
    %1525 = memref.load %arg1[%c4_547, %c27_548] : memref<6x41xf32, #tpu.memory_space<smem>>
    %1526 = vector.broadcast %1525 : f32 to vector<16x128xf32>
    %1527 = arith.select %1524, %1526, %1519 : vector<16x128xi1>, vector<16x128xf32>
    %c5_549 = arith.constant 5 : index
    %c27_550 = arith.constant 27 : index
    %1528 = memref.load %arg1[%c5_549, %c27_550] : memref<6x41xf32, #tpu.memory_space<smem>>
    %1529 = vector.broadcast %1528 : f32 to vector<16x128xf32>
    %1530 = arith.select %1524, %1529, %1522 : vector<16x128xi1>, vector<16x128xf32>
    %c28_i32_551 = arith.constant 28 : i32
    %1531 = vector.broadcast %c28_i32_551 : i32 to vector<16x128xi32>
    %1532 = arith.cmpi eq, %1431, %1531 : vector<16x128xi32>
    %c4_552 = arith.constant 4 : index
    %c28_553 = arith.constant 28 : index
    %1533 = memref.load %arg1[%c4_552, %c28_553] : memref<6x41xf32, #tpu.memory_space<smem>>
    %1534 = vector.broadcast %1533 : f32 to vector<16x128xf32>
    %1535 = arith.select %1532, %1534, %1527 : vector<16x128xi1>, vector<16x128xf32>
    %c5_554 = arith.constant 5 : index
    %c28_555 = arith.constant 28 : index
    %1536 = memref.load %arg1[%c5_554, %c28_555] : memref<6x41xf32, #tpu.memory_space<smem>>
    %1537 = vector.broadcast %1536 : f32 to vector<16x128xf32>
    %1538 = arith.select %1532, %1537, %1530 : vector<16x128xi1>, vector<16x128xf32>
    %c29_i32_556 = arith.constant 29 : i32
    %1539 = vector.broadcast %c29_i32_556 : i32 to vector<16x128xi32>
    %1540 = arith.cmpi eq, %1431, %1539 : vector<16x128xi32>
    %c4_557 = arith.constant 4 : index
    %c29_558 = arith.constant 29 : index
    %1541 = memref.load %arg1[%c4_557, %c29_558] : memref<6x41xf32, #tpu.memory_space<smem>>
    %1542 = vector.broadcast %1541 : f32 to vector<16x128xf32>
    %1543 = arith.select %1540, %1542, %1535 : vector<16x128xi1>, vector<16x128xf32>
    %c5_559 = arith.constant 5 : index
    %c29_560 = arith.constant 29 : index
    %1544 = memref.load %arg1[%c5_559, %c29_560] : memref<6x41xf32, #tpu.memory_space<smem>>
    %1545 = vector.broadcast %1544 : f32 to vector<16x128xf32>
    %1546 = arith.select %1540, %1545, %1538 : vector<16x128xi1>, vector<16x128xf32>
    %c30_i32_561 = arith.constant 30 : i32
    %1547 = vector.broadcast %c30_i32_561 : i32 to vector<16x128xi32>
    %1548 = arith.cmpi eq, %1431, %1547 : vector<16x128xi32>
    %c4_562 = arith.constant 4 : index
    %c30_563 = arith.constant 30 : index
    %1549 = memref.load %arg1[%c4_562, %c30_563] : memref<6x41xf32, #tpu.memory_space<smem>>
    %1550 = vector.broadcast %1549 : f32 to vector<16x128xf32>
    %1551 = arith.select %1548, %1550, %1543 : vector<16x128xi1>, vector<16x128xf32>
    %c5_564 = arith.constant 5 : index
    %c30_565 = arith.constant 30 : index
    %1552 = memref.load %arg1[%c5_564, %c30_565] : memref<6x41xf32, #tpu.memory_space<smem>>
    %1553 = vector.broadcast %1552 : f32 to vector<16x128xf32>
    %1554 = arith.select %1548, %1553, %1546 : vector<16x128xi1>, vector<16x128xf32>
    %c31_i32_566 = arith.constant 31 : i32
    %1555 = vector.broadcast %c31_i32_566 : i32 to vector<16x128xi32>
    %1556 = arith.cmpi eq, %1431, %1555 : vector<16x128xi32>
    %c4_567 = arith.constant 4 : index
    %c31_568 = arith.constant 31 : index
    %1557 = memref.load %arg1[%c4_567, %c31_568] : memref<6x41xf32, #tpu.memory_space<smem>>
    %1558 = vector.broadcast %1557 : f32 to vector<16x128xf32>
    %1559 = arith.select %1556, %1558, %1551 : vector<16x128xi1>, vector<16x128xf32>
    %c5_569 = arith.constant 5 : index
    %c31_570 = arith.constant 31 : index
    %1560 = memref.load %arg1[%c5_569, %c31_570] : memref<6x41xf32, #tpu.memory_space<smem>>
    %1561 = vector.broadcast %1560 : f32 to vector<16x128xf32>
    %1562 = arith.select %1556, %1561, %1554 : vector<16x128xi1>, vector<16x128xf32>
    %c32_i32_571 = arith.constant 32 : i32
    %1563 = vector.broadcast %c32_i32_571 : i32 to vector<16x128xi32>
    %1564 = arith.cmpi eq, %1431, %1563 : vector<16x128xi32>
    %c4_572 = arith.constant 4 : index
    %c32_573 = arith.constant 32 : index
    %1565 = memref.load %arg1[%c4_572, %c32_573] : memref<6x41xf32, #tpu.memory_space<smem>>
    %1566 = vector.broadcast %1565 : f32 to vector<16x128xf32>
    %1567 = arith.select %1564, %1566, %1559 : vector<16x128xi1>, vector<16x128xf32>
    %c5_574 = arith.constant 5 : index
    %c32_575 = arith.constant 32 : index
    %1568 = memref.load %arg1[%c5_574, %c32_575] : memref<6x41xf32, #tpu.memory_space<smem>>
    %1569 = vector.broadcast %1568 : f32 to vector<16x128xf32>
    %1570 = arith.select %1564, %1569, %1562 : vector<16x128xi1>, vector<16x128xf32>
    %c33_i32_576 = arith.constant 33 : i32
    %1571 = vector.broadcast %c33_i32_576 : i32 to vector<16x128xi32>
    %1572 = arith.cmpi eq, %1431, %1571 : vector<16x128xi32>
    %c4_577 = arith.constant 4 : index
    %c33_578 = arith.constant 33 : index
    %1573 = memref.load %arg1[%c4_577, %c33_578] : memref<6x41xf32, #tpu.memory_space<smem>>
    %1574 = vector.broadcast %1573 : f32 to vector<16x128xf32>
    %1575 = arith.select %1572, %1574, %1567 : vector<16x128xi1>, vector<16x128xf32>
    %c5_579 = arith.constant 5 : index
    %c33_580 = arith.constant 33 : index
    %1576 = memref.load %arg1[%c5_579, %c33_580] : memref<6x41xf32, #tpu.memory_space<smem>>
    %1577 = vector.broadcast %1576 : f32 to vector<16x128xf32>
    %1578 = arith.select %1572, %1577, %1570 : vector<16x128xi1>, vector<16x128xf32>
    %c34_i32_581 = arith.constant 34 : i32
    %1579 = vector.broadcast %c34_i32_581 : i32 to vector<16x128xi32>
    %1580 = arith.cmpi eq, %1431, %1579 : vector<16x128xi32>
    %c4_582 = arith.constant 4 : index
    %c34_583 = arith.constant 34 : index
    %1581 = memref.load %arg1[%c4_582, %c34_583] : memref<6x41xf32, #tpu.memory_space<smem>>
    %1582 = vector.broadcast %1581 : f32 to vector<16x128xf32>
    %1583 = arith.select %1580, %1582, %1575 : vector<16x128xi1>, vector<16x128xf32>
    %c5_584 = arith.constant 5 : index
    %c34_585 = arith.constant 34 : index
    %1584 = memref.load %arg1[%c5_584, %c34_585] : memref<6x41xf32, #tpu.memory_space<smem>>
    %1585 = vector.broadcast %1584 : f32 to vector<16x128xf32>
    %1586 = arith.select %1580, %1585, %1578 : vector<16x128xi1>, vector<16x128xf32>
    %c35_i32_586 = arith.constant 35 : i32
    %1587 = vector.broadcast %c35_i32_586 : i32 to vector<16x128xi32>
    %1588 = arith.cmpi eq, %1431, %1587 : vector<16x128xi32>
    %c4_587 = arith.constant 4 : index
    %c35_588 = arith.constant 35 : index
    %1589 = memref.load %arg1[%c4_587, %c35_588] : memref<6x41xf32, #tpu.memory_space<smem>>
    %1590 = vector.broadcast %1589 : f32 to vector<16x128xf32>
    %1591 = arith.select %1588, %1590, %1583 : vector<16x128xi1>, vector<16x128xf32>
    %c5_589 = arith.constant 5 : index
    %c35_590 = arith.constant 35 : index
    %1592 = memref.load %arg1[%c5_589, %c35_590] : memref<6x41xf32, #tpu.memory_space<smem>>
    %1593 = vector.broadcast %1592 : f32 to vector<16x128xf32>
    %1594 = arith.select %1588, %1593, %1586 : vector<16x128xi1>, vector<16x128xf32>
    %c36_i32_591 = arith.constant 36 : i32
    %1595 = vector.broadcast %c36_i32_591 : i32 to vector<16x128xi32>
    %1596 = arith.cmpi eq, %1431, %1595 : vector<16x128xi32>
    %c4_592 = arith.constant 4 : index
    %c36_593 = arith.constant 36 : index
    %1597 = memref.load %arg1[%c4_592, %c36_593] : memref<6x41xf32, #tpu.memory_space<smem>>
    %1598 = vector.broadcast %1597 : f32 to vector<16x128xf32>
    %1599 = arith.select %1596, %1598, %1591 : vector<16x128xi1>, vector<16x128xf32>
    %c5_594 = arith.constant 5 : index
    %c36_595 = arith.constant 36 : index
    %1600 = memref.load %arg1[%c5_594, %c36_595] : memref<6x41xf32, #tpu.memory_space<smem>>
    %1601 = vector.broadcast %1600 : f32 to vector<16x128xf32>
    %1602 = arith.select %1596, %1601, %1594 : vector<16x128xi1>, vector<16x128xf32>
    %c37_i32_596 = arith.constant 37 : i32
    %1603 = vector.broadcast %c37_i32_596 : i32 to vector<16x128xi32>
    %1604 = arith.cmpi eq, %1431, %1603 : vector<16x128xi32>
    %c4_597 = arith.constant 4 : index
    %c37_598 = arith.constant 37 : index
    %1605 = memref.load %arg1[%c4_597, %c37_598] : memref<6x41xf32, #tpu.memory_space<smem>>
    %1606 = vector.broadcast %1605 : f32 to vector<16x128xf32>
    %1607 = arith.select %1604, %1606, %1599 : vector<16x128xi1>, vector<16x128xf32>
    %c5_599 = arith.constant 5 : index
    %c37_600 = arith.constant 37 : index
    %1608 = memref.load %arg1[%c5_599, %c37_600] : memref<6x41xf32, #tpu.memory_space<smem>>
    %1609 = vector.broadcast %1608 : f32 to vector<16x128xf32>
    %1610 = arith.select %1604, %1609, %1602 : vector<16x128xi1>, vector<16x128xf32>
    %c38_i32_601 = arith.constant 38 : i32
    %1611 = vector.broadcast %c38_i32_601 : i32 to vector<16x128xi32>
    %1612 = arith.cmpi eq, %1431, %1611 : vector<16x128xi32>
    %c4_602 = arith.constant 4 : index
    %c38_603 = arith.constant 38 : index
    %1613 = memref.load %arg1[%c4_602, %c38_603] : memref<6x41xf32, #tpu.memory_space<smem>>
    %1614 = vector.broadcast %1613 : f32 to vector<16x128xf32>
    %1615 = arith.select %1612, %1614, %1607 : vector<16x128xi1>, vector<16x128xf32>
    %c5_604 = arith.constant 5 : index
    %c38_605 = arith.constant 38 : index
    %1616 = memref.load %arg1[%c5_604, %c38_605] : memref<6x41xf32, #tpu.memory_space<smem>>
    %1617 = vector.broadcast %1616 : f32 to vector<16x128xf32>
    %1618 = arith.select %1612, %1617, %1610 : vector<16x128xi1>, vector<16x128xf32>
    %c39_i32_606 = arith.constant 39 : i32
    %1619 = vector.broadcast %c39_i32_606 : i32 to vector<16x128xi32>
    %1620 = arith.cmpi eq, %1431, %1619 : vector<16x128xi32>
    %c4_607 = arith.constant 4 : index
    %c39_608 = arith.constant 39 : index
    %1621 = memref.load %arg1[%c4_607, %c39_608] : memref<6x41xf32, #tpu.memory_space<smem>>
    %1622 = vector.broadcast %1621 : f32 to vector<16x128xf32>
    %1623 = arith.select %1620, %1622, %1615 : vector<16x128xi1>, vector<16x128xf32>
    %c5_609 = arith.constant 5 : index
    %c39_610 = arith.constant 39 : index
    %1624 = memref.load %arg1[%c5_609, %c39_610] : memref<6x41xf32, #tpu.memory_space<smem>>
    %1625 = vector.broadcast %1624 : f32 to vector<16x128xf32>
    %1626 = arith.select %1620, %1625, %1618 : vector<16x128xi1>, vector<16x128xf32>
    %c40_i32_611 = arith.constant 40 : i32
    %1627 = vector.broadcast %c40_i32_611 : i32 to vector<16x128xi32>
    %1628 = arith.cmpi eq, %1431, %1627 : vector<16x128xi32>
    %c4_612 = arith.constant 4 : index
    %c40_613 = arith.constant 40 : index
    %1629 = memref.load %arg1[%c4_612, %c40_613] : memref<6x41xf32, #tpu.memory_space<smem>>
    %1630 = vector.broadcast %1629 : f32 to vector<16x128xf32>
    %1631 = arith.select %1628, %1630, %1623 : vector<16x128xi1>, vector<16x128xf32>
    %c5_614 = arith.constant 5 : index
    %c40_615 = arith.constant 40 : index
    %1632 = memref.load %arg1[%c5_614, %c40_615] : memref<6x41xf32, #tpu.memory_space<smem>>
    %1633 = vector.broadcast %1632 : f32 to vector<16x128xf32>
    %1634 = arith.select %1628, %1633, %1626 : vector<16x128xi1>, vector<16x128xf32>
    %c4_616 = arith.constant 4 : index
    %c0_617 = arith.constant 0 : index
    %1635 = memref.load %arg1[%c4_616, %c0_617] : memref<6x41xf32, #tpu.memory_space<smem>>
    %c5_618 = arith.constant 5 : index
    %c0_619 = arith.constant 0 : index
    %1636 = memref.load %arg1[%c5_618, %c0_619] : memref<6x41xf32, #tpu.memory_space<smem>>
    %c0_i32_620 = arith.constant 0 : i32
    %1637 = vector.broadcast %c0_i32_620 : i32 to vector<16x128xi32>
    %1638 = arith.cmpi eq, %1434, %1637 : vector<16x128xi32>
    %c0_i32_621 = arith.constant 0 : i32
    %1639 = vector.broadcast %c0_i32_621 : i32 to vector<16x128xi32>
    %1640 = arith.cmpi eq, %1437, %1639 : vector<16x128xi32>
    %1641 = vector.broadcast %1635 : f32 to vector<16x128xf32>
    %1642 = arith.select %1638, %1641, %1506 : vector<16x128xi1>, vector<16x128xf32>
    %1643 = vector.broadcast %1636 : f32 to vector<16x128xf32>
    %1644 = arith.select %1638, %1643, %1506 : vector<16x128xi1>, vector<16x128xf32>
    %1645 = vector.broadcast %1635 : f32 to vector<16x128xf32>
    %1646 = arith.select %1640, %1645, %1506 : vector<16x128xi1>, vector<16x128xf32>
    %1647 = vector.broadcast %1636 : f32 to vector<16x128xf32>
    %1648 = arith.select %1640, %1647, %1506 : vector<16x128xi1>, vector<16x128xf32>
    %c4_622 = arith.constant 4 : index
    %c1_623 = arith.constant 1 : index
    %1649 = memref.load %arg1[%c4_622, %c1_623] : memref<6x41xf32, #tpu.memory_space<smem>>
    %c5_624 = arith.constant 5 : index
    %c1_625 = arith.constant 1 : index
    %1650 = memref.load %arg1[%c5_624, %c1_625] : memref<6x41xf32, #tpu.memory_space<smem>>
    %c1_i32_626 = arith.constant 1 : i32
    %1651 = vector.broadcast %c1_i32_626 : i32 to vector<16x128xi32>
    %1652 = arith.cmpi eq, %1434, %1651 : vector<16x128xi32>
    %c1_i32_627 = arith.constant 1 : i32
    %1653 = vector.broadcast %c1_i32_627 : i32 to vector<16x128xi32>
    %1654 = arith.cmpi eq, %1437, %1653 : vector<16x128xi32>
    %1655 = vector.broadcast %1649 : f32 to vector<16x128xf32>
    %1656 = arith.select %1652, %1655, %1642 : vector<16x128xi1>, vector<16x128xf32>
    %1657 = vector.broadcast %1650 : f32 to vector<16x128xf32>
    %1658 = arith.select %1652, %1657, %1644 : vector<16x128xi1>, vector<16x128xf32>
    %1659 = vector.broadcast %1649 : f32 to vector<16x128xf32>
    %1660 = arith.select %1654, %1659, %1646 : vector<16x128xi1>, vector<16x128xf32>
    %1661 = vector.broadcast %1650 : f32 to vector<16x128xf32>
    %1662 = arith.select %1654, %1661, %1648 : vector<16x128xi1>, vector<16x128xf32>
    %c4_628 = arith.constant 4 : index
    %c2_629 = arith.constant 2 : index
    %1663 = memref.load %arg1[%c4_628, %c2_629] : memref<6x41xf32, #tpu.memory_space<smem>>
    %c5_630 = arith.constant 5 : index
    %c2_631 = arith.constant 2 : index
    %1664 = memref.load %arg1[%c5_630, %c2_631] : memref<6x41xf32, #tpu.memory_space<smem>>
    %c2_i32_632 = arith.constant 2 : i32
    %1665 = vector.broadcast %c2_i32_632 : i32 to vector<16x128xi32>
    %1666 = arith.cmpi eq, %1434, %1665 : vector<16x128xi32>
    %c2_i32_633 = arith.constant 2 : i32
    %1667 = vector.broadcast %c2_i32_633 : i32 to vector<16x128xi32>
    %1668 = arith.cmpi eq, %1437, %1667 : vector<16x128xi32>
    %1669 = vector.broadcast %1663 : f32 to vector<16x128xf32>
    %1670 = arith.select %1666, %1669, %1656 : vector<16x128xi1>, vector<16x128xf32>
    %1671 = vector.broadcast %1664 : f32 to vector<16x128xf32>
    %1672 = arith.select %1666, %1671, %1658 : vector<16x128xi1>, vector<16x128xf32>
    %1673 = vector.broadcast %1663 : f32 to vector<16x128xf32>
    %1674 = arith.select %1668, %1673, %1660 : vector<16x128xi1>, vector<16x128xf32>
    %1675 = vector.broadcast %1664 : f32 to vector<16x128xf32>
    %1676 = arith.select %1668, %1675, %1662 : vector<16x128xi1>, vector<16x128xf32>
    %c4_634 = arith.constant 4 : index
    %c3_635 = arith.constant 3 : index
    %1677 = memref.load %arg1[%c4_634, %c3_635] : memref<6x41xf32, #tpu.memory_space<smem>>
    %c5_636 = arith.constant 5 : index
    %c3_637 = arith.constant 3 : index
    %1678 = memref.load %arg1[%c5_636, %c3_637] : memref<6x41xf32, #tpu.memory_space<smem>>
    %c3_i32_638 = arith.constant 3 : i32
    %1679 = vector.broadcast %c3_i32_638 : i32 to vector<16x128xi32>
    %1680 = arith.cmpi eq, %1434, %1679 : vector<16x128xi32>
    %c3_i32_639 = arith.constant 3 : i32
    %1681 = vector.broadcast %c3_i32_639 : i32 to vector<16x128xi32>
    %1682 = arith.cmpi eq, %1437, %1681 : vector<16x128xi32>
    %1683 = vector.broadcast %1677 : f32 to vector<16x128xf32>
    %1684 = arith.select %1680, %1683, %1670 : vector<16x128xi1>, vector<16x128xf32>
    %1685 = vector.broadcast %1678 : f32 to vector<16x128xf32>
    %1686 = arith.select %1680, %1685, %1672 : vector<16x128xi1>, vector<16x128xf32>
    %1687 = vector.broadcast %1677 : f32 to vector<16x128xf32>
    %1688 = arith.select %1682, %1687, %1674 : vector<16x128xi1>, vector<16x128xf32>
    %1689 = vector.broadcast %1678 : f32 to vector<16x128xf32>
    %1690 = arith.select %1682, %1689, %1676 : vector<16x128xi1>, vector<16x128xf32>
    %c4_640 = arith.constant 4 : index
    %c4_641 = arith.constant 4 : index
    %1691 = memref.load %arg1[%c4_640, %c4_641] : memref<6x41xf32, #tpu.memory_space<smem>>
    %c5_642 = arith.constant 5 : index
    %c4_643 = arith.constant 4 : index
    %1692 = memref.load %arg1[%c5_642, %c4_643] : memref<6x41xf32, #tpu.memory_space<smem>>
    %c4_i32_644 = arith.constant 4 : i32
    %1693 = vector.broadcast %c4_i32_644 : i32 to vector<16x128xi32>
    %1694 = arith.cmpi eq, %1434, %1693 : vector<16x128xi32>
    %c4_i32_645 = arith.constant 4 : i32
    %1695 = vector.broadcast %c4_i32_645 : i32 to vector<16x128xi32>
    %1696 = arith.cmpi eq, %1437, %1695 : vector<16x128xi32>
    %1697 = vector.broadcast %1691 : f32 to vector<16x128xf32>
    %1698 = arith.select %1694, %1697, %1684 : vector<16x128xi1>, vector<16x128xf32>
    %1699 = vector.broadcast %1692 : f32 to vector<16x128xf32>
    %1700 = arith.select %1694, %1699, %1686 : vector<16x128xi1>, vector<16x128xf32>
    %1701 = vector.broadcast %1691 : f32 to vector<16x128xf32>
    %1702 = arith.select %1696, %1701, %1688 : vector<16x128xi1>, vector<16x128xf32>
    %1703 = vector.broadcast %1692 : f32 to vector<16x128xf32>
    %1704 = arith.select %1696, %1703, %1690 : vector<16x128xi1>, vector<16x128xf32>
    %c4_646 = arith.constant 4 : index
    %c5_647 = arith.constant 5 : index
    %1705 = memref.load %arg1[%c4_646, %c5_647] : memref<6x41xf32, #tpu.memory_space<smem>>
    %c5_648 = arith.constant 5 : index
    %c5_649 = arith.constant 5 : index
    %1706 = memref.load %arg1[%c5_648, %c5_649] : memref<6x41xf32, #tpu.memory_space<smem>>
    %c5_i32_650 = arith.constant 5 : i32
    %1707 = vector.broadcast %c5_i32_650 : i32 to vector<16x128xi32>
    %1708 = arith.cmpi eq, %1434, %1707 : vector<16x128xi32>
    %c5_i32_651 = arith.constant 5 : i32
    %1709 = vector.broadcast %c5_i32_651 : i32 to vector<16x128xi32>
    %1710 = arith.cmpi eq, %1437, %1709 : vector<16x128xi32>
    %1711 = vector.broadcast %1705 : f32 to vector<16x128xf32>
    %1712 = arith.select %1708, %1711, %1698 : vector<16x128xi1>, vector<16x128xf32>
    %1713 = vector.broadcast %1706 : f32 to vector<16x128xf32>
    %1714 = arith.select %1708, %1713, %1700 : vector<16x128xi1>, vector<16x128xf32>
    %1715 = vector.broadcast %1705 : f32 to vector<16x128xf32>
    %1716 = arith.select %1710, %1715, %1702 : vector<16x128xi1>, vector<16x128xf32>
    %1717 = vector.broadcast %1706 : f32 to vector<16x128xf32>
    %1718 = arith.select %1710, %1717, %1704 : vector<16x128xi1>, vector<16x128xf32>
    %c4_652 = arith.constant 4 : index
    %c6_653 = arith.constant 6 : index
    %1719 = memref.load %arg1[%c4_652, %c6_653] : memref<6x41xf32, #tpu.memory_space<smem>>
    %c5_654 = arith.constant 5 : index
    %c6_655 = arith.constant 6 : index
    %1720 = memref.load %arg1[%c5_654, %c6_655] : memref<6x41xf32, #tpu.memory_space<smem>>
    %c6_i32_656 = arith.constant 6 : i32
    %1721 = vector.broadcast %c6_i32_656 : i32 to vector<16x128xi32>
    %1722 = arith.cmpi eq, %1434, %1721 : vector<16x128xi32>
    %c6_i32_657 = arith.constant 6 : i32
    %1723 = vector.broadcast %c6_i32_657 : i32 to vector<16x128xi32>
    %1724 = arith.cmpi eq, %1437, %1723 : vector<16x128xi32>
    %1725 = vector.broadcast %1719 : f32 to vector<16x128xf32>
    %1726 = arith.select %1722, %1725, %1712 : vector<16x128xi1>, vector<16x128xf32>
    %1727 = vector.broadcast %1720 : f32 to vector<16x128xf32>
    %1728 = arith.select %1722, %1727, %1714 : vector<16x128xi1>, vector<16x128xf32>
    %1729 = vector.broadcast %1719 : f32 to vector<16x128xf32>
    %1730 = arith.select %1724, %1729, %1716 : vector<16x128xi1>, vector<16x128xf32>
    %1731 = vector.broadcast %1720 : f32 to vector<16x128xf32>
    %1732 = arith.select %1724, %1731, %1718 : vector<16x128xi1>, vector<16x128xf32>
    %c4_658 = arith.constant 4 : index
    %c7_659 = arith.constant 7 : index
    %1733 = memref.load %arg1[%c4_658, %c7_659] : memref<6x41xf32, #tpu.memory_space<smem>>
    %c5_660 = arith.constant 5 : index
    %c7_661 = arith.constant 7 : index
    %1734 = memref.load %arg1[%c5_660, %c7_661] : memref<6x41xf32, #tpu.memory_space<smem>>
    %c7_i32_662 = arith.constant 7 : i32
    %1735 = vector.broadcast %c7_i32_662 : i32 to vector<16x128xi32>
    %1736 = arith.cmpi eq, %1434, %1735 : vector<16x128xi32>
    %c7_i32_663 = arith.constant 7 : i32
    %1737 = vector.broadcast %c7_i32_663 : i32 to vector<16x128xi32>
    %1738 = arith.cmpi eq, %1437, %1737 : vector<16x128xi32>
    %1739 = vector.broadcast %1733 : f32 to vector<16x128xf32>
    %1740 = arith.select %1736, %1739, %1726 : vector<16x128xi1>, vector<16x128xf32>
    %1741 = vector.broadcast %1734 : f32 to vector<16x128xf32>
    %1742 = arith.select %1736, %1741, %1728 : vector<16x128xi1>, vector<16x128xf32>
    %1743 = vector.broadcast %1733 : f32 to vector<16x128xf32>
    %1744 = arith.select %1738, %1743, %1730 : vector<16x128xi1>, vector<16x128xf32>
    %1745 = vector.broadcast %1734 : f32 to vector<16x128xf32>
    %1746 = arith.select %1738, %1745, %1732 : vector<16x128xi1>, vector<16x128xf32>
    %c4_664 = arith.constant 4 : index
    %c8_665 = arith.constant 8 : index
    %1747 = memref.load %arg1[%c4_664, %c8_665] : memref<6x41xf32, #tpu.memory_space<smem>>
    %c5_666 = arith.constant 5 : index
    %c8_667 = arith.constant 8 : index
    %1748 = memref.load %arg1[%c5_666, %c8_667] : memref<6x41xf32, #tpu.memory_space<smem>>
    %c8_i32_668 = arith.constant 8 : i32
    %1749 = vector.broadcast %c8_i32_668 : i32 to vector<16x128xi32>
    %1750 = arith.cmpi eq, %1434, %1749 : vector<16x128xi32>
    %c8_i32_669 = arith.constant 8 : i32
    %1751 = vector.broadcast %c8_i32_669 : i32 to vector<16x128xi32>
    %1752 = arith.cmpi eq, %1437, %1751 : vector<16x128xi32>
    %1753 = vector.broadcast %1747 : f32 to vector<16x128xf32>
    %1754 = arith.select %1750, %1753, %1740 : vector<16x128xi1>, vector<16x128xf32>
    %1755 = vector.broadcast %1748 : f32 to vector<16x128xf32>
    %1756 = arith.select %1750, %1755, %1742 : vector<16x128xi1>, vector<16x128xf32>
    %1757 = vector.broadcast %1747 : f32 to vector<16x128xf32>
    %1758 = arith.select %1752, %1757, %1744 : vector<16x128xi1>, vector<16x128xf32>
    %1759 = vector.broadcast %1748 : f32 to vector<16x128xf32>
    %1760 = arith.select %1752, %1759, %1746 : vector<16x128xi1>, vector<16x128xf32>
    %c4_670 = arith.constant 4 : index
    %c9_671 = arith.constant 9 : index
    %1761 = memref.load %arg1[%c4_670, %c9_671] : memref<6x41xf32, #tpu.memory_space<smem>>
    %c5_672 = arith.constant 5 : index
    %c9_673 = arith.constant 9 : index
    %1762 = memref.load %arg1[%c5_672, %c9_673] : memref<6x41xf32, #tpu.memory_space<smem>>
    %c9_i32_674 = arith.constant 9 : i32
    %1763 = vector.broadcast %c9_i32_674 : i32 to vector<16x128xi32>
    %1764 = arith.cmpi eq, %1434, %1763 : vector<16x128xi32>
    %c9_i32_675 = arith.constant 9 : i32
    %1765 = vector.broadcast %c9_i32_675 : i32 to vector<16x128xi32>
    %1766 = arith.cmpi eq, %1437, %1765 : vector<16x128xi32>
    %1767 = vector.broadcast %1761 : f32 to vector<16x128xf32>
    %1768 = arith.select %1764, %1767, %1754 : vector<16x128xi1>, vector<16x128xf32>
    %1769 = vector.broadcast %1762 : f32 to vector<16x128xf32>
    %1770 = arith.select %1764, %1769, %1756 : vector<16x128xi1>, vector<16x128xf32>
    %1771 = vector.broadcast %1761 : f32 to vector<16x128xf32>
    %1772 = arith.select %1766, %1771, %1758 : vector<16x128xi1>, vector<16x128xf32>
    %1773 = vector.broadcast %1762 : f32 to vector<16x128xf32>
    %1774 = arith.select %1766, %1773, %1760 : vector<16x128xi1>, vector<16x128xf32>
    %c4_676 = arith.constant 4 : index
    %c10_677 = arith.constant 10 : index
    %1775 = memref.load %arg1[%c4_676, %c10_677] : memref<6x41xf32, #tpu.memory_space<smem>>
    %c5_678 = arith.constant 5 : index
    %c10_679 = arith.constant 10 : index
    %1776 = memref.load %arg1[%c5_678, %c10_679] : memref<6x41xf32, #tpu.memory_space<smem>>
    %c10_i32_680 = arith.constant 10 : i32
    %1777 = vector.broadcast %c10_i32_680 : i32 to vector<16x128xi32>
    %1778 = arith.cmpi eq, %1434, %1777 : vector<16x128xi32>
    %c10_i32_681 = arith.constant 10 : i32
    %1779 = vector.broadcast %c10_i32_681 : i32 to vector<16x128xi32>
    %1780 = arith.cmpi eq, %1437, %1779 : vector<16x128xi32>
    %1781 = vector.broadcast %1775 : f32 to vector<16x128xf32>
    %1782 = arith.select %1778, %1781, %1768 : vector<16x128xi1>, vector<16x128xf32>
    %1783 = vector.broadcast %1776 : f32 to vector<16x128xf32>
    %1784 = arith.select %1778, %1783, %1770 : vector<16x128xi1>, vector<16x128xf32>
    %1785 = vector.broadcast %1775 : f32 to vector<16x128xf32>
    %1786 = arith.select %1780, %1785, %1772 : vector<16x128xi1>, vector<16x128xf32>
    %1787 = vector.broadcast %1776 : f32 to vector<16x128xf32>
    %1788 = arith.select %1780, %1787, %1774 : vector<16x128xi1>, vector<16x128xf32>
    %c4_682 = arith.constant 4 : index
    %c11_683 = arith.constant 11 : index
    %1789 = memref.load %arg1[%c4_682, %c11_683] : memref<6x41xf32, #tpu.memory_space<smem>>
    %c5_684 = arith.constant 5 : index
    %c11_685 = arith.constant 11 : index
    %1790 = memref.load %arg1[%c5_684, %c11_685] : memref<6x41xf32, #tpu.memory_space<smem>>
    %c11_i32_686 = arith.constant 11 : i32
    %1791 = vector.broadcast %c11_i32_686 : i32 to vector<16x128xi32>
    %1792 = arith.cmpi eq, %1434, %1791 : vector<16x128xi32>
    %c11_i32_687 = arith.constant 11 : i32
    %1793 = vector.broadcast %c11_i32_687 : i32 to vector<16x128xi32>
    %1794 = arith.cmpi eq, %1437, %1793 : vector<16x128xi32>
    %1795 = vector.broadcast %1789 : f32 to vector<16x128xf32>
    %1796 = arith.select %1792, %1795, %1782 : vector<16x128xi1>, vector<16x128xf32>
    %1797 = vector.broadcast %1790 : f32 to vector<16x128xf32>
    %1798 = arith.select %1792, %1797, %1784 : vector<16x128xi1>, vector<16x128xf32>
    %1799 = vector.broadcast %1789 : f32 to vector<16x128xf32>
    %1800 = arith.select %1794, %1799, %1786 : vector<16x128xi1>, vector<16x128xf32>
    %1801 = vector.broadcast %1790 : f32 to vector<16x128xf32>
    %1802 = arith.select %1794, %1801, %1788 : vector<16x128xi1>, vector<16x128xf32>
    %c4_688 = arith.constant 4 : index
    %c12_689 = arith.constant 12 : index
    %1803 = memref.load %arg1[%c4_688, %c12_689] : memref<6x41xf32, #tpu.memory_space<smem>>
    %c5_690 = arith.constant 5 : index
    %c12_691 = arith.constant 12 : index
    %1804 = memref.load %arg1[%c5_690, %c12_691] : memref<6x41xf32, #tpu.memory_space<smem>>
    %c12_i32_692 = arith.constant 12 : i32
    %1805 = vector.broadcast %c12_i32_692 : i32 to vector<16x128xi32>
    %1806 = arith.cmpi eq, %1434, %1805 : vector<16x128xi32>
    %c12_i32_693 = arith.constant 12 : i32
    %1807 = vector.broadcast %c12_i32_693 : i32 to vector<16x128xi32>
    %1808 = arith.cmpi eq, %1437, %1807 : vector<16x128xi32>
    %1809 = vector.broadcast %1803 : f32 to vector<16x128xf32>
    %1810 = arith.select %1806, %1809, %1796 : vector<16x128xi1>, vector<16x128xf32>
    %1811 = vector.broadcast %1804 : f32 to vector<16x128xf32>
    %1812 = arith.select %1806, %1811, %1798 : vector<16x128xi1>, vector<16x128xf32>
    %1813 = vector.broadcast %1803 : f32 to vector<16x128xf32>
    %1814 = arith.select %1808, %1813, %1800 : vector<16x128xi1>, vector<16x128xf32>
    %1815 = vector.broadcast %1804 : f32 to vector<16x128xf32>
    %1816 = arith.select %1808, %1815, %1802 : vector<16x128xi1>, vector<16x128xf32>
    %c4_694 = arith.constant 4 : index
    %c13_695 = arith.constant 13 : index
    %1817 = memref.load %arg1[%c4_694, %c13_695] : memref<6x41xf32, #tpu.memory_space<smem>>
    %c5_696 = arith.constant 5 : index
    %c13_697 = arith.constant 13 : index
    %1818 = memref.load %arg1[%c5_696, %c13_697] : memref<6x41xf32, #tpu.memory_space<smem>>
    %c13_i32_698 = arith.constant 13 : i32
    %1819 = vector.broadcast %c13_i32_698 : i32 to vector<16x128xi32>
    %1820 = arith.cmpi eq, %1434, %1819 : vector<16x128xi32>
    %c13_i32_699 = arith.constant 13 : i32
    %1821 = vector.broadcast %c13_i32_699 : i32 to vector<16x128xi32>
    %1822 = arith.cmpi eq, %1437, %1821 : vector<16x128xi32>
    %1823 = vector.broadcast %1817 : f32 to vector<16x128xf32>
    %1824 = arith.select %1820, %1823, %1810 : vector<16x128xi1>, vector<16x128xf32>
    %1825 = vector.broadcast %1818 : f32 to vector<16x128xf32>
    %1826 = arith.select %1820, %1825, %1812 : vector<16x128xi1>, vector<16x128xf32>
    %1827 = vector.broadcast %1817 : f32 to vector<16x128xf32>
    %1828 = arith.select %1822, %1827, %1814 : vector<16x128xi1>, vector<16x128xf32>
    %1829 = vector.broadcast %1818 : f32 to vector<16x128xf32>
    %1830 = arith.select %1822, %1829, %1816 : vector<16x128xi1>, vector<16x128xf32>
    %c4_700 = arith.constant 4 : index
    %c14_701 = arith.constant 14 : index
    %1831 = memref.load %arg1[%c4_700, %c14_701] : memref<6x41xf32, #tpu.memory_space<smem>>
    %c5_702 = arith.constant 5 : index
    %c14_703 = arith.constant 14 : index
    %1832 = memref.load %arg1[%c5_702, %c14_703] : memref<6x41xf32, #tpu.memory_space<smem>>
    %c14_i32_704 = arith.constant 14 : i32
    %1833 = vector.broadcast %c14_i32_704 : i32 to vector<16x128xi32>
    %1834 = arith.cmpi eq, %1434, %1833 : vector<16x128xi32>
    %c14_i32_705 = arith.constant 14 : i32
    %1835 = vector.broadcast %c14_i32_705 : i32 to vector<16x128xi32>
    %1836 = arith.cmpi eq, %1437, %1835 : vector<16x128xi32>
    %1837 = vector.broadcast %1831 : f32 to vector<16x128xf32>
    %1838 = arith.select %1834, %1837, %1824 : vector<16x128xi1>, vector<16x128xf32>
    %1839 = vector.broadcast %1832 : f32 to vector<16x128xf32>
    %1840 = arith.select %1834, %1839, %1826 : vector<16x128xi1>, vector<16x128xf32>
    %1841 = vector.broadcast %1831 : f32 to vector<16x128xf32>
    %1842 = arith.select %1836, %1841, %1828 : vector<16x128xi1>, vector<16x128xf32>
    %1843 = vector.broadcast %1832 : f32 to vector<16x128xf32>
    %1844 = arith.select %1836, %1843, %1830 : vector<16x128xi1>, vector<16x128xf32>
    %c4_706 = arith.constant 4 : index
    %c15_707 = arith.constant 15 : index
    %1845 = memref.load %arg1[%c4_706, %c15_707] : memref<6x41xf32, #tpu.memory_space<smem>>
    %c5_708 = arith.constant 5 : index
    %c15_709 = arith.constant 15 : index
    %1846 = memref.load %arg1[%c5_708, %c15_709] : memref<6x41xf32, #tpu.memory_space<smem>>
    %c15_i32_710 = arith.constant 15 : i32
    %1847 = vector.broadcast %c15_i32_710 : i32 to vector<16x128xi32>
    %1848 = arith.cmpi eq, %1434, %1847 : vector<16x128xi32>
    %c15_i32_711 = arith.constant 15 : i32
    %1849 = vector.broadcast %c15_i32_711 : i32 to vector<16x128xi32>
    %1850 = arith.cmpi eq, %1437, %1849 : vector<16x128xi32>
    %1851 = vector.broadcast %1845 : f32 to vector<16x128xf32>
    %1852 = arith.select %1848, %1851, %1838 : vector<16x128xi1>, vector<16x128xf32>
    %1853 = vector.broadcast %1846 : f32 to vector<16x128xf32>
    %1854 = arith.select %1848, %1853, %1840 : vector<16x128xi1>, vector<16x128xf32>
    %1855 = vector.broadcast %1845 : f32 to vector<16x128xf32>
    %1856 = arith.select %1850, %1855, %1842 : vector<16x128xi1>, vector<16x128xf32>
    %1857 = vector.broadcast %1846 : f32 to vector<16x128xf32>
    %1858 = arith.select %1850, %1857, %1844 : vector<16x128xi1>, vector<16x128xf32>
    %c4_712 = arith.constant 4 : index
    %c16_713 = arith.constant 16 : index
    %1859 = memref.load %arg1[%c4_712, %c16_713] : memref<6x41xf32, #tpu.memory_space<smem>>
    %c5_714 = arith.constant 5 : index
    %c16_715 = arith.constant 16 : index
    %1860 = memref.load %arg1[%c5_714, %c16_715] : memref<6x41xf32, #tpu.memory_space<smem>>
    %c16_i32_716 = arith.constant 16 : i32
    %1861 = vector.broadcast %c16_i32_716 : i32 to vector<16x128xi32>
    %1862 = arith.cmpi eq, %1434, %1861 : vector<16x128xi32>
    %c16_i32_717 = arith.constant 16 : i32
    %1863 = vector.broadcast %c16_i32_717 : i32 to vector<16x128xi32>
    %1864 = arith.cmpi eq, %1437, %1863 : vector<16x128xi32>
    %1865 = vector.broadcast %1859 : f32 to vector<16x128xf32>
    %1866 = arith.select %1862, %1865, %1852 : vector<16x128xi1>, vector<16x128xf32>
    %1867 = vector.broadcast %1860 : f32 to vector<16x128xf32>
    %1868 = arith.select %1862, %1867, %1854 : vector<16x128xi1>, vector<16x128xf32>
    %1869 = vector.broadcast %1859 : f32 to vector<16x128xf32>
    %1870 = arith.select %1864, %1869, %1856 : vector<16x128xi1>, vector<16x128xf32>
    %1871 = vector.broadcast %1860 : f32 to vector<16x128xf32>
    %1872 = arith.select %1864, %1871, %1858 : vector<16x128xi1>, vector<16x128xf32>
    %c4_718 = arith.constant 4 : index
    %c17_719 = arith.constant 17 : index
    %1873 = memref.load %arg1[%c4_718, %c17_719] : memref<6x41xf32, #tpu.memory_space<smem>>
    %c5_720 = arith.constant 5 : index
    %c17_721 = arith.constant 17 : index
    %1874 = memref.load %arg1[%c5_720, %c17_721] : memref<6x41xf32, #tpu.memory_space<smem>>
    %c17_i32_722 = arith.constant 17 : i32
    %1875 = vector.broadcast %c17_i32_722 : i32 to vector<16x128xi32>
    %1876 = arith.cmpi eq, %1434, %1875 : vector<16x128xi32>
    %c17_i32_723 = arith.constant 17 : i32
    %1877 = vector.broadcast %c17_i32_723 : i32 to vector<16x128xi32>
    %1878 = arith.cmpi eq, %1437, %1877 : vector<16x128xi32>
    %1879 = vector.broadcast %1873 : f32 to vector<16x128xf32>
    %1880 = arith.select %1876, %1879, %1866 : vector<16x128xi1>, vector<16x128xf32>
    %1881 = vector.broadcast %1874 : f32 to vector<16x128xf32>
    %1882 = arith.select %1876, %1881, %1868 : vector<16x128xi1>, vector<16x128xf32>
    %1883 = vector.broadcast %1873 : f32 to vector<16x128xf32>
    %1884 = arith.select %1878, %1883, %1870 : vector<16x128xi1>, vector<16x128xf32>
    %1885 = vector.broadcast %1874 : f32 to vector<16x128xf32>
    %1886 = arith.select %1878, %1885, %1872 : vector<16x128xi1>, vector<16x128xf32>
    %c4_724 = arith.constant 4 : index
    %c18_725 = arith.constant 18 : index
    %1887 = memref.load %arg1[%c4_724, %c18_725] : memref<6x41xf32, #tpu.memory_space<smem>>
    %c5_726 = arith.constant 5 : index
    %c18_727 = arith.constant 18 : index
    %1888 = memref.load %arg1[%c5_726, %c18_727] : memref<6x41xf32, #tpu.memory_space<smem>>
    %c18_i32_728 = arith.constant 18 : i32
    %1889 = vector.broadcast %c18_i32_728 : i32 to vector<16x128xi32>
    %1890 = arith.cmpi eq, %1434, %1889 : vector<16x128xi32>
    %c18_i32_729 = arith.constant 18 : i32
    %1891 = vector.broadcast %c18_i32_729 : i32 to vector<16x128xi32>
    %1892 = arith.cmpi eq, %1437, %1891 : vector<16x128xi32>
    %1893 = vector.broadcast %1887 : f32 to vector<16x128xf32>
    %1894 = arith.select %1890, %1893, %1880 : vector<16x128xi1>, vector<16x128xf32>
    %1895 = vector.broadcast %1888 : f32 to vector<16x128xf32>
    %1896 = arith.select %1890, %1895, %1882 : vector<16x128xi1>, vector<16x128xf32>
    %1897 = vector.broadcast %1887 : f32 to vector<16x128xf32>
    %1898 = arith.select %1892, %1897, %1884 : vector<16x128xi1>, vector<16x128xf32>
    %1899 = vector.broadcast %1888 : f32 to vector<16x128xf32>
    %1900 = arith.select %1892, %1899, %1886 : vector<16x128xi1>, vector<16x128xf32>
    %c4_730 = arith.constant 4 : index
    %c19_731 = arith.constant 19 : index
    %1901 = memref.load %arg1[%c4_730, %c19_731] : memref<6x41xf32, #tpu.memory_space<smem>>
    %c5_732 = arith.constant 5 : index
    %c19_733 = arith.constant 19 : index
    %1902 = memref.load %arg1[%c5_732, %c19_733] : memref<6x41xf32, #tpu.memory_space<smem>>
    %c19_i32_734 = arith.constant 19 : i32
    %1903 = vector.broadcast %c19_i32_734 : i32 to vector<16x128xi32>
    %1904 = arith.cmpi eq, %1434, %1903 : vector<16x128xi32>
    %c19_i32_735 = arith.constant 19 : i32
    %1905 = vector.broadcast %c19_i32_735 : i32 to vector<16x128xi32>
    %1906 = arith.cmpi eq, %1437, %1905 : vector<16x128xi32>
    %1907 = vector.broadcast %1901 : f32 to vector<16x128xf32>
    %1908 = arith.select %1904, %1907, %1894 : vector<16x128xi1>, vector<16x128xf32>
    %1909 = vector.broadcast %1902 : f32 to vector<16x128xf32>
    %1910 = arith.select %1904, %1909, %1896 : vector<16x128xi1>, vector<16x128xf32>
    %1911 = vector.broadcast %1901 : f32 to vector<16x128xf32>
    %1912 = arith.select %1906, %1911, %1898 : vector<16x128xi1>, vector<16x128xf32>
    %1913 = vector.broadcast %1902 : f32 to vector<16x128xf32>
    %1914 = arith.select %1906, %1913, %1900 : vector<16x128xi1>, vector<16x128xf32>
    %c4_736 = arith.constant 4 : index
    %c20_737 = arith.constant 20 : index
    %1915 = memref.load %arg1[%c4_736, %c20_737] : memref<6x41xf32, #tpu.memory_space<smem>>
    %c5_738 = arith.constant 5 : index
    %c20_739 = arith.constant 20 : index
    %1916 = memref.load %arg1[%c5_738, %c20_739] : memref<6x41xf32, #tpu.memory_space<smem>>
    %c20_i32_740 = arith.constant 20 : i32
    %1917 = vector.broadcast %c20_i32_740 : i32 to vector<16x128xi32>
    %1918 = arith.cmpi eq, %1434, %1917 : vector<16x128xi32>
    %c20_i32_741 = arith.constant 20 : i32
    %1919 = vector.broadcast %c20_i32_741 : i32 to vector<16x128xi32>
    %1920 = arith.cmpi eq, %1437, %1919 : vector<16x128xi32>
    %1921 = vector.broadcast %1915 : f32 to vector<16x128xf32>
    %1922 = arith.select %1918, %1921, %1908 : vector<16x128xi1>, vector<16x128xf32>
    %1923 = vector.broadcast %1916 : f32 to vector<16x128xf32>
    %1924 = arith.select %1918, %1923, %1910 : vector<16x128xi1>, vector<16x128xf32>
    %1925 = vector.broadcast %1915 : f32 to vector<16x128xf32>
    %1926 = arith.select %1920, %1925, %1912 : vector<16x128xi1>, vector<16x128xf32>
    %1927 = vector.broadcast %1916 : f32 to vector<16x128xf32>
    %1928 = arith.select %1920, %1927, %1914 : vector<16x128xi1>, vector<16x128xf32>
    %c4_742 = arith.constant 4 : index
    %c21_743 = arith.constant 21 : index
    %1929 = memref.load %arg1[%c4_742, %c21_743] : memref<6x41xf32, #tpu.memory_space<smem>>
    %c5_744 = arith.constant 5 : index
    %c21_745 = arith.constant 21 : index
    %1930 = memref.load %arg1[%c5_744, %c21_745] : memref<6x41xf32, #tpu.memory_space<smem>>
    %c21_i32_746 = arith.constant 21 : i32
    %1931 = vector.broadcast %c21_i32_746 : i32 to vector<16x128xi32>
    %1932 = arith.cmpi eq, %1434, %1931 : vector<16x128xi32>
    %c21_i32_747 = arith.constant 21 : i32
    %1933 = vector.broadcast %c21_i32_747 : i32 to vector<16x128xi32>
    %1934 = arith.cmpi eq, %1437, %1933 : vector<16x128xi32>
    %1935 = vector.broadcast %1929 : f32 to vector<16x128xf32>
    %1936 = arith.select %1932, %1935, %1922 : vector<16x128xi1>, vector<16x128xf32>
    %1937 = vector.broadcast %1930 : f32 to vector<16x128xf32>
    %1938 = arith.select %1932, %1937, %1924 : vector<16x128xi1>, vector<16x128xf32>
    %1939 = vector.broadcast %1929 : f32 to vector<16x128xf32>
    %1940 = arith.select %1934, %1939, %1926 : vector<16x128xi1>, vector<16x128xf32>
    %1941 = vector.broadcast %1930 : f32 to vector<16x128xf32>
    %1942 = arith.select %1934, %1941, %1928 : vector<16x128xi1>, vector<16x128xf32>
    %c4_748 = arith.constant 4 : index
    %c22_749 = arith.constant 22 : index
    %1943 = memref.load %arg1[%c4_748, %c22_749] : memref<6x41xf32, #tpu.memory_space<smem>>
    %c5_750 = arith.constant 5 : index
    %c22_751 = arith.constant 22 : index
    %1944 = memref.load %arg1[%c5_750, %c22_751] : memref<6x41xf32, #tpu.memory_space<smem>>
    %c22_i32_752 = arith.constant 22 : i32
    %1945 = vector.broadcast %c22_i32_752 : i32 to vector<16x128xi32>
    %1946 = arith.cmpi eq, %1434, %1945 : vector<16x128xi32>
    %c22_i32_753 = arith.constant 22 : i32
    %1947 = vector.broadcast %c22_i32_753 : i32 to vector<16x128xi32>
    %1948 = arith.cmpi eq, %1437, %1947 : vector<16x128xi32>
    %1949 = vector.broadcast %1943 : f32 to vector<16x128xf32>
    %1950 = arith.select %1946, %1949, %1936 : vector<16x128xi1>, vector<16x128xf32>
    %1951 = vector.broadcast %1944 : f32 to vector<16x128xf32>
    %1952 = arith.select %1946, %1951, %1938 : vector<16x128xi1>, vector<16x128xf32>
    %1953 = vector.broadcast %1943 : f32 to vector<16x128xf32>
    %1954 = arith.select %1948, %1953, %1940 : vector<16x128xi1>, vector<16x128xf32>
    %1955 = vector.broadcast %1944 : f32 to vector<16x128xf32>
    %1956 = arith.select %1948, %1955, %1942 : vector<16x128xi1>, vector<16x128xf32>
    %c4_754 = arith.constant 4 : index
    %c23_755 = arith.constant 23 : index
    %1957 = memref.load %arg1[%c4_754, %c23_755] : memref<6x41xf32, #tpu.memory_space<smem>>
    %c5_756 = arith.constant 5 : index
    %c23_757 = arith.constant 23 : index
    %1958 = memref.load %arg1[%c5_756, %c23_757] : memref<6x41xf32, #tpu.memory_space<smem>>
    %c23_i32_758 = arith.constant 23 : i32
    %1959 = vector.broadcast %c23_i32_758 : i32 to vector<16x128xi32>
    %1960 = arith.cmpi eq, %1434, %1959 : vector<16x128xi32>
    %c23_i32_759 = arith.constant 23 : i32
    %1961 = vector.broadcast %c23_i32_759 : i32 to vector<16x128xi32>
    %1962 = arith.cmpi eq, %1437, %1961 : vector<16x128xi32>
    %1963 = vector.broadcast %1957 : f32 to vector<16x128xf32>
    %1964 = arith.select %1960, %1963, %1950 : vector<16x128xi1>, vector<16x128xf32>
    %1965 = vector.broadcast %1958 : f32 to vector<16x128xf32>
    %1966 = arith.select %1960, %1965, %1952 : vector<16x128xi1>, vector<16x128xf32>
    %1967 = vector.broadcast %1957 : f32 to vector<16x128xf32>
    %1968 = arith.select %1962, %1967, %1954 : vector<16x128xi1>, vector<16x128xf32>
    %1969 = vector.broadcast %1958 : f32 to vector<16x128xf32>
    %1970 = arith.select %1962, %1969, %1956 : vector<16x128xi1>, vector<16x128xf32>
    %c4_760 = arith.constant 4 : index
    %c24_761 = arith.constant 24 : index
    %1971 = memref.load %arg1[%c4_760, %c24_761] : memref<6x41xf32, #tpu.memory_space<smem>>
    %c5_762 = arith.constant 5 : index
    %c24_763 = arith.constant 24 : index
    %1972 = memref.load %arg1[%c5_762, %c24_763] : memref<6x41xf32, #tpu.memory_space<smem>>
    %c24_i32_764 = arith.constant 24 : i32
    %1973 = vector.broadcast %c24_i32_764 : i32 to vector<16x128xi32>
    %1974 = arith.cmpi eq, %1434, %1973 : vector<16x128xi32>
    %c24_i32_765 = arith.constant 24 : i32
    %1975 = vector.broadcast %c24_i32_765 : i32 to vector<16x128xi32>
    %1976 = arith.cmpi eq, %1437, %1975 : vector<16x128xi32>
    %1977 = vector.broadcast %1971 : f32 to vector<16x128xf32>
    %1978 = arith.select %1974, %1977, %1964 : vector<16x128xi1>, vector<16x128xf32>
    %1979 = vector.broadcast %1972 : f32 to vector<16x128xf32>
    %1980 = arith.select %1974, %1979, %1966 : vector<16x128xi1>, vector<16x128xf32>
    %1981 = vector.broadcast %1971 : f32 to vector<16x128xf32>
    %1982 = arith.select %1976, %1981, %1968 : vector<16x128xi1>, vector<16x128xf32>
    %1983 = vector.broadcast %1972 : f32 to vector<16x128xf32>
    %1984 = arith.select %1976, %1983, %1970 : vector<16x128xi1>, vector<16x128xf32>
    %1985 = arith.addf %1485, %1495 : vector<16x128xf32>
    %1986 = arith.addf %1985, %1505 : vector<16x128xf32>
    %1987 = tpu.reciprocal %1986 {approx = true} : vector<16x128xf32> -> vector<16x128xf32>
    %1988 = arith.mulf %1631, %1485 : vector<16x128xf32>
    %1989 = arith.mulf %1978, %1495 : vector<16x128xf32>
    %1990 = arith.addf %1988, %1989 : vector<16x128xf32>
    %1991 = arith.mulf %1982, %1505 : vector<16x128xf32>
    %1992 = arith.addf %1990, %1991 : vector<16x128xf32>
    %1993 = arith.mulf %1992, %1987 : vector<16x128xf32>
    %1994 = arith.mulf %1634, %1485 : vector<16x128xf32>
    %1995 = arith.mulf %1980, %1495 : vector<16x128xf32>
    %1996 = arith.addf %1994, %1995 : vector<16x128xf32>
    %1997 = arith.mulf %1984, %1505 : vector<16x128xf32>
    %1998 = arith.addf %1996, %1997 : vector<16x128xf32>
    %1999 = arith.mulf %1998, %1987 : vector<16x128xf32>
    %2000 = arith.subf %1466, %1459 : vector<16x128xf32>
    %2001 = arith.subf %1472, %1459 : vector<16x128xf32>
    %2002 = arith.subf %1469, %1463 : vector<16x128xf32>
    %2003 = arith.subf %1475, %1463 : vector<16x128xf32>
    %2004 = arith.subf %1978, %1631 : vector<16x128xf32>
    %2005 = arith.subf %1982, %1631 : vector<16x128xf32>
    %2006 = arith.subf %1980, %1634 : vector<16x128xf32>
    %2007 = arith.subf %1984, %1634 : vector<16x128xf32>
    %2008 = arith.mulf %2000, %2003 : vector<16x128xf32>
    %2009 = arith.mulf %2001, %2002 : vector<16x128xf32>
    %2010 = arith.subf %2008, %2009 : vector<16x128xf32>
    %2011 = tpu.reciprocal %2010 {approx = true} : vector<16x128xf32> -> vector<16x128xf32>
    %2012 = arith.mulf %2004, %2003 : vector<16x128xf32>
    %2013 = arith.mulf %2005, %2002 : vector<16x128xf32>
    %2014 = arith.subf %2012, %2013 : vector<16x128xf32>
    %2015 = arith.mulf %2014, %2011 : vector<16x128xf32>
    %2016 = arith.mulf %2005, %2000 : vector<16x128xf32>
    %2017 = arith.mulf %2004, %2001 : vector<16x128xf32>
    %2018 = arith.subf %2016, %2017 : vector<16x128xf32>
    %2019 = arith.mulf %2018, %2011 : vector<16x128xf32>
    %2020 = arith.mulf %2006, %2003 : vector<16x128xf32>
    %2021 = arith.mulf %2007, %2002 : vector<16x128xf32>
    %2022 = arith.subf %2020, %2021 : vector<16x128xf32>
    %2023 = arith.mulf %2022, %2011 : vector<16x128xf32>
    %2024 = arith.mulf %2007, %2000 : vector<16x128xf32>
    %2025 = arith.mulf %2006, %2001 : vector<16x128xf32>
    %2026 = arith.subf %2024, %2025 : vector<16x128xf32>
    %2027 = arith.mulf %2026, %2011 : vector<16x128xf32>
    %2028 = vector.shape_cast %645 : vector<16x128xf32> to vector<1x16x128xf32>
    %2029 = vector.shape_cast %651 : vector<16x128xf32> to vector<1x16x128xf32>
    %2030 = vector.shape_cast %5 : vector<16x128xf32> to vector<1x16x128xf32>
    %2031 = tpu.concatenate %2028, %2029, %2030 in 0 : vector<1x16x128xf32>, vector<1x16x128xf32>, vector<1x16x128xf32> -> vector<3x16x128xf32>
    %c0_766 = arith.constant 0 : index
    %c0_767 = arith.constant 0 : index
    %c0_768 = arith.constant 0 : index
    %2032 = vector.load %arg3[%c0_766, %c0_767, %c0_768] : memref<3x16x128xf32, #tpu.memory_space<vmem>>, vector<3x16x128xf32>
    tpu.vector_store %arg3[%c0_766, %c0_767, %c0_768], %2031 {strides = array<i32>} : memref<3x16x128xf32, #tpu.memory_space<vmem>>, vector<3x16x128xf32>,
    %2033 = vector.shape_cast %1319 : vector<16x128xf32> to vector<1x16x128xf32>
    %2034 = vector.shape_cast %651 : vector<16x128xf32> to vector<1x16x128xf32>
    %2035 = vector.shape_cast %1325 : vector<16x128xf32> to vector<1x16x128xf32>
    %2036 = tpu.concatenate %2033, %2034, %2035 in 0 : vector<1x16x128xf32>, vector<1x16x128xf32>, vector<1x16x128xf32> -> vector<3x16x128xf32>
    %c0_769 = arith.constant 0 : index
    %c0_770 = arith.constant 0 : index
    %c0_771 = arith.constant 0 : index
    %2037 = vector.load %arg4[%c0_769, %c0_770, %c0_771] : memref<3x16x128xf32, #tpu.memory_space<vmem>>, vector<3x16x128xf32>
    tpu.vector_store %arg4[%c0_769, %c0_770, %c0_771], %2036 {strides = array<i32>} : memref<3x16x128xf32, #tpu.memory_space<vmem>>, vector<3x16x128xf32>,
    %2038 = vector.shape_cast %1319 : vector<16x128xf32> to vector<1x16x128xf32>
    %2039 = vector.shape_cast %1993 : vector<16x128xf32> to vector<1x16x128xf32>
    %2040 = vector.shape_cast %1999 : vector<16x128xf32> to vector<1x16x128xf32>
    %2041 = tpu.concatenate %2038, %2039, %2040 in 0 : vector<1x16x128xf32>, vector<1x16x128xf32>, vector<1x16x128xf32> -> vector<3x16x128xf32>
    %c0_772 = arith.constant 0 : index
    %c0_773 = arith.constant 0 : index
    %c0_774 = arith.constant 0 : index
    %2042 = vector.load %arg5[%c0_772, %c0_773, %c0_774] : memref<3x16x128xf32, #tpu.memory_space<vmem>>, vector<3x16x128xf32>
    tpu.vector_store %arg5[%c0_772, %c0_773, %c0_774], %2041 {strides = array<i32>} : memref<3x16x128xf32, #tpu.memory_space<vmem>>, vector<3x16x128xf32>,
    %2043 = vector.shape_cast %667 : vector<16x128xf32> to vector<1x16x128xf32>
    %2044 = vector.shape_cast %671 : vector<16x128xf32> to vector<1x16x128xf32>
    %2045 = vector.shape_cast %675 : vector<16x128xf32> to vector<1x16x128xf32>
    %2046 = vector.shape_cast %679 : vector<16x128xf32> to vector<1x16x128xf32>
    %2047 = tpu.concatenate %2043, %2044, %2045, %2046 in 0 : vector<1x16x128xf32>, vector<1x16x128xf32>, vector<1x16x128xf32>, vector<1x16x128xf32> -> vector<4x16x128xf32>
    %c0_775 = arith.constant 0 : index
    %c0_776 = arith.constant 0 : index
    %c0_777 = arith.constant 0 : index
    %2048 = vector.load %arg6[%c0_775, %c0_776, %c0_777] : memref<4x16x128xf32, #tpu.memory_space<vmem>>, vector<4x16x128xf32>
    tpu.vector_store %arg6[%c0_775, %c0_776, %c0_777], %2047 {strides = array<i32>} : memref<4x16x128xf32, #tpu.memory_space<vmem>>, vector<4x16x128xf32>,
    %2049 = vector.shape_cast %1341 : vector<16x128xf32> to vector<1x16x128xf32>
    %2050 = vector.shape_cast %1345 : vector<16x128xf32> to vector<1x16x128xf32>
    %2051 = vector.shape_cast %1349 : vector<16x128xf32> to vector<1x16x128xf32>
    %2052 = vector.shape_cast %1353 : vector<16x128xf32> to vector<1x16x128xf32>
    %2053 = tpu.concatenate %2049, %2050, %2051, %2052 in 0 : vector<1x16x128xf32>, vector<1x16x128xf32>, vector<1x16x128xf32>, vector<1x16x128xf32> -> vector<4x16x128xf32>
    %c0_778 = arith.constant 0 : index
    %c0_779 = arith.constant 0 : index
    %c0_780 = arith.constant 0 : index
    %2054 = vector.load %arg7[%c0_778, %c0_779, %c0_780] : memref<4x16x128xf32, #tpu.memory_space<vmem>>, vector<4x16x128xf32>
    tpu.vector_store %arg7[%c0_778, %c0_779, %c0_780], %2053 {strides = array<i32>} : memref<4x16x128xf32, #tpu.memory_space<vmem>>, vector<4x16x128xf32>,
    %2055 = vector.shape_cast %2015 : vector<16x128xf32> to vector<1x16x128xf32>
    %2056 = vector.shape_cast %2019 : vector<16x128xf32> to vector<1x16x128xf32>
    %2057 = vector.shape_cast %2023 : vector<16x128xf32> to vector<1x16x128xf32>
    %2058 = vector.shape_cast %2027 : vector<16x128xf32> to vector<1x16x128xf32>
    %2059 = tpu.concatenate %2055, %2056, %2057, %2058 in 0 : vector<1x16x128xf32>, vector<1x16x128xf32>, vector<1x16x128xf32>, vector<1x16x128xf32> -> vector<4x16x128xf32>
    %c0_781 = arith.constant 0 : index
    %c0_782 = arith.constant 0 : index
    %c0_783 = arith.constant 0 : index
    %2060 = vector.load %arg8[%c0_781, %c0_782, %c0_783] : memref<4x16x128xf32, #tpu.memory_space<vmem>>, vector<4x16x128xf32>
    tpu.vector_store %arg8[%c0_781, %c0_782, %c0_783], %2059 {strides = array<i32>} : memref<4x16x128xf32, #tpu.memory_space<vmem>>, vector<4x16x128xf32>,
    %2061 = arith.mulf %1341, %667 : vector<16x128xf32>
    %2062 = arith.mulf %1341, %671 : vector<16x128xf32>
    %2063 = arith.mulf %2015, %675 : vector<16x128xf32>
    %2064 = arith.mulf %2019, %1349 : vector<16x128xf32>
    %2065 = arith.mulf %2064, %667 : vector<16x128xf32>
    %2066 = arith.addf %2063, %2065 : vector<16x128xf32>
    %2067 = arith.mulf %2015, %679 : vector<16x128xf32>
    %2068 = arith.mulf %2019, %1349 : vector<16x128xf32>
    %2069 = arith.mulf %2068, %671 : vector<16x128xf32>
    %2070 = arith.addf %2067, %2069 : vector<16x128xf32>
    %2071 = arith.mulf %2019, %1353 : vector<16x128xf32>
    %2072 = arith.mulf %2023, %675 : vector<16x128xf32>
    %2073 = arith.mulf %2027, %1349 : vector<16x128xf32>
    %2074 = arith.mulf %2073, %667 : vector<16x128xf32>
    %2075 = arith.addf %2072, %2074 : vector<16x128xf32>
    %2076 = arith.mulf %2023, %679 : vector<16x128xf32>
    %2077 = arith.mulf %2027, %1349 : vector<16x128xf32>
    %2078 = arith.mulf %2077, %671 : vector<16x128xf32>
    %2079 = arith.addf %2076, %2078 : vector<16x128xf32>
    %2080 = arith.mulf %2027, %1353 : vector<16x128xf32>
    %2081 = vector.shape_cast %2061 : vector<16x128xf32> to vector<1x16x128xf32>
    %2082 = vector.shape_cast %2062 : vector<16x128xf32> to vector<1x16x128xf32>
    %2083 = vector.shape_cast %1345 : vector<16x128xf32> to vector<1x16x128xf32>
    %2084 = vector.shape_cast %2066 : vector<16x128xf32> to vector<1x16x128xf32>
    %2085 = vector.shape_cast %2070 : vector<16x128xf32> to vector<1x16x128xf32>
    %2086 = vector.shape_cast %2071 : vector<16x128xf32> to vector<1x16x128xf32>
    %2087 = vector.shape_cast %2075 : vector<16x128xf32> to vector<1x16x128xf32>
    %2088 = vector.shape_cast %2079 : vector<16x128xf32> to vector<1x16x128xf32>
    %2089 = vector.shape_cast %2080 : vector<16x128xf32> to vector<1x16x128xf32>
    %2090 = tpu.concatenate %2081, %2082, %2083, %2084, %2085, %2086, %2087, %2088, %2089 in 0 : vector<1x16x128xf32>, vector<1x16x128xf32>, vector<1x16x128xf32>, vector<1x16x128xf32>, vector<1x16x128xf32>, vector<1x16x128xf32>, vector<1x16x128xf32>, vector<1x16x128xf32>, vector<1x16x128xf32> -> vector<9x16x128xf32>
    %c0_784 = arith.constant 0 : index
    %c0_785 = arith.constant 0 : index
    %c0_786 = arith.constant 0 : index
    %2091 = vector.load %arg9[%c0_784, %c0_785, %c0_786] : memref<9x16x128xf32, #tpu.memory_space<vmem>>, vector<9x16x128xf32>
    tpu.vector_store %arg9[%c0_784, %c0_785, %c0_786], %2090 {strides = array<i32>} : memref<9x16x128xf32, #tpu.memory_space<vmem>>, vector<9x16x128xf32>,
    return
  }
  func.func @transform_0(%arg0: i32) -> (i32, i32) {
    %c0_i32 = arith.constant 0 : i32
    %c0_i32_0 = arith.constant 0 : i32
    %c0_i32_1 = arith.constant 0 : i32
    return %c0_i32, %c0_i32_0 : i32, i32
  }
  func.func @transform_1(%arg0: i32) -> (i32, i32, i32) {
    %c0_i32 = arith.constant 0 : i32
    %c0_i32_0 = arith.constant 0 : i32
    %c0_i32_1 = arith.constant 0 : i32
    return %c0_i32, %arg0, %c0_i32_0 : i32, i32, i32
  }
  func.func @transform_2(%arg0: i32) -> (i32, i32, i32) {
    %c0_i32 = arith.constant 0 : i32
    %c0_i32_0 = arith.constant 0 : i32
    %c0_i32_1 = arith.constant 0 : i32
    return %c0_i32, %arg0, %c0_i32_0 : i32, i32, i32
  }
  func.func @transform_3(%arg0: i32) -> (i32, i32, i32) {
    %c0_i32 = arith.constant 0 : i32
    %c0_i32_0 = arith.constant 0 : i32
    %c0_i32_1 = arith.constant 0 : i32
    return %c0_i32, %arg0, %c0_i32_0 : i32, i32, i32
  }
  func.func @transform_4(%arg0: i32) -> (i32, i32, i32) {
    %c0_i32 = arith.constant 0 : i32
    %c0_i32_0 = arith.constant 0 : i32
    %c0_i32_1 = arith.constant 0 : i32
    return %c0_i32, %arg0, %c0_i32_0 : i32, i32, i32
  }
  func.func @transform_5(%arg0: i32) -> (i32, i32, i32) {
    %c0_i32 = arith.constant 0 : i32
    %c0_i32_0 = arith.constant 0 : i32
    %c0_i32_1 = arith.constant 0 : i32
    return %c0_i32, %arg0, %c0_i32_0 : i32, i32, i32
  }
  func.func @transform_6(%arg0: i32) -> (i32, i32, i32) {
    %c0_i32 = arith.constant 0 : i32
    %c0_i32_0 = arith.constant 0 : i32
    %c0_i32_1 = arith.constant 0 : i32
    return %c0_i32, %arg0, %c0_i32_0 : i32, i32, i32
  }
  func.func @transform_7(%arg0: i32) -> (i32, i32, i32) {
    %c0_i32 = arith.constant 0 : i32
    %c0_i32_0 = arith.constant 0 : i32
    %c0_i32_1 = arith.constant 0 : i32
    return %c0_i32, %arg0, %c0_i32_0 : i32, i32, i32
  }
  func.func @transform_8(%arg0: i32) -> (i32, i32, i32) {
    %c0_i32 = arith.constant 0 : i32
    %c0_i32_0 = arith.constant 0 : i32
    %c0_i32_1 = arith.constant 0 : i32
    return %c0_i32, %arg0, %c0_i32_0 : i32, i32, i32
  }
}

</mosaic_0001>

<bundles_post_ra>
// kernel: custom-call.26
= control target key start
LH: loop header
LB: loop body
LE: loop exit
PB: predicated region body
PF: predicated region fallthrough
CT: control target
= control target key end

     0   :  { %5 = vsyncpa [#allocation4], 0  ;;  %s976_s0 = inlined_call_operand.vmem [shape: f32[25,25], index: 0, kind: input, shape index: {}]   ;;  %s977_s1 = inlined_call_operand.vmem [shape: f32[25,25], index: 1, kind: output, shape index: {0}]   ;;  %s978_s2 = inlined_call_operand.hbm [shape: s32[25], index: 2, kind: output, shape index: {1}]   ;;  %s979_s3 = inlined_call_operand.vmem [shape: s32[25], index: 3, kind: output, shape index: {2}]  }
   0x1   :  { %s19_s14 = scalar_lea.vmem %s976_s0, 24 }
   0x2   :  { %p525_p0 = scmp.gt.s32.totalorder %s976_s0, %s19_s14 }
   0x3   :  { %s820_s17 = smov (!%p525_p0), [#allocation0]   ;;  %s824_s20 = smov (!%p525_p0), %s976_s0  }
   0x4   :  { %526 = sbr.rel (%p525_p0) target bundleno = 17 (0x11), region = 165 }
   0x9 LB: > { %v53_v0 = vld [vmem:[%s826_s20] sm:$0xff]  ;;  %s55_s20 = scalar_lea.vmem %s826_s20, 8   ;;  %s826_s20 = sphi %s824_s20, %s55_s20   ;;  %s822_s17 = sphi %s820_s17, %s56_s17  }
   0xa   : > { %54 = vst [vmem:[%s822_s17] sm:$0xff] %v53_v0  ;;  %s56_s17 = scalar_lea.vmem %s822_s17, 8   ;;  %p50_p1 = scmp.gt.s32.totalorder %s55_s20, %s19_s14 }
   0xc   :  { %52 = sbr.rel (!%p50_p1) target bundleno = 9 (0x9), region = 171 }
  0x11 PF:  { %v69_v1 = vld [vmem:[#allocation0] sm:$0xff]  ;;  %v73_v2 = vld [vmem:[#allocation0 + $0x8] sm:$0xff]  ;;  %v77_v3 = vld [vmem:[#allocation0 + $0x10] sm:$0xff]  ;;  %v84_v4 = vlaneseq  ;;  %v844_v6 = vmov 0   ;;  %s828_s0 = smov 0  }
  0x12   :  { %70 = vst [vmem:[#allocation1] sm:$0xff] %v69_v1  ;;  %74 = vst [vmem:[#allocation1 + $0x8] sm:$0xff] %v73_v2  ;;  %v81_v5 = vld [vmem:[#allocation0 + $0x18] sm:$0xff] }
  0x13   :  { %78 = vst [vmem:[#allocation1 + $0x10] sm:$0xff] %v77_v3  ;;  %83 = vst [vmem:[#allocation2] sm:$0x1] %v844_v6  ;;  %v876_v7 = vshrl.u32 %v84_v4, 7 }
  0x14   :  { %82 = vst [vmem:[#allocation1 + $0x18] sm:$0xff] %v81_v5 }
  0x15 LB: > { %s583_s21 = sshll.u32 %s830_s0, 3  ;;  %s92_s0 = sadd.s32 1, %s830_s0   ;;  %s830_s0 = sphi %s828_s0, %s92_s0  }
  0x16   : > { %v96_v8 = vstv %s583_s21  ;;  %s94_s22 = scalar_lea.vmem [#allocation7], %s583_s21  ;;  %p89_p2 = scmp.ge.s32.totalorder %s92_s0, 4  }
  0x17   : > { %v97_v9 = vadd.s32 %v96_v8, %v876_v7  ;;  %s879_s23 = smov (%p89_p2), 0  }
  0x18   :  { %91 = sbr.rel (!%p89_p2) target bundleno = 21 (0x15), region = 182 }
  0x19   : > { %98 = vst [vmem:[%s94_s22] sm:$0xff] %v97_v9 }
  0x1d LB: > { %v109_v10 = vld [vmem:[#allocation1] sm:$0xff]  ;;  %v121_v11 = vld [vmem:[#allocation1 + $0x8] sm:$0xff]  ;;  %v885_v12 = vadd.s32 8, %v876_v7  ;;  %v888_v14 = vstv %s834_s23  ;;  %v133_v16 = vld [vmem:[#allocation1 + $0x10] sm:$0xff]  ;;  %v891_v17 = vadd.s32 24, %v876_v7  ;;  %v896_v18 = vadd.s32 16, %v876_v7  ;;  %s834_s23 = sphi %s879_s23, %s104_s23  }
  0x1e   : > { %v110_v13 = vand.u32 2147483647, %v109_v10  ;;  %v122_v15 = vand.u32 2147483647, %v121_v11  ;;  %vm113_vm0 = vcmp.ge.s32.totalorder %v876_v7, %v888_v14  ;;  %v134_v21 = vand.u32 2147483647, %v133_v16 }
  0x1f   : > { %vm125_vm3 = vcmp.ge.s32.totalorder %v885_v12, %v888_v14  ;;  %v145_v22 = vld [vmem:[#allocation1 + $0x18] sm:$0xff]  ;;  %vm149_vm5 = vcmp.ge.s32.totalorder %v891_v17, %v888_v14  ;;  %vm150_vm6 = vcmp.lt.s32.totalorder %v891_v17, 25  ;;  %vm137_vm8 = vcmp.ge.s32.totalorder %v896_v18, %v888_v14  ;;  %s191_s24 = ssub.s32 128, %s834_s23  ;;  %v200_v60 = vld [vmem:[#allocation2] ss:$0 sm:$0xff]  ;;  %s203_s25 = scalar_lea.vmem [#allocation1], %s834_s23 }
  0x20   : > { %vm585_vm1 = vcmp.gt.f32.partialorder %v110_v13, -inf  ;;  %v146_v25 = vand.u32 2147483647, %v145_v22  ;;  %vm151_vm10 = vmand %vm149_vm5, %vm150_vm6  ;;  %v197_v58 = vand.u32 127, %v84_v4  ;;  %v205_v61 = vld [vmem:[%s203_s25] ss:$0 sm:$0xff] }
  0x21   : > { %vm117_vm2 = vmand %vm113_vm0, %vm585_vm1  ;;  %s209_s27 = scalar_lea.vmem [#allocation7], %s834_s23  ;;  %s104_s23 = sadd.s32 1, %s834_s23  }
  0x22   : > { %v118_v19 = vsel %vm117_vm2, %v876_v7, %v888_v14  ;;  %v119_v20 = vsel %vm117_vm2, %v110_v13, -inf  ;;  %vm913_vm5 = vcmp.eq.s32.totalorder %v197_v58, %v888_v14  ;;  %v211_v62 = vld [vmem:[%s209_s27] ss:$0 sm:$0xff]  ;;  %p101_p3 = scmp.ge.s32.totalorder %s104_s23, 25  }
  0x23   : > { %vm128_vm4 = vcmp.lt.f32.partialorder %v119_v20, %v122_v15  ;;  %s836_s5 = smov (%p101_p3), %s977_s1   ;;  %s840_s6 = smov (%p101_p3), [#allocation1]  }
  0x24   : > { %vm129_vm7 = vmand %vm125_vm3, %vm128_vm4 }
  0x25   : > { %v130_v23 = vsel %vm129_vm7, %v885_v12, %v118_v19  ;;  %v131_v24 = vsel %vm129_vm7, %v122_v15, %v119_v20  ;;  %vm244_vm7 = vcmp.gt.s32.totalorder %v885_v12, %v888_v14 }
  0x26   : > { %vm140_vm9 = vcmp.lt.f32.partialorder %v131_v24, %v134_v21 }
  0x27   : > { %vm141_vm11 = vmand %vm137_vm8, %vm140_vm9  ;;  %vm229_vm8 = vcmp.gt.s32.totalorder %v876_v7, %v888_v14  ;;  %vm259_vm9 = vcmp.gt.s32.totalorder %v896_v18, %v888_v14 }
  0x28   : > { %v142_v26 = vsel %vm141_vm11, %v896_v18, %v130_v23  ;;  %v143_v27 = vsel %vm141_vm11, %v134_v21, %v131_v24  ;;  %vm274_vm11 = vcmp.gt.s32.totalorder %v891_v17, %v888_v14 }
  0x29   : > { %vm152_vm12 = vcmp.lt.f32.partialorder %v143_v27, %v146_v25 }
  0x2a   : > { %vm153_vm13 = vmand %vm151_vm10, %vm152_vm12 }
  0x2b   : > { %v154_v28 = vsel %vm153_vm13, %v891_v17, %v142_v26  ;;  %v155_v29 = vsel %vm153_vm13, %v146_v25, %v143_v27  ;;  %vm248_vm12 = vmand %vm244_vm7, %vm913_vm5 }
  0x2c   : > { %v156_v30 = vrot.slane %v155_v29, 1  ;;  %v157_v31 = vrot.slane %v154_v28, 1  ;;  %vm233_vm13 = vmand %vm229_vm8, %vm913_vm5 }
  0x2e   : > { %vm158_vm14 = vcmp.ge.f32.partialorder %v156_v30, %v155_v29  ;;  %v161_v32 = vrot.slane %v156_v30, 1  ;;  %v162_v33 = vrot.slane %v157_v31, 1 }
  0x2f   : > { %v159_v34 = vsel %vm158_vm14, %v156_v30, %v155_v29  ;;  %v160_v35 = vsel %vm158_vm14, %v157_v31, %v154_v28  ;;  %vm263_vm14 = vmand %vm259_vm9, %vm913_vm5 }
  0x30   : > { %vm163_vm15 = vcmp.ge.f32.partialorder %v161_v32, %v159_v34  ;;  %v166_v36 = vrot.slane %v161_v32, 1  ;;  %v167_v37 = vrot.slane %v162_v33, 1 }
  0x31   : > { %v164_v38 = vsel %vm163_vm15, %v161_v32, %v159_v34  ;;  %v165_v39 = vsel %vm163_vm15, %v162_v33, %v160_v35  ;;  %vm278_vm15 = vmand %vm274_vm11, %vm913_vm5 }
  0x32   : > { %vm168_vm0 = vcmp.ge.f32.partialorder %v166_v36, %v164_v38  ;;  %v171_v40 = vrot.slane %v166_v36, 1  ;;  %v172_v41 = vrot.slane %v167_v37, 1 }
  0x33   : > { %v169_v42 = vsel %vm168_vm0, %v166_v36, %v164_v38  ;;  %v170_v43 = vsel %vm168_vm0, %v167_v37, %v165_v39  ;;  %vm221_vm0 = vcmp.gt.s32.totalorder %v197_v58, %v888_v14 }
  0x34   : > { %vm173_vm1 = vcmp.ge.f32.partialorder %v171_v40, %v169_v42  ;;  %v176_v44 = vrot.slane %v171_v40, 1  ;;  %v177_v45 = vrot.slane %v172_v41, 1 }
  0x35   : > { %v174_v46 = vsel %vm173_vm1, %v171_v40, %v169_v42  ;;  %v175_v47 = vsel %vm173_vm1, %v172_v41, %v170_v43 }
  0x36   : > { %vm178_vm2 = vcmp.ge.f32.partialorder %v176_v44, %v174_v46  ;;  %v181_v48 = vrot.slane %v176_v44, 1  ;;  %v182_v49 = vrot.slane %v177_v45, 1 }
  0x37   : > { %v179_v50 = vsel %vm178_vm2, %v176_v44, %v174_v46  ;;  %v180_v51 = vsel %vm178_vm2, %v177_v45, %v175_v47 }
  0x38   : > { %vm183_vm3 = vcmp.ge.f32.partialorder %v181_v48, %v179_v50  ;;  %v186_v52 = vrot.slane %v181_v48, 1  ;;  %v187_v53 = vrot.slane %v182_v49, 1 }
  0x39   : > { %v184_v54 = vsel %vm183_vm3, %v181_v48, %v179_v50  ;;  %v185_v55 = vsel %vm183_vm3, %v182_v49, %v180_v51 }
  0x3a   : > { %vm188_vm4 = vcmp.ge.f32.partialorder %v186_v52, %v184_v54 }
  0x3b   : > { %v190_v56 = vsel %vm188_vm4, %v187_v53, %v185_v55 }
  0x3c   : > { %192 = vrot.lane.b32.xlu0 %v190_v56, %s191_s24 }
  0xae   : > { %v193_v57 = vpop.permute.xlu0 %192 }
  0xaf   : > { %593 = vpush %v193_v57 }
  0xe0   : > { %s594_s26 = spop %593 }
  0xe1   : > { %v199_v63 = vstv %s594_s26  ;;  %s204_s28 = scalar_lea.vmem [#allocation1], %s594_s26  ;;  %s210_s29 = scalar_lea.vmem [#allocation7], %s594_s26 }
  0xe2   : > { %v201_v0 = vsel %vm913_vm5, %v199_v63, %v200_v60  ;;  %v206_v1 = vld [vmem:[%s204_s28] ss:$0 sm:$0xff] }
  0xe3   : > { %v212_v2 = vld [vmem:[%s210_s29] ss:$0 sm:$0xff]  ;;  %202 = vst [vmem:[#allocation2] sm:$0x1] %v201_v0  ;;  %207 = vst [vmem:[%s204_s28] sm:$0x1] %v205_v61  ;;  %vm215_vm6 = vcmp.ne.f32.partialorder %v206_v1, 0.0 }
  0xe4   : > { %213 = vst [vmem:[%s210_s29] sm:$0x1] %v211_v62  ;;  %208 = vst [vmem:[%s203_s25] sm:$0x1] %v206_v1  ;;  %v222_v29 = vsel %vm221_vm0, %v206_v1, 0.0 }
  0xe5   : > { %214 = vst [vmem:[%s209_s27] sm:$0x1] %v212_v2  ;;  %vm216_vm10 = vmand %vm913_vm5, %vm215_vm6 }
  0xe6   : > { %v217_v3 = vsel %vm216_vm10, %v206_v1, 1.0 }
  0xe7   : > { %v245_v5 = vsel %vm244_vm7, %v217_v3, 1.0  ;;  %v230_v6 = vsel %vm229_vm8, %v217_v3, 1.0  ;;  %v260_v8 = vsel %vm259_vm9, %v217_v3, 1.0  ;;  %v275_v9 = vsel %vm274_vm11, %v217_v3, 1.0 }
  0xe8   : > { %726 = vrcp.f32 %v245_v5 }
  0xe9   : > { %728 = vrcp.f32 %v230_v6 }
  0xea   : > { %730 = vrcp.f32 %v260_v8  ;;  %v341_v41 = vld [vmem:[#allocation2] sm:$0x1] (%p101_p3) }
  0xeb   : > { %732 = vrcp.f32 %v275_v9  ;;  %v241_v11 = vld [vmem:[#allocation1 + $0x8] sm:$0xff]  ;;  %v226_v16 = vld [vmem:[#allocation1] sm:$0xff]  ;;  %v256_v21 = vld [vmem:[#allocation1 + $0x10] sm:$0xff]  ;;  %344 = vst [vmem:[#allocation3] sm:$0x1] (%p101_p3), %v341_v41 }
  0xec   : > { %v271_v12 = vld [vmem:[#allocation1 + $0x18] sm:$0xff]  ;;  %v289_v42 = vld [vmem:[#allocation7 + $0x10] sm:$0xff] (%p101_p3)  ;;  %v291_v43 = vld [vmem:[#allocation7 + $0x18] sm:$0xff] (%p101_p3) }
  0xed   :  { %v285_v14 = vld [vmem:[#allocation7] sm:$0xff] (%p101_p3)  ;;  %v287_v40 = vld [vmem:[#allocation7 + $0x8] sm:$0xff] (%p101_p3) }
  0xf5   : > { %v727_v10 = vpop.eup %726 }
  0xf6   : > { %v729_v13 = vpop.eup %728  ;;  %v247_v15 = vmul.f32 %v727_v10, %v241_v11 }
  0xf7   : > { %v731_v19 = vpop.eup %730  ;;  %v232_v20 = vmul.f32 %v729_v13, %v226_v16 }
  0xf8   : > { %v249_v22 = vsel %vm248_vm12, %v247_v15, 0.0  ;;  %v262_v23 = vmul.f32 %v731_v19, %v256_v21  ;;  %v733_v24 = vpop.eup %732 }
  0xf9   : > { %250 = vadd.xlane.f32.xlu1 %v249_v22  ;;  %v234_v25 = vsel %vm233_vm13, %v232_v20, 0.0  ;;  %v277_v27 = vmul.f32 %v733_v24, %v271_v12 }
  0xfa   : > { %235 = vadd.xlane.f32.xlu0 %v234_v25  ;;  %v264_v26 = vsel %vm263_vm14, %v262_v23, 0.0 }
  0xfb   : > { %v279_v28 = vsel %vm278_vm15, %v277_v27, 0.0 }
  0xfd   : > { %265 = vadd.xlane.f32.xlu1 %v264_v26 }
 0x101   : > { %280 = vadd.xlane.f32.xlu1 %v279_v28 }
 0x127   :  { %304 = vxpose.xlu0.b32.start [1/4] (short) (narrow) (%p101_p3), %v285_v14, 8 }
 0x12b   :  { %305 = vxpose.xlu0.b32.cont [2/4] (short) (narrow) (%p101_p3), %v287_v40, 8 }
 0x12f   :  { %306 = vxpose.xlu0.b32.cont [3/4] (short) (narrow) (%p101_p3), %v289_v42, 8 }
 0x133   :  { %307 = vxpose.xlu0.b32.end [4/4] (short) (narrow) (%p101_p3), %v291_v43, 8 }
 0x182   : > { %v251_v30 = vpop.xlane.xlu1 %250 }
 0x183   : > { %v252_v31 = vmul.f32 %v251_v30, %v222_v29  ;;  %v236_v18 = vpop.xlane.xlu0 %235 }
 0x184   : > { %v237_v32 = vmul.f32 %v236_v18, %v222_v29 }
 0x185   : > { %v253_v33 = vsub.f32 %v247_v15, %v252_v31 }
 0x186   : > { %v238_v34 = vsub.f32 %v232_v20, %v237_v32  ;;  %v266_v35 = vpop.xlane.xlu1 %265 }
 0x187   : > { %254 = vst [vmem:[#allocation1 + $0x8] sm:$0xff] %v253_v33  ;;  %v267_v36 = vmul.f32 %v266_v35, %v222_v29 }
 0x188   : > { %239 = vst [vmem:[#allocation1] sm:$0xff] %v238_v34 }
 0x189   : > { %v268_v37 = vsub.f32 %v262_v23, %v267_v36 }
 0x18a   : > { %v281_v38 = vpop.xlane.xlu1 %280 }
 0x18b   : > { %269 = vst [vmem:[#allocation1 + $0x10] sm:$0xff] %v268_v37  ;;  %v282_v17 = vmul.f32 %v281_v38, %v222_v29 }
 0x18d   : > { %v283_v39 = vsub.f32 %v277_v27, %v282_v17 }
 0x18f   : > { %284 = vst [vmem:[#allocation1 + $0x18] sm:$0xff] %v283_v39 }
 0x190   :  { %103 = sbr.rel (!%p101_p3) target bundleno = 29 (0x1d), region = 193 }
 0x1a3   :  { %v320_v44 = vpop.trf.xlu0 }
 0x1a4   :  { %336 = vst [vmem:[#allocation5] sm:$0x1] %v320_v44 }
 0x1ab   :  { %v349_v45 = vld [vmem:[#allocation5] sm:$0x1] }
 0x1ac   :  { %352 = vst [vmem:[#allocation6] sm:$0x1] %v349_v45 }
 0x1ad LB: > { %v400_v4 = vld [vmem:[%s842_s6] sm:$0xff]  ;;  %s402_s6 = scalar_lea.vmem %s842_s6, 8   ;;  %s842_s6 = sphi %s840_s6, %s402_s6   ;;  %s838_s5 = sphi %s836_s5, %s403_s5  }
 0x1ae   : > { %401 = vst [vmem:[%s838_s5] sm:$0xff] %v400_v4  ;;  %s403_s5 = scalar_lea.vmem %s838_s5, 8   ;;  %p397_p4 = scmp.gt.s32.totalorder %s402_s6, [#allocation1 + $0x18] }
 0x1af   :  { %s845_s7 = smov (%p397_p4), [#allocation3]  }
 0x1b0   :  { %399 = sbr.rel (!%p397_p4) target bundleno = 429 (0x1ad), region = 215  ;;  %s421_s8 = sshll.u32 (%p397_p4), %s845_s7, 4  ;;  %s422_s8 = int_to_ptr.vmem [resolvable:$true] %s421_s8 }
 0x1b1   :  { %s734_s1 = scalar_lea.vmem (%p397_p4), %s422_s8, 16  ;;  %s738_s11 = scalar_lea.vmem (%p397_p4), %s422_s8, 32 }
 0x1b2   :  { %p735_p5 = scmp.ne.s32.totalorder (%p397_p4), %s422_s8, %s734_s1  ;;  %p739_p6 = scmp.lt.s32.totalorder (%p397_p4), %s422_s8, %s422_s8 }
 0x1b3   :  { %v488_v7 = vld [vmem:[#allocation6] sm:$0x1] (%p397_p4)  ;;  %p740_p7 = scmp.lt.s32.totalorder (%p397_p4), %s738_s11, %s734_s1 }
 0x1b4   :  { %489 = vst [vmem:[%s979_s3] sm:$0x1] (%p397_p4), %v488_v7 }
 0x1b5   :  { %p741_p8 = por %p740_p7, %p739_p6 }
 0x1b7   :  { %p742_p9 = pnand %p741_p8, %p735_p5 }
 0x1b9   :  { %745 = shalt.err (!%p742_p9)
}
 0x1ba   :  { %424 = dma.vmem_to_hbm [thread:$0]  %s422_s8, 16, %s978_s2, [#allocation4]  }
 0x1bb   :  { %818 = dma.done.wait [#allocation4], 16  }
 0x1bc   :  { %819 = vsyncadd [#allocation4], 4294967280 }
 0x1bd   :  { %495 = vsyncpa [#allocation4], 1 }

// kernel: custom-call.28
= control target key start
LH: loop header
LB: loop body
LE: loop exit
PB: predicated region body
PF: predicated region fallthrough
CT: control target
= control target key end

     0   :  { %v47_v0 = vlaneseq  ;;  %v578_v9 = vmov -1.0   ;;  %v579_v53 = vmov 0.0   ;;  %s717_s0 = inlined_call_operand.vmem [shape: f32[1,25,25], index: 0, kind: input, shape index: {}]   ;;  %s718_s1 = inlined_call_operand.vmem [shape: f32[1,25,25], index: 1, kind: output, shape index: {}]  }
   0x1   :  { %v36_v1 = vld [vmem:[%s717_s0] sm:$0xff]  ;;  %v38_v36 = vld [vmem:[%s717_s0 + $0x8] sm:$0xff] }
   0x2   :  { %v593_v2 = vand.u32 127, %v47_v0  ;;  %v595_v3 = vshrl.u32 %v47_v0, 7 }
   0x4   :  { %vm53_vm0 = vcmp.eq.s32.totalorder %v595_v3, %v593_v2  ;;  %vm49_vm1 = vcmp.lt.s32.totalorder %v593_v2, 25  ;;  %vm58_vm2 = vcmp.ge.s32.totalorder %v595_v3, %v593_v2  ;;  %vm120_vm4 = vcmp.eq.s32.totalorder %v593_v2, 0 }
   0x5   :  { %v55_v4 = vsel %vm53_vm0, %v36_v1, 0.0  ;;  %vm59_vm3 = vmand %vm58_vm2, %vm49_vm1  ;;  %vm117_vm5 = vcmp.eq.s32.totalorder %v593_v2, %v595_v3  ;;  %v121_v10 = vsel %vm120_vm4, 1.0, %v578_v9  ;;  %vm149_vm6 = vcmp.eq.s32.totalorder %v593_v2, 1 }
   0x6   :  { %56 = vadd.xlane.f32.xlu0 %v55_v4  ;;  %v60_v6 = vsel %vm59_vm3, %v36_v1, 0.0  ;;  %v122_v11 = vsel %vm117_vm5, %v121_v10, 0.0  ;;  %vm159_vm7 = vcmp.eq.s32.totalorder %v593_v2, 2  ;;  %vm169_vm8 = vcmp.eq.s32.totalorder %v593_v2, 3 }
   0x7   :  { %vm179_vm9 = vcmp.eq.s32.totalorder %v593_v2, 4  ;;  %v68_v31 = vadd.s32 8, %v595_v3  ;;  %vm189_vm11 = vcmp.eq.s32.totalorder %v593_v2, 5  ;;  %vm199_vm14 = vcmp.eq.s32.totalorder %v593_v2, 6 }
   0x8   :  { %vm209_vm0 = vcmp.eq.s32.totalorder %v593_v2, 7  ;;  %vm219_vm2 = vcmp.eq.s32.totalorder %v593_v2, 8  ;;  %vm233_vm3 = vcmp.eq.s32.totalorder %v593_v2, 9  ;;  %vm247_vm4 = vcmp.eq.s32.totalorder %v593_v2, 10 }
   0x9   :  { %vm69_vm10 = vcmp.eq.s32.totalorder %v68_v31, %v593_v2  ;;  %vm74_vm12 = vcmp.ge.s32.totalorder %v68_v31, %v593_v2  ;;  %vm128_vm15 = vcmp.eq.s32.totalorder %v593_v2, %v68_v31  ;;  %vm261_vm5 = vcmp.eq.s32.totalorder %v593_v2, 11 }
   0xa   :  { %v71_v37 = vsel %vm69_vm10, %v38_v36, 0.0  ;;  %vm75_vm13 = vmand %vm74_vm12, %vm49_vm1  ;;  %v129_v54 = vsel %vm128_vm15, -1.0, %v579_v53  ;;  %vm317_vm12 = vcmp.eq.s32.totalorder %v593_v2, 15  ;;  %vm349_vm15 = vcmp.eq.s32.totalorder %v593_v2, 17 }
   0xb   :  { %v76_v44 = vsel %vm75_vm13, %v38_v36, 0.0 }
  0x8f   :  { %v599_v5 = vpop.xlane.xlu0 %56 }
  0x90   :  { %570 = vrcp.f32 %v599_v5 }
  0x9d   :  { %v607_v7 = vpop.eup %570 }
  0x9e   :  { %v62_v8 = vmul.f32 %v607_v7, %v60_v6 }
  0xa0   :  { %63 = vst [vmem:[#allocation2] sm:$0xff] %v62_v8 }
  0xa7   :  { %v145_v12 = vld [vmem:[#allocation2 + $0x1] ss:$0 sm:$0xff]  ;;  %v155_v15 = vld [vmem:[#allocation2 + $0x2] ss:$0 sm:$0xff]  ;;  %v165_v20 = vld [vmem:[#allocation2 + $0x3] ss:$0 sm:$0xff] }
  0xa8   :  { %v146_v13 = vxor.u32 2147483648, %v145_v12  ;;  %v156_v17 = vxor.u32 2147483648, %v155_v15  ;;  %v166_v22 = vxor.u32 2147483648, %v165_v20  ;;  %v175_v25 = vld [vmem:[#allocation2 + $0x4] ss:$0 sm:$0xff] }
  0xa9   :  { %v176_v27 = vxor.u32 2147483648, %v175_v25  ;;  %v185_v30 = vld [vmem:[#allocation2 + $0x5] ss:$0 sm:$0xff]  ;;  %v195_v38 = vld [vmem:[#allocation2 + $0x6] ss:$0 sm:$0xff] }
  0xaa   :  { %v150_v14 = vmul.f32 %v146_v13, %v122_v11  ;;  %v186_v33 = vxor.u32 2147483648, %v185_v30  ;;  %v196_v40 = vxor.u32 2147483648, %v195_v38  ;;  %v205_v47 = vld [vmem:[#allocation2 + $0x7] ss:$0 sm:$0xff] }
  0xab   :  { %v206_v50 = vxor.u32 2147483648, %v205_v47  ;;  %v84_v47 = vadd.s32 16, %v595_v3 }
  0xac   :  { %151 = vadd.xlane.f32.xlu0 %v150_v14 }
  0xad   :  { %vm90_vm10 = vcmp.ge.s32.totalorder %v84_v47, %v593_v2  ;;  %vm135_vm13 = vcmp.eq.s32.totalorder %v593_v2, %v84_v47 }
 0x135   :  { %v152_v16 = vpop.xlane.xlu0 %151 }
 0x136   :  { %v153_v18 = vsel %vm149_vm6, %v152_v16, %v122_v11  ;;  %vm275_vm6 = vcmp.eq.s32.totalorder %v593_v2, 12 }
 0x137   :  { %v160_v19 = vmul.f32 %v156_v17, %v153_v18 }
 0x139   :  { %161 = vadd.xlane.f32.xlu1 %v160_v19 }
 0x1c2   :  { %v162_v21 = vpop.xlane.xlu1 %161 }
 0x1c3   :  { %v163_v23 = vsel %vm159_vm7, %v162_v21, %v153_v18  ;;  %vm289_vm7 = vcmp.eq.s32.totalorder %v593_v2, 13 }
 0x1c4   :  { %v170_v24 = vmul.f32 %v166_v22, %v163_v23 }
 0x1c6   :  { %171 = vadd.xlane.f32.xlu1 %v170_v24 }
 0x24f   :  { %v172_v26 = vpop.xlane.xlu1 %171 }
 0x250   :  { %v173_v28 = vsel %vm169_vm8, %v172_v26, %v163_v23  ;;  %vm85_vm8 = vcmp.eq.s32.totalorder %v84_v47, %v593_v2 }
 0x251   :  { %v180_v29 = vmul.f32 %v176_v27, %v173_v28 }
 0x253   :  { %181 = vadd.xlane.f32.xlu0 %v180_v29 }
 0x2dc   :  { %v182_v32 = vpop.xlane.xlu0 %181 }
 0x2dd   :  { %v183_v34 = vsel %vm179_vm9, %v182_v32, %v173_v28  ;;  %vm303_vm9 = vcmp.eq.s32.totalorder %v593_v2, 14 }
 0x2de   :  { %v190_v35 = vmul.f32 %v186_v33, %v183_v34 }
 0x2e0   :  { %191 = vadd.xlane.f32.xlu1 %v190_v35 }
 0x2e4   :  { %72 = vadd.xlane.f32.xlu1 %v71_v37 }
 0x369   :  { %v192_v39 = vpop.xlane.xlu1 %191 }
 0x36a   :  { %v193_v41 = vsel %vm189_vm11, %v192_v39, %v183_v34  ;;  %vm91_vm11 = vmand %vm90_vm10, %vm49_vm1  ;;  %vm475_vm10 = vcmp.eq.s32.totalorder %v593_v2, 24 }
 0x36b   :  { %v200_v42 = vmul.f32 %v196_v40, %v193_v41 }
 0x36d   :  { %201 = vadd.xlane.f32.xlu0 %v200_v42  ;;  %v623_v43 = vpop.xlane.xlu1 %72 }
 0x36e   :  { %572 = vrcp.f32 %v623_v43 }
 0x37b   :  { %v629_v45 = vpop.eup %572 }
 0x37c   :  { %v78_v46 = vmul.f32 %v629_v45, %v76_v44 }
 0x37e   :  { %79 = vst [vmem:[#allocation2 + $0x8] sm:$0xff] %v78_v46 }
 0x385   :  { %v215_v48 = vld [vmem:[#allocation2 + $0x8] ss:$0 sm:$0xff]  ;;  %v229_v59 = vld [vmem:[#allocation2 + $0x9] ss:$0 sm:$0xff]  ;;  %v243_v6 = vld [vmem:[#allocation2 + $0xa] ss:$0 sm:$0xff] }
 0x386   :  { %v216_v51 = vxor.u32 2147483648, %v215_v48  ;;  %v230_v62 = vxor.u32 2147483648, %v229_v59  ;;  %v244_v10 = vxor.u32 2147483648, %v243_v6  ;;  %v257_v15 = vld [vmem:[#allocation2 + $0xb] ss:$0 sm:$0xff] }
 0x387   :  { %v258_v18 = vxor.u32 2147483648, %v257_v15  ;;  %v271_v23 = vld [vmem:[#allocation2 + $0xc] ss:$0 sm:$0xff]  ;;  %v285_v31 = vld [vmem:[#allocation2 + $0xd] ss:$0 sm:$0xff] }
 0x388   :  { %v224_v56 = vmul.f32 %v216_v51, %v129_v54  ;;  %v272_v26 = vxor.u32 2147483648, %v271_v23  ;;  %v286_v34 = vxor.u32 2147483648, %v285_v31  ;;  %v299_v39 = vld [vmem:[#allocation2 + $0xe] ss:$0 sm:$0xff] }
 0x389   :  { %v300_v42 = vxor.u32 2147483648, %v299_v39 }
 0x3f6   :  { %v202_v49 = vpop.xlane.xlu0 %201 }
 0x3f7   :  { %v203_v52 = vsel %vm199_vm14, %v202_v49, %v193_v41  ;;  %vm331_vm14 = vcmp.eq.s32.totalorder %v593_v2, 16 }
 0x3f8   :  { %v210_v55 = vmul.f32 %v206_v50, %v203_v52 }
 0x3fa   :  { %211 = vadd.xlane.f32.xlu0 %v210_v55  ;;  %v313_v55 = vld [vmem:[#allocation2 + $0xf] ss:$0 sm:$0xff] }
 0x3fe   :  { %225 = vadd.xlane.f32.xlu0 %v224_v56 }
 0x483   :  { %v212_v57 = vpop.xlane.xlu0 %211 }
 0x484   :  { %v213_v58 = vsel %vm209_vm0, %v212_v57, %v203_v52  ;;  %v314_v57 = vxor.u32 2147483648, %v313_v55  ;;  %vm367_vm0 = vcmp.eq.s32.totalorder %v593_v2, 18 }
 0x485   :  { %v220_v60 = vmul.f32 %v216_v51, %v213_v58  ;;  %v40_v51 = vld [vmem:[%s717_s0 + $0x10] sm:$0xff] }
 0x487   :  { %v226_v61 = vpop.xlane.xlu0 %225  ;;  %221 = vadd.xlane.f32.xlu1 %v220_v60 }
 0x488   :  { %v227_v63 = vsel %vm219_vm2, %v226_v61, %v129_v54  ;;  %v87_v54 = vsel %vm85_vm8, %v40_v51, 0.0 }
 0x489   :  { %v238_v0 = vmul.f32 %v230_v62, %v227_v63 }
 0x48b   :  { %239 = vadd.xlane.f32.xlu0 %v238_v0 }
 0x510   :  { %v222_v1 = vpop.xlane.xlu1 %221 }
 0x511   :  { %v223_v4 = vsel %vm219_vm2, %v222_v1, %v213_v58  ;;  %vm385_vm2 = vcmp.eq.s32.totalorder %v593_v2, 19 }
 0x512   :  { %v234_v8 = vmul.f32 %v230_v62, %v223_v4 }
 0x514   :  { %v240_v9 = vpop.xlane.xlu0 %239  ;;  %235 = vadd.xlane.f32.xlu1 %v234_v8 }
 0x515   :  { %v241_v11 = vsel %vm233_vm3, %v240_v9, %v227_v63  ;;  %v92_v63 = vsel %vm91_vm11, %v40_v51, 0.0  ;;  %vm499_vm11 = vweird.f32 %v623_v43 }
 0x516   :  { %v252_v12 = vmul.f32 %v244_v10, %v241_v11 }
 0x518   :  { %253 = vadd.xlane.f32.xlu0 %v252_v12 }
 0x59d   :  { %v236_v13 = vpop.xlane.xlu1 %235 }
 0x59e   :  { %v237_v14 = vsel %vm233_vm3, %v236_v13, %v223_v4  ;;  %vm403_vm3 = vcmp.eq.s32.totalorder %v593_v2, 20 }
 0x59f   :  { %v248_v16 = vmul.f32 %v244_v10, %v237_v14 }
 0x5a1   :  { %v254_v17 = vpop.xlane.xlu0 %253  ;;  %249 = vadd.xlane.f32.xlu1 %v248_v16 }
 0x5a2   :  { %v255_v19 = vsel %vm247_vm4, %v254_v17, %v241_v11 }
 0x5a3   :  { %v266_v20 = vmul.f32 %v258_v18, %v255_v19 }
 0x5a5   :  { %267 = vadd.xlane.f32.xlu0 %v266_v20 }
 0x62a   :  { %v250_v21 = vpop.xlane.xlu1 %249 }
 0x62b   :  { %v251_v22 = vsel %vm247_vm4, %v250_v21, %v237_v14  ;;  %v136_v14 = vsel %vm135_vm13, -1.0, %v579_v53  ;;  %vm421_vm4 = vcmp.eq.s32.totalorder %v593_v2, 21  ;;  %vm494_vm13 = vweird.f32 %v599_v5 }
 0x62c   :  { %v262_v24 = vmul.f32 %v258_v18, %v251_v22 }
 0x62e   :  { %v268_v25 = vpop.xlane.xlu0 %267  ;;  %263 = vadd.xlane.f32.xlu1 %v262_v24 }
 0x62f   :  { %v269_v27 = vsel %vm261_vm5, %v268_v25, %v255_v19 }
 0x630   :  { %v280_v28 = vmul.f32 %v272_v26, %v269_v27 }
 0x632   :  { %281 = vadd.xlane.f32.xlu0 %v280_v28 }
 0x6b7   :  { %v264_v29 = vpop.xlane.xlu1 %263 }
 0x6b8   :  { %v265_v30 = vsel %vm261_vm5, %v264_v29, %v251_v22 }
 0x6b9   :  { %v276_v32 = vmul.f32 %v272_v26, %v265_v30 }
 0x6bb   :  { %v282_v33 = vpop.xlane.xlu0 %281  ;;  %277 = vadd.xlane.f32.xlu1 %v276_v32 }
 0x6bc   :  { %v283_v35 = vsel %vm275_vm6, %v282_v33, %v269_v27 }
 0x6bd   :  { %v294_v36 = vmul.f32 %v286_v34, %v283_v35 }
 0x6bf   :  { %295 = vadd.xlane.f32.xlu0 %v294_v36 }
 0x744   :  { %v278_v37 = vpop.xlane.xlu1 %277 }
 0x745   :  { %v279_v38 = vsel %vm275_vm6, %v278_v37, %v265_v30  ;;  %vm439_vm6 = vcmp.eq.s32.totalorder %v593_v2, 22 }
 0x746   :  { %v290_v40 = vmul.f32 %v286_v34, %v279_v38 }
 0x748   :  { %v296_v41 = vpop.xlane.xlu0 %295  ;;  %291 = vadd.xlane.f32.xlu1 %v290_v40 }
 0x749   :  { %v297_v44 = vsel %vm289_vm7, %v296_v41, %v283_v35 }
 0x74a   :  { %v308_v46 = vmul.f32 %v300_v42, %v297_v44 }
 0x74c   :  { %309 = vadd.xlane.f32.xlu0 %v308_v46 }
 0x7d1   :  { %v292_v48 = vpop.xlane.xlu1 %291 }
 0x7d2   :  { %v293_v49 = vsel %vm289_vm7, %v292_v48, %v279_v38 }
 0x7d3   :  { %v304_v50 = vmul.f32 %v300_v42, %v293_v49 }
 0x7d5   :  { %v310_v52 = vpop.xlane.xlu0 %309  ;;  %305 = vadd.xlane.f32.xlu1 %v304_v50 }
 0x7d6   :  { %v311_v56 = vsel %vm303_vm9, %v310_v52, %v297_v44 }
 0x7d7   :  { %v322_v58 = vmul.f32 %v314_v57, %v311_v56 }
 0x7d9   :  { %88 = vadd.xlane.f32.xlu1 %v87_v54 }
 0x7dd   :  { %323 = vadd.xlane.f32.xlu1 %v322_v58 }
 0x85e   :  { %v306_v59 = vpop.xlane.xlu1 %305 }
 0x85f   :  { %v307_v60 = vsel %vm303_vm9, %v306_v59, %v293_v49  ;;  %vm457_vm9 = vcmp.eq.s32.totalorder %v593_v2, 23 }
 0x860   :  { %v318_v61 = vmul.f32 %v314_v57, %v307_v60 }
 0x862   :  { %319 = vadd.xlane.f32.xlu0 %v318_v61  ;;  %v648_v62 = vpop.xlane.xlu1 %88 }
 0x863   :  { %574 = vrcp.f32 %v648_v62 }
 0x866   :  { %v324_v4 = vpop.xlane.xlu1 %323 }
 0x867   :  { %v325_v9 = vsel %vm317_vm12, %v324_v4, %v311_v56 }
 0x870   :  { %v654_v0 = vpop.eup %574 }
 0x871   :  { %v94_v1 = vmul.f32 %v654_v0, %v92_v63 }
 0x873   :  { %95 = vst [vmem:[#allocation2 + $0x10] sm:$0xff] %v94_v1 }
 0x87a   :  { %v327_v6 = vld [vmem:[#allocation2 + $0x10] ss:$0 sm:$0xff]  ;;  %v345_v16 = vld [vmem:[#allocation2 + $0x11] ss:$0 sm:$0xff]  ;;  %v363_v27 = vld [vmem:[#allocation2 + $0x12] ss:$0 sm:$0xff] }
 0x87b   :  { %v328_v8 = vxor.u32 2147483648, %v327_v6  ;;  %v346_v18 = vxor.u32 2147483648, %v345_v16  ;;  %v364_v29 = vxor.u32 2147483648, %v363_v27  ;;  %v381_v38 = vld [vmem:[#allocation2 + $0x13] ss:$0 sm:$0xff] }
 0x87c   :  { %v382_v40 = vxor.u32 2147483648, %v381_v38  ;;  %v399_v51 = vld [vmem:[#allocation2 + $0x14] ss:$0 sm:$0xff]  ;;  %v417_v1 = vld [vmem:[#allocation2 + $0x15] ss:$0 sm:$0xff] }
 0x87d   :  { %v336_v10 = vmul.f32 %v328_v8, %v325_v9  ;;  %v340_v15 = vmul.f32 %v328_v8, %v136_v14  ;;  %v400_v54 = vxor.u32 2147483648, %v399_v51  ;;  %v418_v6 = vxor.u32 2147483648, %v417_v1  ;;  %v435_v16 = vld [vmem:[#allocation2 + $0x16] ss:$0 sm:$0xff] }
 0x87f   :  { %337 = vadd.xlane.f32.xlu1 %v336_v10 }
 0x8eb   :  { %v320_v11 = vpop.xlane.xlu0 %319 }
 0x8ec   :  { %v321_v12 = vsel %vm317_vm12, %v320_v11, %v307_v60 }
 0x8ed   :  { %v332_v13 = vmul.f32 %v328_v8, %v321_v12 }
 0x8ef   :  { %333 = vadd.xlane.f32.xlu0 %v332_v13 }
 0x8f3   :  { %341 = vadd.xlane.f32.xlu0 %v340_v15 }
 0x908   :  { %v338_v17 = vpop.xlane.xlu1 %337 }
 0x909   :  { %v339_v19 = vsel %vm331_vm14, %v338_v17, %v325_v9  ;;  %v100_v17 = vadd.s32 24, %v595_v3 }
 0x90a   :  { %v354_v20 = vmul.f32 %v346_v18, %v339_v19 }
 0x90b   :  { %vm101_vm5 = vcmp.eq.s32.totalorder %v100_v17, %v593_v2  ;;  %vm106_vm7 = vcmp.ge.s32.totalorder %v100_v17, %v593_v2 }
 0x90c   :  { %355 = vadd.xlane.f32.xlu0 %v354_v20  ;;  %vm107_vm8 = vmand %vm106_vm7, %vm49_vm1  ;;  %vm142_vm1 = vcmp.eq.s32.totalorder %v593_v2, %v100_v17 }
 0x978   :  { %v334_v21 = vpop.xlane.xlu0 %333 }
 0x979   :  { %v335_v22 = vsel %vm331_vm14, %v334_v21, %v321_v12 }
 0x97a   :  { %v350_v23 = vmul.f32 %v346_v18, %v335_v22 }
 0x97c   :  { %v342_v24 = vpop.xlane.xlu0 %341  ;;  %351 = vadd.xlane.f32.xlu1 %v350_v23 }
 0x97d   :  { %v343_v25 = vsel %vm331_vm14, %v342_v24, %v136_v14  ;;  %vm505_vm14 = vweird.f32 %v648_v62 }
 0x97e   :  { %v358_v26 = vmul.f32 %v346_v18, %v343_v25 }
 0x980   :  { %359 = vadd.xlane.f32.xlu1 %v358_v26 }
 0x995   :  { %v356_v28 = vpop.xlane.xlu0 %355 }
 0x996   :  { %v357_v30 = vsel %vm349_vm15, %v356_v28, %v339_v19  ;;  %v436_v19 = vxor.u32 2147483648, %v435_v16 }
 0x997   :  { %v372_v31 = vmul.f32 %v364_v29, %v357_v30 }
 0x999   :  { %373 = vadd.xlane.f32.xlu1 %v372_v31 }
 0xa05   :  { %v352_v32 = vpop.xlane.xlu1 %351 }
 0xa06   :  { %v353_v33 = vsel %vm349_vm15, %v352_v32, %v335_v22  ;;  %v42_v22 = vld [vmem:[%s717_s0 + $0x18] sm:$0xff] }
 0xa07   :  { %v368_v34 = vmul.f32 %v364_v29, %v353_v33  ;;  %v103_v23 = vsel %vm101_vm5, %v42_v22, 0.0 }
 0xa09   :  { %369 = vadd.xlane.f32.xlu0 %v368_v34  ;;  %v360_v35 = vpop.xlane.xlu1 %359 }
 0xa0a   :  { %v361_v36 = vsel %vm349_vm15, %v360_v35, %v343_v25  ;;  %v108_v35 = vsel %vm107_vm8, %v42_v22, 0.0 }
 0xa0b   :  { %v376_v37 = vmul.f32 %v364_v29, %v361_v36  ;;  %v453_v29 = vld [vmem:[#allocation2 + $0x17] ss:$0 sm:$0xff] }
 0xa0c   :  { %v454_v31 = vxor.u32 2147483648, %v453_v29 }
 0xa0d   :  { %377 = vadd.xlane.f32.xlu0 %v376_v37 }
 0xa22   :  { %v374_v39 = vpop.xlane.xlu1 %373 }
 0xa23   :  { %v375_v41 = vsel %vm367_vm0, %v374_v39, %v357_v30 }
 0xa24   :  { %v390_v42 = vmul.f32 %v382_v40, %v375_v41 }
 0xa26   :  { %391 = vadd.xlane.f32.xlu0 %v390_v42 }
 0xa92   :  { %v370_v44 = vpop.xlane.xlu0 %369 }
 0xa93   :  { %v371_v46 = vsel %vm367_vm0, %v370_v44, %v353_v33 }
 0xa94   :  { %v386_v47 = vmul.f32 %v382_v40, %v371_v46 }
 0xa96   :  { %387 = vadd.xlane.f32.xlu1 %v386_v47  ;;  %v378_v48 = vpop.xlane.xlu0 %377 }
 0xa97   :  { %v379_v49 = vsel %vm367_vm0, %v378_v48, %v361_v36 }
 0xa98   :  { %v394_v50 = vmul.f32 %v382_v40, %v379_v49 }
 0xa9a   :  { %395 = vadd.xlane.f32.xlu1 %v394_v50  ;;  %v143_v50 = vsel %vm142_vm1, -1.0, %v579_v53 }
 0xaaf   :  { %v392_v52 = vpop.xlane.xlu0 %391 }
 0xab0   :  { %v393_v55 = vsel %vm385_vm2, %v392_v52, %v375_v41 }
 0xab1   :  { %v408_v56 = vmul.f32 %v400_v54, %v393_v55 }
 0xab3   :  { %409 = vadd.xlane.f32.xlu1 %v408_v56 }
 0xb1f   :  { %v388_v57 = vpop.xlane.xlu1 %387 }
 0xb20   :  { %v389_v58 = vsel %vm385_vm2, %v388_v57, %v371_v46 }
 0xb21   :  { %v404_v59 = vmul.f32 %v400_v54, %v389_v58 }
 0xb23   :  { %405 = vadd.xlane.f32.xlu0 %v404_v59  ;;  %v396_v60 = vpop.xlane.xlu1 %395 }
 0xb24   :  { %v397_v61 = vsel %vm385_vm2, %v396_v60, %v379_v49 }
 0xb25   :  { %v412_v63 = vmul.f32 %v400_v54, %v397_v61 }
 0xb27   :  { %413 = vadd.xlane.f32.xlu0 %v412_v63 }
 0xb3c   :  { %v410_v4 = vpop.xlane.xlu1 %409 }
 0xb3d   :  { %v411_v8 = vsel %vm403_vm3, %v410_v4, %v393_v55 }
 0xb3e   :  { %v426_v9 = vmul.f32 %v418_v6, %v411_v8 }
 0xb40   :  { %427 = vadd.xlane.f32.xlu0 %v426_v9 }
 0xbac   :  { %v406_v10 = vpop.xlane.xlu0 %405 }
 0xbad   :  { %v407_v11 = vsel %vm403_vm3, %v406_v10, %v389_v58 }
 0xbae   :  { %v422_v12 = vmul.f32 %v418_v6, %v407_v11 }
 0xbb0   :  { %423 = vadd.xlane.f32.xlu1 %v422_v12  ;;  %v414_v13 = vpop.xlane.xlu0 %413 }
 0xbb1   :  { %v415_v14 = vsel %vm403_vm3, %v414_v13, %v397_v61 }
 0xbb2   :  { %v430_v15 = vmul.f32 %v418_v6, %v415_v14 }
 0xbb4   :  { %431 = vadd.xlane.f32.xlu1 %v430_v15 }
 0xbc9   :  { %v428_v18 = vpop.xlane.xlu0 %427 }
 0xbca   :  { %v429_v20 = vsel %vm421_vm4, %v428_v18, %v411_v8 }
 0xbcb   :  { %v444_v21 = vmul.f32 %v436_v19, %v429_v20 }
 0xbcd   :  { %445 = vadd.xlane.f32.xlu1 %v444_v21 }
 0xbd1   :  { %104 = vadd.xlane.f32.xlu1 %v103_v23 }
 0xc39   :  { %v424_v24 = vpop.xlane.xlu1 %423 }
 0xc3a   :  { %v425_v25 = vsel %vm421_vm4, %v424_v24, %v407_v11 }
 0xc3b   :  { %v440_v3 = vmul.f32 %v436_v19, %v425_v25 }
 0xc3d   :  { %441 = vadd.xlane.f32.xlu0 %v440_v3  ;;  %v432_v26 = vpop.xlane.xlu1 %431 }
 0xc3e   :  { %v433_v27 = vsel %vm421_vm4, %v432_v26, %v415_v14 }
 0xc3f   :  { %v448_v28 = vmul.f32 %v436_v19, %v433_v27 }
 0xc41   :  { %449 = vadd.xlane.f32.xlu0 %v448_v28 }
 0xc56   :  { %v446_v30 = vpop.xlane.xlu1 %445 }
 0xc57   :  { %v447_v32 = vsel %vm439_vm6, %v446_v30, %v429_v20 }
 0xc58   :  { %v462_v33 = vmul.f32 %v454_v31, %v447_v32 }
 0xc5a   :  { %463 = vadd.xlane.f32.xlu1 %v462_v33  ;;  %v105_v34 = vpop.xlane.xlu1 %104 }
 0xc5b   :  { %576 = vrcp.f32 %v105_v34  ;;  %vm511_vm12 = vweird.f32 %v105_v34 }
 0xc68   :  { %v577_v36 = vpop.eup %576 }
 0xc69   :  { %v110_v37 = vmul.f32 %v577_v36, %v108_v35 }
 0xc6b   :  { %111 = vst [vmem:[#allocation2 + $0x18] sm:$0xff] %v110_v37 }
 0xc72   :  { %v471_v46 = vld [vmem:[#allocation2 + $0x18] ss:$0 sm:$0xff] }
 0xc73   :  { %v472_v47 = vxor.u32 2147483648, %v471_v46 }
 0xc75   :  { %v488_v52 = vmul.f32 %v472_v47, %v143_v50 }
 0xcc6   :  { %v442_v38 = vpop.xlane.xlu0 %441 }
 0xcc7   :  { %v443_v39 = vsel %vm439_vm6, %v442_v38, %v425_v25 }
 0xcc8   :  { %v458_v40 = vmul.f32 %v454_v31, %v443_v39 }
 0xcca   :  { %459 = vadd.xlane.f32.xlu0 %v458_v40  ;;  %v450_v41 = vpop.xlane.xlu0 %449 }
 0xccb   :  { %v451_v42 = vsel %vm439_vm6, %v450_v41, %v433_v27 }
 0xccc   :  { %v466_v44 = vmul.f32 %v454_v31, %v451_v42 }
 0xcce   :  { %467 = vadd.xlane.f32.xlu0 %v466_v44 }
 0xce3   :  { %v464_v48 = vpop.xlane.xlu1 %463 }
 0xce4   :  { %v465_v49 = vsel %vm457_vm9, %v464_v48, %v447_v32 }
 0xce5   :  { %v480_v51 = vmul.f32 %v472_v47, %v465_v49 }
 0xce7   :  { %481 = vadd.xlane.f32.xlu0 %v480_v51 }
 0xceb   :  { %489 = vadd.xlane.f32.xlu0 %v488_v52 }
 0xd53   :  { %v460_v54 = vpop.xlane.xlu0 %459 }
 0xd54   :  { %v461_v55 = vsel %vm457_vm9, %v460_v54, %v443_v39 }
 0xd55   :  { %v476_v56 = vmul.f32 %v472_v47, %v461_v55 }
 0xd57   :  { %v468_v57 = vpop.xlane.xlu0 %467  ;;  %477 = vadd.xlane.f32.xlu1 %v476_v56 }
 0xd58   :  { %v469_v58 = vsel %vm457_vm9, %v468_v57, %v451_v42 }
 0xd59   :  { %v484_v59 = vmul.f32 %v472_v47, %v469_v58 }
 0xd5b   :  { %485 = vadd.xlane.f32.xlu1 %v484_v59 }
 0xd70   :  { %v482_v60 = vpop.xlane.xlu0 %481 }
 0xd71   :  { %v483_v61 = vsel %vm475_vm10, %v482_v60, %v465_v49 }
 0xd72   :  { %v498_v53 = vmul.f32 %v629_v45, %v483_v61 }
 0xd74   :  { %v500_v63 = vsel %vm499_vm11, %v483_v61, %v498_v53  ;;  %v490_v1 = vpop.xlane.xlu0 %489 }
 0xd75   :  { %552 = vst [vmem:[%s718_s1 + $0x8] sm:$0xff] %v500_v63  ;;  %v491_v4 = vsel %vm475_vm10, %v490_v1, %v143_v50 }
 0xd76   :  { %v510_v6 = vmul.f32 %v577_v36, %v491_v4 }
 0xd78   :  { %v512_v8 = vsel %vm511_vm12, %v491_v4, %v510_v6 }
 0xd79   :  { %556 = vst [vmem:[%s718_s1 + $0x18] sm:$0xff] %v512_v8 }
 0xde0   :  { %v478_v9 = vpop.xlane.xlu1 %477 }
 0xde1   :  { %v479_v43 = vsel %vm475_vm10, %v478_v9, %v461_v55 }
 0xde2   :  { %v493_v45 = vmul.f32 %v607_v7, %v479_v43 }
 0xde4   :  { %v495_v10 = vsel %vm494_vm13, %v479_v43, %v493_v45  ;;  %v486_v11 = vpop.xlane.xlu1 %485 }
 0xde5   :  { %550 = vst [vmem:[%s718_s1] sm:$0xff] %v495_v10  ;;  %v487_v12 = vsel %vm475_vm10, %v486_v11, %v469_v58 }
 0xde6   :  { %v504_v13 = vmul.f32 %v654_v0, %v487_v12 }
 0xde8   :  { %v506_v14 = vsel %vm505_vm14, %v487_v12, %v504_v13 }
 0xde9   :  { %554 = vst [vmem:[%s718_s1 + $0x10] sm:$0xff] %v506_v14 }

// kernel: custom-call.27
= control target key start
LH: loop header
LB: loop body
LE: loop exit
PB: predicated region body
PF: predicated region fallthrough
CT: control target
= control target key end

     0   :  { %v47_v0 = vlaneseq  ;;  %v661_v11 = vmov -1.0   ;;  %v662_v15 = vmov 0.0   ;;  %s789_s0 = inlined_call_operand.vmem [shape: f32[1,25,25], index: 0, kind: input, shape index: {}]   ;;  %s790_s1 = inlined_call_operand.vmem [shape: f32[1,25,25], index: 1, kind: output, shape index: {}]  }
   0x1   :  { %v40_v3 = vld [vmem:[%s789_s0 + $0x10] sm:$0xff] }
   0x2   :  { %v673_v1 = vand.u32 127, %v47_v0  ;;  %v675_v2 = vshrl.u32 %v47_v0, 7 }
   0x4   :  { %vm49_vm0 = vcmp.lt.s32.totalorder %v673_v1, 25  ;;  %v84_v4 = vadd.s32 16, %v675_v2  ;;  %v693_v10 = vadd.s32 24, %v675_v2  ;;  %vm141_vm4 = vcmp.eq.s32.totalorder %v673_v1, 24 }
   0x5   :  { %v142_v12 = vsel %vm141_vm4, 1.0, %v661_v11  ;;  %vm149_vm7 = vcmp.eq.s32.totalorder %v673_v1, 23  ;;  %vm163_vm8 = vcmp.eq.s32.totalorder %v673_v1, 22  ;;  %vm177_vm9 = vcmp.eq.s32.totalorder %v673_v1, 21 }
   0x6   :  { %vm85_vm1 = vcmp.eq.s32.totalorder %v84_v4, %v673_v1  ;;  %vm90_vm2 = vcmp.le.s32.totalorder %v84_v4, %v673_v1  ;;  %vm138_vm5 = vcmp.eq.s32.totalorder %v673_v1, %v693_v10  ;;  %vm131_vm6 = vcmp.eq.s32.totalorder %v673_v1, %v84_v4 }
   0x7   :  { %v87_v5 = vsel %vm85_vm1, %v40_v3, 0.0  ;;  %vm91_vm3 = vmand %vm90_vm2, %vm49_vm0  ;;  %v143_v13 = vsel %vm138_vm5, %v142_v12, 0.0  ;;  %v132_v16 = vsel %vm131_vm6, -1.0, %v662_v15  ;;  %vm191_vm10 = vcmp.eq.s32.totalorder %v673_v1, 20 }
   0x8   :  { %v92_v6 = vsel %vm91_vm3, %v40_v3, 0.0  ;;  %88 = vadd.xlane.f32.xlu0 %v87_v5  ;;  %vm205_vm11 = vcmp.eq.s32.totalorder %v673_v1, 19  ;;  %vm219_vm12 = vcmp.eq.s32.totalorder %v673_v1, 18  ;;  %v68_v61 = vadd.s32 8, %v675_v2 }
   0x9   :  { %vm233_vm14 = vcmp.eq.s32.totalorder %v673_v1, 17  ;;  %vm247_vm3 = vcmp.eq.s32.totalorder %v673_v1, 16  ;;  %vm261_vm4 = vcmp.eq.s32.totalorder %v673_v1, 15  ;;  %vm279_vm5 = vcmp.eq.s32.totalorder %v673_v1, 14 }
   0xa   :  { %vm69_vm13 = vcmp.eq.s32.totalorder %v68_v61, %v673_v1  ;;  %vm74_vm15 = vcmp.le.s32.totalorder %v68_v61, %v673_v1  ;;  %vm124_vm2 = vcmp.eq.s32.totalorder %v673_v1, %v68_v61  ;;  %vm297_vm6 = vcmp.eq.s32.totalorder %v673_v1, 13 }
   0xb   :  { %vm75_vm1 = vmand %vm74_vm15, %vm49_vm0  ;;  %vm387_vm15 = vcmp.eq.s32.totalorder %v673_v1, 8 }
  0x91   :  { %v686_v7 = vpop.xlane.xlu0 %88 }
  0x92   :  { %653 = vrcp.f32 %v686_v7 }
  0x9f   :  { %v689_v8 = vpop.eup %653 }
  0xa0   :  { %v94_v9 = vmul.f32 %v689_v8, %v92_v6 }
  0xa2   :  { %95 = vst [vmem:[#allocation2 + $0x10] sm:$0xff] %v94_v9  ;;  %v38_v9 = vld [vmem:[%s789_s0 + $0x8] sm:$0xff] }
  0xa3   :  { %v71_v11 = vsel %vm69_vm13, %v38_v9, 0.0 }
  0xa9   :  { %v145_v14 = vld [vmem:[#allocation2 + $0x17] ss:$0 sm:$0xff]  ;;  %v159_v20 = vld [vmem:[#allocation2 + $0x16] ss:$0 sm:$0xff]  ;;  %v173_v28 = vld [vmem:[#allocation2 + $0x15] ss:$0 sm:$0xff] }
  0xaa   :  { %v146_v17 = vxor.u32 2147483648, %v145_v14  ;;  %v160_v23 = vxor.u32 2147483648, %v159_v20  ;;  %v174_v31 = vxor.u32 2147483648, %v173_v28  ;;  %v187_v36 = vld [vmem:[#allocation2 + $0x14] ss:$0 sm:$0xff] }
  0xab   :  { %v188_v39 = vxor.u32 2147483648, %v187_v36  ;;  %v201_v44 = vld [vmem:[#allocation2 + $0x13] ss:$0 sm:$0xff]  ;;  %v215_v52 = vld [vmem:[#allocation2 + $0x12] ss:$0 sm:$0xff] }
  0xac   :  { %v154_v18 = vmul.f32 %v146_v17, %v143_v13  ;;  %v150_v19 = vmul.f32 %v146_v17, %v132_v16  ;;  %v202_v47 = vxor.u32 2147483648, %v201_v44  ;;  %v216_v55 = vxor.u32 2147483648, %v215_v52  ;;  %v229_v60 = vld [vmem:[#allocation2 + $0x11] ss:$0 sm:$0xff]  ;;  %v243_v12 = vld [vmem:[#allocation2 + $0x10] ss:$0 sm:$0xff] }
  0xad   :  { %v230_v0 = vxor.u32 2147483648, %v229_v60 }
  0xae   :  { %155 = vadd.xlane.f32.xlu1 %v154_v18  ;;  %151 = vadd.xlane.f32.xlu0 %v150_v19 }
 0x137   :  { %v156_v21 = vpop.xlane.xlu1 %155  ;;  %v152_v22 = vpop.xlane.xlu0 %151 }
 0x138   :  { %v157_v24 = vsel %vm149_vm7, %v156_v21, %v143_v13  ;;  %v153_v25 = vsel %vm149_vm7, %v152_v22, %v132_v16  ;;  %v244_v16 = vxor.u32 2147483648, %v243_v12  ;;  %v76_v22 = vsel %vm75_vm1, %v38_v9, 0.0 }
 0x139   :  { %v168_v26 = vmul.f32 %v160_v23, %v157_v24  ;;  %v164_v27 = vmul.f32 %v160_v23, %v153_v25  ;;  %vm315_vm7 = vcmp.eq.s32.totalorder %v673_v1, 12  ;;  %vm427_vm1 = vcmp.eq.s32.totalorder %v673_v1, 6 }
 0x13b   :  { %169 = vadd.xlane.f32.xlu0 %v168_v26  ;;  %165 = vadd.xlane.f32.xlu1 %v164_v27 }
 0x1c4   :  { %v166_v29 = vpop.xlane.xlu1 %165  ;;  %v170_v30 = vpop.xlane.xlu0 %169 }
 0x1c5   :  { %v167_v32 = vsel %vm163_vm8, %v166_v29, %v153_v25  ;;  %v171_v33 = vsel %vm163_vm8, %v170_v30, %v157_v24  ;;  %v125_v25 = vsel %vm124_vm2, -1.0, %v662_v15  ;;  %vm333_vm8 = vcmp.eq.s32.totalorder %v673_v1, 11 }
 0x1c6   :  { %v178_v34 = vmul.f32 %v174_v31, %v167_v32  ;;  %v182_v35 = vmul.f32 %v174_v31, %v171_v33  ;;  %vm449_vm2 = vcmp.eq.s32.totalorder %v673_v1, 5 }
 0x1c8   :  { %179 = vadd.xlane.f32.xlu1 %v178_v34  ;;  %183 = vadd.xlane.f32.xlu0 %v182_v35 }
 0x251   :  { %v180_v37 = vpop.xlane.xlu1 %179  ;;  %v184_v38 = vpop.xlane.xlu0 %183 }
 0x252   :  { %v181_v40 = vsel %vm177_vm9, %v180_v37, %v167_v32  ;;  %v185_v41 = vsel %vm177_vm9, %v184_v38, %v171_v33  ;;  %vm351_vm9 = vcmp.eq.s32.totalorder %v673_v1, 10 }
 0x253   :  { %v192_v42 = vmul.f32 %v188_v39, %v181_v40  ;;  %v196_v43 = vmul.f32 %v188_v39, %v185_v41 }
 0x255   :  { %193 = vadd.xlane.f32.xlu1 %v192_v42  ;;  %197 = vadd.xlane.f32.xlu0 %v196_v43 }
 0x2de   :  { %v194_v45 = vpop.xlane.xlu1 %193  ;;  %v198_v46 = vpop.xlane.xlu0 %197 }
 0x2df   :  { %v195_v48 = vsel %vm191_vm10, %v194_v45, %v181_v40  ;;  %v199_v49 = vsel %vm191_vm10, %v198_v46, %v185_v41  ;;  %vm53_vm10 = vcmp.eq.s32.totalorder %v675_v2, %v673_v1 }
 0x2e0   :  { %v206_v50 = vmul.f32 %v202_v47, %v195_v48  ;;  %v210_v51 = vmul.f32 %v202_v47, %v199_v49 }
 0x2e2   :  { %207 = vadd.xlane.f32.xlu1 %v206_v50  ;;  %211 = vadd.xlane.f32.xlu0 %v210_v51 }
 0x36b   :  { %v208_v53 = vpop.xlane.xlu1 %207  ;;  %v212_v54 = vpop.xlane.xlu0 %211 }
 0x36c   :  { %v209_v56 = vsel %vm205_vm11, %v208_v53, %v195_v48  ;;  %v213_v57 = vsel %vm205_vm11, %v212_v54, %v199_v49  ;;  %vm369_vm11 = vcmp.eq.s32.totalorder %v673_v1, 9 }
 0x36d   :  { %v220_v58 = vmul.f32 %v216_v55, %v209_v56  ;;  %v224_v59 = vmul.f32 %v216_v55, %v213_v57 }
 0x36f   :  { %221 = vadd.xlane.f32.xlu1 %v220_v58  ;;  %225 = vadd.xlane.f32.xlu0 %v224_v59 }
 0x3f8   :  { %v222_v62 = vpop.xlane.xlu1 %221  ;;  %v226_v63 = vpop.xlane.xlu0 %225 }
 0x3f9   :  { %v223_v3 = vsel %vm219_vm12, %v222_v62, %v209_v56  ;;  %v227_v4 = vsel %vm219_vm12, %v226_v63, %v213_v57  ;;  %vm58_vm12 = vcmp.le.s32.totalorder %v675_v2, %v673_v1 }
 0x3fa   :  { %v234_v5 = vmul.f32 %v230_v0, %v223_v3  ;;  %v238_v6 = vmul.f32 %v230_v0, %v227_v4  ;;  %vm59_vm13 = vmand %vm58_vm12, %vm49_vm0  ;;  %vm405_vm0 = vcmp.eq.s32.totalorder %v673_v1, 7 }
 0x3fc   :  { %235 = vadd.xlane.f32.xlu1 %v234_v5  ;;  %239 = vadd.xlane.f32.xlu0 %v238_v6 }
 0x400   :  { %72 = vadd.xlane.f32.xlu1 %v71_v11 }
 0x485   :  { %v236_v13 = vpop.xlane.xlu1 %235  ;;  %v240_v14 = vpop.xlane.xlu0 %239 }
 0x486   :  { %v237_v17 = vsel %vm233_vm14, %v236_v13, %v223_v3  ;;  %v241_v18 = vsel %vm233_vm14, %v240_v14, %v227_v4  ;;  %vm117_vm14 = vcmp.eq.s32.totalorder %v673_v1, %v675_v2 }
 0x487   :  { %v248_v19 = vmul.f32 %v244_v16, %v237_v17  ;;  %v252_v20 = vmul.f32 %v244_v16, %v241_v18 }
 0x489   :  { %249 = vadd.xlane.f32.xlu0 %v248_v19  ;;  %253 = vadd.xlane.f32.xlu1 %v252_v20  ;;  %v712_v21 = vpop.xlane.xlu1 %72 }
 0x48a   :  { %655 = vrcp.f32 %v712_v21 }
 0x497   :  { %v718_v23 = vpop.eup %655 }
 0x498   :  { %v78_v24 = vmul.f32 %v718_v23, %v76_v22 }
 0x49a   :  { %79 = vst [vmem:[#allocation2 + $0x8] sm:$0xff] %v78_v24 }
 0x4a1   :  { %v257_v26 = vld [vmem:[#allocation2 + $0xf] ss:$0 sm:$0xff]  ;;  %v275_v35 = vld [vmem:[#allocation2 + $0xe] ss:$0 sm:$0xff]  ;;  %v293_v46 = vld [vmem:[#allocation2 + $0xd] ss:$0 sm:$0xff] }
 0x4a2   :  { %v258_v27 = vxor.u32 2147483648, %v257_v26  ;;  %v276_v37 = vxor.u32 2147483648, %v275_v35  ;;  %v294_v48 = vxor.u32 2147483648, %v293_v46  ;;  %v311_v57 = vld [vmem:[#allocation2 + $0xc] ss:$0 sm:$0xff] }
 0x4a3   :  { %v312_v59 = vxor.u32 2147483648, %v311_v57  ;;  %v329_v6 = vld [vmem:[#allocation2 + $0xb] ss:$0 sm:$0xff]  ;;  %v347_v22 = vld [vmem:[#allocation2 + $0xa] ss:$0 sm:$0xff] }
 0x4a4   :  { %v262_v28 = vmul.f32 %v258_v27, %v125_v25  ;;  %v330_v11 = vxor.u32 2147483648, %v329_v6 }
 0x4a6   :  { %263 = vadd.xlane.f32.xlu0 %v262_v28 }
 0x512   :  { %v250_v29 = vpop.xlane.xlu0 %249  ;;  %v254_v30 = vpop.xlane.xlu1 %253 }
 0x513   :  { %v251_v31 = vsel %vm247_vm3, %v250_v29, %v237_v17  ;;  %v255_v32 = vsel %vm247_vm3, %v254_v30, %v241_v18  ;;  %vm471_vm3 = vcmp.eq.s32.totalorder %v673_v1, 4 }
 0x514   :  { %v266_v33 = vmul.f32 %v258_v27, %v251_v31  ;;  %v270_v34 = vmul.f32 %v258_v27, %v255_v32 }
 0x516   :  { %267 = vadd.xlane.f32.xlu1 %v266_v33  ;;  %271 = vadd.xlane.f32.xlu0 %v270_v34  ;;  %v365_v34 = vld [vmem:[#allocation2 + $0x9] ss:$0 sm:$0xff] }
 0x52f   :  { %v264_v36 = vpop.xlane.xlu0 %263 }
 0x530   :  { %v265_v38 = vsel %vm261_vm4, %v264_v36, %v125_v25  ;;  %v348_v25 = vxor.u32 2147483648, %v347_v22  ;;  %v366_v36 = vxor.u32 2147483648, %v365_v34 }
 0x531   :  { %v280_v39 = vmul.f32 %v276_v37, %v265_v38 }
 0x533   :  { %281 = vadd.xlane.f32.xlu1 %v280_v39 }
 0x59f   :  { %v272_v40 = vpop.xlane.xlu0 %271  ;;  %v268_v41 = vpop.xlane.xlu1 %267 }
 0x5a0   :  { %v273_v42 = vsel %vm261_vm4, %v272_v40, %v255_v32  ;;  %v269_v43 = vsel %vm261_vm4, %v268_v41, %v251_v31  ;;  %vm493_vm4 = vcmp.eq.s32.totalorder %v673_v1, 3 }
 0x5a1   :  { %v288_v44 = vmul.f32 %v276_v37, %v273_v42  ;;  %v284_v45 = vmul.f32 %v276_v37, %v269_v43 }
 0x5a3   :  { %289 = vadd.xlane.f32.xlu1 %v288_v44  ;;  %285 = vadd.xlane.f32.xlu0 %v284_v45  ;;  %v36_v45 = vld [vmem:[%s789_s0] sm:$0xff] }
 0x5a4   :  { %v55_v46 = vsel %vm53_vm10, %v36_v45, 0.0 }
 0x5bc   :  { %v282_v47 = vpop.xlane.xlu1 %281 }
 0x5bd   :  { %v283_v49 = vsel %vm279_vm5, %v282_v47, %v265_v38  ;;  %v383_v47 = vld [vmem:[#allocation2 + $0x8] ss:$0 sm:$0xff] }
 0x5be   :  { %v298_v50 = vmul.f32 %v294_v48, %v283_v49 }
 0x5c0   :  { %299 = vadd.xlane.f32.xlu0 %v298_v50 }
 0x62c   :  { %v286_v51 = vpop.xlane.xlu0 %285  ;;  %v290_v52 = vpop.xlane.xlu1 %289 }
 0x62d   :  { %v287_v53 = vsel %vm279_vm5, %v286_v51, %v269_v43  ;;  %v291_v54 = vsel %vm279_vm5, %v290_v52, %v273_v42  ;;  %vm515_vm5 = vcmp.eq.s32.totalorder %v673_v1, 2 }
 0x62e   :  { %v302_v55 = vmul.f32 %v294_v48, %v287_v53  ;;  %v306_v56 = vmul.f32 %v294_v48, %v291_v54 }
 0x630   :  { %303 = vadd.xlane.f32.xlu1 %v302_v55  ;;  %307 = vadd.xlane.f32.xlu0 %v306_v56 }
 0x649   :  { %v300_v58 = vpop.xlane.xlu0 %299 }
 0x64a   :  { %v301_v60 = vsel %vm297_vm6, %v300_v58, %v283_v49  ;;  %v384_v49 = vxor.u32 2147483648, %v383_v47 }
 0x64b   :  { %v316_v61 = vmul.f32 %v312_v59, %v301_v60 }
 0x64d   :  { %317 = vadd.xlane.f32.xlu1 %v316_v61 }
 0x6b9   :  { %v308_v62 = vpop.xlane.xlu0 %307  ;;  %v304_v63 = vpop.xlane.xlu1 %303 }
 0x6ba   :  { %v309_v0 = vsel %vm297_vm6, %v308_v62, %v291_v54  ;;  %v305_v3 = vsel %vm297_vm6, %v304_v63, %v287_v53  ;;  %v118_v63 = vsel %vm117_vm14, -1.0, %v662_v15  ;;  %vm101_vm6 = vcmp.eq.s32.totalorder %v693_v10, %v673_v1 }
 0x6bb   :  { %v324_v4 = vmul.f32 %v312_v59, %v309_v0  ;;  %v320_v5 = vmul.f32 %v312_v59, %v305_v3  ;;  %v60_v59 = vsel %vm59_vm13, %v36_v45, 0.0 }
 0x6bd   :  { %325 = vadd.xlane.f32.xlu1 %v324_v4  ;;  %321 = vadd.xlane.f32.xlu0 %v320_v5 }
 0x6d6   :  { %v318_v9 = vpop.xlane.xlu1 %317 }
 0x6d7   :  { %v319_v12 = vsel %vm315_vm7, %v318_v9, %v301_v60 }
 0x6d8   :  { %v334_v13 = vmul.f32 %v330_v11, %v319_v12 }
 0x6da   :  { %335 = vadd.xlane.f32.xlu0 %v334_v13 }
 0x746   :  { %v322_v14 = vpop.xlane.xlu0 %321  ;;  %v326_v16 = vpop.xlane.xlu1 %325 }
 0x747   :  { %v323_v17 = vsel %vm315_vm7, %v322_v14, %v305_v3  ;;  %v327_v18 = vsel %vm315_vm7, %v326_v16, %v309_v0  ;;  %vm537_vm7 = vcmp.eq.s32.totalorder %v673_v1, 1 }
 0x748   :  { %v338_v19 = vmul.f32 %v330_v11, %v323_v17  ;;  %v342_v20 = vmul.f32 %v330_v11, %v327_v18 }
 0x74a   :  { %339 = vadd.xlane.f32.xlu1 %v338_v19  ;;  %343 = vadd.xlane.f32.xlu0 %v342_v20 }
 0x763   :  { %v336_v24 = vpop.xlane.xlu0 %335 }
 0x764   :  { %v337_v26 = vsel %vm333_vm8, %v336_v24, %v319_v12 }
 0x765   :  { %v352_v27 = vmul.f32 %v348_v25, %v337_v26 }
 0x767   :  { %353 = vadd.xlane.f32.xlu1 %v352_v27 }
 0x7d3   :  { %v344_v28 = vpop.xlane.xlu0 %343  ;;  %v340_v29 = vpop.xlane.xlu1 %339 }
 0x7d4   :  { %v345_v30 = vsel %vm333_vm8, %v344_v28, %v327_v18  ;;  %v341_v31 = vsel %vm333_vm8, %v340_v29, %v323_v17  ;;  %vm558_vm8 = vcmp.eq.s32.totalorder %v673_v1, 0 }
 0x7d5   :  { %v360_v32 = vmul.f32 %v348_v25, %v345_v30  ;;  %v356_v33 = vmul.f32 %v348_v25, %v341_v31 }
 0x7d7   :  { %361 = vadd.xlane.f32.xlu1 %v360_v32  ;;  %357 = vadd.xlane.f32.xlu0 %v356_v33 }
 0x7f0   :  { %v354_v35 = vpop.xlane.xlu1 %353 }
 0x7f1   :  { %v355_v37 = vsel %vm351_vm9, %v354_v35, %v337_v26 }
 0x7f2   :  { %v370_v38 = vmul.f32 %v366_v36, %v355_v37 }
 0x7f4   :  { %371 = vadd.xlane.f32.xlu0 %v370_v38 }
 0x860   :  { %v358_v39 = vpop.xlane.xlu0 %357  ;;  %v362_v40 = vpop.xlane.xlu1 %361 }
 0x861   :  { %v359_v41 = vsel %vm351_vm9, %v358_v39, %v341_v31  ;;  %v363_v42 = vsel %vm351_vm9, %v362_v40, %v345_v30  ;;  %vm582_vm9 = vweird.f32 %v712_v21 }
 0x862   :  { %v374_v43 = vmul.f32 %v366_v36, %v359_v41  ;;  %v378_v44 = vmul.f32 %v366_v36, %v363_v42 }
 0x864   :  { %375 = vadd.xlane.f32.xlu1 %v374_v43  ;;  %379 = vadd.xlane.f32.xlu0 %v378_v44 }
 0x868   :  { %56 = vadd.xlane.f32.xlu1 %v55_v46 }
 0x87d   :  { %v372_v48 = vpop.xlane.xlu0 %371 }
 0x87e   :  { %v373_v50 = vsel %vm369_vm11, %v372_v48, %v355_v37 }
 0x87f   :  { %v388_v51 = vmul.f32 %v384_v49, %v373_v50 }
 0x881   :  { %389 = vadd.xlane.f32.xlu0 %v388_v51 }
 0x8ed   :  { %v380_v52 = vpop.xlane.xlu0 %379  ;;  %v376_v53 = vpop.xlane.xlu1 %375 }
 0x8ee   :  { %v381_v54 = vsel %vm369_vm11, %v380_v52, %v363_v42  ;;  %v377_v55 = vsel %vm369_vm11, %v376_v53, %v359_v41  ;;  %vm588_vm11 = vweird.f32 %v686_v7 }
 0x8ef   :  { %v396_v56 = vmul.f32 %v384_v49, %v381_v54  ;;  %v392_v57 = vmul.f32 %v384_v49, %v377_v55 }
 0x8f1   :  { %397 = vadd.xlane.f32.xlu0 %v396_v56  ;;  %393 = vadd.xlane.f32.xlu1 %v392_v57  ;;  %v736_v58 = vpop.xlane.xlu1 %56 }
 0x8f2   :  { %657 = vrcp.f32 %v736_v58  ;;  %vm577_vm10 = vweird.f32 %v736_v58 }
 0x8ff   :  { %v743_v60 = vpop.eup %657 }
 0x900   :  { %v62_v61 = vmul.f32 %v743_v60, %v60_v59 }
 0x902   :  { %63 = vst [vmem:[#allocation2] sm:$0xff] %v62_v61 }
 0x909   :  { %v401_v62 = vld [vmem:[#allocation2 + $0x7] ss:$0 sm:$0xff]  ;;  %v423_v2 = vld [vmem:[#allocation2 + $0x6] ss:$0 sm:$0xff]  ;;  %v445_v31 = vld [vmem:[#allocation2 + $0x5] ss:$0 sm:$0xff] }
 0x90a   :  { %v390_v0 = vpop.xlane.xlu0 %389  ;;  %v402_v3 = vxor.u32 2147483648, %v401_v62  ;;  %v424_v18 = vxor.u32 2147483648, %v423_v2  ;;  %v446_v34 = vxor.u32 2147483648, %v445_v31  ;;  %v467_v45 = vld [vmem:[#allocation2 + $0x4] ss:$0 sm:$0xff] }
 0x90b   :  { %v391_v4 = vsel %vm387_vm15, %v390_v0, %v373_v50  ;;  %v468_v48 = vxor.u32 2147483648, %v467_v45  ;;  %v489_v61 = vld [vmem:[#allocation2 + $0x3] ss:$0 sm:$0xff]  ;;  %v511_v2 = vld [vmem:[#allocation2 + $0x2] ss:$0 sm:$0xff]  ;;  %v42_v45 = vld [vmem:[%s789_s0 + $0x18] sm:$0xff] }
 0x90c   :  { %v410_v5 = vmul.f32 %v402_v3, %v391_v4  ;;  %v406_v6 = vmul.f32 %v402_v3, %v118_v63  ;;  %v490_v0 = vxor.u32 2147483648, %v489_v61  ;;  %v533_v31 = vld [vmem:[#allocation2 + $0x1] ss:$0 sm:$0xff] }
 0x90e   :  { %411 = vadd.xlane.f32.xlu0 %v410_v5  ;;  %407 = vadd.xlane.f32.xlu1 %v406_v6 }
 0x97a   :  { %v398_v9 = vpop.xlane.xlu0 %397  ;;  %v394_v11 = vpop.xlane.xlu1 %393 }
 0x97b   :  { %v399_v12 = vsel %vm387_vm15, %v398_v9, %v381_v54  ;;  %v395_v13 = vsel %vm387_vm15, %v394_v11, %v377_v55 }
 0x97c   :  { %v418_v14 = vmul.f32 %v402_v3, %v399_v12  ;;  %v414_v16 = vmul.f32 %v402_v3, %v395_v13 }
 0x97e   :  { %419 = vadd.xlane.f32.xlu0 %v418_v14  ;;  %415 = vadd.xlane.f32.xlu1 %v414_v16 }
 0x997   :  { %v412_v17 = vpop.xlane.xlu0 %411  ;;  %v408_v15 = vpop.xlane.xlu1 %407 }
 0x998   :  { %v413_v19 = vsel %vm405_vm0, %v412_v17, %v391_v4  ;;  %v409_v20 = vsel %vm405_vm0, %v408_v15, %v118_v63 }
 0x999   :  { %v432_v22 = vmul.f32 %v424_v18, %v413_v19  ;;  %v428_v24 = vmul.f32 %v424_v18, %v409_v20 }
 0x99b   :  { %433 = vadd.xlane.f32.xlu0 %v432_v22  ;;  %429 = vadd.xlane.f32.xlu1 %v428_v24 }
 0xa07   :  { %v420_v25 = vpop.xlane.xlu0 %419  ;;  %v416_v26 = vpop.xlane.xlu1 %415 }
 0xa08   :  { %v421_v27 = vsel %vm405_vm0, %v420_v25, %v399_v12  ;;  %v417_v28 = vsel %vm405_vm0, %v416_v26, %v395_v13 }
 0xa09   :  { %v440_v29 = vmul.f32 %v424_v18, %v421_v27  ;;  %v436_v30 = vmul.f32 %v424_v18, %v417_v28  ;;  %v512_v18 = vxor.u32 2147483648, %v511_v2 }
 0xa0b   :  { %441 = vadd.xlane.f32.xlu0 %v440_v29  ;;  %437 = vadd.xlane.f32.xlu1 %v436_v30 }
 0xa24   :  { %v434_v32 = vpop.xlane.xlu0 %433  ;;  %v430_v33 = vpop.xlane.xlu1 %429 }
 0xa25   :  { %v435_v35 = vsel %vm427_vm1, %v434_v32, %v413_v19  ;;  %v431_v36 = vsel %vm427_vm1, %v430_v33, %v409_v20 }
 0xa26   :  { %v454_v37 = vmul.f32 %v446_v34, %v435_v35  ;;  %v450_v38 = vmul.f32 %v446_v34, %v431_v36 }
 0xa28   :  { %455 = vadd.xlane.f32.xlu0 %v454_v37  ;;  %451 = vadd.xlane.f32.xlu1 %v450_v38 }
 0xa94   :  { %v442_v39 = vpop.xlane.xlu0 %441  ;;  %v438_v40 = vpop.xlane.xlu1 %437 }
 0xa95   :  { %v443_v41 = vsel %vm427_vm1, %v442_v39, %v421_v27  ;;  %v439_v42 = vsel %vm427_vm1, %v438_v40, %v417_v28 }
 0xa96   :  { %v462_v43 = vmul.f32 %v446_v34, %v443_v41  ;;  %v458_v44 = vmul.f32 %v446_v34, %v439_v42  ;;  %v534_v34 = vxor.u32 2147483648, %v533_v31 }
 0xa98   :  { %463 = vadd.xlane.f32.xlu0 %v462_v43  ;;  %459 = vadd.xlane.f32.xlu1 %v458_v44 }
 0xab1   :  { %v456_v46 = vpop.xlane.xlu0 %455  ;;  %v452_v47 = vpop.xlane.xlu1 %451 }
 0xab2   :  { %v457_v49 = vsel %vm449_vm2, %v456_v46, %v435_v35  ;;  %v453_v50 = vsel %vm449_vm2, %v452_v47, %v431_v36  ;;  %v103_v46 = vsel %vm101_vm6, %v42_v45, 0.0  ;;  %v554_v47 = vld [vmem:[#allocation2] ss:$0 sm:$0xff] }
 0xab3   :  { %v476_v51 = vmul.f32 %v468_v48, %v457_v49  ;;  %v472_v52 = vmul.f32 %v468_v48, %v453_v50 }
 0xab5   :  { %477 = vadd.xlane.f32.xlu0 %v476_v51  ;;  %473 = vadd.xlane.f32.xlu1 %v472_v52 }
 0xb21   :  { %v464_v53 = vpop.xlane.xlu0 %463  ;;  %v460_v54 = vpop.xlane.xlu1 %459 }
 0xb22   :  { %v465_v55 = vsel %vm449_vm2, %v464_v53, %v443_v41  ;;  %v461_v56 = vsel %vm449_vm2, %v460_v54, %v439_v42 }
 0xb23   :  { %v484_v57 = vmul.f32 %v468_v48, %v465_v55  ;;  %v480_v59 = vmul.f32 %v468_v48, %v461_v56 }
 0xb25   :  { %485 = vadd.xlane.f32.xlu0 %v484_v57  ;;  %481 = vadd.xlane.f32.xlu1 %v480_v59 }
 0xb3e   :  { %v478_v62 = vpop.xlane.xlu0 %477  ;;  %v474_v63 = vpop.xlane.xlu1 %473 }
 0xb3f   :  { %v479_v3 = vsel %vm471_vm3, %v478_v62, %v457_v49  ;;  %v475_v4 = vsel %vm471_vm3, %v474_v63, %v453_v50  ;;  %v555_v50 = vxor.u32 2147483648, %v554_v47 }
 0xb40   :  { %v498_v5 = vmul.f32 %v490_v0, %v479_v3  ;;  %v494_v6 = vmul.f32 %v490_v0, %v475_v4 }
 0xb42   :  { %499 = vadd.xlane.f32.xlu0 %v498_v5  ;;  %495 = vadd.xlane.f32.xlu1 %v494_v6 }
 0xbae   :  { %v486_v9 = vpop.xlane.xlu0 %485  ;;  %v482_v11 = vpop.xlane.xlu1 %481 }
 0xbaf   :  { %v487_v12 = vsel %vm471_vm3, %v486_v9, %v465_v55  ;;  %v483_v13 = vsel %vm471_vm3, %v482_v11, %v461_v56 }
 0xbb0   :  { %v506_v14 = vmul.f32 %v490_v0, %v487_v12  ;;  %v502_v16 = vmul.f32 %v490_v0, %v483_v13 }
 0xbb2   :  { %507 = vadd.xlane.f32.xlu0 %v506_v14  ;;  %503 = vadd.xlane.f32.xlu1 %v502_v16 }
 0xbcb   :  { %v500_v17 = vpop.xlane.xlu0 %499  ;;  %v496_v15 = vpop.xlane.xlu1 %495 }
 0xbcc   :  { %v501_v19 = vsel %vm493_vm4, %v500_v17, %v479_v3  ;;  %v497_v20 = vsel %vm493_vm4, %v496_v15, %v475_v4 }
 0xbcd   :  { %v520_v22 = vmul.f32 %v512_v18, %v501_v19  ;;  %v516_v24 = vmul.f32 %v512_v18, %v497_v20 }
 0xbcf   :  { %521 = vadd.xlane.f32.xlu0 %v520_v22  ;;  %517 = vadd.xlane.f32.xlu1 %v516_v24 }
 0xc3b   :  { %v508_v25 = vpop.xlane.xlu0 %507  ;;  %v504_v26 = vpop.xlane.xlu1 %503 }
 0xc3c   :  { %v509_v27 = vsel %vm493_vm4, %v508_v25, %v487_v12  ;;  %v505_v28 = vsel %vm493_vm4, %v504_v26, %v483_v13 }
 0xc3d   :  { %v528_v29 = vmul.f32 %v512_v18, %v509_v27  ;;  %v524_v30 = vmul.f32 %v512_v18, %v505_v28 }
 0xc3f   :  { %529 = vadd.xlane.f32.xlu0 %v528_v29  ;;  %525 = vadd.xlane.f32.xlu1 %v524_v30 }
 0xc58   :  { %v522_v32 = vpop.xlane.xlu0 %521  ;;  %v518_v33 = vpop.xlane.xlu1 %517 }
 0xc59   :  { %v523_v35 = vsel %vm515_vm5, %v522_v32, %v501_v19  ;;  %v519_v36 = vsel %vm515_vm5, %v518_v33, %v497_v20 }
 0xc5a   :  { %v542_v37 = vmul.f32 %v534_v34, %v523_v35  ;;  %v538_v38 = vmul.f32 %v534_v34, %v519_v36 }
 0xc5c   :  { %543 = vadd.xlane.f32.xlu0 %v542_v37  ;;  %539 = vadd.xlane.f32.xlu1 %v538_v38 }
 0xcc8   :  { %v530_v39 = vpop.xlane.xlu0 %529  ;;  %v526_v40 = vpop.xlane.xlu1 %525 }
 0xcc9   :  { %v531_v41 = vsel %vm515_vm5, %v530_v39, %v509_v27  ;;  %v527_v42 = vsel %vm515_vm5, %v526_v40, %v505_v28 }
 0xcca   :  { %v550_v43 = vmul.f32 %v534_v34, %v531_v41  ;;  %v546_v44 = vmul.f32 %v534_v34, %v527_v42 }
 0xccc   :  { %551 = vadd.xlane.f32.xlu0 %v550_v43  ;;  %547 = vadd.xlane.f32.xlu1 %v546_v44 }
 0xcd0   :  { %104 = vadd.xlane.f32.xlu1 %v103_v46 }
 0xce5   :  { %v544_v48 = vpop.xlane.xlu0 %543  ;;  %v540_v49 = vpop.xlane.xlu1 %539 }
 0xce6   :  { %v545_v51 = vsel %vm537_vm7, %v544_v48, %v523_v35  ;;  %v541_v52 = vsel %vm537_vm7, %v540_v49, %v519_v36 }
 0xce7   :  { %v563_v53 = vmul.f32 %v555_v50, %v545_v51  ;;  %v559_v54 = vmul.f32 %v555_v50, %v541_v52 }
 0xce9   :  { %564 = vadd.xlane.f32.xlu1 %v563_v53  ;;  %560 = vadd.xlane.f32.xlu0 %v559_v54 }
 0xd55   :  { %v552_v55 = vpop.xlane.xlu0 %551  ;;  %v548_v56 = vpop.xlane.xlu1 %547 }
 0xd56   :  { %v553_v57 = vsel %vm537_vm7, %v552_v55, %v531_v41  ;;  %v549_v10 = vsel %vm537_vm7, %v548_v56, %v527_v42 }
 0xd57   :  { %v571_v59 = vmul.f32 %v555_v50, %v553_v57  ;;  %v567_v61 = vmul.f32 %v555_v50, %v549_v10 }
 0xd59   :  { %572 = vadd.xlane.f32.xlu1 %v571_v59  ;;  %568 = vadd.xlane.f32.xlu0 %v567_v61  ;;  %v105_v62 = vpop.xlane.xlu1 %104 }
 0xd5a   :  { %659 = vrcp.f32 %v105_v62  ;;  %vm594_vm12 = vweird.f32 %v105_v62 }
 0xd67   :  { %v660_v63 = vpop.eup %659 }
 0xd72   :  { %v561_v0 = vpop.xlane.xlu0 %560  ;;  %v565_v3 = vpop.xlane.xlu1 %564 }
 0xd73   :  { %v562_v4 = vsel %vm558_vm8, %v561_v0, %v541_v52  ;;  %v566_v5 = vsel %vm558_vm8, %v565_v3, %v545_v51 }
 0xd74   :  { %v576_v6 = vmul.f32 %v743_v60, %v562_v4  ;;  %v581_v9 = vmul.f32 %v718_v23, %v566_v5 }
 0xd76   :  { %v578_v11 = vsel %vm577_vm10, %v562_v4, %v576_v6  ;;  %v583_v12 = vsel %vm582_vm9, %v566_v5, %v581_v9 }
 0xd77   :  { %633 = vst [vmem:[%s790_s1] sm:$0xff] %v578_v11  ;;  %635 = vst [vmem:[%s790_s1 + $0x8] sm:$0xff] %v583_v12 }
 0xde2   :  { %v569_v13 = vpop.xlane.xlu0 %568  ;;  %v573_v14 = vpop.xlane.xlu1 %572 }
 0xde3   :  { %v570_v60 = vsel %vm558_vm8, %v569_v13, %v549_v10  ;;  %v574_v21 = vsel %vm558_vm8, %v573_v14, %v553_v57 }
 0xde4   :  { %v587_v23 = vmul.f32 %v689_v8, %v570_v60  ;;  %v593_v58 = vmul.f32 %v660_v63, %v574_v21 }
 0xde6   :  { %v589_v16 = vsel %vm588_vm11, %v570_v60, %v587_v23  ;;  %v595_v2 = vsel %vm594_vm12, %v574_v21, %v593_v58 }
 0xde7   :  { %637 = vst [vmem:[%s790_s1 + $0x10] sm:$0xff] %v589_v16  ;;  %639 = vst [vmem:[%s790_s1 + $0x18] sm:$0xff] %v595_v2 }

// kernel: triplane_forward.1
= control target key start
LH: loop header
LB: loop body
LE: loop exit
PB: predicated region body
PF: predicated region fallthrough
CT: control target
= control target key end

     0   :  { %s9312_s0 = inlined_call_operand.vmem [shape: f32[6,41], index: 0, kind: input, shape index: {}]   ;;  %s9313_s1 = inlined_call_operand.vmem [shape: f32[3,32,128], index: 1, kind: input, shape index: {}]   ;;  %s9314_s2 = inlined_call_operand.vmem [shape: f32[3,32,128], index: 2, kind: output, shape index: {0}]   ;;  %s9315_s3 = inlined_call_operand.vmem [shape: f32[3,32,128], index: 3, kind: output, shape index: {1}]   ;;  %s9316_s4 = inlined_call_operand.vmem [shape: f32[3,32,128], index: 4, kind: output, shape index: {2}]   ;;  %s9317_s5 = inlined_call_operand.vmem [shape: f32[4,32,128], index: 5, kind: output, shape index: {3}]   ;;  %s9318_s6 = inlined_call_operand.vmem [shape: f32[4,32,128], index: 6, kind: output, shape index: {4}]   ;;  %s9319_s7 = inlined_call_operand.vmem [shape: f32[4,32,128], index: 7, kind: output, shape index: {5}]   ;;  %s9320_s8 = inlined_call_operand.vmem [shape: f32[9,32,128], index: 8, kind: output, shape index: {6}]  }
   0x1   :  { %9699 = sst [smem:[#allocation90_spill]] %s9312_s0 }
   0x2   :  { %9700 = sst [smem:[#allocation91_spill]] %s9313_s1 }
   0x3   :  { %9701 = sst [smem:[#allocation92_spill]] %s9314_s2 }
   0x4   :  { %9702 = sst [smem:[#allocation93_spill]] %s9315_s3 }
   0x5   :  { %9703 = sst [smem:[#allocation94_spill]] %s9316_s4 }
   0x6   :  { %9704 = sst [smem:[#allocation95_spill]] %s9317_s5 }
   0x7   :  { %9705 = sst [smem:[#allocation96_spill]] %s9318_s6 }
   0x8   :  { %9706 = sst [smem:[#allocation97_spill]] %s9319_s7 }
   0x9   :  { %9707 = sst [smem:[#allocation98_spill]] %s9320_s8 }
   0xa   :  { %14 = vsyncpa [#allocation3], 0  ;;  %s4314_s27 = smov 0   ;;  %s4316_s28 = smov 0  }
   0xb   :  { %s4318_s29 = smov 0  }
   0xc LB: > { %9708 = sst [smem:[#allocation13_spill]] %s4261_s28  ;;  %s4330_s30 = sadd.s32 4294967295, %s4265_s29   ;;  %s4265_s29 = sphi %s4318_s29, %s10316_s29   ;;  %s4261_s28 = sphi %s4316_s28, %s10318_s28   ;;  %s4257_s27 = sphi %s4314_s27, %s10317_s27  }
   0xd   : > { %9709 = sst [smem:[#allocation14_spill]] %s4330_s30  ;;  %s4333_s9 = sadd.s32 1, %s4265_s29  }
   0xe   : > { %9710 = sst [smem:[#allocation15_spill]] %s4333_s9  ;;  %s45_s10 = ssub.s32 %s4265_s29, %s4333_s9 }
   0xf   : > { %s48_s11 = sadd.s32 1, %s4261_s28  ;;  %p46_p0 = scmp.eq.s32.totalorder %s45_s10, 0 }
  0x10   : > { %p55_p1 = scmp.ne.s32.totalorder %s4261_s28, %s4257_s27  ;;  %p56_p2 = scmp.eq.s32.totalorder %s4265_s29, 0 }
  0x11   : > { %p85_p3 = scmp.eq.s32.totalorder %s4330_s30, 1  ;;  %p3791_p6 = scmp.ge.s32.totalorder %s4265_s29, 1 }
  0x12   : > { %s4343_s12 = scalar_select %p46_p0, %s4261_s28, %s48_s11  }
  0x13   : > { %p4345_p4 = por %p56_p2, %p55_p1  ;;  %p4349_p5 = por %p85_p3, %p55_p1 }
  0x14   : > { %9711 = sst [smem:[#allocation16_spill]] %s4343_s12  ;;  %p254_p7 = scmp.lt.s32.totalorder %s4265_s29, 3 }
  0x15   : > { %s9713_s14 = scalar_select %p4349_p5, 1, 0 }
  0x16   : > { %p4154_p8 = scmp.eq.s32.totalorder %s4330_s30, 0  ;;  %p4356_p9 = pnand %p3791_p6, %p254_p7 }
  0x17   : > { %9714 = sst [smem:[#allocation17_spill]] %s9713_s14 }
  0x18   : > { %s9716_s0 = sld [smem:[#allocation90_spill]]  ;;  %p4150_p10 = pneg %p4356_p9 }
  0x1a   : > { %p4151_p11 = pnand %p4154_p8, %p4150_p10 }
  0x1c   : > { %p4226_p13 = pneg %p4151_p11 }
  0x1e   : > { %s267_s18 = sshll.u32 %s9716_s0, 4  ;;  %s268_s18 = int_to_ptr.vmem [resolvable:$true] %s267_s18 }
  0x1f   : > { %s4224_s19 = scalar_lea.vmem %s268_s18, 128  ;;  %p4232_p2 = scmp.lt.s32.totalorder %s268_s18, %s268_s18 }
  0x20   : > { %p4225_p12 = scmp.ne.s32.totalorder %s268_s18, %s4224_s19  ;;  %p4233_p3 = scmp.lt.s32.totalorder %s4224_s19, %s4224_s19 }
  0x22   : > { %p4227_p0 = pnand %p4226_p13, %p4225_p12  ;;  %p4234_p6 = por %p4233_p3, %p4232_p2 }
  0x24   : > { %p4228_p1 = pneg %p4227_p0 }
  0x26   : > { %p4235_p7 = pnand %p4234_p6, %p4228_p1 }
  0x28   : > { %4238 = shalt.err (!%p4235_p7)
}
  0x29   : > { %s4267_s20 = smov [#allocation2]   ;;  %p3793_p5 = scmp.ge.s32.totalorder %s4265_s29, 2 }
  0x2a   : > { %4153 = dma.vmem_to_smem (!%p4151_p11), %s268_s18, 128, %s4267_s20, [#allocation3]  }
  0x2b   : > { %274 = sbr.rel (%p3793_p5) target bundleno = 61 (0x3d), region = 20 }
  0x30   : > { %277 = sbr.rel (!%p4345_p4) target bundleno = 61 (0x3d), region = 24  ;;  %s279_s21 = sand.u32 (%p4345_p4), 1, %s4261_s28  }
  0x31   : > { %s4111_s22 = sshll.u32 (%p4345_p4), %s4265_s29, 4  ;;  %s4119_s23 = smul.u32 (%p4345_p4), 48, %s279_s21 }
  0x32   : > { %s9717_s1 = sld [smem:[#allocation91_spill]] (%p4345_p4) }
  0x33   : > { %s281_s10 = scalar_lea.vmem (%p4345_p4), [#allocation4], %s4119_s23 }
  0x38   : > { %s284_s26 = scalar_lea.vmem %s9717_s1, %s4111_s22 }
  0x39   : > { %v323_v0 = vld [vmem:[%s284_s26] sm:$0xff]  ;;  %v325_v1 = vld [vmem:[%s284_s26 + $0x8] sm:$0xff] }
  0x3a   : > { %v327_v2 = vld [vmem:[%s284_s26 + $0x20] sm:$0xff]  ;;  %v329_v3 = vld [vmem:[%s284_s26 + $0x28] sm:$0xff]  ;;  %324 = vst [vmem:[%s281_s10] sm:$0xff] %v323_v0  ;;  %326 = vst [vmem:[%s281_s10 + $0x8] sm:$0xff] %v325_v1 }
  0x3b   : > { %v331_v4 = vld [vmem:[%s284_s26 + $0x40] sm:$0xff]  ;;  %v333_v5 = vld [vmem:[%s284_s26 + $0x48] sm:$0xff]  ;;  %328 = vst [vmem:[%s281_s10 + $0x10] sm:$0xff] %v327_v2  ;;  %330 = vst [vmem:[%s281_s10 + $0x18] sm:$0xff] %v329_v3 }
  0x3c   : > { %332 = vst [vmem:[%s281_s10 + $0x20] sm:$0xff] %v331_v4  ;;  %334 = vst [vmem:[%s281_s10 + $0x28] sm:$0xff] %v333_v5 }
  0x3d PF: > { %343 = sbr.rel (%p4356_p9) target bundleno = 838 (0x346), region = 62 }
  0x42   : > { %4252 = dma.done.wait (%p4154_p8), [#allocation3], 128  }
  0x43   : > { %4254 = vsyncadd (%p4154_p8), [#allocation3], 4294967168  ;;  %s4382_s29 = sand.u32 1, %s4257_s27  }
  0x44   : > { %9718 = sst [smem:[#allocation18_spill]] %s4382_s29  ;;  %s4385_s11 = smul.u32 48, %s4382_s29 }
  0x46   : > { %9719 = sst [smem:[#allocation19_spill]] %s4385_s11  ;;  %s4388_s13 = scalar_lea.vmem [#allocation4], %s4385_s11 }
  0x47   : > { %356 = sfence }
  0x48   : > { %v4391_v6 = vld [vmem:[%s4388_s13] sm:$0xff]  ;;  %v4394_v7 = vld [vmem:[%s4388_s13 + $0x10] sm:$0xff]  ;;  %s4398_s27 = sld [smem:[#allocation2 + $0x19]]  ;;  %v416_v10 = vld [vmem:[%s4388_s13 + $0x8] sm:$0xff] }
  0x49   : > { %v423_v8 = vmul.f32 0.5, %v4391_v6  ;;  %v427_v9 = vmul.f32 0.5, %v4394_v7  ;;  %v3802_v11 = vld [vmem:[%s4388_s13 + $0x18] sm:$0xff]  ;;  %s4402_s15 = sld [smem:[#allocation2 + $0x99]]  ;;  %v424_v12 = vmul.f32 0.5, %v416_v10 }
  0x4a   : > { %v428_v13 = vmul.f32 0.5, %v3802_v11  ;;  %s4406_s16 = sld [smem:[#allocation2 + $0x1a]] }
  0x4b   : > { %v425_v14 = vadd.f32 0.5, %v423_v8  ;;  %v4404_v15 = vadd.f32 0.5, %v427_v9  ;;  %s4408_s17 = sld [smem:[#allocation2 + $0x9a]]  ;;  %v4410_v16 = vadd.f32 0.5, %v424_v12 }
  0x4c   : > { %v4412_v17 = vadd.f32 0.5, %v428_v13  ;;  %s4415_s18 = sld [smem:[#allocation2 + $0x1b]] }
  0x4d   : > { %v432_v18 = vmul.f32 4.0, %v425_v14  ;;  %v436_v19 = vsub.f32 1.0, %v4404_v15  ;;  %s4417_s19 = sld [smem:[#allocation2 + $0x9b]]  ;;  %v433_v20 = vmul.f32 4.0, %v4410_v16  ;;  %v3805_v28 = vclamps-f32 %v425_v14, 0.95 }
  0x4e   : > { %v437_v21 = vsub.f32 1.0, %v4412_v17  ;;  %s4421_s20 = sld [smem:[#allocation2 + $0x1c]]  ;;  %v3807_v31 = vclamps-f32 %v4404_v15, 0.95  ;;  %v9370_v32 = vstv %s4398_s27 }
  0x4f   : > { %v434_v22 = vfloor.f32 %v432_v18  ;;  %v438_v23 = vmul.f32 4.0, %v436_v19  ;;  %s4423_s21 = sld [smem:[#allocation2 + $0x9c]]  ;;  %v435_v24 = vfloor.f32 %v433_v20  ;;  %v9369_v33 = vstv %s4402_s15 }
  0x50   : > { %s4425_s22 = sld [smem:[#allocation2 + $0x1d]]  ;;  %v439_v27 = vmul.f32 4.0, %v437_v21  ;;  %v9368_v41 = vstv %s4406_s16 }
  0x51   : > { %v440_v25 = vfloor.f32 %v438_v23  ;;  %v442_v26 = vmax.f32 %v434_v22, 0.0  ;;  %s4427_s23 = sld [smem:[#allocation2 + $0x9d]]  ;;  %v443_v34 = vmax.f32 %v435_v24, 0.0  ;;  %v9367_v42 = vstv %s4408_s17 }
  0x52   : > { %s4430_s24 = sld [smem:[#allocation2 + $0x1e]]  ;;  %v441_v39 = vfloor.f32 %v439_v27  ;;  %v9366_v47 = vstv %s4415_s18 }
  0x53   : > { %v444_v29 = vmin.f32 %v442_v26, 3.0  ;;  %v446_v30 = vmax.f32 %v440_v25, 0.0  ;;  %s4434_s25 = sld [smem:[#allocation2 + $0x9e]]  ;;  %v9365_v50 = vstv %s4417_s19  ;;  %v4450_v51 = vmin.f32 %v443_v34, 3.0 }
  0x54   : > { %s4437_s26 = sld [smem:[#allocation2 + $0x1f]]  ;;  %v4456_v55 = vmax.f32 %v441_v39, 0.0  ;;  %v9364_v58 = vstv %s4421_s20 }
  0x55   : > { %v448_v36 = vmin.f32 %v446_v30, 3.0  ;;  %v458_v37 = vadd.f32 0.5, %v444_v29  ;;  %v530_v38 = vmul.f32 0.25, %v444_v29  ;;  %v4126_v40 = vtrunc.f32 %v444_v29  ;;  %s4441_s10 = sld [smem:[#allocation2 + $0x9f]] }
  0x56   : > { %s4445_s0 = sld [smem:[#allocation2 + $0x20]]  ;;  %v9362_v59 = vstv %s4423_s21  ;;  %v9361_v3 = vstv %s4425_s22 }
  0x57   : > { %v460_v44 = vmul.f32 0.25, %v458_v37  ;;  %v462_v45 = vadd.f32 0.5, %v448_v36  ;;  %v4122_v46 = vtrunc.f32 %v448_v36  ;;  %v532_v48 = vmul.f32 2.0, %v530_v38  ;;  %s4448_s1 = sld [smem:[#allocation2 + $0xa0]] }
  0x58   : > { %v536_v49 = vmul.f32 0.25, %v448_v36  ;;  %s4454_s12 = sld [smem:[#allocation2 + $0x21]]  ;;  %v4127_v56 = vcvt.f32.s32 %v4126_v40  ;;  %v9360_v5 = vstv %s4427_s23  ;;  %v9359_v8 = vstv %s4430_s24 }
  0x59   : > { %v464_v52 = vmul.f32 0.25, %v462_v45  ;;  %v4452_v53 = vsub.f32 %v3805_v28, %v460_v44  ;;  %v4123_v54 = vcvt.f32.s32 %v4122_v46  ;;  %v4461_v62 = vadd.f32 -1.0, %v532_v48  ;;  %s4464_s28 = sld [smem:[#allocation2 + $0xa1]] }
  0x5a   : > { %v538_v57 = vsub.f32 1.0, %v536_v49  ;;  %v548_v63 = vmul.f32 2.0, %v460_v44  ;;  %s4468_s9 = sld [smem:[#allocation2 + $0x22]]  ;;  %v9358_v12 = vstv %s4434_s25  ;;  %v9357_v18 = vstv %s4437_s26 }
  0x5b   : > { %v466_v60 = vsub.f32 1.0, %v464_v52  ;;  %v472_v61 = vadd.f32 1e-05, %v4452_v53  ;;  %v502_v0 = vmul.u32 5, %v4123_v54  ;;  %v512_v1 = vmul.u32 4, %v4123_v54  ;;  %s4475_s8 = sld [smem:[#allocation2 + $0xa2]] }
  0x5c   : > { %v540_v2 = vmul.f32 2.0, %v538_v57  ;;  %v4480_v14 = vadd.f32 0.5, %v4461_v62  ;;  %v4482_v15 = vadd.f32 -1.0, %v548_v63  ;;  %s4485_s7 = sld [smem:[#allocation2 + $0x23]]  ;;  %v9356_v22 = vstv %s4441_s10 }
  0x5d   : > { %4182 = vrcp.f32 %v472_v61  ;;  %v552_v4 = vmul.f32 2.0, %v466_v60  ;;  %v4470_v9 = vadd.s32 %v4127_v56, %v502_v0  ;;  %v514_v10 = vadd.s32 %v4127_v56, %v512_v1  ;;  %s4495_s6 = sld [smem:[#allocation2 + $0xa3]] }
  0x5e   : > { %v4472_v11 = vadd.f32 -1.0, %v540_v2  ;;  %v4477_v13 = vsub.f32 %v3807_v31, %v466_v60  ;;  %9723 = vst [vmem:[#allocation23_spill] sm:$0xff] %v4482_v15  ;;  %v9355_v24 = vstv %s4445_s0  ;;  %v9354_v25 = vstv %s4448_s1  ;;  %s4503_s5 = sld [smem:[#allocation2 + $0x24]] }
  0x5f   : > { %9720 = sst [smem:[#allocation20_spill]] %s4464_s28  ;;  %v4488_v19 = vadd.s32 5, %v4470_v9  ;;  %v4490_v20 = vadd.s32 25, %v514_v10  ;;  %v4492_v21 = vadd.f32 -1.0, %v552_v4  ;;  %v9353_v26 = vstv %s4454_s12 }
  0x60   : > { %9721 = sst [smem:[#allocation21_spill]] %s4468_s9  ;;  %v4498_v23 = vadd.f32 -0.5, %v4472_v11  ;;  %vm484_vm5 = vcmp.ge.f32.partialorder %v4452_v53, 0.0  ;;  %vm488_vm10 = vcmp.ge.f32.partialorder %v4477_v13, 0.0  ;;  %v9352_v39 = vstv %s4464_s28 }
  0x61   : > { %9722 = sst [smem:[#allocation22_spill]] %s4475_s8  ;;  %9725 = vst [vmem:[#allocation25_spill] sm:$0xff] %v4492_v21  ;;  %v4506_v27 = vadd.s32 1, %v4488_v19  ;;  %vm618_vm0 = vcmp.eq.s32.totalorder %v4490_v20, 25  ;;  %vm628_vm1 = vcmp.eq.s32.totalorder %v4490_v20, 26  ;;  %vm638_vm2 = vcmp.eq.s32.totalorder %v4490_v20, 27 }
  0x62   : > { %9724 = sst [smem:[#allocation24_spill]] %s4485_s7  ;;  %v622_v28 = vsel %vm618_vm0, %v9370_v32, 0.0  ;;  %v626_v29 = vsel %vm618_vm0, %v9369_v33, 0.0  ;;  %vm648_vm3 = vcmp.eq.s32.totalorder %v4490_v20, 28  ;;  %vm658_vm4 = vcmp.eq.s32.totalorder %v4490_v20, 29 }
  0x63   : > { %9726 = sst [smem:[#allocation26_spill]] %s4495_s6  ;;  %v632_v30 = vsel %vm628_vm1, %v9368_v41, %v622_v28  ;;  %v636_v31 = vsel %vm628_vm1, %v9367_v42, %v626_v29  ;;  %vm668_vm6 = vcmp.eq.s32.totalorder %v4490_v20, 30  ;;  %vm678_vm7 = vcmp.eq.s32.totalorder %v4490_v20, 31 }
  0x64   : > { %9727 = sst [smem:[#allocation27_spill]] %s4503_s5  ;;  %v642_v34 = vsel %vm638_vm2, %v9366_v47, %v632_v30  ;;  %v646_v36 = vsel %vm638_vm2, %v9365_v50, %v636_v31  ;;  %vm688_vm8 = vcmp.eq.s32.totalorder %v4490_v20, 32  ;;  %vm698_vm9 = vcmp.eq.s32.totalorder %v4490_v20, 33  ;;  %v5057_v47 = vld [vmem:[%s4388_s13 + $0x28] sm:$0xff] }
  0x65   : > { %s4511_s4 = sld [smem:[#allocation2 + $0xa4]]  ;;  %v652_v37 = vsel %vm648_vm3, %v9364_v58, %v642_v34  ;;  %v656_v38 = vsel %vm648_vm3, %v9362_v59, %v646_v36  ;;  %vm708_vm11 = vcmp.eq.s32.totalorder %v4490_v20, 34  ;;  %vm494_vm12 = vcmp.lt.f32.partialorder %v4452_v53, 0.0  ;;  %9749 = vst [vmem:[#allocation41_spill] sm:$0xff] %v5057_v47 }
  0x66   : > { %s4519_s3 = sld [smem:[#allocation2 + $0x25]]  ;;  %v662_v40 = vsel %vm658_vm4, %v9361_v3, %v652_v37  ;;  %v666_v44 = vsel %vm658_vm4, %v9360_v5, %v656_v38  ;;  %v9351_v45 = vstv %s4468_s9  ;;  %v9350_v46 = vstv %s4475_s8 }
  0x67   : > { %s4528_s2 = sld [smem:[#allocation2 + $0xa5]]  ;;  %v672_v48 = vsel %vm668_vm6, %v9359_v8, %v662_v40  ;;  %v676_v49 = vsel %vm668_vm6, %v9358_v12, %v666_v44  ;;  %vm718_vm13 = vcmp.eq.s32.totalorder %v4490_v20, 35  ;;  %v9349_v52 = vstv %s4485_s7 }
  0x68   : > { %s4543_s30 = sld [smem:[#allocation2 + $0x26]]  ;;  %v682_v54 = vsel %vm678_vm7, %v9357_v18, %v672_v48  ;;  %v686_v56 = vsel %vm678_vm7, %v9356_v22, %v676_v49  ;;  %v9348_v57 = vstv %s4495_s6  ;;  %vm728_vm14 = vcmp.eq.s32.totalorder %v4490_v20, 36 }
  0x69   : > { %s4556_s14 = sld [smem:[#allocation2 + $0xa6]]  ;;  %v692_v61 = vsel %vm688_vm8, %v9355_v24, %v682_v54  ;;  %v696_v63 = vsel %vm688_vm8, %v9354_v25, %v686_v56  ;;  %v9347_v0 = vstv %s4503_s5  ;;  %vm738_vm15 = vcmp.eq.s32.totalorder %v4490_v20, 37 }
  0x6a   : > { %s4568_s29 = sld [smem:[#allocation2 + $0x27]]  ;;  %v4183_v60 = vpop.eup %4182  ;;  %v702_v4 = vsel %vm698_vm9, %v9353_v26, %v692_v61  ;;  %v706_v10 = vsel %vm698_vm9, %v9352_v39, %v696_v63  ;;  %vm748_vm3 = vcmp.eq.s32.totalorder %v4490_v20, 38  ;;  %vm758_vm6 = vcmp.eq.s32.totalorder %v4490_v20, 39 }
  0x6b   : > { %9728 = sst [smem:[#allocation28_spill]] %s4511_s4  ;;  %v9346_v1 = vstv %s4511_s4  ;;  %v475_v2 = vmul.f32 %v4183_v60, %v4477_v13  ;;  %v712_v28 = vsel %vm708_vm11, %v9351_v45, %v702_v4  ;;  %v716_v29 = vsel %vm708_vm11, %v9350_v46, %v706_v10 }
  0x6c   : > { %9729 = sst [smem:[#allocation29_spill]] %s4519_s3  ;;  %v9345_v30 = vstv %s4519_s3  ;;  %v722_v34 = vsel %vm718_vm13, %v9349_v52, %v712_v28  ;;  %v726_v36 = vsel %vm718_vm13, %v9348_v57, %v716_v29  ;;  %vm9571_vm7 = vmmov 1  }
  0x6d   : > { %9730 = sst [smem:[#allocation30_spill]] %s4528_s2  ;;  %v9344_v31 = vstv %s4528_s2  ;;  %vm478_vm0 = vcmp.le.f32.partialorder %v475_v2, 1.0  ;;  %vm480_vm1 = vcmp.gt.f32.partialorder %v475_v2, -1.0  ;;  %v732_v38 = vsel %vm728_vm14, %v9347_v0, %v722_v34 }
  0x6e   : > { %9731 = sst [smem:[#allocation31_spill]] %s4543_s30  ;;  %vm4618_vm2 = vmand %vm478_vm0, %vm480_vm1  ;;  %v736_v40 = vsel %vm728_vm14, %v9346_v1, %v726_v36  ;;  %v9343_v44 = vstv %s4543_s30  ;;  %v742_v49 = vsel %vm738_vm15, %v9345_v30, %v732_v38  ;;  %v506_v60 = vadd.s32 1, %v4470_v9 }
  0x6f   : > { %9732 = sst [smem:[#allocation32_spill]] %s4556_s14  ;;  %vm4636_vm4 = vmand %vm484_vm5, %vm4618_vm2  ;;  %v746_v54 = vsel %vm738_vm15, %v9344_v31, %v736_v40  ;;  %v9339_v56 = vstv %s4556_s14  ;;  %v752_v61 = vsel %vm748_vm3, %v9343_v44, %v742_v49  ;;  %v4664_v2 = vmin.f32 %v4456_v55, 3.0 }
  0x70   : > { %9733 = sst [smem:[#allocation33_spill]] %s4568_s29  ;;  %vm490_vm5 = vmxor %vm4618_vm2, %vm9571_vm7  ;;  %v9332_v63 = vstv %s4568_s29  ;;  %v594_v10 = vsub.f32 %v4391_v6, %v4482_v15  ;;  %v598_v28 = vsub.f32 %v4394_v7, %v4492_v21  ;;  %v4680_v29 = vsel %vm748_vm3, %v9339_v56, %v746_v54 }
  0x71   : > { %s4650_s4 = sld [smem:[#allocation2 + $0x28]]  ;;  %vm4668_vm8 = vmand %vm488_vm10, %vm490_vm5  ;;  %v4685_v55 = vadd.f32 0.5, %v4450_v51  ;;  %v762_v37 = vsel %vm758_vm6, %v9332_v63, %v752_v61  ;;  %vm768_vm10 = vcmp.eq.s32.totalorder %v4490_v20, 40 }
  0x72   : > { %s4661_s2 = sld [smem:[#allocation2]]  ;;  %vm4691_vm9 = vmand %vm494_vm12, %vm4618_vm2  ;;  %v562_v34 = vsel %vm4668_vm8, %v4472_v11, %v4498_v23  ;;  %v566_v36 = vsel %vm4668_vm8, %v4480_v14, %v4461_v62 }
  0x73   : > { %s4682_s30 = sld [smem:[#allocation2 + $0x80]]  ;;  %v518_v53 = vsel %vm4691_vm9, %v4488_v19, %v4506_v27  ;;  %v524_v38 = vsel %vm4691_vm9, %v4470_v9, %v4488_v19  ;;  %v556_v40 = vsel %vm4691_vm9, %v4461_v62, %v4480_v14  ;;  %v4723_v49 = vsel %vm4636_vm4, %v4472_v11, %v562_v34 }
  0x74   : > { %9743 = vst [vmem:[#allocation35_spill] sm:$0xff] %v4723_v49  ;;  %s4725_s29 = sld [smem:[#allocation2 + $0x1]]  ;;  %v520_v54 = vsel %vm4668_vm8, %v4470_v9, %v518_v53  ;;  %v526_v19 = vsel %vm4668_vm8, %v506_v60, %v524_v38  ;;  %v558_v61 = vsel %vm4668_vm8, %v4461_v62, %v556_v40  ;;  %v4738_v63 = vsel %vm4636_vm4, %v4480_v14, %v566_v36 }
  0x75   : > { %9744 = vst [vmem:[#allocation36_spill] sm:$0xff] %v4738_v63  ;;  %s4740_s14 = sld [smem:[#allocation2 + $0x81]]  ;;  %v4744_v34 = vsel %vm4636_vm4, %v506_v60, %v520_v54  ;;  %v4749_v9 = vsel %vm4636_vm4, %v4506_v27, %v526_v19  ;;  %v4754_v62 = vsel %vm4636_vm4, %v4480_v14, %v558_v61  ;;  %v570_v36 = vsel %vm4691_vm9, %v4472_v11, %v4498_v23 }
  0x76   : > { %9745 = vst [vmem:[#allocation37_spill] sm:$0xff] %v4754_v62  ;;  %s4760_s3 = sld [smem:[#allocation2 + $0xa7]]  ;;  %v572_v60 = vsel %vm4668_vm8, %v4472_v11, %v570_v36  ;;  %v576_v27 = vsub.f32 %v4391_v6, %v4754_v62  ;;  %v582_v14 = vsub.f32 %v4394_v7, %v4723_v49  ;;  %v584_v53 = vsub.f32 %v4391_v6, %v4738_v63 }
  0x77   : > { %9738 = sst [smem:[#allocation34_spill]] %s4650_s4  ;;  %v4776_v13 = vsel %vm4636_vm4, %v4498_v23, %v572_v60  ;;  %v9341_v4 = vstv %s4650_s4  ;;  %vm780_vm11 = vcmp.eq.s32.totalorder %v4744_v34, 0  ;;  %vm782_vm12 = vcmp.eq.s32.totalorder %v4749_v9, 0 }
  0x78   : > { %s4771_s5 = sld [smem:[#allocation2 + $0x2]]  ;;  %9746 = vst [vmem:[#allocation38_spill] sm:$0xff] %v4776_v13  ;;  %v578_v11 = vsub.f32 %v4394_v7, %v4776_v13  ;;  %v586_v38 = vmul.f32 %v584_v53, %v582_v14  ;;  %v600_v40 = vmul.f32 %v598_v28, %v584_v53  ;;  %v608_v6 = vmul.f32 %v594_v10, %v582_v14 }
  0x79   : > { %s4781_s6 = sld [smem:[#allocation2 + $0x82]]  ;;  %v610_v54 = vmul.f32 %v598_v28, %v576_v27  ;;  %v4786_v19 = vstv %s4661_s2  ;;  %v4789_v48 = vstv %s4682_s30  ;;  %vm796_vm13 = vcmp.eq.s32.totalorder %v4744_v34, 1 }
  0x7a   : > { %s4792_s7 = sld [smem:[#allocation2 + $0x3]]  ;;  %v580_v23 = vmul.f32 %v578_v11, %v576_v27  ;;  %v596_v61 = vmul.f32 %v594_v10, %v578_v11  ;;  %v785_v7 = vsel %vm780_vm11, %v4786_v19, 0.0  ;;  %v788_v36 = vsel %vm780_vm11, %v4789_v48, 0.0 }
  0x7b   : > { %s4796_s8 = sld [smem:[#allocation2 + $0x83]]  ;;  %v612_v28 = vsub.f32 %v608_v6, %v610_v54  ;;  %v790_v60 = vsel %vm782_vm12, %v4786_v19, 0.0  ;;  %v792_v14 = vsel %vm782_vm12, %v4789_v48, 0.0  ;;  %vm798_vm14 = vcmp.eq.s32.totalorder %v4749_v9, 1 }
  0x7c   : > { %s4805_s2 = sld [smem:[#allocation2 + $0x4]]  ;;  %v588_v10 = vsub.f32 %v580_v23, %v586_v38  ;;  %v602_v27 = vsub.f32 %v596_v61, %v600_v40  ;;  %v4808_v53 = vstv %s4725_s29  ;;  %v4811_v11 = vstv %s4740_s14 }
  0x7d   : > { %s4813_s30 = sld [smem:[#allocation2 + $0x84]]  ;;  %v4820_v54 = vsel %vm768_vm10, %v9341_v4, %v762_v37  ;;  %v801_v56 = vsel %vm796_vm13, %v4808_v53, %v785_v7  ;;  %v804_v38 = vsel %vm796_vm13, %v4811_v11, %v788_v36  ;;  %v806_v23 = vsel %vm798_vm14, %v4808_v53, %v790_v60 }
  0x7e   : > { %9747 = vst [vmem:[#allocation39_spill] sm:$0xff] %v4820_v54  ;;  %s4828_s29 = sld [smem:[#allocation2 + $0x5]]  ;;  %v590_v40 = vand.u32 2147483647, %v588_v10  ;;  %v808_v61 = vsel %vm798_vm14, %v4811_v11, %v792_v14  ;;  %vm812_vm15 = vcmp.eq.s32.totalorder %v4744_v34, 2  ;;  %vm814_vm0 = vcmp.eq.s32.totalorder %v4749_v9, 2 }
  0x7f   : > { %s4833_s14 = sld [smem:[#allocation2 + $0x85]]  ;;  %v4835_v37 = vand.u32 2147483647, %v612_v28  ;;  %v4839_v7 = vstv %s4771_s5  ;;  %v4842_v36 = vstv %s4781_s6  ;;  %v4848_v60 = vand.u32 2147483647, %v602_v27 }
  0x80   : > { %s4844_s4 = sld [smem:[#allocation2 + $0x6]]  ;;  %v4846_v10 = vmul.f32 0.5, %v590_v40  ;;  %v817_v14 = vsel %vm812_vm15, %v4839_v7, %v801_v56  ;;  %v820_v4 = vsel %vm812_vm15, %v4842_v36, %v804_v38  ;;  %v822_v28 = vsel %vm814_vm0, %v4839_v7, %v806_v23 }
  0x81   : > { %s4852_s9 = sld [smem:[#allocation2 + $0x86]]  ;;  %v824_v44 = vsel %vm814_vm0, %v4842_v36, %v808_v61  ;;  %vm828_vm1 = vcmp.eq.s32.totalorder %v4744_v34, 3  ;;  %vm830_vm2 = vcmp.eq.s32.totalorder %v4749_v9, 3  ;;  %v4861_v27 = vstv %s4792_s7 }
  0x82   : > { %s4858_s5 = sld [smem:[#allocation2 + $0x7]]  ;;  %v4864_v40 = vstv %s4796_s8  ;;  %vm844_vm3 = vcmp.eq.s32.totalorder %v4744_v34, 4  ;;  %vm846_vm4 = vcmp.eq.s32.totalorder %v4749_v9, 4  ;;  %v833_v56 = vsel %vm828_vm1, %v4861_v27, %v817_v14 }
  0x83   : > { %s4868_s6 = sld [smem:[#allocation2 + $0x87]]  ;;  %v836_v38 = vsel %vm828_vm1, %v4864_v40, %v820_v4  ;;  %v838_v23 = vsel %vm830_vm2, %v4861_v27, %v822_v28  ;;  %v840_v61 = vsel %vm830_vm2, %v4864_v40, %v824_v44  ;;  %v4877_v31 = vstv %s4805_s2 }
  0x84   : > { %s4874_s7 = sld [smem:[#allocation2 + $0x8]]  ;;  %v4880_v30 = vstv %s4813_s30  ;;  %vm860_vm5 = vcmp.eq.s32.totalorder %v4744_v34, 5  ;;  %vm862_vm8 = vcmp.eq.s32.totalorder %v4749_v9, 5  ;;  %v849_v14 = vsel %vm844_vm3, %v4877_v31, %v833_v56 }
  0x85   : > { %s4884_s8 = sld [smem:[#allocation2 + $0x88]]  ;;  %v852_v4 = vsel %vm844_vm3, %v4880_v30, %v836_v38  ;;  %v854_v44 = vsel %vm846_vm4, %v4877_v31, %v838_v23  ;;  %v856_v28 = vsel %vm846_vm4, %v4880_v30, %v840_v61  ;;  %v4893_v1 = vstv %s4828_s29 }
  0x86   : > { %s4890_s2 = sld [smem:[#allocation2 + $0x9]]  ;;  %v4896_v0 = vstv %s4833_s14  ;;  %vm876_vm9 = vcmp.eq.s32.totalorder %v4744_v34, 6  ;;  %vm878_vm11 = vcmp.eq.s32.totalorder %v4749_v9, 6  ;;  %v865_v56 = vsel %vm860_vm5, %v4893_v1, %v849_v14 }
  0x87   : > { %s4900_s30 = sld [smem:[#allocation2 + $0x89]]  ;;  %v868_v38 = vsel %vm860_vm5, %v4896_v0, %v852_v4  ;;  %v870_v23 = vsel %vm862_vm8, %v4893_v1, %v854_v44  ;;  %v872_v61 = vsel %vm862_vm8, %v4896_v0, %v856_v28  ;;  %v4909_v57 = vstv %s4844_s4 }
  0x88   : > { %s4906_s29 = sld [smem:[#allocation2 + $0xa]]  ;;  %v4912_v52 = vstv %s4852_s9  ;;  %vm892_vm12 = vcmp.eq.s32.totalorder %v4744_v34, 7  ;;  %vm894_vm13 = vcmp.eq.s32.totalorder %v4749_v9, 7  ;;  %v881_v14 = vsel %vm876_vm9, %v4909_v57, %v865_v56 }
  0x89   : > { %s4916_s14 = sld [smem:[#allocation2 + $0x8a]]  ;;  %v884_v4 = vsel %vm876_vm9, %v4912_v52, %v868_v38  ;;  %v886_v44 = vsel %vm878_vm11, %v4909_v57, %v870_v23  ;;  %v888_v28 = vsel %vm878_vm11, %v4912_v52, %v872_v61  ;;  %v4925_v46 = vstv %s4858_s5 }
  0x8a   : > { %s4922_s4 = sld [smem:[#allocation2 + $0xb]]  ;;  %v4928_v45 = vstv %s4868_s6  ;;  %vm908_vm14 = vcmp.eq.s32.totalorder %v4744_v34, 8  ;;  %vm910_vm15 = vcmp.eq.s32.totalorder %v4749_v9, 8  ;;  %v897_v56 = vsel %vm892_vm12, %v4925_v46, %v881_v14 }
  0x8b   : > { %s4932_s9 = sld [smem:[#allocation2 + $0x8b]]  ;;  %v900_v38 = vsel %vm892_vm12, %v4928_v45, %v884_v4  ;;  %v902_v23 = vsel %vm894_vm13, %v4925_v46, %v886_v44  ;;  %v904_v61 = vsel %vm894_vm13, %v4928_v45, %v888_v28  ;;  %v4941_v39 = vstv %s4874_s7 }
  0x8c   : > { %s4938_s5 = sld [smem:[#allocation2 + $0xc]]  ;;  %v4944_v26 = vstv %s4884_s8  ;;  %vm924_vm0 = vcmp.eq.s32.totalorder %v4744_v34, 9  ;;  %vm926_vm1 = vcmp.eq.s32.totalorder %v4749_v9, 9  ;;  %v913_v14 = vsel %vm908_vm14, %v4941_v39, %v897_v56 }
  0x8d   : > { %s4948_s6 = sld [smem:[#allocation2 + $0x8c]]  ;;  %v916_v4 = vsel %vm908_vm14, %v4944_v26, %v900_v38  ;;  %v918_v44 = vsel %vm910_vm15, %v4941_v39, %v902_v23  ;;  %v920_v28 = vsel %vm910_vm15, %v4944_v26, %v904_v61  ;;  %v4957_v25 = vstv %s4890_s2 }
  0x8e   : > { %s4954_s7 = sld [smem:[#allocation2 + $0xd]]  ;;  %v4960_v24 = vstv %s4900_s30  ;;  %vm940_vm2 = vcmp.eq.s32.totalorder %v4744_v34, 10  ;;  %vm942_vm3 = vcmp.eq.s32.totalorder %v4749_v9, 10  ;;  %v929_v56 = vsel %vm924_vm0, %v4957_v25, %v913_v14 }
  0x8f   : > { %s4964_s8 = sld [smem:[#allocation2 + $0x8d]]  ;;  %v932_v38 = vsel %vm924_vm0, %v4960_v24, %v916_v4  ;;  %v934_v23 = vsel %vm926_vm1, %v4957_v25, %v918_v44  ;;  %v936_v61 = vsel %vm926_vm1, %v4960_v24, %v920_v28  ;;  %v4973_v22 = vstv %s4906_s29 }
  0x90   : > { %s4970_s2 = sld [smem:[#allocation2 + $0xe]]  ;;  %v4976_v18 = vstv %s4916_s14  ;;  %vm956_vm4 = vcmp.eq.s32.totalorder %v4744_v34, 11  ;;  %vm958_vm5 = vcmp.eq.s32.totalorder %v4749_v9, 11  ;;  %v945_v14 = vsel %vm940_vm2, %v4973_v22, %v929_v56 }
  0x91   : > { %s4980_s30 = sld [smem:[#allocation2 + $0x8e]]  ;;  %v948_v4 = vsel %vm940_vm2, %v4976_v18, %v932_v38  ;;  %v950_v44 = vsel %vm942_vm3, %v4973_v22, %v934_v23  ;;  %v952_v28 = vsel %vm942_vm3, %v4976_v18, %v936_v61  ;;  %v4989_v12 = vstv %s4922_s4 }
  0x92   : > { %s4986_s29 = sld [smem:[#allocation2 + $0xf]]  ;;  %v4992_v8 = vstv %s4932_s9  ;;  %vm972_vm8 = vcmp.eq.s32.totalorder %v4744_v34, 12  ;;  %vm974_vm9 = vcmp.eq.s32.totalorder %v4749_v9, 12  ;;  %v961_v56 = vsel %vm956_vm4, %v4989_v12, %v945_v14  ;;  %v5015_v14 = vld [vmem:[%s4388_s13 + $0x20] sm:$0xff] }
  0x93   : > { %s4996_s14 = sld [smem:[#allocation2 + $0x8f]]  ;;  %v964_v38 = vsel %vm956_vm4, %v4992_v8, %v948_v4  ;;  %v966_v23 = vsel %vm958_vm5, %v4989_v12, %v950_v44  ;;  %v968_v61 = vsel %vm958_vm5, %v4992_v8, %v952_v28  ;;  %v5005_v5 = vstv %s4938_s5 }
  0x94   : > { %s5002_s4 = sld [smem:[#allocation2 + $0x10]]  ;;  %v5008_v3 = vstv %s4948_s6  ;;  %vm988_vm11 = vcmp.eq.s32.totalorder %v4744_v34, 13  ;;  %vm990_vm12 = vcmp.eq.s32.totalorder %v4749_v9, 13  ;;  %v977_v4 = vsel %vm972_vm8, %v5005_v5, %v961_v56  ;;  %s5028_s6 = scalar_lea.vmem [#allocation5], %s4385_s11 }
  0x95   : > { %s5012_s9 = sld [smem:[#allocation2 + $0x90]]  ;;  %v980_v44 = vsel %vm972_vm8, %v5008_v3, %v964_v38  ;;  %v982_v28 = vsel %vm974_vm9, %v5005_v5, %v966_v23  ;;  %v984_v59 = vsel %vm974_vm9, %v5008_v3, %v968_v61  ;;  %2948 = vst [vmem:[%s5028_s6 + $0x20] sm:$0xff] %v5015_v14  ;;  %v5033_v56 = vstv %s4954_s7  ;;  %2949 = vst [vmem:[%s5028_s6 + $0x28] sm:$0xff] %v5057_v47 }
  0x96   : > { %s5025_s5 = sld [smem:[#allocation2 + $0x11]]  ;;  %v5036_v38 = vstv %s4964_s8  ;;  %vm1004_vm13 = vcmp.eq.s32.totalorder %v4744_v34, 14  ;;  %vm1006_vm14 = vcmp.eq.s32.totalorder %v4749_v9, 14  ;;  %v993_v23 = vsel %vm988_vm11, %v5033_v56, %v977_v4 }
  0x97   : > { %9748 = sst [smem:[#allocation40_spill]] %s5028_s6  ;;  %v996_v61 = vsel %vm988_vm11, %v5036_v38, %v980_v44  ;;  %v998_v58 = vsel %vm990_vm12, %v5033_v56, %v982_v28  ;;  %v1000_v50 = vsel %vm990_vm12, %v5036_v38, %v984_v59  ;;  %v5060_v42 = vstv %s4970_s2 }
  0x98   : > { %s5040_s28 = sld [smem:[#allocation2 + $0x91]]  ;;  %v5063_v4 = vstv %s4980_s30  ;;  %vm1020_vm15 = vcmp.eq.s32.totalorder %v4744_v34, 15  ;;  %vm1022_vm0 = vcmp.eq.s32.totalorder %v4749_v9, 15  ;;  %v1009_v59 = vsel %vm1004_vm13, %v5060_v42, %v993_v23 }
  0x99   : > { %s5054_s7 = sld [smem:[#allocation2 + $0x12]]  ;;  %v1012_v44 = vsel %vm1004_vm13, %v5063_v4, %v996_v61  ;;  %v1014_v28 = vsel %vm1006_vm14, %v5060_v42, %v998_v58  ;;  %v1016_v41 = vsel %vm1006_vm14, %v5063_v4, %v1000_v50  ;;  %v5086_v33 = vstv %s4986_s29 }
  0x9a   : > { %s5067_s8 = sld [smem:[#allocation2 + $0x92]]  ;;  %9750 = vst [vmem:[#allocation42_spill] sm:$0xff] %v5086_v33  ;;  %v5089_v32 = vstv %s4996_s14  ;;  %vm1036_vm1 = vcmp.eq.s32.totalorder %v4744_v34, 16  ;;  %vm1038_vm2 = vcmp.eq.s32.totalorder %v4749_v9, 16  ;;  %v1025_v23 = vsel %vm1020_vm15, %v5086_v33, %v1009_v59 }
  0x9b   : > { %s5083_s2 = sld [smem:[#allocation2 + $0x13]]  ;;  %9751 = vst [vmem:[#allocation43_spill] sm:$0xff] %v5089_v32  ;;  %v1028_v58 = vsel %vm1020_vm15, %v5089_v32, %v1012_v44  ;;  %v1030_v50 = vsel %vm1022_vm0, %v5086_v33, %v1014_v28  ;;  %v1032_v61 = vsel %vm1022_vm0, %v5089_v32, %v1016_v41  ;;  %v5106_v43 = vstv %s5002_s4 }
  0x9c   : > { %s5093_s30 = sld [smem:[#allocation2 + $0x93]]  ;;  %9752 = vst [vmem:[#allocation44_spill] sm:$0xff] %v5106_v43  ;;  %v5109_v35 = vstv %s5012_s9  ;;  %vm1052_vm3 = vcmp.eq.s32.totalorder %v4744_v34, 17  ;;  %vm1054_vm4 = vcmp.eq.s32.totalorder %v4749_v9, 17  ;;  %v1041_v59 = vsel %vm1036_vm1, %v5106_v43, %v1025_v23 }
  0x9d   : > { %s5103_s29 = sld [smem:[#allocation2 + $0x14]]  ;;  %9753 = vst [vmem:[#allocation45_spill] sm:$0xff] %v5109_v35  ;;  %v1044_v44 = vsel %vm1036_vm1, %v5109_v35, %v1028_v58  ;;  %v1046_v41 = vsel %vm1038_vm2, %v5106_v43, %v1030_v50  ;;  %v1048_v28 = vsel %vm1038_vm2, %v5109_v35, %v1032_v61  ;;  %v5122_v6 = vstv %s5025_s5 }
  0x9e   : > { %s5113_s14 = sld [smem:[#allocation2 + $0x94]]  ;;  %9754 = vst [vmem:[#allocation46_spill] sm:$0xff] %v5122_v6  ;;  %v5125_v13 = vstv %s5040_s28  ;;  %vm1068_vm5 = vcmp.eq.s32.totalorder %v4744_v34, 18  ;;  %vm1070_vm8 = vcmp.eq.s32.totalorder %v4749_v9, 18  ;;  %v1057_v23 = vsel %vm1052_vm3, %v5122_v6, %v1041_v59 }
  0x9f   : > { %s5119_s4 = sld [smem:[#allocation2 + $0x15]]  ;;  %9755 = vst [vmem:[#allocation47_spill] sm:$0xff] %v5125_v13  ;;  %v1060_v58 = vsel %vm1052_vm3, %v5125_v13, %v1044_v44  ;;  %v1062_v50 = vsel %vm1054_vm4, %v5122_v6, %v1046_v41  ;;  %v1064_v61 = vsel %vm1054_vm4, %v5125_v13, %v1048_v28  ;;  %v5138_v49 = vstv %s5054_s7 }
  0xa0   : > { %s5129_s9 = sld [smem:[#allocation2 + $0x95]]  ;;  %9756 = vst [vmem:[#allocation48_spill] sm:$0xff] %v5138_v49  ;;  %v5141_v21 = vstv %s5067_s8  ;;  %vm1084_vm9 = vcmp.eq.s32.totalorder %v4744_v34, 19  ;;  %vm1086_vm11 = vcmp.eq.s32.totalorder %v4749_v9, 19  ;;  %v1073_v59 = vsel %vm1068_vm5, %v5138_v49, %v1057_v23 }
  0xa1   : > { %s5135_s5 = sld [smem:[#allocation2 + $0x16]]  ;;  %9757 = vst [vmem:[#allocation49_spill] sm:$0xff] %v5141_v21  ;;  %v1076_v44 = vsel %vm1068_vm5, %v5141_v21, %v1060_v58  ;;  %v1078_v41 = vsel %vm1070_vm8, %v5138_v49, %v1062_v50  ;;  %v1080_v28 = vsel %vm1070_vm8, %v5141_v21, %v1064_v61  ;;  %v5154_v63 = vstv %s5083_s2 }
  0xa2   : > { %s5145_s28 = sld [smem:[#allocation2 + $0x96]]  ;;  %9758 = vst [vmem:[#allocation50_spill] sm:$0xff] %v5154_v63  ;;  %v5157_v62 = vstv %s5093_s30  ;;  %vm1100_vm12 = vcmp.eq.s32.totalorder %v4744_v34, 20  ;;  %vm1102_vm13 = vcmp.eq.s32.totalorder %v4749_v9, 20  ;;  %v1089_v23 = vsel %vm1084_vm9, %v5154_v63, %v1073_v59 }
  0xa3   : > { %s5151_s7 = sld [smem:[#allocation2 + $0x17]]  ;;  %9759 = vst [vmem:[#allocation51_spill] sm:$0xff] %v5157_v62  ;;  %v1092_v58 = vsel %vm1084_vm9, %v5157_v62, %v1076_v44  ;;  %v1094_v50 = vsel %vm1086_vm11, %v5154_v63, %v1078_v41  ;;  %v1096_v61 = vsel %vm1086_vm11, %v5157_v62, %v1080_v28  ;;  %v5174_v15 = vstv %s5103_s29 }
  0xa4   : > { %s5161_s8 = sld [smem:[#allocation2 + $0x97]]  ;;  %9760 = vst [vmem:[#allocation52_spill] sm:$0xff] %v5174_v15  ;;  %v5177_v47 = vstv %s5113_s14  ;;  %vm1116_vm14 = vcmp.eq.s32.totalorder %v4744_v34, 21  ;;  %vm1118_vm15 = vcmp.eq.s32.totalorder %v4749_v9, 21  ;;  %v1105_v59 = vsel %vm1100_vm12, %v5174_v15, %v1089_v23 }
  0xa5   : > { %s5163_s11 = sld [smem:[#allocation2 + $0xa8]]  ;;  %9761 = vst [vmem:[#allocation53_spill] sm:$0xff] %v5177_v47  ;;  %v1108_v44 = vsel %vm1100_vm12, %v5177_v47, %v1092_v58  ;;  %v1110_v41 = vsel %vm1102_vm13, %v5174_v15, %v1094_v50  ;;  %v1112_v28 = vsel %vm1102_vm13, %v5177_v47, %v1096_v61  ;;  %v5190_v62 = vstv %s5119_s4 }
  0xa6   : > { %s5181_s2 = sld [smem:[#allocation2 + $0x18]]  ;;  %9762 = vst [vmem:[#allocation54_spill] sm:$0xff] %v5190_v62  ;;  %v5193_v63 = vstv %s5129_s9  ;;  %vm1132_vm0 = vcmp.eq.s32.totalorder %v4744_v34, 22  ;;  %vm1134_vm1 = vcmp.eq.s32.totalorder %v4749_v9, 22  ;;  %v5198_v23 = vmul.f32 0.5, %v4848_v60 }
  0xa7   : > { %s5187_s30 = sld [smem:[#allocation2 + $0x98]]  ;;  %9763 = vst [vmem:[#allocation55_spill] sm:$0xff] %v5193_v63  ;;  %v1121_v58 = vsel %vm1116_vm14, %v5190_v62, %v1105_v59  ;;  %v1124_v50 = vsel %vm1116_vm14, %v5193_v63, %v1108_v44  ;;  %v1126_v61 = vsel %vm1118_vm15, %v5190_v62, %v1110_v41  ;;  %v5206_v47 = vstv %s5135_s5 }
  0xa8   : > { %9764 = vst [vmem:[#allocation56_spill] sm:$0xff] %v5206_v47  ;;  %v5209_v15 = vstv %s5145_s28  ;;  %vm1148_vm2 = vcmp.eq.s32.totalorder %v4744_v34, 23  ;;  %vm1150_vm3 = vcmp.eq.s32.totalorder %v4749_v9, 23  ;;  %v5214_v60 = vmul.f32 0.5, %v4835_v37  ;;  %s5791_s29 = sld [smem:[#allocation2 + $0x19b]] }
  0xa9   : > { %9765 = vst [vmem:[#allocation57_spill] sm:$0xff] %v5209_v15  ;;  %v1128_v59 = vsel %vm1118_vm15, %v5193_v63, %v1112_v28  ;;  %v1137_v44 = vsel %vm1132_vm0, %v5206_v47, %v1121_v58  ;;  %v1142_v41 = vsel %vm1134_vm1, %v5206_v47, %v1126_v61  ;;  %v1140_v62 = vsel %vm1132_vm0, %v5209_v15, %v1124_v50  ;;  %s5794_s14 = sld [smem:[#allocation2 + $0x11c]] }
  0xaa   : > { %v5225_v21 = vstv %s5151_s7  ;;  %v5228_v49 = vstv %s5161_s8  ;;  %vm1164_vm4 = vcmp.eq.s32.totalorder %v4744_v34, 24  ;;  %v9767_v37 = vstv %s4760_s3  ;;  %s5796_s4 = sld [smem:[#allocation2 + $0x19c]] }
  0xab   : > { %9766 = vst [vmem:[#allocation58_spill] sm:$0xff] %v5225_v21  ;;  %v766_v28 = vsel %vm758_vm6, %v9767_v37, %v4680_v29  ;;  %v1153_v58 = vsel %vm1148_vm2, %v5225_v21, %v1137_v44  ;;  %v1158_v61 = vsel %vm1150_vm3, %v5225_v21, %v1142_v41  ;;  %vm1166_vm5 = vcmp.eq.s32.totalorder %v4749_v9, 24  ;;  %s5802_s9 = sld [smem:[#allocation2 + $0x11d]] }
  0xac   : > { %v1144_v47 = vsel %vm1134_vm1, %v5209_v15, %v1128_v59  ;;  %v5248_v63 = vstv %s5181_s2  ;;  %v1178_v29 = vadd.f32 %v5198_v23, %v4846_v10  ;;  %v1156_v44 = vsel %vm1148_vm2, %v5228_v49, %v1140_v62  ;;  %s5811_s5 = sld [smem:[#allocation2 + $0x19d]] }
  0xad   : > { %9768 = vst [vmem:[#allocation59_spill] sm:$0xff] %v5248_v63  ;;  %v5258_v41 = vsel %vm1164_vm4, %v5248_v63, %v1153_v58  ;;  %v5261_v37 = vstv %s5187_s30  ;;  %v1184_v50 = vmul.f32 %v4820_v54, %v4846_v10  ;;  %v5268_v59 = vsel %vm1166_vm5, %v5248_v63, %v1158_v61  ;;  %s5815_s28 = sld [smem:[#allocation2 + $0x11e]] }
  0xae   : > { %9769 = vst [vmem:[#allocation60_spill] sm:$0xff] %v5258_v41  ;;  %9770 = vst [vmem:[#allocation61_spill] sm:$0xff] %v5261_v37  ;;  %v1180_v21 = vadd.f32 %v1178_v29, %v5214_v60  ;;  %v1186_v62 = vmul.f32 %v5258_v41, %v5198_v23  ;;  %v461_v15 = vmul.f32 0.25, %v4685_v55  ;;  %v463_v58 = vadd.f32 0.5, %v4664_v2  ;;  %s5818_s7 = sld [smem:[#allocation2 + $0x19e]] }
  0xaf   : > { %9771 = vst [vmem:[#allocation62_spill] sm:$0xff] %v5268_v59  ;;  %v4124_v13 = vtrunc.f32 %v4664_v2  ;;  %v4128_v6 = vtrunc.f32 %v4450_v51  ;;  %v531_v54 = vmul.f32 0.25, %v4450_v51  ;;  %v9772_v35 = vstv %s5163_s11  ;;  %s5870_s8 = sld [smem:[#allocation2 + $0x11f]] }
  0xb0   : > { %v5282_v61 = vsel %vm768_vm10, %v9772_v35, %v766_v28  ;;  %4184 = vrcp.f32 %v1180_v21  ;;  %v9774_v29 = vclamps-f32 %v4410_v16, 0.95  ;;  %v537_v55 = vmul.f32 0.25, %v4664_v2  ;;  %s5887_s2 = sld [smem:[#allocation2 + $0x19f]] }
  0xb1   : > { %9773 = vst [vmem:[#allocation63_spill] sm:$0xff] %v5282_v61  ;;  %v465_v41 = vmul.f32 0.25, %v463_v58  ;;  %v4125_v43 = vcvt.f32.s32 %v4124_v13  ;;  %v4129_v32 = vcvt.f32.s32 %v4128_v6  ;;  %v533_v33 = vmul.f32 2.0, %v531_v54  ;;  %s5958_s30 = sld [smem:[#allocation2 + $0x180]] }
  0xb2   : > { %v5286_v63 = vsub.f32 %v9774_v29, %v461_v15  ;;  %v1160_v51 = vsel %vm1150_vm3, %v5228_v49, %v1144_v47  ;;  %v5295_v35 = vsel %vm1164_vm4, %v5261_v37, %v1156_v44  ;;  %v1190_v16 = vmul.f32 %v5268_v59, %v5214_v60 }
  0xb3   : > { %9775 = vst [vmem:[#allocation64_spill] sm:$0xff] %v5295_v35  ;;  %v1188_v21 = vadd.f32 %v1186_v62, %v1184_v50  ;;  %v467_v2 = vsub.f32 1.0, %v465_v41  ;;  %v503_v28 = vmul.u32 5, %v4125_v43  ;;  %v513_v13 = vmul.u32 4, %v4125_v43 }
  0xb4   : > { %v473_v20 = vadd.f32 1e-05, %v5286_v63  ;;  %v5300_v6 = vadd.f32 -1.0, %v533_v33  ;;  %v539_v54 = vsub.f32 1.0, %v537_v55  ;;  %v549_v58 = vmul.f32 2.0, %v461_v15 }
  0xb5   : > { %v5305_v47 = vsel %vm1166_vm5, %v5261_v37, %v1160_v51  ;;  %v5307_v34 = vadd.s32 %v4129_v32, %v503_v28  ;;  %v515_v44 = vadd.s32 %v4129_v32, %v513_v13  ;;  %v1196_v50 = vmul.f32 %v5282_v61, %v4846_v10 }
  0xb6   : > { %4186 = vrcp.f32 %v473_v20  ;;  %9776 = vst [vmem:[#allocation65_spill] sm:$0xff] %v5305_v47  ;;  %v541_v41 = vmul.f32 2.0, %v539_v54  ;;  %v5311_v62 = vadd.f32 -1.0, %v549_v58  ;;  %v553_v43 = vmul.f32 2.0, %v467_v2 }
  0xb7   : > { %v1198_v33 = vmul.f32 %v5295_v35, %v5198_v23  ;;  %v1192_v15 = vadd.f32 %v1190_v16, %v1188_v21  ;;  %v9778_v9 = vclamps-f32 %v4412_v17, 0.95  ;;  %v5320_v55 = vadd.s32 5, %v5307_v34  ;;  %v5335_v17 = vld [vmem:[%s4388_s13 + $0x8] sm:$0xff] }
  0xb8   : > { %9777 = vst [vmem:[#allocation66_spill] sm:$0xff] %v5311_v62  ;;  %v5322_v32 = vadd.s32 25, %v515_v44  ;;  %v5325_v10 = vadd.s32 1, %v5307_v34  ;;  %v5327_v51 = vadd.f32 -1.0, %v541_v41  ;;  %v5330_v23 = vadd.f32 0.5, %v5300_v6 }
  0xb9   : > { %v5317_v29 = vsub.f32 %v9778_v9, %v467_v2  ;;  %v5332_v16 = vadd.f32 -1.0, %v553_v43  ;;  %v5339_v20 = vsub.f32 %v5335_v17, %v5311_v62  ;;  %v5345_v21 = vadd.s32 1, %v5320_v55 }
  0xba   : > { %vm619_vm6 = vcmp.eq.s32.totalorder %v5322_v32, 25  ;;  %vm629_vm10 = vcmp.eq.s32.totalorder %v5322_v32, 26  ;;  %vm639_vm8 = vcmp.eq.s32.totalorder %v5322_v32, 27  ;;  %v9780_v2 = vstv %s4398_s27  ;;  %s9793_s27 = sld [smem:[#allocation20_spill]] }
  0xbb   : > { %9779 = vst [vmem:[#allocation67_spill] sm:$0xff] %v5332_v16  ;;  %v623_v28 = vsel %vm619_vm6, %v9780_v2, 0.0  ;;  %v9781_v13 = vstv %s4402_s15  ;;  %v1200_v58 = vadd.f32 %v1198_v33, %v1196_v50  ;;  %vm485_vm9 = vcmp.ge.f32.partialorder %v5286_v63, 0.0  ;;  %s9794_s15 = sld [smem:[#allocation21_spill]] }
  0xbc   : > { %v627_v54 = vsel %vm619_vm6, %v9781_v13, 0.0  ;;  %v9782_v44 = vstv %s4406_s16  ;;  %v9783_v43 = vstv %s4408_s17  ;;  %vm649_vm11 = vcmp.eq.s32.totalorder %v5322_v32, 28  ;;  %s9795_s16 = sld [smem:[#allocation22_spill]] }
  0xbd   : > { %v633_v41 = vsel %vm629_vm10, %v9782_v44, %v623_v28  ;;  %v637_v9 = vsel %vm629_vm10, %v9783_v43, %v627_v54  ;;  %vm659_vm12 = vcmp.eq.s32.totalorder %v5322_v32, 29  ;;  %v5359_v35 = vadd.f32 -0.5, %v5327_v51  ;;  %v4185_v28 = vpop.eup %4184  ;;  %s9799_s17 = sld [smem:[#allocation24_spill]] }
  0xbe   : > { %v9784_v2 = vstv %s4415_s18  ;;  %v9785_v50 = vstv %s4417_s19  ;;  %vm669_vm13 = vcmp.eq.s32.totalorder %v5322_v32, 30  ;;  %vm489_vm14 = vcmp.ge.f32.partialorder %v5317_v29, 0.0  ;;  %s9801_s18 = sld [smem:[#allocation26_spill]] }
  0xbf   : > { %v643_v13 = vsel %vm639_vm8, %v9784_v2, %v633_v41  ;;  %v647_v33 = vsel %vm639_vm8, %v9785_v50, %v637_v9  ;;  %v9786_v54 = vstv %s4421_s20  ;;  %v9787_v43 = vstv %s4423_s21  ;;  %s9802_s19 = sld [smem:[#allocation27_spill]] }
  0xc0   : > { %v653_v44 = vsel %vm649_vm11, %v9786_v54, %v643_v13  ;;  %v657_v61 = vsel %vm649_vm11, %v9787_v43, %v647_v33  ;;  %vm679_vm15 = vcmp.eq.s32.totalorder %v5322_v32, 31  ;;  %vm689_vm0 = vcmp.eq.s32.totalorder %v5322_v32, 32  ;;  %s9812_s20 = sld [smem:[#allocation31_spill]] }
  0xc1   : > { %v5373_v41 = vmul.f32 %v4185_v28, %v1192_v15  ;;  %vm495_vm1 = vcmp.lt.f32.partialorder %v5286_v63, 0.0  ;;  %v9789_v9 = vstv %s4425_s22  ;;  %v9790_v50 = vstv %s4427_s23  ;;  %s9817_s21 = sld [smem:[#allocation32_spill]] }
  0xc2   : > { %v663_v2 = vsel %vm659_vm12, %v9789_v9, %v653_v44  ;;  %v667_v62 = vsel %vm659_vm12, %v9790_v50, %v657_v61  ;;  %vm699_vm2 = vcmp.eq.s32.totalorder %v5322_v32, 33  ;;  %v9791_v13 = vstv %s4430_s24  ;;  %s9818_s22 = sld [smem:[#allocation33_spill]] }
  0xc3   : > { %9788 = vst [vmem:[#allocation68_spill] sm:$0xff] %v5373_v41  ;;  %v673_v54 = vsel %vm669_vm13, %v9791_v13, %v663_v2  ;;  %v9792_v59 = vstv %s4434_s25  ;;  %vm709_vm3 = vcmp.eq.s32.totalorder %v5322_v32, 34  ;;  %vm719_vm4 = vcmp.eq.s32.totalorder %v5322_v32, 35  ;;  %2944 = vst [vmem:[%s5028_s6] sm:$0xff] %v5373_v41  ;;  %v4187_v2 = vpop.eup %4186  ;;  %s9823_s23 = sld [smem:[#allocation34_spill]] }
  0xc4   : > { %v677_v33 = vsel %vm669_vm13, %v9792_v59, %v667_v62  ;;  %v1264_v15 = vmul.f32 0.5, %v5373_v41  ;;  %v9796_v44 = vstv %s4437_s26  ;;  %v9797_v43 = vstv %s4441_s10  ;;  %s9824_s24 = sld [smem:[#allocation19_spill]] }
  0xc5   : > { %v683_v61 = vsel %vm679_vm15, %v9796_v44, %v673_v54  ;;  %v687_v9 = vsel %vm679_vm15, %v9797_v43, %v677_v33  ;;  %vm729_vm5 = vcmp.eq.s32.totalorder %v5322_v32, 36  ;;  %v9798_v50 = vstv %s4445_s0  ;;  %s9807_s0 = sld [smem:[#allocation28_spill]] }
  0xc6   : > { %v693_v59 = vsel %vm689_vm0, %v9798_v50, %v683_v61  ;;  %v9800_v62 = vstv %s4448_s1  ;;  %vm739_vm6 = vcmp.eq.s32.totalorder %v5322_v32, 37  ;;  %vm749_vm10 = vcmp.eq.s32.totalorder %v5322_v32, 38  ;;  %s9809_s1 = sld [smem:[#allocation29_spill]] }
  0xc7   : > { %v697_v13 = vsel %vm689_vm0, %v9800_v62, %v687_v9  ;;  %v5405_v54 = vadd.f32 0.5, %v1264_v15  ;;  %v477_v33 = vmul.f32 %v4187_v2, %v5317_v29  ;;  %v9804_v44 = vstv %s4454_s12  ;;  %s9810_s12 = sld [smem:[#allocation30_spill]] }
  0xc8   : > { %v703_v43 = vsel %vm699_vm2, %v9804_v44, %v693_v59  ;;  %v9805_v41 = vstv %s9793_s27  ;;  %v9806_v50 = vstv %s9794_s15  ;;  %v9808_v62 = vstv %s9795_s16  ;;  %s5776_s25 = sld [smem:[#allocation2 + $0x11a]] }
  0xc9   : > { %9803 = vst [vmem:[#allocation69_spill] sm:$0xff] %v5405_v54  ;;  %v707_v61 = vsel %vm699_vm2, %v9805_v41, %v697_v13  ;;  %v713_v9 = vsel %vm709_vm3, %v9806_v50, %v703_v43  ;;  %vm759_vm8 = vcmp.eq.s32.totalorder %v5322_v32, 39  ;;  %v1202_v2 = vmul.f32 %v5305_v47, %v5214_v60  ;;  %s5781_s26 = sld [smem:[#allocation2 + $0x19a]] }
  0xca   : > { %v717_v15 = vsel %vm709_vm3, %v9808_v62, %v707_v61  ;;  %v1272_v59 = vmul.f32 4.0, %v5405_v54  ;;  %vm479_vm11 = vcmp.le.f32.partialorder %v477_v33, 1.0  ;;  %vm481_vm12 = vcmp.gt.f32.partialorder %v477_v33, -1.0  ;;  %s5789_s10 = sld [smem:[#allocation2 + $0x11b]] }
  0xcb   : > { %v9811_v41 = vstv %s9799_s17  ;;  %vm5432_vm13 = vmand %vm479_vm11, %vm481_vm12  ;;  %v9815_v43 = vstv %s9801_s18  ;;  %v9816_v60 = vstv %s9802_s19  ;;  %v1204_v62 = vadd.f32 %v1202_v2, %v1200_v58  ;;  %s5976_s27 = sld [smem:[#allocation2 + $0x120]] }
  0xcc   : > { %v723_v13 = vsel %vm719_vm4, %v9811_v41, %v713_v9  ;;  %v727_v61 = vsel %vm719_vm4, %v9815_v43, %v717_v15  ;;  %v1268_v33 = vmul.f32 0.5, %v5015_v14  ;;  %v1274_v47 = vfloor.f32 %v1272_v59  ;;  %vm5449_vm15 = vmand %vm485_vm9, %vm5432_vm13  ;;  %v4219_v14 = vld [vmem:[%s4388_s13 + $0x18] sm:$0xff]  ;;  %s5521_s13 = scalar_lea.vmem [#allocation6], %s9824_s24  ;;  %s5991_s15 = sld [smem:[#allocation2 + $0x1a0]] }
  0xcd   : > { %v733_v50 = vsel %vm729_vm5, %v9816_v60, %v723_v13  ;;  %v9821_v41 = vstv %s9807_s0  ;;  %v9822_v43 = vstv %s9809_s1  ;;  %vm769_vm0 = vcmp.eq.s32.totalorder %v5322_v32, 40  ;;  %vm491_vm2 = vmxor %vm5432_vm13, %vm9571_vm7  ;;  %9836 = sst [smem:[#allocation20_spill]] %s5521_s13 }
  0xce   : > { %v737_v15 = vsel %vm729_vm5, %v9821_v41, %v727_v61  ;;  %v743_v58 = vsel %vm739_vm6, %v9822_v43, %v733_v50  ;;  %v599_v2 = vsub.f32 %v4219_v14, %v5332_v16  ;;  %v9825_v59 = vstv %s9810_s12  ;;  %vm5479_vm9 = vmand %vm489_vm14, %vm491_vm2  ;;  %s6007_s16 = sld [smem:[#allocation2 + $0x121]] }
  0xcf   : > { %v747_v13 = vsel %vm739_vm6, %v9825_v59, %v737_v15  ;;  %v9826_v61 = vstv %s9812_s20  ;;  %v1206_v50 = vmul.f32 %v4185_v28, %v1204_v62  ;;  %v5475_v41 = vmax.f32 %v1274_v47, 0.0  ;;  %vm5497_vm3 = vmand %vm495_vm1, %vm5432_vm13  ;;  %s6024_s17 = sld [smem:[#allocation2 + $0x1a1]] }
  0xd0   : > { %v753_v60 = vsel %vm749_vm10, %v9826_v61, %v743_v58  ;;  %v9829_v54 = vstv %s9817_s21  ;;  %v9830_v37 = vstv %s9818_s22  ;;  %v5491_v59 = vadd.f32 0.5, %v1268_v33  ;;  %s6033_s18 = sld [smem:[#allocation2 + $0x122]] }
  0xd1   : > { %v757_v16 = vsel %vm749_vm10, %v9829_v54, %v747_v13  ;;  %v763_v15 = vsel %vm759_vm8, %v9830_v37, %v753_v60  ;;  %v563_v29 = vsel %vm5479_vm9, %v5327_v51, %v5359_v35  ;;  %v567_v37 = vsel %vm5479_vm9, %v5330_v23, %v5300_v6  ;;  %2946 = vst [vmem:[%s5028_s6 + $0x10] sm:$0xff] %v1206_v50  ;;  %s6046_s19 = sld [smem:[#allocation2 + $0x1a2]] }
  0xd2   : > { %v9833_v28 = vstv %s4760_s3  ;;  %v9834_v44 = vstv %s9823_s23  ;;  %2952 = vst [vmem:[%s5521_s13 + $0x10] sm:$0xff] %v1206_v50  ;;  %v519_v62 = vsel %vm5497_vm3, %v5320_v55, %v5345_v21  ;;  %v557_v33 = vsel %vm5497_vm3, %v5300_v6, %v5330_v23  ;;  %s5758_s3 = sld [smem:[#allocation2 + $0x199]] }
  0xd3   : > { %v767_v54 = vsel %vm759_vm8, %v9833_v28, %v757_v16  ;;  %v5517_v63 = vsel %vm769_vm0, %v9834_v44, %v763_v15  ;;  %v525_v16 = vsel %vm5497_vm3, %v5307_v34, %v5320_v55  ;;  %v5539_v58 = vsel %vm5449_vm15, %v5327_v51, %v563_v29  ;;  %9880 = sst [smem:[#allocation21_spill]] %s5991_s15 }
  0xd4   : > { %9835 = vst [vmem:[#allocation70_spill] sm:$0xff] %v5517_v63  ;;  %9837 = vst [vmem:[#allocation71_spill] sm:$0xff] %v5539_v58  ;;  %v521_v13 = vsel %vm5479_vm9, %v5307_v34, %v519_v62  ;;  %v527_v61 = vsel %vm5479_vm9, %v5325_v10, %v525_v16  ;;  %v559_v55 = vsel %vm5479_vm9, %v5300_v6, %v557_v33  ;;  %v9841_v28 = vstv %s5163_s11  ;;  %s5769_s11 = sld [smem:[#allocation2 + $0x119]] }
  0xd5   : > { %v5553_v60 = vsel %vm5449_vm15, %v5330_v23, %v567_v37  ;;  %v5558_v50 = vsel %vm5449_vm15, %v5325_v10, %v521_v13  ;;  %v5563_v34 = vsel %vm5449_vm15, %v5345_v21, %v527_v61  ;;  %v5568_v15 = vsel %vm5449_vm15, %v5330_v23, %v559_v55  ;;  %9881 = sst [smem:[#allocation22_spill]] %s6007_s16 }
  0xd6   : > { %9838 = vst [vmem:[#allocation72_spill] sm:$0xff] %v5553_v60  ;;  %9839 = vst [vmem:[#allocation73_spill] sm:$0xff] %v5568_v15  ;;  %v571_v6 = vsel %vm5497_vm3, %v5327_v51, %v5359_v35  ;;  %v577_v29 = vsub.f32 %v5335_v17, %v5568_v15  ;;  %v583_v21 = vsub.f32 %v4219_v14, %v5539_v58  ;;  %vm781_vm14 = vcmp.eq.s32.totalorder %v5558_v50, 0  ;;  %9882 = sst [smem:[#allocation24_spill]] %s6033_s18 }
  0xd7   : > { %v573_v10 = vsel %vm5479_vm9, %v5327_v51, %v571_v6  ;;  %v585_v37 = vsub.f32 %v5335_v17, %v5553_v60  ;;  %v5591_v47 = vsel %vm769_vm0, %v9841_v28, %v767_v54  ;;  %vm783_vm1 = vcmp.eq.s32.totalorder %v5563_v34, 0  ;;  %s6053_s0 = sld [smem:[#allocation2 + $0x123]] }
  0xd8   : > { %v5585_v23 = vsel %vm5449_vm15, %v5359_v35, %v573_v10  ;;  %9842 = vst [vmem:[#allocation75_spill] sm:$0xff] %v5591_v47  ;;  %v609_v17 = vmul.f32 %v5339_v20, %v583_v21  ;;  %v611_v62 = vmul.f32 %v599_v2, %v577_v29  ;;  %v786_v9 = vsel %vm781_vm14, %v4786_v19, 0.0  ;;  %s6058_s1 = sld [smem:[#allocation2 + $0x1a3]] }
  0xd9   : > { %9840 = vst [vmem:[#allocation74_spill] sm:$0xff] %v5585_v23  ;;  %v579_v51 = vsub.f32 %v4219_v14, %v5585_v23  ;;  %v587_v43 = vmul.f32 %v585_v37, %v583_v21  ;;  %v601_v44 = vmul.f32 %v599_v2, %v585_v37  ;;  %v789_v35 = vsel %vm781_vm14, %v4789_v48, 0.0  ;;  %s6065_s12 = sld [smem:[#allocation2 + $0x124]] }
  0xda   : > { %v791_v16 = vsel %vm783_vm1, %v4786_v19, 0.0  ;;  %v793_v33 = vsel %vm783_vm1, %v4789_v48, 0.0  ;;  %vm797_vm4 = vcmp.eq.s32.totalorder %v5558_v50, 1  ;;  %v613_v13 = vsub.f32 %v609_v17, %v611_v62  ;;  %s6080_s20 = sld [smem:[#allocation2 + $0x1a4]] }
  0xdb   : > { %v581_v32 = vmul.f32 %v579_v51, %v577_v29  ;;  %v597_v54 = vmul.f32 %v5339_v20, %v579_v51  ;;  %vm799_vm5 = vcmp.eq.s32.totalorder %v5563_v34, 1  ;;  %v802_v14 = vsel %vm797_vm4, %v4808_v53, %v786_v9  ;;  %s6091_s21 = sld [smem:[#allocation2 + $0x125]] }
  0xdc   : > { %v805_v2 = vsel %vm797_vm4, %v4811_v11, %v789_v35  ;;  %v807_v6 = vsel %vm799_vm5, %v4808_v53, %v791_v16  ;;  %v809_v19 = vsel %vm799_vm5, %v4811_v11, %v793_v33  ;;  %v615_v10 = vand.u32 2147483647, %v613_v13  ;;  %s6095_s22 = sld [smem:[#allocation2 + $0x1a5]] }
  0xdd   : > { %v589_v61 = vsub.f32 %v581_v32, %v587_v43  ;;  %v603_v55 = vsub.f32 %v597_v54, %v601_v44  ;;  %vm813_vm6 = vcmp.eq.s32.totalorder %v5558_v50, 2  ;;  %vm815_vm10 = vcmp.eq.s32.totalorder %v5563_v34, 2  ;;  %s6105_s23 = sld [smem:[#allocation2 + $0x126]] }
  0xde   : > { %vm829_vm8 = vcmp.eq.s32.totalorder %v5558_v50, 3  ;;  %v818_v29 = vsel %vm813_vm6, %v4839_v7, %v802_v14  ;;  %v821_v21 = vsel %vm813_vm6, %v4842_v36, %v805_v2  ;;  %v5613_v37 = vmul.f32 0.5, %v615_v10  ;;  %9886 = sst [smem:[#allocation26_spill]] %s6058_s1 }
  0xdf   : > { %v591_v48 = vand.u32 2147483647, %v589_v61  ;;  %v605_v20 = vand.u32 2147483647, %v603_v55  ;;  %v823_v28 = vsel %vm815_vm10, %v4839_v7, %v807_v6  ;;  %v825_v53 = vsel %vm815_vm10, %v4842_v36, %v809_v19  ;;  %9887 = sst [smem:[#allocation27_spill]] %s6065_s12 }
  0xe0   : > { %vm831_vm11 = vcmp.eq.s32.totalorder %v5563_v34, 3  ;;  %v834_v43 = vsel %vm829_vm8, %v4861_v27, %v818_v29  ;;  %v837_v44 = vsel %vm829_vm8, %v4864_v40, %v821_v21  ;;  %vm845_vm12 = vcmp.eq.s32.totalorder %v5558_v50, 4  ;;  %9888 = sst [smem:[#allocation28_spill]] %s6080_s20 }
  0xe1   : > { %v5618_v11 = vmul.f32 0.5, %v591_v48  ;;  %v5620_v51 = vmul.f32 0.5, %v605_v20  ;;  %v839_v17 = vsel %vm831_vm11, %v4861_v27, %v823_v28  ;;  %v841_v62 = vsel %vm831_vm11, %v4864_v40, %v825_v53  ;;  %9889 = sst [smem:[#allocation29_spill]] %s6091_s21 }
  0xe2   : > { %vm847_vm13 = vcmp.eq.s32.totalorder %v5563_v34, 4  ;;  %v850_v7 = vsel %vm845_vm12, %v4877_v31, %v834_v43  ;;  %v853_v36 = vsel %vm845_vm12, %v4880_v30, %v837_v44  ;;  %vm861_vm15 = vcmp.eq.s32.totalorder %v5558_v50, 5  ;;  %s6120_s24 = sld [smem:[#allocation2 + $0x127]] }
  0xe3   : > { %v855_v9 = vsel %vm847_vm13, %v4877_v31, %v839_v17  ;;  %v857_v35 = vsel %vm847_vm13, %v4880_v30, %v841_v62  ;;  %vm863_vm0 = vcmp.eq.s32.totalorder %v5563_v34, 5  ;;  %vm877_vm2 = vcmp.eq.s32.totalorder %v5558_v50, 6  ;;  %v9843_v17 = vld [vmem:[#allocation42_spill] sm:$0xff]  ;;  %v9844_v62 = vld [vmem:[#allocation43_spill] sm:$0xff] }
  0xe4   : > { %vm879_vm9 = vcmp.eq.s32.totalorder %v5563_v34, 6  ;;  %v866_v27 = vsel %vm861_vm15, %v4893_v1, %v850_v7  ;;  %v869_v40 = vsel %vm861_vm15, %v4896_v0, %v853_v36  ;;  %v871_v16 = vsel %vm863_vm0, %v4893_v1, %v855_v9  ;;  %v9845_v9 = vld [vmem:[#allocation44_spill] sm:$0xff] }
  0xe5   : > { %v873_v32 = vsel %vm863_vm0, %v4896_v0, %v857_v35  ;;  %v882_v31 = vsel %vm877_vm2, %v4909_v57, %v866_v27  ;;  %v885_v30 = vsel %vm877_vm2, %v4912_v52, %v869_v40  ;;  %v887_v54 = vsel %vm879_vm9, %v4909_v57, %v871_v16  ;;  %v9846_v35 = vld [vmem:[#allocation45_spill] sm:$0xff]  ;;  %v9847_v16 = vld [vmem:[#allocation46_spill] sm:$0xff] }
  0xe6   : > { %v889_v33 = vsel %vm879_vm9, %v4912_v52, %v873_v32  ;;  %vm893_vm3 = vcmp.eq.s32.totalorder %v5558_v50, 7  ;;  %vm895_vm14 = vcmp.eq.s32.totalorder %v5563_v34, 7  ;;  %vm909_vm1 = vcmp.eq.s32.totalorder %v5558_v50, 8 }
  0xe7   : > { %vm911_vm4 = vcmp.eq.s32.totalorder %v5563_v34, 8  ;;  %v898_v1 = vsel %vm893_vm3, %v4925_v46, %v882_v31  ;;  %v901_v0 = vsel %vm893_vm3, %v4928_v45, %v885_v30  ;;  %v903_v13 = vsel %vm895_vm14, %v4925_v46, %v887_v54  ;;  %v9848_v31 = vld [vmem:[#allocation47_spill] sm:$0xff] }
  0xe8   : > { %v905_v14 = vsel %vm895_vm14, %v4928_v45, %v889_v33  ;;  %v914_v57 = vsel %vm909_vm1, %v4941_v39, %v898_v1  ;;  %v917_v52 = vsel %vm909_vm1, %v4944_v26, %v901_v0  ;;  %v919_v2 = vsel %vm911_vm4, %v4941_v39, %v903_v13  ;;  %v9849_v1 = vld [vmem:[#allocation48_spill] sm:$0xff]  ;;  %v9850_v13 = vld [vmem:[#allocation49_spill] sm:$0xff]  ;;  %9891 = sst [smem:[#allocation31_spill]] %s6120_s24 }
  0xe9   : > { %v921_v61 = vsel %vm911_vm4, %v4944_v26, %v905_v14  ;;  %vm925_vm5 = vcmp.eq.s32.totalorder %v5558_v50, 9  ;;  %vm927_vm6 = vcmp.eq.s32.totalorder %v5563_v34, 9  ;;  %vm941_vm10 = vcmp.eq.s32.totalorder %v5558_v50, 10 }
  0xea   : > { %vm943_vm8 = vcmp.eq.s32.totalorder %v5563_v34, 10  ;;  %v930_v46 = vsel %vm925_vm5, %v4957_v25, %v914_v57  ;;  %v933_v45 = vsel %vm925_vm5, %v4960_v24, %v917_v52  ;;  %v935_v55 = vsel %vm927_vm6, %v4957_v25, %v919_v2  ;;  %v9851_v2 = vld [vmem:[#allocation50_spill] sm:$0xff] }
  0xeb   : > { %v937_v6 = vsel %vm927_vm6, %v4960_v24, %v921_v61  ;;  %v946_v39 = vsel %vm941_vm10, %v4973_v22, %v930_v46  ;;  %v949_v26 = vsel %vm941_vm10, %v4976_v18, %v933_v45  ;;  %v951_v19 = vsel %vm943_vm8, %v4973_v22, %v935_v55  ;;  %v9852_v46 = vld [vmem:[#allocation51_spill] sm:$0xff] }
  0xec   : > { %v953_v10 = vsel %vm943_vm8, %v4976_v18, %v937_v6  ;;  %vm957_vm11 = vcmp.eq.s32.totalorder %v5558_v50, 11  ;;  %vm959_vm12 = vcmp.eq.s32.totalorder %v5563_v34, 11  ;;  %vm973_vm13 = vcmp.eq.s32.totalorder %v5558_v50, 12 }
  0xed   : > { %vm975_vm15 = vcmp.eq.s32.totalorder %v5563_v34, 12  ;;  %v962_v25 = vsel %vm957_vm11, %v4989_v12, %v946_v39  ;;  %v965_v24 = vsel %vm957_vm11, %v4992_v8, %v949_v26  ;;  %v967_v48 = vsel %vm959_vm12, %v4989_v12, %v951_v19  ;;  %v9853_v39 = vld [vmem:[#allocation52_spill] sm:$0xff]  ;;  %v9854_v19 = vld [vmem:[#allocation53_spill] sm:$0xff] }
  0xee   : > { %v969_v20 = vsel %vm959_vm12, %v4992_v8, %v953_v10  ;;  %v978_v22 = vsel %vm973_vm13, %v5005_v5, %v962_v25  ;;  %v981_v18 = vsel %vm973_vm13, %v5008_v3, %v965_v24  ;;  %v983_v29 = vsel %vm975_vm15, %v5005_v5, %v967_v48  ;;  %v9855_v48 = vld [vmem:[#allocation54_spill] sm:$0xff] }
  0xef   : > { %v985_v21 = vsel %vm975_vm15, %v5008_v3, %v969_v20  ;;  %vm989_vm0 = vcmp.eq.s32.totalorder %v5558_v50, 13  ;;  %vm991_vm2 = vcmp.eq.s32.totalorder %v5563_v34, 13  ;;  %vm1005_vm9 = vcmp.eq.s32.totalorder %v5558_v50, 14 }
  0xf0   : > { %vm1007_vm3 = vcmp.eq.s32.totalorder %v5563_v34, 14  ;;  %v994_v12 = vsel %vm989_vm0, %v5033_v56, %v978_v22  ;;  %v997_v8 = vsel %vm989_vm0, %v5036_v38, %v981_v18  ;;  %v999_v28 = vsel %vm991_vm2, %v5033_v56, %v983_v29  ;;  %v9856_v22 = vld [vmem:[#allocation55_spill] sm:$0xff] }
  0xf1   : > { %v1001_v53 = vsel %vm991_vm2, %v5036_v38, %v985_v21  ;;  %v1010_v5 = vsel %vm1005_vm9, %v5060_v42, %v994_v12  ;;  %v1013_v3 = vsel %vm1005_vm9, %v5063_v4, %v997_v8  ;;  %v1015_v43 = vsel %vm1007_vm3, %v5060_v42, %v999_v28  ;;  %v9857_v12 = vld [vmem:[#allocation56_spill] sm:$0xff]  ;;  %v9858_v28 = vld [vmem:[#allocation57_spill] sm:$0xff] }
  0xf2   : > { %v1017_v44 = vsel %vm1007_vm3, %v5063_v4, %v1001_v53  ;;  %vm1021_vm14 = vcmp.eq.s32.totalorder %v5558_v50, 15  ;;  %vm1023_vm1 = vcmp.eq.s32.totalorder %v5563_v34, 15  ;;  %vm1037_vm4 = vcmp.eq.s32.totalorder %v5558_v50, 16 }
  0xf3   : > { %vm1039_vm5 = vcmp.eq.s32.totalorder %v5563_v34, 16  ;;  %v1026_v56 = vsel %vm1021_vm14, %v9843_v17, %v1010_v5  ;;  %v1029_v38 = vsel %vm1021_vm14, %v9844_v62, %v1013_v3  ;;  %v1031_v7 = vsel %vm1023_vm1, %v9843_v17, %v1015_v43  ;;  %v9859_v43 = vld [vmem:[#allocation58_spill] sm:$0xff] }
  0xf4   : > { %v1033_v36 = vsel %vm1023_vm1, %v9844_v62, %v1017_v44  ;;  %v1042_v42 = vsel %vm1037_vm4, %v9845_v9, %v1026_v56  ;;  %v1045_v4 = vsel %vm1037_vm4, %v9846_v35, %v1029_v38  ;;  %v1047_v27 = vsel %vm1039_vm5, %v9845_v9, %v1031_v7  ;;  %v9860_v38 = vld [vmem:[#allocation59_spill] sm:$0xff] }
  0xf5   : > { %v1049_v40 = vsel %vm1039_vm5, %v9846_v35, %v1033_v36  ;;  %vm1053_vm6 = vcmp.eq.s32.totalorder %v5558_v50, 17  ;;  %vm1055_vm10 = vcmp.eq.s32.totalorder %v5563_v34, 17  ;;  %vm1069_vm8 = vcmp.eq.s32.totalorder %v5558_v50, 18  ;;  %v9862_v36 = vld [vmem:[#allocation61_spill] sm:$0xff] }
  0xf6   : > { %vm1071_vm11 = vcmp.eq.s32.totalorder %v5563_v34, 18  ;;  %v1058_v32 = vsel %vm1053_vm6, %v9847_v16, %v1042_v42  ;;  %v1061_v30 = vsel %vm1053_vm6, %v9848_v31, %v1045_v4  ;;  %v1063_v54 = vsel %vm1055_vm10, %v9847_v16, %v1047_v27 }
  0xf7   : > { %v1065_v33 = vsel %vm1055_vm10, %v9848_v31, %v1049_v40  ;;  %v1074_v0 = vsel %vm1069_vm8, %v9849_v1, %v1058_v32  ;;  %v1077_v14 = vsel %vm1069_vm8, %v9850_v13, %v1061_v30  ;;  %v1079_v57 = vsel %vm1071_vm11, %v9849_v1, %v1063_v54  ;;  %v9867_v54 = vld [vmem:[#allocation69_spill] sm:$0xff] }
  0xf8   : > { %v1081_v52 = vsel %vm1071_vm11, %v9850_v13, %v1065_v33  ;;  %vm1085_vm12 = vcmp.eq.s32.totalorder %v5558_v50, 19  ;;  %vm1087_vm13 = vcmp.eq.s32.totalorder %v5563_v34, 19  ;;  %vm1101_vm15 = vcmp.eq.s32.totalorder %v5558_v50, 20 }
  0xf9   : > { %vm1103_vm0 = vcmp.eq.s32.totalorder %v5563_v34, 20  ;;  %v1090_v61 = vsel %vm1085_vm12, %v9851_v2, %v1074_v0  ;;  %v1093_v45 = vsel %vm1085_vm12, %v9852_v46, %v1077_v14  ;;  %v1095_v55 = vsel %vm1087_vm13, %v9851_v2, %v1079_v57 }
  0xfa   : > { %v1097_v6 = vsel %vm1087_vm13, %v9852_v46, %v1081_v52  ;;  %v1106_v26 = vsel %vm1101_vm15, %v9853_v39, %v1090_v61  ;;  %v1109_v10 = vsel %vm1101_vm15, %v9854_v19, %v1093_v45  ;;  %v1111_v25 = vsel %vm1103_vm0, %v9853_v39, %v1095_v55 }
  0xfb   : > { %v1113_v24 = vsel %vm1103_vm0, %v9854_v19, %v1097_v6  ;;  %vm1117_vm2 = vcmp.eq.s32.totalorder %v5558_v50, 21  ;;  %vm1119_vm9 = vcmp.eq.s32.totalorder %v5563_v34, 21  ;;  %vm1133_vm3 = vcmp.eq.s32.totalorder %v5558_v50, 22 }
  0xfc   : > { %vm1135_vm14 = vcmp.eq.s32.totalorder %v5563_v34, 22  ;;  %v1122_v20 = vsel %vm1117_vm2, %v9855_v48, %v1106_v26  ;;  %v1125_v18 = vsel %vm1117_vm2, %v9856_v22, %v1109_v10  ;;  %v1127_v29 = vsel %vm1119_vm9, %v9855_v48, %v1111_v25 }
  0xfd   : > { %v1129_v21 = vsel %vm1119_vm9, %v9856_v22, %v1113_v24  ;;  %v1138_v8 = vsel %vm1133_vm3, %v9857_v12, %v1122_v20  ;;  %v1141_v53 = vsel %vm1133_vm3, %v9858_v28, %v1125_v18  ;;  %v1143_v5 = vsel %vm1135_vm14, %v9857_v12, %v1127_v29 }
  0xfe   : > { %v1145_v3 = vsel %vm1135_vm14, %v9858_v28, %v1129_v21  ;;  %vm1149_vm1 = vcmp.eq.s32.totalorder %v5558_v50, 23  ;;  %vm1151_vm4 = vcmp.eq.s32.totalorder %v5563_v34, 23  ;;  %vm1165_vm5 = vcmp.eq.s32.totalorder %v5558_v50, 24  ;;  %v9865_v50 = vld [vmem:[#allocation41_spill] sm:$0xff] }
  0xff   : > { %vm1167_vm6 = vcmp.eq.s32.totalorder %v5563_v34, 24  ;;  %v1154_v44 = vsel %vm1149_vm1, %v9859_v43, %v1138_v8  ;;  %v1157_v17 = vsel %vm1149_vm1, %v5228_v49, %v1141_v53  ;;  %v1159_v56 = vsel %vm1151_vm4, %v9859_v43, %v1143_v5 }
 0x100   : > { %v1161_v62 = vsel %vm1151_vm4, %v5228_v49, %v1145_v3  ;;  %v5749_v7 = vsel %vm1165_vm5, %v9860_v38, %v1154_v44  ;;  %v5752_v9 = vsel %vm1165_vm5, %v9862_v36, %v1157_v17  ;;  %v5755_v42 = vsel %vm1167_vm6, %v9860_v38, %v1159_v56  ;;  %v9868_v38 = vld [vmem:[#allocation68_spill] sm:$0xff] }
 0x101   : > { %9861 = vst [vmem:[#allocation42_spill] sm:$0xff] %v5749_v7  ;;  %9863 = vst [vmem:[#allocation43_spill] sm:$0xff] %v5752_v9  ;;  %v1269_v35 = vmul.f32 0.5, %v9865_v50  ;;  %v5761_v34 = vsel %vm1167_vm6, %v9862_v36, %v1161_v62  ;;  %v1179_v4 = vadd.f32 %v5620_v51, %v5618_v11  ;;  %v1185_v49 = vmul.f32 %v5517_v63, %v5618_v11 }
 0x102   : > { %9864 = vst [vmem:[#allocation44_spill] sm:$0xff] %v5755_v42  ;;  %9866 = vst [vmem:[#allocation45_spill] sm:$0xff] %v5761_v34  ;;  %v1187_v27 = vmul.f32 %v5749_v7, %v5620_v51  ;;  %v1197_v40 = vmul.f32 %v5591_v47, %v5618_v11  ;;  %v1199_v16 = vmul.f32 %v5752_v9, %v5620_v51  ;;  %v1276_v32 = vsub.f32 1.0, %v5491_v59 }
 0x103   : > { %v1181_v31 = vadd.f32 %v1179_v4, %v5613_v37  ;;  %v1284_v30 = vmin.f32 %v5475_v41, 3.0  ;;  %v3900_v33 = vclamps-f32 %v9867_v54, 0.95  ;;  %v1191_v1 = vmul.f32 %v5755_v42, %v5613_v37 }
 0x104   : > { %v1203_v11 = vmul.f32 %v5761_v34, %v5613_v37  ;;  %v1278_v0 = vmul.f32 4.0, %v1276_v32  ;;  %v5787_v51 = vadd.f32 0.5, %v1269_v35  ;;  %v1189_v13 = vadd.f32 %v1187_v27, %v1185_v49 }
 0x105   : > { %4188 = vrcp.f32 %v1181_v31  ;;  %v1201_v14 = vadd.f32 %v1199_v16, %v1197_v40  ;;  %v1298_v57 = vadd.f32 0.5, %v1284_v30  ;;  %v4134_v52 = vtrunc.f32 %v1284_v30 }
 0x106   : > { %v1280_v41 = vfloor.f32 %v1278_v0  ;;  %v1370_v2 = vmul.f32 0.25, %v1284_v30  ;;  %v1277_v61 = vsub.f32 1.0, %v5787_v51  ;;  %v3902_v45 = vclamps-f32 %v5491_v59, 0.95 }
 0x107   : > { %v1300_v37 = vmul.f32 0.25, %v1298_v57  ;;  %v1193_v39 = vadd.f32 %v1191_v1, %v1189_v13  ;;  %v9484_v10 = vstv %s5769_s11  ;;  %v1205_v25 = vadd.f32 %v1203_v11, %v1201_v14 }
 0x108   : > { %v1286_v46 = vmax.f32 %v1280_v41, 0.0  ;;  %v1372_v55 = vmul.f32 2.0, %v1370_v2  ;;  %v1279_v6 = vmul.f32 4.0, %v1277_v61  ;;  %v4135_v48 = vcvt.f32.s32 %v4134_v52 }
 0x109   : > { %v5799_v26 = vsub.f32 %v3900_v33, %v1300_v37  ;;  %v1388_v19 = vmul.f32 2.0, %v1300_v37  ;;  %v3903_v29 = vclamps-f32 %v5787_v51, 0.95  ;;  %v9483_v28 = vstv %s5758_s3 }
 0x10a   : > { %v1288_v24 = vmin.f32 %v1286_v46, 3.0  ;;  %v1281_v20 = vfloor.f32 %v1279_v6  ;;  %v5805_v18 = vadd.f32 -1.0, %v1372_v55  ;;  %v9482_v5 = vstv %s5776_s25 }
 0x10b   : > { %v1312_v22 = vadd.f32 1e-05, %v5799_v26  ;;  %v5807_v59 = vadd.f32 -1.0, %v1388_v19  ;;  %v9481_v3 = vstv %s5781_s26  ;;  %v9480_v56 = vstv %s5789_s10 }
 0x10c   : > { %v1302_v21 = vadd.f32 0.5, %v1288_v24  ;;  %v4130_v12 = vtrunc.f32 %v1288_v24  ;;  %v1376_v8 = vmul.f32 0.25, %v1288_v24  ;;  %v1287_v53 = vmax.f32 %v1281_v20, 0.0 }
 0x10d   : > { %4190 = vrcp.f32 %v1312_v22  ;;  %v5821_v62 = vadd.f32 0.5, %v5805_v18  ;;  %v5825_v36 = vsub.f32 %v9868_v38, %v5807_v59  ;;  %v9474_v35 = vstv %s5791_s29 }
 0x10e   : > { %v1304_v43 = vmul.f32 0.25, %v1302_v21  ;;  %v4131_v44 = vcvt.f32.s32 %v4130_v12  ;;  %v1378_v17 = vsub.f32 1.0, %v1376_v8  ;;  %v1289_v50 = vmin.f32 %v1287_v53, 3.0 }
 0x10f   : > { %v9473_v32 = vstv %s5794_s14  ;;  %v9472_v31 = vstv %s5796_s4  ;;  %v9471_v30 = vstv %s5802_s9  ;;  %vm1324_vm10 = vcmp.ge.f32.partialorder %v5799_v26, 0.0 }
 0x110   : > { %v1306_v4 = vsub.f32 1.0, %v1304_v43  ;;  %v1342_v49 = vmul.u32 5, %v4131_v44  ;;  %v1352_v27 = vmul.u32 4, %v4131_v44  ;;  %v1380_v40 = vmul.f32 2.0, %v1378_v17  ;;  %v5877_v44 = vld [vmem:[%s5028_s6 + $0x20] sm:$0xff] }
 0x111   : > { %v1303_v16 = vadd.f32 0.5, %v1289_v50  ;;  %v4132_v11 = vtrunc.f32 %v1289_v50  ;;  %v1377_v0 = vmul.f32 0.25, %v1289_v50  ;;  %v9437_v37 = vstv %s5811_s5 }
 0x112   : > { %v4189_v54 = vpop.eup %4188  ;;  %v5831_v33 = vadd.s32 %v4135_v48, %v1342_v49  ;;  %v1354_v1 = vadd.s32 %v4135_v48, %v1352_v27  ;;  %v1392_v57 = vmul.f32 2.0, %v1306_v4  ;;  %v5835_v52 = vsub.f32 %v3902_v45, %v1306_v4 }
 0x113   : > { %v5833_v13 = vmul.f32 %v4189_v54, %v1193_v39  ;;  %v1207_v14 = vmul.f32 %v4189_v54, %v1205_v25  ;;  %v1305_v41 = vmul.f32 0.25, %v1303_v16  ;;  %v5840_v61 = vadd.f32 -1.0, %v1380_v40 }
 0x114   : > { %v5838_v2 = vadd.s32 25, %v1354_v1  ;;  %v5848_v55 = vadd.s32 5, %v5831_v33  ;;  %v5850_v6 = vadd.f32 -1.0, %v1392_v57  ;;  %v5853_v39 = vcvt.f32.s32 %v4132_v11 }
 0x115   : > { %v1265_v46 = vmul.f32 0.5, %v5833_v13  ;;  %2945 = vst [vmem:[%s5028_s6 + $0x8] sm:$0xff] %v5833_v13  ;;  %2947 = vst [vmem:[%s5028_s6 + $0x18] sm:$0xff] %v1207_v14  ;;  %v1307_v45 = vsub.f32 1.0, %v1305_v41  ;;  %v1379_v19 = vsub.f32 1.0, %v1377_v0  ;;  %v9436_v25 = vstv %s5815_s28 }
 0x116   : > { %9869 = vst [vmem:[#allocation46_spill] sm:$0xff] %v5850_v6  ;;  %2953 = vst [vmem:[%s5521_s13 + $0x18] sm:$0xff] %v1207_v14  ;;  %v9435_v24 = vstv %s5818_s7  ;;  %vm1328_vm8 = vcmp.ge.f32.partialorder %v5835_v52, 0.0  ;;  %vm1334_vm11 = vcmp.lt.f32.partialorder %v5799_v26, 0.0  ;;  %vm1458_vm12 = vcmp.eq.s32.totalorder %v5838_v2, 25  ;;  %s6131_s13 = sld [smem:[#allocation2 + $0x1a7]] }
 0x117   : > { %v5857_v48 = vadd.f32 0.5, %v1265_v46  ;;  %v1393_v20 = vmul.f32 2.0, %v1307_v45  ;;  %v5863_v22 = vadd.s32 1, %v5831_v33  ;;  %v5866_v21 = vadd.f32 -0.5, %v5840_v61 }
 0x118   : > { %v1381_v12 = vmul.f32 2.0, %v1379_v19  ;;  %v1462_v8 = vsel %vm1458_vm12, %v9484_v10, 0.0  ;;  %v5874_v43 = vadd.s32 1, %v5848_v55  ;;  %v5881_v17 = vsub.f32 %v5877_v44, %v5850_v6 }
 0x119   : > { %v1273_v53 = vmul.f32 4.0, %v5857_v48  ;;  %v5885_v50 = vsub.f32 %v3903_v29, %v1307_v45  ;;  %v1343_v49 = vmul.u32 5, %v5853_v39  ;;  %v1466_v27 = vsel %vm1458_vm12, %v9483_v28, 0.0 }
 0x11a   : > { %v4191_v4 = vpop.eup %4190  ;;  %vm1468_vm13 = vcmp.eq.s32.totalorder %v5838_v2, 26  ;;  %vm1478_vm15 = vcmp.eq.s32.totalorder %v5838_v2, 27  ;;  %v5895_v51 = vadd.f32 -1.0, %v1393_v20  ;;  %v5899_v54 = vadd.f32 -1.0, %v1381_v12 }
 0x11b   : > { %v1275_v40 = vfloor.f32 %v1273_v53  ;;  %v1315_v16 = vmul.f32 %v4191_v4, %v5835_v52  ;;  %v1472_v29 = vsel %vm1468_vm13, %v9482_v5, %v1462_v8  ;;  %v1476_v1 = vsel %vm1468_vm13, %v9481_v3, %v1466_v27  ;;  %v5939_v27 = vld [vmem:[%s5028_s6 + $0x28] sm:$0xff]  ;;  %s6112_s6 = sld [smem:[#allocation2 + $0x1a6]] }
 0x11c   : > { %9870 = vst [vmem:[#allocation47_spill] sm:$0xff] %v5895_v51  ;;  %v1482_v11 = vsel %vm1478_vm15, %v9480_v56, %v1472_v29  ;;  %vm1488_vm0 = vcmp.eq.s32.totalorder %v5838_v2, 28  ;;  %v1486_v14 = vsel %vm1478_vm15, %v9474_v35, %v1476_v1  ;;  %vm1498_vm14 = vcmp.eq.s32.totalorder %v5838_v2, 29  ;;  %9892 = sst [smem:[#allocation32_spill]] %s6131_s13 }
 0x11d   : > { %v1283_v0 = vmax.f32 %v1275_v40, 0.0  ;;  %vm1318_vm2 = vcmp.le.f32.partialorder %v1315_v16, 1.0  ;;  %vm1320_vm9 = vcmp.gt.f32.partialorder %v1315_v16, -1.0  ;;  %v1492_v41 = vsel %vm1488_vm0, %v9473_v32, %v1482_v11 }
 0x11e   : > { %vm5908_vm3 = vmand %vm1318_vm2, %vm1320_vm9  ;;  %v1496_v46 = vsel %vm1488_vm0, %v9472_v31, %v1486_v14  ;;  %vm1508_vm1 = vcmp.eq.s32.totalorder %v5838_v2, 30  ;;  %v1353_v20 = vmul.u32 4, %v5853_v39  ;;  %v1502_v12 = vsel %vm1498_vm14, %v9471_v30, %v1492_v41 }
 0x11f   : > { %vm5922_vm4 = vmand %vm1324_vm10, %vm5908_vm3  ;;  %v1285_v19 = vmin.f32 %v1283_v0, 3.0  ;;  %v1506_v8 = vsel %vm1498_vm14, %v9437_v37, %v1496_v46  ;;  %v3901_v53 = vclamps-f32 %v5857_v48, 0.95  ;;  %v5936_v4 = vadd.f32 -0.5, %v5899_v54 }
 0x120   : > { %vm1330_vm5 = vmxor %vm5908_vm3, %vm9571_vm7  ;;  %v5943_v40 = vsub.f32 %v5939_v27, %v5895_v51  ;;  %vm1518_vm6 = vcmp.eq.s32.totalorder %v5838_v2, 31  ;;  %v1512_v29 = vsel %vm1508_vm1, %v9436_v25, %v1502_v12  ;;  %v1516_v48 = vsel %vm1508_vm1, %v9435_v24, %v1506_v8 }
 0x121   : > { %vm5948_vm10 = vmand %vm1328_vm8, %vm1330_vm5  ;;  %v9469_v1 = vstv %s5870_s8  ;;  %v9438_v11 = vstv %s5887_s2  ;;  %v1299_v41 = vadd.f32 0.5, %v1285_v19  ;;  %v4136_v46 = vtrunc.f32 %v1285_v19  ;;  %9890 = sst [smem:[#allocation30_spill]] %s6112_s6 }
 0x122   : > { %vm5964_vm12 = vmand %vm1334_vm11, %vm5908_vm3  ;;  %v1402_v0 = vsel %vm5948_vm10, %v5840_v61, %v5866_v21  ;;  %v1406_v14 = vsel %vm5948_vm10, %v5821_v62, %v5805_v18  ;;  %v1371_v8 = vmul.f32 0.25, %v1285_v19  ;;  %v1522_v37 = vsel %vm1518_vm6, %v9469_v1, %v1512_v29 }
 0x123   : > { %v1358_v26 = vsel %vm5964_vm12, %v5848_v55, %v5874_v43  ;;  %v1396_v57 = vsel %vm5964_vm12, %v5805_v18, %v5821_v62  ;;  %v5989_v12 = vsel %vm5922_vm4, %v5840_v61, %v1402_v0  ;;  %v1408_v25 = vsel %vm5922_vm4, %v5821_v62, %v1406_v14 }
 0x124   : > { %9879 = vst [vmem:[#allocation48_spill] sm:$0xff] %v5989_v12  ;;  %v1398_v24 = vsel %vm5948_vm10, %v5805_v18, %v1396_v57  ;;  %v1526_v0 = vsel %vm1518_vm6, %v9438_v11, %v1516_v48  ;;  %v1360_v19 = vsel %vm5948_vm10, %v5831_v33, %v1358_v26  ;;  %v1364_v18 = vsel %vm5964_vm12, %v5831_v33, %v5848_v55 }
 0x125   : > { %v1400_v14 = vsel %vm5922_vm4, %v5821_v62, %v1398_v24  ;;  %v1410_v29 = vsel %vm5964_vm12, %v5840_v61, %v5866_v21  ;;  %vm1528_vm8 = vcmp.eq.s32.totalorder %v5838_v2, 32  ;;  %v1422_v33 = vsub.f32 %v5877_v44, %v5989_v12 }
 0x126   : > { %v1412_v48 = vsel %vm5948_vm10, %v5840_v61, %v1410_v29  ;;  %v1416_v26 = vsub.f32 %v9868_v38, %v1400_v14  ;;  %v1424_v62 = vsub.f32 %v9868_v38, %v1408_v25  ;;  %v6041_v24 = vsub.f32 %v1400_v14, %v5807_v59 }
 0x127   : > { %v6038_v55 = vsel %vm5922_vm4, %v5866_v21, %v1412_v48  ;;  %v6044_v52 = vsub.f32 %v1408_v25, %v5807_v59  ;;  %v1301_v61 = vmul.f32 0.25, %v1299_v41  ;;  %v1366_v38 = vsel %vm5948_vm10, %v5863_v22, %v1364_v18 }
 0x128   : > { %9883 = vst [vmem:[#allocation49_spill] sm:$0xff] %v6038_v55  ;;  %9884 = vst [vmem:[#allocation50_spill] sm:$0xff] %v6041_v24  ;;  %v1418_v57 = vsub.f32 %v5877_v44, %v6038_v55  ;;  %v1426_v29 = vmul.f32 %v1424_v62, %v1422_v33  ;;  %v4137_v11 = vcvt.f32.s32 %v4136_v46  ;;  %v1440_v21 = vmul.f32 %v5881_v17, %v1424_v62 }
 0x129   : > { %9885 = vst [vmem:[#allocation51_spill] sm:$0xff] %v6044_v52  ;;  %v6056_v14 = vsub.f32 %v3901_v53, %v1301_v61  ;;  %v1373_v59 = vmul.f32 2.0, %v1371_v8  ;;  %v1389_v25 = vmul.f32 2.0, %v1301_v61  ;;  %v6070_v46 = vsel %vm5922_vm4, %v5863_v22, %v1360_v19 }
 0x12a   : > { %v1420_v41 = vmul.f32 %v1418_v57, %v1416_v26  ;;  %v1436_v48 = vmul.f32 %v5825_v36, %v1418_v57  ;;  %v6063_v16 = vadd.s32 %v4137_v11, %v1343_v49  ;;  %v1355_v44 = vadd.s32 %v4137_v11, %v1353_v20 }
 0x12b   : > { %v6075_v53 = vsel %vm5922_vm4, %v5874_v43, %v1366_v38  ;;  %v1313_v8 = vadd.f32 1e-05, %v6056_v14  ;;  %v6078_v18 = vadd.f32 -1.0, %v1373_v59  ;;  %v1448_v43 = vmul.f32 %v5825_v36, %v1422_v33 }
 0x12c   : > { %v6083_v39 = vadd.s32 1, %v6063_v16  ;;  %v6086_v49 = vadd.s32 5, %v6063_v16  ;;  %v6088_v22 = vadd.s32 25, %v1355_v44  ;;  %v6093_v45 = vadd.f32 -1.0, %v1389_v25 }
 0x12d   : > { %4192 = vrcp.f32 %v1313_v8  ;;  %v1428_v20 = vsub.f32 %v1420_v41, %v1426_v29  ;;  %v1442_v11 = vsub.f32 %v1436_v48, %v1440_v21  ;;  %v6101_v62 = vadd.f32 0.5, %v6078_v18 }
 0x12e   : > { %v6098_v19 = vadd.s32 1, %v6086_v49  ;;  %v1450_v36 = vmul.f32 %v5881_v17, %v1416_v26  ;;  %v9468_v33 = vstv %s5976_s27  ;;  %v9467_v29 = vstv %s5991_s15  ;;  %s6139_s15 = sld [smem:[#allocation2 + $0x128]] }
 0x12f   : > { %v1430_v61 = vand.u32 2147483647, %v1428_v20  ;;  %v1444_v38 = vand.u32 2147483647, %v1442_v11  ;;  %v1532_v57 = vsel %vm1528_vm8, %v9468_v33, %v1522_v37  ;;  %v1536_v17 = vsel %vm1528_vm8, %v9467_v29, %v1526_v0 }
 0x130   : > { %v1452_v21 = vsub.f32 %v1448_v43, %v1450_v36  ;;  %vm1538_vm11 = vcmp.eq.s32.totalorder %v5838_v2, 33  ;;  %v9466_v26 = vstv %s6007_s16  ;;  %v6124_v37 = vsub.f32 %v5833_v13, %v6093_v45  ;;  %s6146_s16 = sld [smem:[#allocation2 + $0x1a8]] }
 0x131   : > { %v6126_v59 = vmul.f32 0.5, %v1430_v61  ;;  %v1542_v25 = vsel %vm1538_vm11, %v9466_v26, %v1532_v57  ;;  %v9465_v41 = vstv %s6024_s17  ;;  %v6133_v0 = vmul.f32 0.5, %v1444_v38 }
 0x132   : > { %v1546_v48 = vsel %vm1538_vm11, %v9465_v41, %v1536_v17  ;;  %vm1548_vm13 = vcmp.eq.s32.totalorder %v5838_v2, 34  ;;  %v9460_v44 = vstv %s6033_s18  ;;  %v9456_v43 = vstv %s6046_s19  ;;  %s6154_s18 = sld [smem:[#allocation2 + $0x100]] }
 0x133   : > { %v1552_v8 = vsel %vm1548_vm13, %v9460_v44, %v1542_v25  ;;  %vm1558_vm15 = vcmp.eq.s32.totalorder %v5838_v2, 35  ;;  %v9455_v20 = vstv %s6053_s0  ;;  %vm1325_vm0 = vcmp.ge.f32.partialorder %v6056_v14, 0.0 }
 0x134   : > { %9893 = sst [smem:[#allocation33_spill]] %s6139_s15  ;;  %v1454_v11 = vand.u32 2147483647, %v1452_v21  ;;  %v1556_v36 = vsel %vm1548_vm13, %v9456_v43, %v1546_v48  ;;  %v1562_v61 = vsel %vm1558_vm15, %v9455_v20, %v1552_v8  ;;  %v9449_v38 = vstv %s6058_s1 }
 0x135   : > { %v1566_v57 = vsel %vm1558_vm15, %v9449_v38, %v1556_v36  ;;  %vm1568_vm2 = vcmp.eq.s32.totalorder %v5838_v2, 36  ;;  %v9452_v17 = vstv %s6065_s12  ;;  %v9451_v25 = vstv %s6080_s20  ;;  %s6168_s1 = sld [smem:[#allocation2 + $0x101]] }
 0x136   : > { %9894 = sst [smem:[#allocation34_spill]] %s6146_s16  ;;  %vm1329_vm9 = vcmp.ge.f32.partialorder %v5885_v50, 0.0  ;;  %v1572_v21 = vsel %vm1568_vm2, %v9452_v17, %v1562_v61  ;;  %v1576_v48 = vsel %vm1568_vm2, %v9451_v25, %v1566_v57  ;;  %vm1578_vm3 = vcmp.eq.s32.totalorder %v5838_v2, 37 }
 0x137   : > { %v9454_v8 = vstv %s6091_s21  ;;  %vm1335_vm14 = vcmp.lt.f32.partialorder %v6056_v14, 0.0  ;;  %v9458_v38 = vstv %s6095_s22  ;;  %vm1588_vm1 = vcmp.eq.s32.totalorder %v5838_v2, 38  ;;  %s6176_s20 = sld [smem:[#allocation2 + $0x181]] }
 0x138   : > { %v1582_v36 = vsel %vm1578_vm3, %v9454_v8, %v1572_v21  ;;  %v9459_v61 = vstv %s6105_s23  ;;  %v1586_v57 = vsel %vm1578_vm3, %v9458_v38, %v1576_v48  ;;  %v9464_v17 = vstv %s6112_s6  ;;  %s6184_s21 = sld [smem:[#allocation2 + $0x102]] }
 0x139   : > { %v1592_v25 = vsel %vm1588_vm1, %v9459_v61, %v1582_v36  ;;  %vm1598_vm4 = vcmp.eq.s32.totalorder %v5838_v2, 39  ;;  %v6186_v21 = vmul.f32 0.5, %v1454_v11  ;;  %v1596_v8 = vsel %vm1588_vm1, %v9464_v17, %v1586_v57  ;;  %s6192_s12 = sld [smem:[#allocation2 + $0x182]] }
 0x13a   : > { %v9463_v20 = vstv %s6120_s24  ;;  %v9462_v43 = vstv %s6131_s13  ;;  %v4193_v48 = vpop.eup %4192  ;;  %vm1608_vm5 = vcmp.eq.s32.totalorder %v5838_v2, 40  ;;  %v9461_v61 = vstv %s6139_s15  ;;  %s6378_s15 = sld [smem:[#allocation2 + $0x106]] }
 0x13b   : > { %v1602_v38 = vsel %vm1598_vm4, %v9463_v20, %v1592_v25  ;;  %v1606_v36 = vsel %vm1598_vm4, %v9462_v43, %v1596_v8  ;;  %v1317_v44 = vmul.f32 %v4193_v48, %v5885_v50  ;;  %v9470_v57 = vstv %s6146_s16  ;;  %s6364_s16 = sld [smem:[#allocation2 + $0x186]] }
 0x13c   : > { %v6205_v11 = vsel %vm1608_vm5, %v9461_v61, %v1602_v38  ;;  %vm1620_vm6 = vcmp.eq.s32.totalorder %v6070_v46, 0  ;;  %vm1622_vm10 = vcmp.eq.s32.totalorder %v6075_v53, 0  ;;  %v6211_v25 = vstv %s6154_s18  ;;  %s6279_s18 = sld [smem:[#allocation2 + $0x183]] }
 0x13d   : > { %v6214_v8 = vstv %s5958_s30  ;;  %vm1636_vm12 = vcmp.eq.s32.totalorder %v6070_v46, 1  ;;  %vm1319_vm8 = vcmp.le.f32.partialorder %v1317_v44, 1.0  ;;  %vm1321_vm11 = vcmp.gt.f32.partialorder %v1317_v44, -1.0  ;;  %s6261_s30 = sld [smem:[#allocation2 + $0x103]] }
 0x13e   : > { %v1625_v48 = vsel %vm1620_vm6, %v6211_v25, 0.0  ;;  %v1628_v38 = vsel %vm1620_vm6, %v6214_v8, 0.0  ;;  %vm6219_vm13 = vmand %vm1319_vm8, %vm1321_vm11  ;;  %v1630_v43 = vsel %vm1622_vm10, %v6211_v25, 0.0  ;;  %v1632_v20 = vsel %vm1622_vm10, %v6214_v8, 0.0  ;;  %s6395_s13 = sld [smem:[#allocation2 + $0x107]] }
 0x13f   : > { %vm1638_vm15 = vcmp.eq.s32.totalorder %v6075_v53, 1  ;;  %v6227_v17 = vstv %s6168_s1  ;;  %vm6233_vm2 = vmand %vm1325_vm0, %vm6219_vm13  ;;  %v6241_v26 = vstv %s6176_s20  ;;  %vm1652_vm3 = vcmp.eq.s32.totalorder %v6070_v46, 2  ;;  %s6301_s1 = sld [smem:[#allocation2 + $0x184]] }
 0x140   : > { %v1641_v41 = vsel %vm1636_vm12, %v6227_v17, %v1625_v48  ;;  %v1646_v29 = vsel %vm1638_vm15, %v6227_v17, %v1630_v43  ;;  %vm1331_vm1 = vmxor %vm6219_vm13, %vm9571_vm7  ;;  %v6252_v33 = vsel %vm1608_vm5, %v9470_v57, %v1606_v36  ;;  %v1644_v1 = vsel %vm1636_vm12, %v6241_v26, %v1628_v38  ;;  %s6334_s20 = sld [smem:[#allocation2 + $0x185]] }
 0x141   : > { %9899 = vst [vmem:[#allocation52_spill] sm:$0xff] %v6252_v33  ;;  %vm1654_vm0 = vcmp.eq.s32.totalorder %v6075_v53, 2  ;;  %v6259_v48 = vstv %s6184_s21  ;;  %vm6265_vm4 = vmand %vm1329_vm9, %vm1331_vm1  ;;  %v1648_v2 = vsel %vm1638_vm15, %v6241_v26, %v1632_v20  ;;  %v6274_v57 = vstv %s6192_s12  ;;  %s6320_s12 = sld [smem:[#allocation2 + $0x104]] }
 0x142   : > { %v1657_v36 = vsel %vm1652_vm3, %v6259_v48, %v1641_v41  ;;  %v1662_v38 = vsel %vm1654_vm0, %v6259_v48, %v1646_v29  ;;  %vm6285_vm9 = vmand %vm1335_vm14, %vm6219_vm13  ;;  %v1403_v41 = vsel %vm6265_vm4, %v5899_v54, %v5936_v4  ;;  %v1407_v29 = vsel %vm6265_vm4, %v6101_v62, %v6078_v18  ;;  %s6351_s21 = sld [smem:[#allocation2 + $0x105]] }
 0x143   : > { %v1660_v20 = vsel %vm1652_vm3, %v6274_v57, %v1644_v1  ;;  %vm1668_vm5 = vcmp.eq.s32.totalorder %v6070_v46, 3  ;;  %v1359_v14 = vsel %vm6285_vm9, %v6086_v49, %v6098_v19  ;;  %v1365_v61 = vsel %vm6285_vm9, %v6063_v16, %v6086_v49  ;;  %s6405_s24 = sld [smem:[#allocation2 + $0x187]] }
 0x144   : > { %v1397_v30 = vsel %vm6285_vm9, %v6078_v18, %v6101_v62  ;;  %v6318_v1 = vsel %vm6233_vm2, %v5899_v54, %v1403_v41  ;;  %v1361_v31 = vsel %vm6265_vm4, %v6063_v16, %v1359_v14  ;;  %v1409_v32 = vsel %vm6233_vm2, %v6101_v62, %v1407_v29  ;;  %s6434_s6 = sld [smem:[#allocation2 + $0x109]] }
 0x145   : > { %9904 = vst [vmem:[#allocation53_spill] sm:$0xff] %v6318_v1  ;;  %v1399_v49 = vsel %vm6265_vm4, %v6078_v18, %v1397_v30  ;;  %v1664_v35 = vsel %vm1654_vm0, %v6274_v57, %v1648_v2  ;;  %v6339_v41 = vsel %vm6233_vm2, %v6083_v39, %v1361_v31  ;;  %v1367_v16 = vsel %vm6265_vm4, %v6083_v39, %v1365_v61 }
 0x146   : > { %v1401_v30 = vsel %vm6233_vm2, %v6101_v62, %v1399_v49  ;;  %v1411_v18 = vsel %vm6285_vm9, %v5899_v54, %v5936_v4  ;;  %v6361_v39 = vsub.f32 %v5939_v27, %v6318_v1  ;;  %v1425_v62 = vsub.f32 %v5833_v13, %v1409_v32 }
 0x147   : > { %v1413_v31 = vsel %vm6265_vm4, %v5899_v54, %v1411_v18  ;;  %v6357_v2 = vsub.f32 %v5833_v13, %v1401_v30  ;;  %v6372_v43 = vsub.f32 %v1401_v30, %v6093_v45  ;;  %v6375_v54 = vsub.f32 %v1409_v32, %v6093_v45 }
 0x148   : > { %v6369_v50 = vsel %vm6233_vm2, %v5936_v4, %v1413_v31  ;;  %vm1670_vm14 = vcmp.eq.s32.totalorder %v6075_v53, 3  ;;  %v6383_v13 = vsel %vm6233_vm2, %v6098_v19, %v1367_v16  ;;  %v6390_v29 = vmul.f32 %v1425_v62, %v6361_v39 }
 0x149   : > { %9905 = vst [vmem:[#allocation54_spill] sm:$0xff] %v6369_v50  ;;  %9906 = vst [vmem:[#allocation55_spill] sm:$0xff] %v6372_v43  ;;  %v6387_v4 = vsub.f32 %v5939_v27, %v6369_v50  ;;  %v6393_v32 = vstv %s6261_s30  ;;  %v6401_v44 = vstv %s6279_s18  ;;  %vm1684_vm6 = vcmp.eq.s32.totalorder %v6070_v46, 4  ;;  %s6418_s30 = sld [smem:[#allocation2 + $0x108]] }
 0x14a   : > { %9907 = vst [vmem:[#allocation56_spill] sm:$0xff] %v6375_v54  ;;  %v1673_v45 = vsel %vm1668_vm5, %v6393_v32, %v1657_v36  ;;  %v1678_v19 = vsel %vm1670_vm14, %v6393_v32, %v1662_v38  ;;  %v6412_v14 = vmul.f32 %v5943_v40, %v1425_v62  ;;  %v1676_v36 = vsel %vm1668_vm5, %v6401_v44, %v1660_v20  ;;  %s6428_s18 = sld [smem:[#allocation2 + $0x188]] }
 0x14b   : > { %v6409_v27 = vmul.f32 %v6387_v4, %v6357_v2  ;;  %v1680_v61 = vsel %vm1670_vm14, %v6401_v44, %v1664_v35  ;;  %vm1686_vm10 = vcmp.eq.s32.totalorder %v6075_v53, 4  ;;  %v6422_v38 = vstv %s6320_s12  ;;  %s6450_s12 = sld [smem:[#allocation2 + $0x10a]] }
 0x14c   : > { %v6425_v49 = vstv %s6301_s1  ;;  %vm1700_vm12 = vcmp.eq.s32.totalorder %v6070_v46, 5  ;;  %v1689_v16 = vsel %vm1684_vm6, %v6422_v38, %v1673_v45  ;;  %v1694_v35 = vsel %vm1686_vm10, %v6422_v38, %v1678_v19  ;;  %s6444_s1 = sld [smem:[#allocation2 + $0x189]] }
 0x14d   : > { %v1692_v30 = vsel %vm1684_vm6, %v6425_v49, %v1676_v36  ;;  %v1696_v20 = vsel %vm1686_vm10, %v6425_v49, %v1680_v61  ;;  %vm1702_vm8 = vcmp.eq.s32.totalorder %v6075_v53, 5  ;;  %v6438_v18 = vstv %s6351_s21  ;;  %s6466_s21 = sld [smem:[#allocation2 + $0x10b]] }
 0x14e   : > { %v6441_v31 = vstv %s6334_s20  ;;  %vm1716_vm11 = vcmp.eq.s32.totalorder %v6070_v46, 6  ;;  %v1705_v62 = vsel %vm1700_vm12, %v6438_v18, %v1689_v16  ;;  %v1710_v19 = vsel %vm1702_vm8, %v6438_v18, %v1694_v35  ;;  %s6460_s20 = sld [smem:[#allocation2 + $0x18a]] }
 0x14f   : > { %v1708_v45 = vsel %vm1700_vm12, %v6441_v31, %v1692_v30  ;;  %v1712_v36 = vsel %vm1702_vm8, %v6441_v31, %v1696_v20  ;;  %vm1718_vm13 = vcmp.eq.s32.totalorder %v6075_v53, 6  ;;  %v6454_v61 = vstv %s6378_s15  ;;  %s6476_s15 = sld [smem:[#allocation2 + $0x18b]] }
 0x150   : > { %v6457_v56 = vstv %s6364_s16  ;;  %vm1732_vm15 = vcmp.eq.s32.totalorder %v6070_v46, 7  ;;  %v1721_v16 = vsel %vm1716_vm11, %v6454_v61, %v1705_v62  ;;  %v1726_v35 = vsel %vm1718_vm13, %v6454_v61, %v1710_v19  ;;  %s6482_s16 = sld [smem:[#allocation2 + $0x10c]] }
 0x151   : > { %v1724_v30 = vsel %vm1716_vm11, %v6457_v56, %v1708_v45  ;;  %v1728_v20 = vsel %vm1718_vm13, %v6457_v56, %v1712_v36  ;;  %vm1734_vm2 = vcmp.eq.s32.totalorder %v6075_v53, 7  ;;  %v6470_v3 = vstv %s6395_s13  ;;  %s6498_s13 = sld [smem:[#allocation2 + $0x10d]] }
 0x152   : > { %v6473_v5 = vstv %s6405_s24  ;;  %vm1748_vm3 = vcmp.eq.s32.totalorder %v6070_v46, 8  ;;  %v1737_v62 = vsel %vm1732_vm15, %v6470_v3, %v1721_v16  ;;  %v1742_v19 = vsel %vm1734_vm2, %v6470_v3, %v1726_v35  ;;  %s6492_s24 = sld [smem:[#allocation2 + $0x18c]] }
 0x153   : > { %v1740_v45 = vsel %vm1732_vm15, %v6473_v5, %v1724_v30  ;;  %v1744_v36 = vsel %vm1734_vm2, %v6473_v5, %v1728_v20  ;;  %vm1750_vm1 = vcmp.eq.s32.totalorder %v6075_v53, 8  ;;  %v6486_v28 = vstv %s6418_s30  ;;  %s6508_s30 = sld [smem:[#allocation2 + $0x18d]] }
 0x154   : > { %v6489_v10 = vstv %s6428_s18  ;;  %vm1764_vm0 = vcmp.eq.s32.totalorder %v6070_v46, 9  ;;  %v1753_v16 = vsel %vm1748_vm3, %v6486_v28, %v1737_v62  ;;  %v1758_v35 = vsel %vm1750_vm1, %v6486_v28, %v1742_v19  ;;  %s6514_s18 = sld [smem:[#allocation2 + $0x10e]] }
 0x155   : > { %v1756_v30 = vsel %vm1748_vm3, %v6489_v10, %v1740_v45  ;;  %v1760_v20 = vsel %vm1750_vm1, %v6489_v10, %v1744_v36  ;;  %vm1766_vm4 = vcmp.eq.s32.totalorder %v6075_v53, 9  ;;  %v6502_v54 = vstv %s6434_s6  ;;  %s6524_s6 = sld [smem:[#allocation2 + $0x18e]] }
 0x156   : > { %v6505_v43 = vstv %s6444_s1  ;;  %vm1780_vm9 = vcmp.eq.s32.totalorder %v6070_v46, 10  ;;  %v1769_v62 = vsel %vm1764_vm0, %v6502_v54, %v1753_v16  ;;  %v1774_v19 = vsel %vm1766_vm4, %v6502_v54, %v1758_v35  ;;  %s6530_s1 = sld [smem:[#allocation2 + $0x10f]] }
 0x157   : > { %v1772_v45 = vsel %vm1764_vm0, %v6505_v43, %v1756_v30  ;;  %v1776_v36 = vsel %vm1766_vm4, %v6505_v43, %v1760_v20  ;;  %vm1782_vm5 = vcmp.eq.s32.totalorder %v6075_v53, 10  ;;  %v6518_v24 = vstv %s6450_s12  ;;  %s6540_s12 = sld [smem:[#allocation2 + $0x18f]] }
 0x158   : > { %v6521_v50 = vstv %s6460_s20  ;;  %vm1796_vm14 = vcmp.eq.s32.totalorder %v6070_v46, 11  ;;  %v1785_v16 = vsel %vm1780_vm9, %v6518_v24, %v1769_v62  ;;  %v1790_v35 = vsel %vm1782_vm5, %v6518_v24, %v1774_v19  ;;  %s6546_s20 = sld [smem:[#allocation2 + $0x110]] }
 0x159   : > { %v1788_v30 = vsel %vm1780_vm9, %v6521_v50, %v1772_v45  ;;  %v1792_v20 = vsel %vm1782_vm5, %v6521_v50, %v1776_v36  ;;  %vm1798_vm6 = vcmp.eq.s32.totalorder %v6075_v53, 11  ;;  %v6534_v1 = vstv %s6466_s21  ;;  %s6556_s21 = sld [smem:[#allocation2 + $0x190]] }
 0x15a   : > { %v6537_v51 = vstv %s6476_s15  ;;  %vm1812_vm10 = vcmp.eq.s32.totalorder %v6070_v46, 12  ;;  %v1801_v62 = vsel %vm1796_vm14, %v6534_v1, %v1785_v16  ;;  %v1806_v19 = vsel %vm1798_vm6, %v6534_v1, %v1790_v35  ;;  %s6562_s15 = sld [smem:[#allocation2 + $0x111]] }
 0x15b   : > { %v1804_v45 = vsel %vm1796_vm14, %v6537_v51, %v1788_v30  ;;  %v1808_v36 = vsel %vm1798_vm6, %v6537_v51, %v1792_v20  ;;  %vm1814_vm12 = vcmp.eq.s32.totalorder %v6075_v53, 12  ;;  %v6550_v52 = vstv %s6482_s16  ;;  %s6572_s16 = sld [smem:[#allocation2 + $0x191]] }
 0x15c   : > { %v6553_v55 = vstv %s6492_s24  ;;  %vm1828_vm8 = vcmp.eq.s32.totalorder %v6070_v46, 13  ;;  %v1817_v16 = vsel %vm1812_vm10, %v6550_v52, %v1801_v62  ;;  %v1822_v35 = vsel %vm1814_vm12, %v6550_v52, %v1806_v19  ;;  %s6578_s24 = sld [smem:[#allocation2 + $0x112]] }
 0x15d   : > { %v1820_v30 = vsel %vm1812_vm10, %v6553_v55, %v1804_v45  ;;  %v1824_v20 = vsel %vm1814_vm12, %v6553_v55, %v1808_v36  ;;  %vm1830_vm11 = vcmp.eq.s32.totalorder %v6075_v53, 13  ;;  %v6566_v12 = vstv %s6498_s13  ;;  %s6588_s13 = sld [smem:[#allocation2 + $0x192]] }
 0x15e   : > { %v6569_v6 = vstv %s6508_s30  ;;  %vm1844_vm13 = vcmp.eq.s32.totalorder %v6070_v46, 14  ;;  %v1833_v62 = vsel %vm1828_vm8, %v6566_v12, %v1817_v16  ;;  %v1838_v19 = vsel %vm1830_vm11, %v6566_v12, %v1822_v35  ;;  %s6594_s30 = sld [smem:[#allocation2 + $0x113]] }
 0x15f   : > { %v1836_v45 = vsel %vm1828_vm8, %v6569_v6, %v1820_v30  ;;  %v1840_v36 = vsel %vm1830_vm11, %v6569_v6, %v1824_v20  ;;  %vm1846_vm15 = vcmp.eq.s32.totalorder %v6075_v53, 14  ;;  %v6582_v34 = vstv %s6514_s18  ;;  %s6604_s18 = sld [smem:[#allocation2 + $0x193]] }
 0x160   : > { %v6585_v9 = vstv %s6524_s6  ;;  %vm1860_vm2 = vcmp.eq.s32.totalorder %v6070_v46, 15  ;;  %v1849_v16 = vsel %vm1844_vm13, %v6582_v34, %v1833_v62  ;;  %v1854_v35 = vsel %vm1846_vm15, %v6582_v34, %v1838_v19  ;;  %s6610_s6 = sld [smem:[#allocation2 + $0x114]] }
 0x161   : > { %v1852_v30 = vsel %vm1844_vm13, %v6585_v9, %v1836_v45  ;;  %v1856_v20 = vsel %vm1846_vm15, %v6585_v9, %v1840_v36  ;;  %vm1862_vm3 = vcmp.eq.s32.totalorder %v6075_v53, 15  ;;  %v6598_v47 = vstv %s6530_s1  ;;  %s6620_s1 = sld [smem:[#allocation2 + $0x194]] }
 0x162   : > { %v6601_v42 = vstv %s6540_s12  ;;  %vm1876_vm1 = vcmp.eq.s32.totalorder %v6070_v46, 16  ;;  %v1865_v62 = vsel %vm1860_vm2, %v6598_v47, %v1849_v16  ;;  %v1870_v19 = vsel %vm1862_vm3, %v6598_v47, %v1854_v35  ;;  %s6626_s12 = sld [smem:[#allocation2 + $0x115]] }
 0x163   : > { %v1868_v45 = vsel %vm1860_vm2, %v6601_v42, %v1852_v30  ;;  %v1872_v36 = vsel %vm1862_vm3, %v6601_v42, %v1856_v20  ;;  %vm1878_vm0 = vcmp.eq.s32.totalorder %v6075_v53, 16  ;;  %v6614_v7 = vstv %s6546_s20  ;;  %s6636_s20 = sld [smem:[#allocation2 + $0x195]] }
 0x164   : > { %9908 = vst [vmem:[#allocation57_spill] sm:$0xff] %v6614_v7  ;;  %v6617_v63 = vstv %s6556_s21  ;;  %vm1892_vm4 = vcmp.eq.s32.totalorder %v6070_v46, 17  ;;  %v1881_v16 = vsel %vm1876_vm1, %v6614_v7, %v1865_v62  ;;  %v1886_v35 = vsel %vm1878_vm0, %v6614_v7, %v1870_v19  ;;  %s6642_s21 = sld [smem:[#allocation2 + $0x116]] }
 0x165   : > { %9909 = vst [vmem:[#allocation58_spill] sm:$0xff] %v6617_v63  ;;  %v1884_v30 = vsel %vm1876_vm1, %v6617_v63, %v1868_v45  ;;  %v1888_v20 = vsel %vm1878_vm0, %v6617_v63, %v1872_v36  ;;  %vm1894_vm9 = vcmp.eq.s32.totalorder %v6075_v53, 17  ;;  %v6630_v23 = vstv %s6562_s15  ;;  %s6652_s15 = sld [smem:[#allocation2 + $0x196]] }
 0x166   : > { %9910 = vst [vmem:[#allocation59_spill] sm:$0xff] %v6630_v23  ;;  %v6633_v58 = vstv %s6572_s16  ;;  %vm1908_vm5 = vcmp.eq.s32.totalorder %v6070_v46, 18  ;;  %v1897_v62 = vsel %vm1892_vm4, %v6630_v23, %v1881_v16  ;;  %v1902_v19 = vsel %vm1894_vm9, %v6630_v23, %v1886_v35  ;;  %s6658_s16 = sld [smem:[#allocation2 + $0x117]] }
 0x167   : > { %9911 = vst [vmem:[#allocation61_spill] sm:$0xff] %v6633_v58  ;;  %v1900_v45 = vsel %vm1892_vm4, %v6633_v58, %v1884_v30  ;;  %v1904_v36 = vsel %vm1894_vm9, %v6633_v58, %v1888_v20  ;;  %vm1910_vm14 = vcmp.eq.s32.totalorder %v6075_v53, 18  ;;  %v6646_v60 = vstv %s6578_s24  ;;  %s6668_s24 = sld [smem:[#allocation2 + $0x197]] }
 0x168   : > { %9912 = vst [vmem:[#allocation41_spill] sm:$0xff] %v6646_v60  ;;  %v6649_v15 = vstv %s6588_s13  ;;  %vm1924_vm6 = vcmp.eq.s32.totalorder %v6070_v46, 19  ;;  %v1913_v16 = vsel %vm1908_vm5, %v6646_v60, %v1897_v62  ;;  %v1918_v35 = vsel %vm1910_vm14, %v6646_v60, %v1902_v19  ;;  %s6674_s13 = sld [smem:[#allocation2 + $0x118]] }
 0x169   : > { %9913 = vst [vmem:[#allocation69_spill] sm:$0xff] %v6649_v15  ;;  %v1916_v30 = vsel %vm1908_vm5, %v6649_v15, %v1900_v45  ;;  %v1920_v20 = vsel %vm1910_vm14, %v6649_v15, %v1904_v36  ;;  %vm1926_vm10 = vcmp.eq.s32.totalorder %v6075_v53, 19  ;;  %v6662_v58 = vstv %s6594_s30  ;;  %s6684_s30 = sld [smem:[#allocation2 + $0x198]] }
 0x16a   : > { %9914 = vst [vmem:[#allocation68_spill] sm:$0xff] %v6662_v58  ;;  %v6665_v23 = vstv %s6604_s18  ;;  %vm1940_vm12 = vcmp.eq.s32.totalorder %v6070_v46, 20  ;;  %v1929_v62 = vsel %vm1924_vm6, %v6662_v58, %v1913_v16  ;;  %v1934_v19 = vsel %vm1926_vm10, %v6662_v58, %v1918_v35  ;;  %s6987_s18 = sld [smem:[#allocation2 + $0x21a]] }
 0x16b   : > { %9915 = vst [vmem:[#allocation76_spill] sm:$0xff] %v6665_v23  ;;  %v1932_v45 = vsel %vm1924_vm6, %v6665_v23, %v1916_v30  ;;  %v1936_v36 = vsel %vm1926_vm10, %v6665_v23, %v1920_v20  ;;  %vm1942_vm8 = vcmp.eq.s32.totalorder %v6075_v53, 20  ;;  %v6678_v15 = vstv %s6610_s6  ;;  %s6993_s6 = sld [smem:[#allocation2 + $0x21b]] }
 0x16c   : > { %9916 = vst [vmem:[#allocation77_spill] sm:$0xff] %v6678_v15  ;;  %v6681_v60 = vstv %s6620_s1  ;;  %vm1956_vm11 = vcmp.eq.s32.totalorder %v6070_v46, 21  ;;  %v1945_v16 = vsel %vm1940_vm12, %v6678_v15, %v1929_v62  ;;  %v1950_v35 = vsel %vm1942_vm8, %v6678_v15, %v1934_v19  ;;  %s6999_s1 = sld [smem:[#allocation2 + $0x21c]] }
 0x16d   : > { %9917 = vst [vmem:[#allocation78_spill] sm:$0xff] %v6681_v60  ;;  %v1948_v30 = vsel %vm1940_vm12, %v6681_v60, %v1932_v45  ;;  %v1952_v20 = vsel %vm1942_vm8, %v6681_v60, %v1936_v36  ;;  %vm1958_vm13 = vcmp.eq.s32.totalorder %v6075_v53, 21  ;;  %v6692_v23 = vstv %s6626_s12  ;;  %s7005_s12 = sld [smem:[#allocation2 + $0x21d]] }
 0x16e   : > { %9918 = vst [vmem:[#allocation79_spill] sm:$0xff] %v6692_v23  ;;  %v6695_v58 = vstv %s6636_s20  ;;  %vm1972_vm15 = vcmp.eq.s32.totalorder %v6070_v46, 22  ;;  %v1961_v63 = vsel %vm1956_vm11, %v6692_v23, %v1945_v16  ;;  %v1966_v45 = vsel %vm1958_vm13, %v6692_v23, %v1950_v35  ;;  %s7011_s20 = sld [smem:[#allocation2 + $0x21e]] }
 0x16f   : > { %9919 = vst [vmem:[#allocation80_spill] sm:$0xff] %v6695_v58  ;;  %v1964_v62 = vsel %vm1956_vm11, %v6695_v58, %v1948_v30  ;;  %v1968_v19 = vsel %vm1958_vm13, %v6695_v58, %v1952_v20  ;;  %vm1974_vm2 = vcmp.eq.s32.totalorder %v6075_v53, 22  ;;  %v6704_v36 = vstv %s6642_s21  ;;  %s7017_s21 = sld [smem:[#allocation2 + $0x21f]] }
 0x170   : > { %v6707_v60 = vstv %s6652_s15  ;;  %vm1988_vm3 = vcmp.eq.s32.totalorder %v6070_v46, 23  ;;  %v1977_v15 = vsel %vm1972_vm15, %v6704_v36, %v1961_v63  ;;  %v1982_v30 = vsel %vm1974_vm2, %v6704_v36, %v1966_v45  ;;  %s7023_s15 = sld [smem:[#allocation2 + $0x220]] }
 0x171   : > { %9920 = vst [vmem:[#allocation81_spill] sm:$0xff] %v6707_v60  ;;  %v1980_v16 = vsel %vm1972_vm15, %v6707_v60, %v1964_v62  ;;  %v1984_v35 = vsel %vm1974_vm2, %v6707_v60, %v1968_v19  ;;  %vm1990_vm1 = vcmp.eq.s32.totalorder %v6075_v53, 23  ;;  %v6716_v20 = vstv %s6658_s16  ;;  %s7029_s16 = sld [smem:[#allocation2 + $0x221]] }
 0x172   : > { %9921 = vst [vmem:[#allocation82_spill] sm:$0xff] %v6716_v20  ;;  %v6719_v58 = vstv %s6668_s24  ;;  %vm2004_vm0 = vcmp.eq.s32.totalorder %v6070_v46, 24  ;;  %v1993_v23 = vsel %vm1988_vm3, %v6716_v20, %v1977_v15  ;;  %v1998_v63 = vsel %vm1990_vm1, %v6716_v20, %v1982_v30  ;;  %s7035_s24 = sld [smem:[#allocation2 + $0x222]] }
 0x173   : > { %9922 = vst [vmem:[#allocation83_spill] sm:$0xff] %v6719_v58  ;;  %v1996_v7 = vsel %vm1988_vm3, %v6719_v58, %v1980_v16  ;;  %v2000_v62 = vsel %vm1990_vm1, %v6719_v58, %v1984_v35  ;;  %vm2006_vm4 = vcmp.eq.s32.totalorder %v6075_v53, 24  ;;  %v6728_v45 = vstv %s6674_s13  ;;  %s7041_s13 = sld [smem:[#allocation2 + $0x223]] }
 0x174   : > { %9923 = vst [vmem:[#allocation84_spill] sm:$0xff] %v6728_v45  ;;  %v6731_v19 = vstv %s6684_s30  ;;  %v2018_v60 = vadd.f32 %v6133_v0, %v6126_v59  ;;  %v1437_v46 = vmul.f32 %v6124_v37, %v6387_v4  ;;  %v2009_v15 = vsel %vm2004_vm0, %v6728_v45, %v1993_v23  ;;  %s7047_s30 = sld [smem:[#allocation2 + $0x224]] }
 0x175   : > { %v6739_v16 = vsel %vm2004_vm0, %v6731_v19, %v1996_v7  ;;  %v2014_v30 = vsel %vm2006_vm4, %v6728_v45, %v1998_v63  ;;  %v2024_v53 = vmul.f32 %v6205_v11, %v6126_v59  ;;  %v2026_v58 = vmul.f32 %v2009_v15, %v6133_v0 }
 0x176   : > { %9924 = vst [vmem:[#allocation85_spill] sm:$0xff] %v6739_v16  ;;  %v2020_v35 = vadd.f32 %v2018_v60, %v6186_v21  ;;  %v2030_v20 = vmul.f32 %v2014_v30, %v6186_v21  ;;  %v6748_v4 = vsel %vm2006_vm4, %v6731_v19, %v2000_v62  ;;  %v6752_v23 = vmul.f32 %v6252_v33, %v6126_v59 }
 0x177   : > { %9925 = vst [vmem:[#allocation86_spill] sm:$0xff] %v6748_v4  ;;  %v6756_v7 = vmul.f32 %v6739_v16, %v6133_v0  ;;  %v6759_v60 = vsub.f32 %v2009_v15, %v6205_v11  ;;  %v2028_v63 = vadd.f32 %v2026_v58, %v2024_v53  ;;  %v6762_v45 = vsub.f32 %v2014_v30, %v6205_v11 }
 0x178   : > { %4194 = vrcp.f32 %v2020_v35  ;;  %v1429_v62 = vsub.f32 %v6409_v27, %v6390_v29  ;;  %v1443_v59 = vsub.f32 %v1437_v46, %v6412_v14  ;;  %v1449_v33 = vmul.f32 %v6124_v37, %v6361_v39 }
 0x179   : > { %9926 = vst [vmem:[#allocation87_spill] sm:$0xff] %v6759_v60  ;;  %9927 = vst [vmem:[#allocation88_spill] sm:$0xff] %v6762_v45  ;;  %v1451_v0 = vmul.f32 %v5943_v40, %v6357_v2  ;;  %vm1459_vm9 = vcmp.eq.s32.totalorder %v6088_v22, 25  ;;  %v2032_v58 = vadd.f32 %v2030_v20, %v2028_v63  ;;  %v9928_v15 = vstv %s5769_s11  ;;  %s9938_s11 = sld [smem:[#allocation22_spill]] }
 0x17a   : > { %v1431_v11 = vand.u32 2147483647, %v1429_v62  ;;  %v1463_v30 = vsel %vm1459_vm9, %v9928_v15, 0.0  ;;  %v9929_v35 = vstv %s5758_s3  ;;  %v1445_v27 = vand.u32 2147483647, %v1443_v59  ;;  %s9936_s3 = sld [smem:[#allocation21_spill]] }
 0x17b   : > { %v1467_v29 = vsel %vm1459_vm9, %v9929_v35, 0.0  ;;  %v1453_v14 = vsub.f32 %v1449_v33, %v1451_v0  ;;  %vm1469_vm5 = vcmp.eq.s32.totalorder %v6088_v22, 26  ;;  %vm1479_vm14 = vcmp.eq.s32.totalorder %v6088_v22, 27  ;;  %9975 = sst [smem:[#allocation21_spill]] %s6987_s18 }
 0x17c   : > { %v6778_v40 = vmul.f32 0.5, %v1431_v11  ;;  %v9930_v37 = vstv %s5776_s25  ;;  %v9931_v39 = vstv %s5781_s26  ;;  %vm1489_vm6 = vcmp.eq.s32.totalorder %v6088_v22, 28  ;;  %s9942_s25 = sld [smem:[#allocation24_spill]] }
 0x17d   : > { %v1473_v2 = vsel %vm1469_vm5, %v9930_v37, %v1463_v30  ;;  %v1477_v20 = vsel %vm1469_vm5, %v9931_v39, %v1467_v29  ;;  %v6785_v46 = vmul.f32 0.5, %v1445_v27  ;;  %v1455_v33 = vand.u32 2147483647, %v1453_v14  ;;  %s9945_s26 = sld [smem:[#allocation26_spill]] }
 0x17e   : > { %v9932_v53 = vstv %s5789_s10  ;;  %v9933_v62 = vstv %s5791_s29  ;;  %v9934_v0 = vstv %s5794_s14  ;;  %v9935_v15 = vstv %s5796_s4  ;;  %s9948_s10 = sld [smem:[#allocation27_spill]] }
 0x17f   : > { %v1483_v63 = vsel %vm1479_vm14, %v9932_v53, %v1473_v2  ;;  %v1487_v59 = vsel %vm1479_vm14, %v9933_v62, %v1477_v20  ;;  %vm1499_vm10 = vcmp.eq.s32.totalorder %v6088_v22, 29  ;;  %vm1509_vm12 = vcmp.eq.s32.totalorder %v6088_v22, 30  ;;  %s9950_s29 = sld [smem:[#allocation28_spill]] }
 0x180   : > { %v1493_v11 = vsel %vm1489_vm6, %v9934_v0, %v1483_v63  ;;  %v1497_v35 = vsel %vm1489_vm6, %v9935_v15, %v1487_v59  ;;  %v6797_v30 = vmul.f32 0.5, %v1455_v33  ;;  %v9937_v29 = vstv %s5802_s9  ;;  %s9952_s14 = sld [smem:[#allocation29_spill]] }
 0x181   : > { %v1503_v27 = vsel %vm1499_vm10, %v9937_v29, %v1493_v11  ;;  %v9939_v14 = vstv %s5811_s5  ;;  %vm1519_vm8 = vcmp.eq.s32.totalorder %v6088_v22, 31  ;;  %v9940_v2 = vstv %s5815_s28  ;;  %s9955_s4 = sld [smem:[#allocation20_spill]] }
 0x182   : > { %v1507_v37 = vsel %vm1499_vm10, %v9939_v14, %v1497_v35  ;;  %v1513_v39 = vsel %vm1509_vm12, %v9940_v2, %v1503_v27  ;;  %v9941_v20 = vstv %s5818_s7  ;;  %vm1529_vm11 = vcmp.eq.s32.totalorder %v6088_v22, 32  ;;  %s9956_s9 = sld [smem:[#allocation30_spill]] }
 0x183   : > { %v1517_v53 = vsel %vm1509_vm12, %v9941_v20, %v1507_v37  ;;  %vm1539_vm13 = vcmp.eq.s32.totalorder %v6088_v22, 33  ;;  %v9943_v33 = vstv %s5870_s8  ;;  %v9944_v62 = vstv %s5887_s2  ;;  %s9959_s5 = sld [smem:[#allocation19_spill]] }
 0x184   : > { %v1523_v63 = vsel %vm1519_vm8, %v9943_v33, %v1513_v39  ;;  %v1527_v59 = vsel %vm1519_vm8, %v9944_v62, %v1517_v53  ;;  %vm1549_vm15 = vcmp.eq.s32.totalorder %v6088_v22, 34  ;;  %vm1559_vm2 = vcmp.eq.s32.totalorder %v6088_v22, 35  ;;  %s9960_s28 = sld [smem:[#allocation31_spill]] }
 0x185   : > { %v9946_v0 = vstv %s5976_s27  ;;  %v9947_v15 = vstv %s9936_s3  ;;  %vm1569_vm3 = vcmp.eq.s32.totalorder %v6088_v22, 36  ;;  %vm1579_vm1 = vcmp.eq.s32.totalorder %v6088_v22, 37  ;;  %v6834_v33 = vpop.eup %4194  ;;  %s9962_s7 = sld [smem:[#allocation32_spill]] }
 0x186   : > { %v1533_v11 = vsel %vm1529_vm11, %v9946_v0, %v1523_v63  ;;  %v1537_v35 = vsel %vm1529_vm11, %v9947_v15, %v1527_v59  ;;  %v9949_v29 = vstv %s9938_s11  ;;  %v9951_v14 = vstv %s6024_s17  ;;  %s9965_s8 = sld [smem:[#allocation33_spill]] }
 0x187   : > { %v1543_v27 = vsel %vm1539_vm13, %v9949_v29, %v1533_v11  ;;  %v1547_v37 = vsel %vm1539_vm13, %v9951_v14, %v1537_v35  ;;  %vm1589_vm0 = vcmp.eq.s32.totalorder %v6088_v22, 38  ;;  %vm1599_vm4 = vcmp.eq.s32.totalorder %v6088_v22, 39  ;;  %s9967_s2 = sld [smem:[#allocation34_spill]] }
 0x188   : > { %v9953_v2 = vstv %s9942_s25  ;;  %v9954_v20 = vstv %s6046_s19  ;;  %vm1609_vm9 = vcmp.eq.s32.totalorder %v6088_v22, 40  ;;  %vm1621_vm5 = vcmp.eq.s32.totalorder %v6339_v41, 0  ;;  %s6957_s17 = sld [smem:[#allocation2 + $0x200]] }
 0x189   : > { %v1553_v39 = vsel %vm1549_vm15, %v9953_v2, %v1543_v27  ;;  %v1557_v53 = vsel %vm1549_vm15, %v9954_v20, %v1547_v37  ;;  %v9957_v63 = vstv %s6053_s0  ;;  %v9958_v59 = vstv %s9945_s26  ;;  %s6874_s27 = scalar_lea.vmem [#allocation7], %s9959_s5  ;;  %s6963_s19 = sld [smem:[#allocation2 + $0x201]] }
 0x18a   : > { %v1563_v62 = vsel %vm1559_vm2, %v9957_v63, %v1553_v39  ;;  %v1567_v0 = vsel %vm1559_vm2, %v9958_v59, %v1557_v53  ;;  %vm1623_vm14 = vcmp.eq.s32.totalorder %v6383_v13, 0  ;;  %v1626_v11 = vsel %vm1621_vm5, %v6211_v25, 0.0  ;;  %s6969_s0 = sld [smem:[#allocation2 + $0x202]] }
 0x18b   : > { %v2034_v15 = vmul.f32 %v6834_v33, %v2032_v58  ;;  %v9961_v35 = vstv %s9948_s10  ;;  %v9963_v27 = vstv %s9950_s29  ;;  %v1629_v37 = vsel %vm1621_vm5, %v6214_v8, 0.0  ;;  %9976 = sst [smem:[#allocation22_spill]] %s6993_s6 }
 0x18c   : > { %v1573_v29 = vsel %vm1569_vm3, %v9961_v35, %v1563_v62  ;;  %v1577_v14 = vsel %vm1569_vm3, %v9963_v27, %v1567_v0  ;;  %v9964_v2 = vstv %s9952_s14  ;;  %v9966_v20 = vstv %s6095_s22  ;;  %s6975_s22 = sld [smem:[#allocation2 + $0x203]] }
 0x18d   : > { %v1583_v39 = vsel %vm1579_vm1, %v9964_v2, %v1573_v29  ;;  %v1587_v58 = vsel %vm1579_vm1, %v9966_v20, %v1577_v14  ;;  %v1631_v53 = vsel %vm1623_vm14, %v6211_v25, 0.0  ;;  %v1633_v63 = vsel %vm1623_vm14, %v6214_v8, 0.0  ;;  %2950 = vst [vmem:[%s9955_s4] sm:$0xff] %v2034_v15  ;;  %2956 = vst [vmem:[%s6874_s27] sm:$0xff] %v2034_v15  ;;  %9979 = sst [smem:[#allocation24_spill]] %s7011_s20 }
 0x18e   : > { %v9968_v62 = vstv %s6105_s23  ;;  %v9969_v0 = vstv %s9956_s9  ;;  %vm1637_vm6 = vcmp.eq.s32.totalorder %v6339_v41, 1  ;;  %vm1639_vm10 = vcmp.eq.s32.totalorder %v6383_v13, 1  ;;  %s6981_s23 = sld [smem:[#allocation2 + $0x219]] }
 0x18f   : > { %v1593_v59 = vsel %vm1589_vm0, %v9968_v62, %v1583_v39  ;;  %v1597_v35 = vsel %vm1589_vm0, %v9969_v0, %v1587_v58  ;;  %v9970_v25 = vstv %s9960_s28  ;;  %v9971_v29 = vstv %s9962_s7  ;;  %9982 = sst [smem:[#allocation26_spill]] %s7017_s21 }
 0x190   : > { %v1603_v8 = vsel %vm1599_vm4, %v9970_v25, %v1593_v59  ;;  %v1607_v27 = vsel %vm1599_vm4, %v9971_v29, %v1597_v35  ;;  %v1642_v14 = vsel %vm1637_vm6, %v6227_v17, %v1626_v11  ;;  %v1645_v2 = vsel %vm1637_vm6, %v6241_v26, %v1629_v37  ;;  %9987 = sst [smem:[#allocation27_spill]] %s7041_s13 }
 0x191   : > { %v9972_v39 = vstv %s9965_s8  ;;  %v9973_v58 = vstv %s9967_s2  ;;  %v1647_v62 = vsel %vm1639_vm10, %v6227_v17, %v1631_v53  ;;  %v1649_v59 = vsel %vm1639_vm10, %v6241_v26, %v1633_v63  ;;  %s7053_s3 = sld [smem:[#allocation2 + $0x225]] }
 0x192   : > { %v6891_v20 = vsel %vm1609_vm9, %v9972_v39, %v1603_v8  ;;  %v6897_v15 = vsel %vm1609_vm9, %v9973_v58, %v1607_v27  ;;  %vm1653_vm12 = vcmp.eq.s32.totalorder %v6339_v41, 2  ;;  %vm1655_vm8 = vcmp.eq.s32.totalorder %v6383_v13, 2  ;;  %s7059_s11 = sld [smem:[#allocation2 + $0x226]] }
 0x193   : > { %9974 = vst [vmem:[#allocation89_spill] sm:$0xff] %v6897_v15  ;;  %vm1669_vm11 = vcmp.eq.s32.totalorder %v6339_v41, 3  ;;  %vm1671_vm13 = vcmp.eq.s32.totalorder %v6383_v13, 3  ;;  %v1658_v11 = vsel %vm1653_vm12, %v6259_v48, %v1642_v14  ;;  %v1661_v37 = vsel %vm1653_vm12, %v6274_v57, %v1645_v2  ;;  %s7065_s25 = sld [smem:[#allocation2 + $0x227]] }
 0x194   : > { %v1663_v22 = vsel %vm1655_vm8, %v6259_v48, %v1647_v62  ;;  %v1665_v0 = vsel %vm1655_vm8, %v6274_v57, %v1649_v59  ;;  %v1674_v17 = vsel %vm1669_vm11, %v6393_v32, %v1658_v11  ;;  %v1677_v26 = vsel %vm1669_vm11, %v6401_v44, %v1661_v37  ;;  %s7071_s26 = sld [smem:[#allocation2 + $0x228]] }
 0x195   : > { %v1679_v53 = vsel %vm1671_vm13, %v6393_v32, %v1663_v22  ;;  %v1681_v63 = vsel %vm1671_vm13, %v6401_v44, %v1665_v0  ;;  %vm1685_vm15 = vcmp.eq.s32.totalorder %v6339_v41, 4  ;;  %vm1687_vm2 = vcmp.eq.s32.totalorder %v6383_v13, 4  ;;  %s7079_s10 = sld [smem:[#allocation2 + $0x204]] }
 0x196   : > { %vm1701_vm3 = vcmp.eq.s32.totalorder %v6339_v41, 5  ;;  %vm1703_vm1 = vcmp.eq.s32.totalorder %v6383_v13, 5  ;;  %v1690_v48 = vsel %vm1685_vm15, %v6422_v38, %v1674_v17  ;;  %v1693_v57 = vsel %vm1685_vm15, %v6425_v49, %v1677_v26  ;;  %s9998_s29 = sld [smem:[#allocation40_spill]] }
 0x197   : > { %v1695_v35 = vsel %vm1687_vm2, %v6422_v38, %v1679_v53  ;;  %v1697_v25 = vsel %vm1687_vm2, %v6425_v49, %v1681_v63  ;;  %v1706_v32 = vsel %vm1701_vm3, %v6438_v18, %v1690_v48  ;;  %v1709_v44 = vsel %vm1701_vm3, %v6441_v31, %v1693_v57  ;;  %9992 = sst [smem:[#allocation28_spill]] %s7053_s3 }
 0x198   : > { %v1711_v8 = vsel %vm1703_vm1, %v6438_v18, %v1695_v35  ;;  %v1713_v29 = vsel %vm1703_vm1, %v6441_v31, %v1697_v25  ;;  %vm1717_vm0 = vcmp.eq.s32.totalorder %v6339_v41, 6  ;;  %vm1719_vm4 = vcmp.eq.s32.totalorder %v6383_v13, 6  ;;  %s7088_s14 = sld [smem:[#allocation2 + $0x205]] }
 0x199   : > { %vm1733_vm9 = vcmp.eq.s32.totalorder %v6339_v41, 7  ;;  %vm1735_vm5 = vcmp.eq.s32.totalorder %v6383_v13, 7  ;;  %v1722_v38 = vsel %vm1717_vm0, %v6454_v61, %v1706_v32  ;;  %v1725_v49 = vsel %vm1717_vm0, %v6457_v56, %v1709_v44  ;;  %v9978_v44 = vld [vmem:[#allocation58_spill] sm:$0xff]  ;;  %s7097_s9 = sld [smem:[#allocation2 + $0x206]] }
 0x19a   : > { %v1727_v27 = vsel %vm1719_vm4, %v6454_v61, %v1711_v8  ;;  %v1729_v14 = vsel %vm1719_vm4, %v6457_v56, %v1713_v29  ;;  %v1738_v18 = vsel %vm1733_vm9, %v6470_v3, %v1722_v38  ;;  %v1741_v31 = vsel %vm1733_vm9, %v6473_v5, %v1725_v49  ;;  %v9980_v29 = vld [vmem:[#allocation59_spill] sm:$0xff]  ;;  %v9981_v49 = vld [vmem:[#allocation61_spill] sm:$0xff]  ;;  %s7108_s5 = sld [smem:[#allocation2 + $0x207]] }
 0x19b   : > { %v1743_v2 = vsel %vm1735_vm5, %v6470_v3, %v1727_v27  ;;  %v1745_v39 = vsel %vm1735_vm5, %v6473_v5, %v1729_v14  ;;  %vm1749_vm14 = vcmp.eq.s32.totalorder %v6339_v41, 8  ;;  %vm1751_vm6 = vcmp.eq.s32.totalorder %v6383_v13, 8  ;;  %s7116_s28 = sld [smem:[#allocation2 + $0x208]] }
 0x19c   : > { %vm1765_vm10 = vcmp.eq.s32.totalorder %v6339_v41, 9  ;;  %vm1767_vm12 = vcmp.eq.s32.totalorder %v6383_v13, 9  ;;  %v1754_v61 = vsel %vm1749_vm14, %v6486_v28, %v1738_v18  ;;  %v1757_v56 = vsel %vm1749_vm14, %v6489_v10, %v1741_v31  ;;  %v9983_v31 = vld [vmem:[#allocation41_spill] sm:$0xff]  ;;  %s7120_s7 = sld [smem:[#allocation2 + $0x209]] }
 0x19d   : > { %v1759_v58 = vsel %vm1751_vm6, %v6486_v28, %v1743_v2  ;;  %v1761_v62 = vsel %vm1751_vm6, %v6489_v10, %v1745_v39  ;;  %v1770_v3 = vsel %vm1765_vm10, %v6502_v54, %v1754_v61  ;;  %v1773_v5 = vsel %vm1765_vm10, %v6505_v43, %v1757_v56  ;;  %v9984_v39 = vld [vmem:[#allocation69_spill] sm:$0xff]  ;;  %s7124_s8 = sld [smem:[#allocation2 + $0x20a]] }
 0x19e   : > { %v1775_v59 = vsel %vm1767_vm12, %v6502_v54, %v1759_v58  ;;  %v1777_v11 = vsel %vm1767_vm12, %v6505_v43, %v1761_v62  ;;  %vm1781_vm8 = vcmp.eq.s32.totalorder %v6339_v41, 10  ;;  %vm1783_vm11 = vcmp.eq.s32.totalorder %v6383_v13, 10  ;;  %v9985_v62 = vld [vmem:[#allocation68_spill] sm:$0xff]  ;;  %s7128_s2 = sld [smem:[#allocation2 + $0x20b]] }
 0x19f   : > { %vm1797_vm13 = vcmp.eq.s32.totalorder %v6339_v41, 11  ;;  %vm1799_vm15 = vcmp.eq.s32.totalorder %v6383_v13, 11  ;;  %v1786_v28 = vsel %vm1781_vm8, %v6518_v24, %v1770_v3  ;;  %v1789_v10 = vsel %vm1781_vm8, %v6521_v50, %v1773_v5  ;;  %v9986_v5 = vld [vmem:[#allocation76_spill] sm:$0xff]  ;;  %s7147_s6 = sld [smem:[#allocation2 + $0x20e]] }
 0x1a0   : > { %v1791_v37 = vsel %vm1783_vm11, %v6518_v24, %v1775_v59  ;;  %v1793_v22 = vsel %vm1783_vm11, %v6521_v50, %v1777_v11  ;;  %v1802_v43 = vsel %vm1797_vm13, %v6534_v1, %v1786_v28  ;;  %v1805_v54 = vsel %vm1797_vm13, %v6537_v51, %v1789_v10  ;;  %v9988_v10 = vld [vmem:[#allocation77_spill] sm:$0xff]  ;;  %s7153_s20 = sld [smem:[#allocation2 + $0x20f]] }
 0x1a1   : > { %v1807_v0 = vsel %vm1799_vm15, %v6534_v1, %v1791_v37  ;;  %v1809_v17 = vsel %vm1799_vm15, %v6537_v51, %v1793_v22  ;;  %vm1813_vm2 = vcmp.eq.s32.totalorder %v6339_v41, 12  ;;  %vm1815_vm3 = vcmp.eq.s32.totalorder %v6383_v13, 12  ;;  %v9989_v22 = vld [vmem:[#allocation78_spill] sm:$0xff]  ;;  %s7159_s21 = sld [smem:[#allocation2 + $0x210]] }
 0x1a2   : > { %vm1829_vm1 = vcmp.eq.s32.totalorder %v6339_v41, 13  ;;  %vm1831_vm0 = vcmp.eq.s32.totalorder %v6383_v13, 13  ;;  %v1818_v24 = vsel %vm1813_vm2, %v6550_v52, %v1802_v43  ;;  %v1821_v50 = vsel %vm1813_vm2, %v6553_v55, %v1805_v54  ;;  %s7167_s13 = sld [smem:[#allocation2 + $0x211]] }
 0x1a3   : > { %v1823_v1 = vsel %vm1815_vm3, %v6550_v52, %v1807_v0  ;;  %v1825_v51 = vsel %vm1815_vm3, %v6553_v55, %v1809_v17  ;;  %v1834_v26 = vsel %vm1829_vm1, %v6566_v12, %v1818_v24  ;;  %v1837_v53 = vsel %vm1829_vm1, %v6569_v6, %v1821_v50  ;;  %v9990_v17 = vld [vmem:[#allocation79_spill] sm:$0xff]  ;;  %v9991_v50 = vld [vmem:[#allocation80_spill] sm:$0xff]  ;;  %s7176_s3 = sld [smem:[#allocation2 + $0x212]] }
 0x1a4   : > { %v1839_v63 = vsel %vm1831_vm0, %v6566_v12, %v1823_v1  ;;  %v1841_v48 = vsel %vm1831_vm0, %v6569_v6, %v1825_v51  ;;  %vm1845_vm4 = vcmp.eq.s32.totalorder %v6339_v41, 14  ;;  %vm1847_vm9 = vcmp.eq.s32.totalorder %v6383_v13, 14 }
 0x1a5   : > { %vm1861_vm5 = vcmp.eq.s32.totalorder %v6339_v41, 15  ;;  %vm1863_vm14 = vcmp.eq.s32.totalorder %v6383_v13, 15  ;;  %v1850_v55 = vsel %vm1845_vm4, %v6582_v34, %v1834_v26  ;;  %v1853_v52 = vsel %vm1845_vm4, %v6585_v9, %v1837_v53 }
 0x1a6   : > { %v1855_v12 = vsel %vm1847_vm9, %v6582_v34, %v1839_v63  ;;  %v1857_v6 = vsel %vm1847_vm9, %v6585_v9, %v1841_v48  ;;  %v1866_v57 = vsel %vm1861_vm5, %v6598_v47, %v1850_v55  ;;  %v1869_v35 = vsel %vm1861_vm5, %v6601_v42, %v1853_v52  ;;  %v9977_v9 = vld [vmem:[#allocation57_spill] sm:$0xff] }
 0x1a7   : > { %v1871_v25 = vsel %vm1863_vm14, %v6598_v47, %v1855_v12  ;;  %v1873_v32 = vsel %vm1863_vm14, %v6601_v42, %v1857_v6  ;;  %vm1877_vm6 = vcmp.eq.s32.totalorder %v6339_v41, 16  ;;  %vm1879_vm10 = vcmp.eq.s32.totalorder %v6383_v13, 16  ;;  %v9993_v63 = vld [vmem:[#allocation81_spill] sm:$0xff]  ;;  %v9994_v12 = vld [vmem:[#allocation82_spill] sm:$0xff] }
 0x1a8   : > { %vm1893_vm12 = vcmp.eq.s32.totalorder %v6339_v41, 17  ;;  %vm1895_vm8 = vcmp.eq.s32.totalorder %v6383_v13, 17  ;;  %v1882_v34 = vsel %vm1877_vm6, %v9977_v9, %v1866_v57  ;;  %v1885_v8 = vsel %vm1877_vm6, %v9978_v44, %v1869_v35  ;;  %v9995_v57 = vld [vmem:[#allocation83_spill] sm:$0xff] }
 0x1a9   : > { %v1887_v47 = vsel %vm1879_vm10, %v9977_v9, %v1871_v25  ;;  %v1889_v42 = vsel %vm1879_vm10, %v9978_v44, %v1873_v32  ;;  %v1898_v38 = vsel %vm1893_vm12, %v9980_v29, %v1882_v34  ;;  %v1901_v27 = vsel %vm1893_vm12, %v9981_v49, %v1885_v8  ;;  %v9996_v44 = vld [vmem:[#allocation84_spill] sm:$0xff] }
 0x1aa   : > { %v1903_v14 = vsel %vm1895_vm8, %v9980_v29, %v1887_v47  ;;  %v1905_v18 = vsel %vm1895_vm8, %v9981_v49, %v1889_v42  ;;  %vm1909_vm11 = vcmp.eq.s32.totalorder %v6339_v41, 18  ;;  %vm1911_vm13 = vcmp.eq.s32.totalorder %v6383_v13, 18 }
 0x1ab   : > { %vm1925_vm15 = vcmp.eq.s32.totalorder %v6339_v41, 19  ;;  %vm1927_vm2 = vcmp.eq.s32.totalorder %v6383_v13, 19  ;;  %v1914_v2 = vsel %vm1909_vm11, %v9983_v31, %v1898_v38  ;;  %v1917_v61 = vsel %vm1909_vm11, %v9984_v39, %v1901_v27 }
 0x1ac   : > { %v1919_v56 = vsel %vm1911_vm13, %v9983_v31, %v1903_v14  ;;  %v1921_v58 = vsel %vm1911_vm13, %v9984_v39, %v1905_v18  ;;  %v1930_v3 = vsel %vm1925_vm15, %v9985_v62, %v1914_v2  ;;  %v1933_v59 = vsel %vm1925_vm15, %v9986_v5, %v1917_v61  ;;  %v7113_v18 = vld [vmem:[%s9998_s29 + $0x10] sm:$0xff]  ;;  %s7135_s29 = sld [smem:[#allocation2 + $0x20c]] }
 0x1ad   : > { %v1935_v11 = vsel %vm1927_vm2, %v9985_v62, %v1919_v56  ;;  %v1937_v28 = vsel %vm1927_vm2, %v9986_v5, %v1921_v58  ;;  %vm1941_vm3 = vcmp.eq.s32.totalorder %v6339_v41, 20  ;;  %vm1943_vm1 = vcmp.eq.s32.totalorder %v6383_v13, 20 }
 0x1ae   : > { %vm1957_vm0 = vcmp.eq.s32.totalorder %v6339_v41, 21  ;;  %vm1959_vm4 = vcmp.eq.s32.totalorder %v6383_v13, 21  ;;  %v1946_v37 = vsel %vm1941_vm3, %v9988_v10, %v1930_v3  ;;  %v1949_v43 = vsel %vm1941_vm3, %v9989_v22, %v1933_v59 }
 0x1af   : > { %v1951_v54 = vsel %vm1943_vm1, %v9988_v10, %v1935_v11  ;;  %v1953_v0 = vsel %vm1943_vm1, %v9989_v22, %v1937_v28  ;;  %v1962_v24 = vsel %vm1957_vm0, %v9990_v17, %v1946_v37  ;;  %v1965_v1 = vsel %vm1957_vm0, %v9991_v50, %v1949_v43 }
 0x1b0   : > { %v1967_v51 = vsel %vm1959_vm4, %v9990_v17, %v1951_v54  ;;  %v1969_v26 = vsel %vm1959_vm4, %v9991_v50, %v1953_v0  ;;  %vm1973_vm9 = vcmp.eq.s32.totalorder %v6339_v41, 22  ;;  %vm1975_vm5 = vcmp.eq.s32.totalorder %v6383_v13, 22 }
 0x1b1   : > { %vm1989_vm14 = vcmp.eq.s32.totalorder %v6339_v41, 23  ;;  %vm1991_vm6 = vcmp.eq.s32.totalorder %v6383_v13, 23  ;;  %v1978_v53 = vsel %vm1973_vm9, %v6704_v36, %v1962_v24  ;;  %v1981_v48 = vsel %vm1973_vm9, %v9993_v63, %v1965_v1 }
 0x1b2   : > { %v1983_v55 = vsel %vm1975_vm5, %v6704_v36, %v1967_v51  ;;  %v1985_v52 = vsel %vm1975_vm5, %v9993_v63, %v1969_v26  ;;  %v1994_v6 = vsel %vm1989_vm14, %v9994_v12, %v1978_v53  ;;  %v1997_v35 = vsel %vm1989_vm14, %v9995_v57, %v1981_v48 }
 0x1b3   : > { %v1999_v25 = vsel %vm1991_vm6, %v9994_v12, %v1983_v55  ;;  %v2001_v32 = vsel %vm1991_vm6, %v9995_v57, %v1985_v52  ;;  %vm2005_vm10 = vcmp.eq.s32.totalorder %v6339_v41, 24  ;;  %vm2007_vm12 = vcmp.eq.s32.totalorder %v6383_v13, 24 }
 0x1b4   : > { %v2019_v36 = vadd.f32 %v6785_v46, %v6778_v40  ;;  %v2025_v9 = vmul.f32 %v6891_v20, %v6778_v40  ;;  %v2042_v34 = vmul.f32 %v6748_v4, %v6186_v21  ;;  %v2010_v8 = vsel %vm2005_vm10, %v9996_v44, %v1994_v6 }
 0x1b5   : > { %v7085_v47 = vsel %vm2005_vm10, %v6731_v19, %v1997_v35  ;;  %v2015_v41 = vsel %vm2007_vm12, %v9996_v44, %v1999_v25  ;;  %v7091_v13 = vsel %vm2007_vm12, %v6731_v19, %v2001_v32  ;;  %v2027_v29 = vmul.f32 %v2010_v8, %v6785_v46 }
 0x1b6   : > { %9997 = vst [vmem:[#allocation57_spill] sm:$0xff] %v7085_v47  ;;  %9999 = vst [vmem:[#allocation58_spill] sm:$0xff] %v7091_v13  ;;  %v2021_v42 = vadd.f32 %v2019_v36, %v6797_v30  ;;  %v2037_v21 = vmul.f32 %v6897_v15, %v6778_v40  ;;  %v2031_v38 = vmul.f32 %v2015_v41, %v6797_v30  ;;  %v7165_v53 = vstv %s6957_s17  ;;  %s7190_s17 = sld [smem:[#allocation2 + $0x213]] }
 0x1b7   : > { %v2039_v49 = vmul.f32 %v7085_v47, %v6785_v46  ;;  %v7103_v27 = vsub.f32 %v2010_v8, %v6891_v20  ;;  %v7106_v19 = vsub.f32 %v2015_v41, %v6891_v20  ;;  %v2029_v14 = vadd.f32 %v2027_v29, %v2025_v9 }
 0x1b8   : > { %4196 = vrcp.f32 %v2021_v42  ;;  %v2040_v40 = vadd.f32 %v6756_v7, %v6752_v23  ;;  %v2104_v46 = vmul.f32 0.5, %v7113_v18  ;;  %v2043_v31 = vmul.f32 %v7091_v13, %v6797_v30 }
 0x1b9   : > { %10000 = vst [vmem:[#allocation59_spill] sm:$0xff] %v7103_v27  ;;  %10001 = vst [vmem:[#allocation61_spill] sm:$0xff] %v7106_v19  ;;  %v2041_v20 = vadd.f32 %v2039_v49, %v2037_v21  ;;  %v9555_v23 = vstv %s6981_s23  ;;  %v9557_v7 = vstv %s6987_s18  ;;  %v2033_v61 = vadd.f32 %v2031_v38, %v2029_v14  ;;  %s7140_s18 = sld [smem:[#allocation2 + $0x20d]] }
 0x1ba   : > { %v2044_v2 = vadd.f32 %v2042_v34, %v2040_v40  ;;  %v7122_v39 = vadd.f32 0.5, %v2104_v46  ;;  %v7171_v55 = vstv %s6963_s19  ;;  %v7174_v52 = vstv %s6969_s0  ;;  %s7195_s19 = sld [smem:[#allocation2 + $0x214]] }
 0x1bb   : > { %v2045_v62 = vadd.f32 %v2043_v31, %v2041_v20  ;;  %v7179_v12 = vstv %s6975_s22  ;;  %v7182_v6 = vstv %s7079_s10  ;;  %v7185_v57 = vstv %s7088_s14  ;;  %s7204_s0 = sld [smem:[#allocation2 + $0x215]] }
 0x1bc   : > { %v7131_v30 = vmul.f32 %v6834_v33, %v2044_v2  ;;  %v2112_v56 = vmul.f32 4.0, %v7122_v39  ;;  %v3996_v28 = vclamps-f32 %v7122_v39, 0.95  ;;  %v7188_v35 = vstv %s7097_s9  ;;  %s7217_s22 = sld [smem:[#allocation2 + $0x216]] }
 0x1bd   : > { %v7193_v9 = vstv %s7108_s5  ;;  %v7199_v41 = vstv %s7116_s28  ;;  %v7202_v42 = vstv %s7120_s7  ;;  %v7209_v40 = vstv %s7124_s8  ;;  %s7226_s10 = sld [smem:[#allocation2 + $0x217]] }
 0x1be   : > { %v2108_v11 = vmul.f32 0.5, %v7131_v30  ;;  %2954 = vst [vmem:[%s9955_s4 + $0x20] sm:$0xff] %v7131_v30  ;;  %v2114_v33 = vfloor.f32 %v2112_v56  ;;  %v7212_v46 = vstv %s7128_s2  ;;  %v7215_v31 = vstv %s7135_s29  ;;  %s7240_s29 = sld [smem:[#allocation2 + $0x218]] }
 0x1bf   : > { %v7229_v56 = vstv %s7140_s18  ;;  %s7255_s18 = sld [smem:[#allocation2 + $0x299]]  ;;  %v10022_v4 = vstv %s7035_s24 }
 0x1c0   : > { %v7155_v0 = vadd.f32 0.5, %v2108_v11  ;;  %v2122_v17 = vmax.f32 %v2114_v33, 0.0  ;;  %v7235_v11 = vstv %s7153_s20  ;;  %v7238_v33 = vstv %s7159_s21  ;;  %s7269_s20 = sld [smem:[#allocation2 + $0x29b]] }
 0x1c1   : > { %s10003_s21 = sld [smem:[#allocation21_spill]] }
 0x1c2   : > { %v2116_v63 = vsub.f32 1.0, %v7155_v0  ;;  %v2124_v48 = vmin.f32 %v2122_v17, 3.0  ;;  %v3998_v44 = vclamps-f32 %v7155_v0, 0.95  ;;  %v7283_v54 = vstv %s7217_s22  ;;  %s10008_s14 = sld [smem:[#allocation26_spill]] }
 0x1c3   : > { %v7286_v37 = vstv %s7226_s10  ;;  %s10018_s9 = sld [smem:[#allocation27_spill]] }
 0x1c4   : > { %v2118_v25 = vmul.f32 4.0, %v2116_v63  ;;  %v2138_v32 = vadd.f32 0.5, %v2124_v48  ;;  %v2210_v36 = vmul.f32 0.25, %v2124_v48  ;;  %v4142_v8 = vtrunc.f32 %v2124_v48  ;;  %s10027_s5 = sld [smem:[#allocation28_spill]] }
 0x1c5   : > { %v4197_v34 = vpop.eup %4196  ;;  %v7289_v10 = vstv %s7240_s29  ;;  %s7696_s28 = sld [smem:[#allocation2 + $0x29c]] }
 0x1c6   : > { %v2035_v29 = vmul.f32 %v4197_v34, %v2033_v61  ;;  %v2120_v21 = vfloor.f32 %v2118_v25  ;;  %v7206_v38 = vmul.f32 %v4197_v34, %v2045_v62  ;;  %v2140_v49 = vmul.f32 0.25, %v2138_v32  ;;  %s7714_s7 = sld [smem:[#allocation2 + $0x29d]] }
 0x1c7   : > { %v2212_v14 = vmul.f32 2.0, %v2210_v36  ;;  %v7232_v62 = vstv %s7147_s6  ;;  %v4143_v48 = vcvt.f32.s32 %v4142_v8  ;;  %v7250_v36 = vstv %s7167_s13  ;;  %s7258_s6 = sld [smem:[#allocation2 + $0x29a]] }
 0x1c8   : > { %2951 = vst [vmem:[%s9955_s4 + $0x8] sm:$0xff] %v2035_v29  ;;  %v2109_v20 = vmul.f32 0.5, %v7206_v38  ;;  %2955 = vst [vmem:[%s9955_s4 + $0x28] sm:$0xff] %v7206_v38  ;;  %v2126_v2 = vmax.f32 %v2120_v21, 0.0  ;;  %v7224_v39 = vsub.f32 %v3996_v28, %v2140_v49  ;;  %v2228_v61 = vmul.f32 2.0, %v2140_v49  ;;  %s10002_s4 = sld [smem:[#allocation40_spill]] }
 0x1c9   : > { %2957 = vst [vmem:[%s6874_s27 + $0x8] sm:$0xff] %v2035_v29  ;;  %v7245_v25 = vadd.f32 -1.0, %v2212_v14  ;;  %v7253_v34 = vstv %s7176_s3  ;;  %v7261_v14 = vstv %s7190_s17  ;;  %s10005_s13 = sld [smem:[#allocation22_spill]] }
 0x1ca   : > { %v7242_v17 = vadd.f32 0.5, %v2109_v20  ;;  %v2128_v63 = vmin.f32 %v2126_v2, 3.0  ;;  %v2152_v28 = vadd.f32 1e-05, %v7224_v39  ;;  %v7247_v32 = vadd.f32 -1.0, %v2228_v61  ;;  %s10006_s3 = sld [smem:[#allocation24_spill]] }
 0x1cb   : > { %v7264_v20 = vstv %s7195_s19  ;;  %v7267_v2 = vstv %s7204_s0  ;;  %vm2164_vm8 = vcmp.ge.f32.partialorder %v7224_v39, 0.0  ;;  %vm2174_vm13 = vcmp.lt.f32.partialorder %v7224_v39, 0.0  ;;  %s7764_s8 = sld [smem:[#allocation2 + $0x280]] }
 0x1cc   : > { %v2117_v29 = vsub.f32 1.0, %v7242_v17  ;;  %v2142_v21 = vadd.f32 0.5, %v2128_v63  ;;  %4198 = vrcp.f32 %v2152_v28  ;;  %v4138_v49 = vtrunc.f32 %v2128_v63  ;;  %s7772_s2 = sld [smem:[#allocation2 + $0x29e]] }
 0x1cd   : > { %v2216_v8 = vmul.f32 0.25, %v2128_v63  ;;  %v7276_v63 = vadd.f32 0.5, %v7245_v25  ;;  %v7280_v24 = vsub.f32 %v7113_v18, %v7247_v32  ;;  %s7783_s17 = sld [smem:[#allocation2 + $0x29f]] }
 0x1ce   : > { %v2119_v61 = vmul.f32 4.0, %v2117_v29  ;;  %v2144_v26 = vmul.f32 0.25, %v2142_v21  ;;  %v4139_v51 = vcvt.f32.s32 %v4138_v49  ;;  %v7272_v1 = vld [vmem:[%s10002_s4 + $0x18] sm:$0xff]  ;;  %s7792_s19 = sld [smem:[#allocation2 + $0x2a0]] }
 0x1cf   : > { %v2105_v28 = vmul.f32 0.5, %v7272_v1  ;;  %v2218_v50 = vsub.f32 1.0, %v2216_v8  ;;  %s7804_s0 = sld [smem:[#allocation2 + $0x2a1]] }
 0x1d0   : > { %v2121_v43 = vfloor.f32 %v2119_v61  ;;  %v2146_v22 = vsub.f32 1.0, %v2144_v26  ;;  %v2182_v29 = vmul.u32 5, %v4139_v51  ;;  %v2192_v21 = vmul.u32 4, %v4139_v51  ;;  %s7810_s22 = sld [smem:[#allocation2 + $0x2a2]] }
 0x1d1   : > { %v2220_v49 = vmul.f32 2.0, %v2218_v50  ;;  %v7291_v8 = vadd.f32 0.5, %v2105_v28  ;;  %s7825_s10 = sld [smem:[#allocation2 + $0x2a3]] }
 0x1d2   : > { %v7293_v59 = vadd.s32 %v4143_v48, %v2182_v29  ;;  %v2194_v5 = vadd.s32 %v4143_v48, %v2192_v21  ;;  %v2232_v3 = vmul.f32 2.0, %v2146_v22  ;;  %v2150_v26 = vsub.f32 %v3998_v44, %v2146_v22  ;;  %s7833_s29 = sld [smem:[#allocation2 + $0x2a4]] }
 0x1d3   : > { %v7299_v50 = vadd.f32 -1.0, %v2220_v49  ;;  %v2113_v51 = vmul.f32 4.0, %v7291_v8  ;;  %v2127_v48 = vmax.f32 %v2121_v43, 0.0  ;;  %s7842_s4 = sld [smem:[#allocation2 + $0x2a5]] }
 0x1d4   : > { %v7304_v28 = vadd.s32 5, %v7293_v59  ;;  %v7306_v29 = vadd.s32 25, %v2194_v5  ;;  %vm2168_vm11 = vcmp.ge.f32.partialorder %v2150_v26, 0.0  ;;  %v7309_v58 = vadd.f32 -1.0, %v2232_v3 }
 0x1d5   : > { %v7315_v44 = vadd.s32 1, %v7293_v59  ;;  %v7321_v5 = vadd.f32 -0.5, %v7299_v50  ;;  %v2115_v43 = vfloor.f32 %v2113_v51  ;;  %v2129_v21 = vmin.f32 %v2127_v48, 3.0 }
 0x1d6   : > { %10004 = vst [vmem:[#allocation41_spill] sm:$0xff] %v7309_v58  ;;  %vm2298_vm15 = vcmp.eq.s32.totalorder %v7306_v29, 25  ;;  %vm9561_vm2 = vcmp.eq.s32.totalorder %v7306_v29, 26  ;;  %vm9560_vm3 = vcmp.eq.s32.totalorder %v7306_v29, 27  ;;  %vm9562_vm1 = vcmp.eq.s32.totalorder %v7306_v29, 28 }
 0x1d7   : > { %v2302_v3 = vsel %vm2298_vm15, %v9555_v23, 0.0  ;;  %v2190_v49 = vadd.s32 1, %v7304_v28  ;;  %vm9566_vm0 = vcmp.eq.s32.totalorder %v7306_v29, 29  ;;  %v7336_v22 = vsub.f32 %v7131_v30, %v7309_v58 }
 0x1d8   : > { %v2312_v0 = vsel %vm9561_vm2, %v9557_v7, %v2302_v3  ;;  %v10007_v23 = vstv %s10005_s13  ;;  %vm2348_vm4 = vcmp.eq.s32.totalorder %v7306_v29, 30  ;;  %vm9567_vm9 = vcmp.eq.s32.totalorder %v7306_v29, 31 }
 0x1d9   : > { %v4199_v61 = vpop.eup %4198  ;;  %v2322_v13 = vsel %vm9560_vm3, %v10007_v23, %v2312_v0  ;;  %v10009_v3 = vstv %s6999_s1  ;;  %vm9568_vm5 = vcmp.eq.s32.totalorder %v7306_v29, 32  ;;  %vm2378_vm14 = vcmp.eq.s32.totalorder %v7306_v29, 33  ;;  %10051 = sst [smem:[#allocation29_spill]] %s7842_s4 }
 0x1da   : > { %v2155_v51 = vmul.f32 %v4199_v61, %v2150_v26  ;;  %v2332_v48 = vsel %vm9562_vm1, %v10009_v3, %v2322_v13  ;;  %v10010_v7 = vstv %s7005_s12  ;;  %vm2388_vm6 = vcmp.eq.s32.totalorder %v7306_v29, 34 }
 0x1db   : > { %v2342_v58 = vsel %vm9566_vm0, %v10010_v7, %v2332_v48  ;;  %vm2398_vm10 = vcmp.eq.s32.totalorder %v7306_v29, 35  ;;  %vm9632_vm12 = vcmp.eq.s32.totalorder %v7306_v29, 36  ;;  %v10011_v23 = vstv %s10006_s3 }
 0x1dc   : > { %vm2158_vm3 = vcmp.le.f32.partialorder %v2155_v51, 1.0  ;;  %vm2160_vm2 = vcmp.gt.f32.partialorder %v2155_v51, -1.0  ;;  %v2352_v13 = vsel %vm2348_vm4, %v10011_v23, %v2342_v58  ;;  %v2123_v61 = vmax.f32 %v2115_v43, 0.0 }
 0x1dd   : > { %vm7361_vm1 = vmand %vm2158_vm3, %vm2160_vm2  ;;  %v10014_v3 = vstv %s10008_s14  ;;  %v2143_v48 = vadd.f32 0.5, %v2129_v21  ;;  %v4140_v47 = vtrunc.f32 %v2129_v21  ;;  %v7369_v15 = vmul.f32 0.25, %v2129_v21 }
 0x1de   : > { %v2362_v7 = vsel %vm9567_vm9, %v10014_v3, %v2352_v13  ;;  %vm7375_vm0 = vmand %vm2164_vm8, %vm7361_vm1  ;;  %v10017_v43 = vstv %s7023_s15  ;;  %vm9628_vm2 = vcmp.eq.s32.totalorder %v7306_v29, 37  ;;  %vm9576_vm3 = vcmp.eq.s32.totalorder %v7306_v29, 38 }
 0x1df   : > { %v2372_v51 = vsel %vm9568_vm5, %v10017_v43, %v2362_v7  ;;  %v7385_v23 = vmin.f32 %v2123_v61, 3.0  ;;  %vm2170_vm9 = vmxor %vm7361_vm1, %vm9571_vm7  ;;  %v10019_v21 = vstv %s7029_s16  ;;  %vm9574_vm8 = vcmp.eq.s32.totalorder %v7306_v29, 39 }
 0x1e0   : > { %v2382_v13 = vsel %vm2378_vm14, %v10019_v21, %v2372_v51  ;;  %v7395_v3 = vmul.f32 0.25, %v2143_v48  ;;  %v7397_v7 = vcvt.f32.s32 %v4140_v47  ;;  %vm7401_vm5 = vmand %vm2168_vm11, %vm2170_vm9  ;;  %vm9575_vm7 = vcmp.eq.s32.totalorder %v7306_v29, 40 }
 0x1e1   : > { %v2392_v16 = vsel %vm2388_vm6, %v10022_v4, %v2382_v13  ;;  %v7411_v51 = vadd.f32 0.5, %v7385_v23  ;;  %v7415_v47 = vmul.f32 0.25, %v7385_v23  ;;  %vm7421_vm11 = vmand %vm2174_vm13, %vm7361_vm1  ;;  %v2242_v4 = vsel %vm7401_vm5, %v7299_v50, %v7321_v5 }
 0x1e2   : > { %v2246_v21 = vsel %vm7401_vm5, %v7276_v63, %v7245_v25  ;;  %v10025_v13 = vstv %s10018_s9  ;;  %v2198_v43 = vsel %vm7421_vm11, %v7304_v28, %v2190_v49  ;;  %v2204_v48 = vsel %vm7421_vm11, %v7293_v59, %v7304_v28 }
 0x1e3   : > { %v2402_v0 = vsel %vm2398_vm10, %v10025_v13, %v2392_v16  ;;  %v2236_v19 = vsel %vm7421_vm11, %v7245_v25, %v7276_v63  ;;  %v7452_v16 = vsel %vm7375_vm0, %v7299_v50, %v2242_v4  ;;  %v2200_v13 = vsel %vm7401_vm5, %v7293_v59, %v2198_v43 }
 0x1e4   : > { %10026 = vst [vmem:[#allocation69_spill] sm:$0xff] %v7452_v16  ;;  %v2206_v39 = vsel %vm7401_vm5, %v7315_v44, %v2204_v48  ;;  %v2238_v28 = vsel %vm7401_vm5, %v7245_v25, %v2236_v19  ;;  %v7466_v27 = vsel %vm7375_vm0, %v7276_v63, %v2246_v21  ;;  %v7471_v4 = vsel %vm7375_vm0, %v7315_v44, %v2200_v13 }
 0x1e5   : > { %v7475_v59 = vsel %vm7375_vm0, %v2190_v49, %v2206_v39  ;;  %v7480_v43 = vsel %vm7375_vm0, %v7276_v63, %v2238_v28  ;;  %v2250_v19 = vsel %vm7421_vm11, %v7299_v50, %v7321_v5  ;;  %v2262_v49 = vsub.f32 %v7131_v30, %v7452_v16 }
 0x1e6   : > { %v2252_v25 = vsel %vm7401_vm5, %v7299_v50, %v2250_v19  ;;  %v2256_v44 = vsub.f32 %v7113_v18, %v7480_v43  ;;  %v2264_v63 = vsub.f32 %v7113_v18, %v7466_v27  ;;  %v10029_v26 = vstv %s7047_s30 }
 0x1e7   : > { %v7498_v48 = vsel %vm7375_vm0, %v7321_v5, %v2252_v25  ;;  %v2412_v61 = vsel %vm9632_vm12, %v10029_v26, %v2402_v0  ;;  %vm9631_vm13 = vcmp.eq.s32.totalorder %v7471_v4, 0  ;;  %vm9629_vm1 = vcmp.eq.s32.totalorder %v7475_v59, 0 }
 0x1e8   : > { %10028 = vst [vmem:[#allocation68_spill] sm:$0xff] %v7498_v48  ;;  %v2258_v50 = vsub.f32 %v7131_v30, %v7498_v48  ;;  %v2266_v21 = vmul.f32 %v2264_v63, %v2262_v49  ;;  %v2280_v18 = vmul.f32 %v7336_v22, %v2264_v63  ;;  %v2288_v58 = vmul.f32 %v7280_v24, %v2262_v49 }
 0x1e9   : > { %v2290_v5 = vmul.f32 %v7336_v22, %v2256_v44  ;;  %v10030_v39 = vstv %s10027_s5  ;;  %v2465_v13 = vsel %vm9631_vm13, %v7165_v53, 0.0  ;;  %v2470_v30 = vsel %vm9629_vm1, %v7165_v53, 0.0 }
 0x1ea   : > { %v2422_v0 = vsel %vm9628_vm2, %v10030_v39, %v2412_v61  ;;  %v2260_v28 = vmul.f32 %v2258_v50, %v2256_v44  ;;  %v2276_v19 = vmul.f32 %v7280_v24, %v2258_v50  ;;  %v10031_v25 = vstv %s7059_s11 }
 0x1eb   : > { %v2432_v49 = vsel %vm9576_vm3, %v10031_v25, %v2422_v0  ;;  %vm9625_vm0 = vcmp.eq.s32.totalorder %v7471_v4, 1  ;;  %v2292_v22 = vsub.f32 %v2288_v58, %v2290_v5  ;;  %v10032_v63 = vstv %s7065_s25 }
 0x1ec   : > { %v2442_v26 = vsel %vm9574_vm8, %v10032_v63, %v2432_v49  ;;  %vm9624_vm9 = vcmp.eq.s32.totalorder %v7475_v59, 1  ;;  %v2481_v61 = vsel %vm9625_vm0, %v7171_v55, %v2465_v13  ;;  %v2268_v44 = vsub.f32 %v2260_v28, %v2266_v21 }
 0x1ed   : > { %v2282_v39 = vsub.f32 %v2276_v19, %v2280_v18  ;;  %v10033_v24 = vstv %s7071_s26  ;;  %v2486_v58 = vsel %vm9624_vm9, %v7171_v55, %v2470_v30  ;;  %v2294_v5 = vand.u32 2147483647, %v2292_v22 }
 0x1ee   : > { %v7539_v50 = vsel %vm9575_vm7, %v10033_v24, %v2442_v26  ;;  %vm9579_vm5 = vcmp.eq.s32.totalorder %v7471_v4, 2  ;;  %vm9577_vm11 = vcmp.eq.s32.totalorder %v7475_v59, 2  ;;  %vm9578_vm8 = vcmp.eq.s32.totalorder %v7471_v4, 3 }
 0x1ef   : > { %v2270_v0 = vand.u32 2147483647, %v2268_v44  ;;  %v2284_v13 = vand.u32 2147483647, %v2282_v39  ;;  %v2497_v21 = vsel %vm9579_vm5, %v7174_v52, %v2481_v61  ;;  %v2502_v18 = vsel %vm9577_vm11, %v7174_v52, %v2486_v58 }
 0x1f0   : > { %v7553_v28 = vmul.f32 0.5, %v2294_v5  ;;  %vm9580_vm7 = vcmp.eq.s32.totalorder %v7475_v59, 3  ;;  %v2513_v30 = vsel %vm9578_vm8, %v7179_v12, %v2497_v21  ;;  %vm9581_vm3 = vcmp.eq.s32.totalorder %v7471_v4, 4 }
 0x1f1   : > { %v7560_v19 = vmul.f32 0.5, %v2270_v0  ;;  %v7562_v25 = vmul.f32 0.5, %v2284_v13  ;;  %v2518_v49 = vsel %vm9580_vm7, %v7179_v12, %v2502_v18  ;;  %vm9582_vm11 = vcmp.eq.s32.totalorder %v7475_v59, 4 }
 0x1f2   : > { %10034 = vst [vmem:[#allocation76_spill] sm:$0xff] %v7553_v28  ;;  %v2529_v22 = vsel %vm9581_vm3, %v7182_v6, %v2513_v30  ;;  %v2534_v63 = vsel %vm9582_vm11, %v7182_v6, %v2518_v49  ;;  %vm9583_vm8 = vcmp.eq.s32.totalorder %v7471_v4, 5  ;;  %vm9584_vm5 = vcmp.eq.s32.totalorder %v7475_v59, 5 }
 0x1f3   : > { %10035 = vst [vmem:[#allocation77_spill] sm:$0xff] %v7562_v25  ;;  %v2545_v26 = vsel %vm9583_vm8, %v7185_v57, %v2529_v22  ;;  %v2550_v61 = vsel %vm9584_vm5, %v7185_v57, %v2534_v63  ;;  %vm9585_vm7 = vcmp.eq.s32.totalorder %v7471_v4, 6  ;;  %vm9586_vm3 = vcmp.eq.s32.totalorder %v7475_v59, 6 }
 0x1f4   : > { %v2561_v44 = vsel %vm9585_vm7, %v7188_v35, %v2545_v26  ;;  %v2566_v39 = vsel %vm9586_vm3, %v7188_v35, %v2550_v61  ;;  %vm9587_vm11 = vcmp.eq.s32.totalorder %v7471_v4, 7  ;;  %vm9588_vm8 = vcmp.eq.s32.totalorder %v7475_v59, 7 }
 0x1f5   : > { %v2577_v24 = vsel %vm9587_vm11, %v7193_v9, %v2561_v44  ;;  %v2582_v58 = vsel %vm9588_vm8, %v7193_v9, %v2566_v39  ;;  %vm9589_vm5 = vcmp.eq.s32.totalorder %v7471_v4, 8  ;;  %vm9590_vm7 = vcmp.eq.s32.totalorder %v7475_v59, 8 }
 0x1f6   : > { %v2593_v5 = vsel %vm9589_vm5, %v7199_v41, %v2577_v24  ;;  %v2598_v0 = vsel %vm9590_vm7, %v7199_v41, %v2582_v58  ;;  %vm9591_vm3 = vcmp.eq.s32.totalorder %v7471_v4, 9  ;;  %vm9592_vm11 = vcmp.eq.s32.totalorder %v7475_v59, 9 }
 0x1f7   : > { %v2609_v13 = vsel %vm9591_vm3, %v7202_v42, %v2593_v5  ;;  %v2614_v21 = vsel %vm9592_vm11, %v7202_v42, %v2598_v0  ;;  %vm9593_vm8 = vcmp.eq.s32.totalorder %v7471_v4, 10  ;;  %vm9594_vm5 = vcmp.eq.s32.totalorder %v7475_v59, 10 }
 0x1f8   : > { %v2625_v18 = vsel %vm9593_vm8, %v7209_v40, %v2609_v13  ;;  %v2630_v30 = vsel %vm9594_vm5, %v7209_v40, %v2614_v21  ;;  %vm9595_vm7 = vcmp.eq.s32.totalorder %v7471_v4, 11  ;;  %vm9596_vm3 = vcmp.eq.s32.totalorder %v7475_v59, 11 }
 0x1f9   : > { %v2641_v49 = vsel %vm9595_vm7, %v7212_v46, %v2625_v18  ;;  %v2646_v22 = vsel %vm9596_vm3, %v7212_v46, %v2630_v30  ;;  %vm9597_vm11 = vcmp.eq.s32.totalorder %v7471_v4, 12  ;;  %vm9598_vm8 = vcmp.eq.s32.totalorder %v7475_v59, 12 }
 0x1fa   : > { %v2657_v63 = vsel %vm9597_vm11, %v7215_v31, %v2641_v49  ;;  %v2662_v26 = vsel %vm9598_vm8, %v7215_v31, %v2646_v22  ;;  %vm9599_vm5 = vcmp.eq.s32.totalorder %v7471_v4, 13  ;;  %vm9600_vm7 = vcmp.eq.s32.totalorder %v7475_v59, 13 }
 0x1fb   : > { %v2673_v61 = vsel %vm9599_vm5, %v7229_v56, %v2657_v63  ;;  %v2678_v44 = vsel %vm9600_vm7, %v7229_v56, %v2662_v26  ;;  %vm9601_vm3 = vcmp.eq.s32.totalorder %v7471_v4, 14  ;;  %vm9602_vm11 = vcmp.eq.s32.totalorder %v7475_v59, 14 }
 0x1fc   : > { %v2689_v39 = vsel %vm9601_vm3, %v7232_v62, %v2673_v61  ;;  %v2694_v24 = vsel %vm9602_vm11, %v7232_v62, %v2678_v44  ;;  %vm9603_vm8 = vcmp.eq.s32.totalorder %v7471_v4, 15  ;;  %vm9604_vm5 = vcmp.eq.s32.totalorder %v7475_v59, 15 }
 0x1fd   : > { %v2705_v58 = vsel %vm9603_vm8, %v7235_v11, %v2689_v39  ;;  %v2710_v5 = vsel %vm9604_vm5, %v7235_v11, %v2694_v24  ;;  %vm9605_vm7 = vcmp.eq.s32.totalorder %v7471_v4, 16  ;;  %vm9606_vm3 = vcmp.eq.s32.totalorder %v7475_v59, 16 }
 0x1fe   : > { %v2721_v0 = vsel %vm9605_vm7, %v7238_v33, %v2705_v58  ;;  %v2726_v13 = vsel %vm9606_vm3, %v7238_v33, %v2710_v5  ;;  %vm9607_vm11 = vcmp.eq.s32.totalorder %v7471_v4, 17  ;;  %vm9608_vm8 = vcmp.eq.s32.totalorder %v7475_v59, 17 }
 0x1ff   : > { %v2737_v21 = vsel %vm9607_vm11, %v7250_v36, %v2721_v0  ;;  %v2742_v18 = vsel %vm9608_vm8, %v7250_v36, %v2726_v13  ;;  %vm9609_vm5 = vcmp.eq.s32.totalorder %v7471_v4, 18  ;;  %vm9611_vm7 = vcmp.eq.s32.totalorder %v7475_v59, 18 }
 0x200   : > { %v2753_v30 = vsel %vm9609_vm5, %v7253_v34, %v2737_v21  ;;  %v2758_v49 = vsel %vm9611_vm7, %v7253_v34, %v2742_v18  ;;  %vm9610_vm3 = vcmp.eq.s32.totalorder %v7471_v4, 19  ;;  %vm9612_vm11 = vcmp.eq.s32.totalorder %v7475_v59, 19 }
 0x201   : > { %v2769_v22 = vsel %vm9610_vm3, %v7261_v14, %v2753_v30  ;;  %v2774_v63 = vsel %vm9612_vm11, %v7261_v14, %v2758_v49  ;;  %vm9613_vm8 = vcmp.eq.s32.totalorder %v7471_v4, 20  ;;  %vm9615_vm5 = vcmp.eq.s32.totalorder %v7475_v59, 20 }
 0x202   : > { %v2785_v26 = vsel %vm9613_vm8, %v7264_v20, %v2769_v22  ;;  %v2790_v61 = vsel %vm9615_vm5, %v7264_v20, %v2774_v63  ;;  %vm9614_vm3 = vcmp.eq.s32.totalorder %v7471_v4, 21  ;;  %vm9616_vm7 = vcmp.eq.s32.totalorder %v7475_v59, 21 }
 0x203   : > { %v2801_v44 = vsel %vm9614_vm3, %v7267_v2, %v2785_v26  ;;  %v2806_v39 = vsel %vm9616_vm7, %v7267_v2, %v2790_v61  ;;  %vm9617_vm11 = vcmp.eq.s32.totalorder %v7471_v4, 22  ;;  %vm9622_vm8 = vcmp.eq.s32.totalorder %v7475_v59, 22 }
 0x204   : > { %v2817_v24 = vsel %vm9617_vm11, %v7283_v54, %v2801_v44  ;;  %v2822_v58 = vsel %vm9622_vm8, %v7283_v54, %v2806_v39  ;;  %vm9621_vm3 = vcmp.eq.s32.totalorder %v7471_v4, 23  ;;  %vm9620_vm5 = vcmp.eq.s32.totalorder %v7475_v59, 23 }
 0x205   : > { %v2833_v5 = vsel %vm9621_vm3, %v7286_v37, %v2817_v24  ;;  %v2838_v0 = vsel %vm9620_vm5, %v7286_v37, %v2822_v58  ;;  %vm9619_vm7 = vcmp.eq.s32.totalorder %v7471_v4, 24  ;;  %vm9618_vm11 = vcmp.eq.s32.totalorder %v7475_v59, 24 }
 0x206   : > { %v2849_v13 = vsel %vm9619_vm7, %v7289_v10, %v2833_v5  ;;  %v2854_v21 = vsel %vm9618_vm11, %v7289_v10, %v2838_v0  ;;  %v2858_v18 = vadd.f32 %v7562_v25, %v7560_v19  ;;  %v2864_v30 = vmul.f32 %v7539_v50, %v7560_v19 }
 0x207   : > { %v2866_v49 = vmul.f32 %v2849_v13, %v7562_v25  ;;  %v2870_v22 = vmul.f32 %v2854_v21, %v7553_v28  ;;  %v7746_v63 = vsub.f32 %v7480_v43, %v7247_v32  ;;  %v7750_v26 = vsub.f32 %v7466_v27, %v7247_v32 }
 0x208   : > { %v2860_v61 = vadd.f32 %v2858_v18, %v7553_v28  ;;  %v7754_v44 = vsub.f32 %v2849_v13, %v7539_v50  ;;  %v7757_v39 = vsub.f32 %v2854_v21, %v7539_v50  ;;  %v2141_v24 = vmul.f32 0.25, %v7411_v51 }
 0x209   : > { %10036 = vst [vmem:[#allocation78_spill] sm:$0xff] %v7746_v63  ;;  %10037 = vst [vmem:[#allocation79_spill] sm:$0xff] %v7750_v26  ;;  %v2868_v58 = vadd.f32 %v2866_v49, %v2864_v30  ;;  %v10040_v43 = vtrunc.f32 %v7385_v23  ;;  %v2183_v0 = vmul.u32 5, %v7397_v7  ;;  %v10041_v32 = vclamps-f32 %v7291_v8, 0.95 }
 0x20a   : > { %10038 = vst [vmem:[#allocation80_spill] sm:$0xff] %v7754_v44  ;;  %10039 = vst [vmem:[#allocation81_spill] sm:$0xff] %v7757_v39  ;;  %4200 = vrcp.f32 %v2860_v61  ;;  %v2193_v18 = vmul.u32 4, %v7397_v7  ;;  %v2213_v50 = vmul.f32 2.0, %v7415_v47  ;;  %v10042_v23 = vsub.f32 1.0, %v7369_v15 }
 0x20b   : > { %v4145_v5 = vcvt.f32.s32 %v10040_v43  ;;  %v7768_v13 = vsub.f32 %v10041_v32, %v2141_v24  ;;  %v10043_v30 = vstv %s7255_s18  ;;  %v2872_v8 = vadd.f32 %v2870_v22, %v2868_v58 }
 0x20c   : > { %v2221_v21 = vmul.f32 2.0, %v10042_v23  ;;  %v2306_v49 = vsel %vm2298_vm15, %v10043_v30, 0.0  ;;  %v10044_v43 = vsub.f32 1.0, %v7395_v3  ;;  %v10045_v7 = vclamps-f32 %v7242_v17, 0.95 }
 0x20d   : > { %v7774_v51 = vadd.s32 %v4145_v5, %v2183_v0  ;;  %v2153_v0 = vadd.f32 1e-05, %v7768_v13  ;;  %v2195_v32 = vadd.s32 %v4145_v5, %v2193_v18  ;;  %v7800_v30 = vadd.f32 -1.0, %v2213_v50 }
 0x20e   : > { %v7789_v47 = vsub.f32 %v10045_v7, %v10044_v43  ;;  %v7802_v22 = vadd.f32 -1.0, %v2221_v21  ;;  %v2229_v58 = vmul.f32 2.0, %v2141_v24  ;;  %v10046_v5 = vmov %v10044_v43 }
 0x20f   : > { %v7795_v15 = vadd.s32 1, %v7774_v51  ;;  %v7798_v23 = vadd.s32 5, %v7774_v51  ;;  %4202 = vrcp.f32 %v2153_v0  ;;  %v7806_v17 = vadd.s32 25, %v2195_v32 }
 0x210   : > { %v2233_v18 = vmul.f32 2.0, %v10046_v5  ;;  %v7816_v50 = vadd.f32 0.5, %v7800_v30  ;;  %v7819_v21 = vadd.f32 -0.5, %v7802_v22  ;;  %v10047_v7 = vstv %s7258_s6 }
 0x211   : > { %v7813_v43 = vadd.s32 1, %v7798_v23  ;;  %vm10048_vm15 = vcmp.eq.s32.totalorder %v7306_v29, 26  ;;  %v7827_v3 = vadd.f32 -1.0, %v2229_v58  ;;  %vm9623_vm11 = vcmp.eq.s32.totalorder %v7806_v17, 25 }
 0x212   : > { %v2316_v0 = vsel %vm10048_vm15, %v10047_v7, %v2306_v49  ;;  %v7829_v24 = vadd.f32 -1.0, %v2233_v18  ;;  %vm9626_vm7 = vcmp.eq.s32.totalorder %v7806_v17, 26  ;;  %v10050_v32 = vstv %s6981_s23  ;;  %s7857_s23 = sld [smem:[#allocation2 + $0x2a6]] }
 0x213   : > { %v2303_v5 = vsel %vm9623_vm11, %v10050_v32, 0.0  ;;  %vm9627_vm15 = vcmp.eq.s32.totalorder %v7806_v17, 27  ;;  %vm9630_vm5 = vcmp.eq.s32.totalorder %v7806_v17, 28  ;;  %vm9633_vm3 = vcmp.eq.s32.totalorder %v7806_v17, 29 }
 0x214   : > { %10049 = vst [vmem:[#allocation82_spill] sm:$0xff] %v7829_v24  ;;  %v7846_v49 = vsub.f32 %v7272_v1, %v7827_v3  ;;  %v7850_v58 = vsub.f32 %v7206_v38, %v7829_v24  ;;  %v10052_v18 = vstv %s10003_s21  ;;  %vm9638_vm8 = vcmp.eq.s32.totalorder %v7806_v17, 30  ;;  %s7866_s21 = sld [smem:[#allocation2 + $0x2a7]] }
 0x215   : > { %v2313_v7 = vsel %vm9626_vm7, %v10052_v18, %v2303_v5  ;;  %v10054_v32 = vstv %s10005_s13  ;;  %vm9640_vm11 = vcmp.eq.s32.totalorder %v7806_v17, 31  ;;  %vm2369_vm9 = vcmp.eq.s32.totalorder %v7806_v17, 32  ;;  %s7875_s13 = sld [smem:[#allocation2 + $0x2a8]] }
 0x216   : > { %v2323_v61 = vsel %vm9627_vm15, %v10054_v32, %v2313_v7  ;;  %vm2379_vm0 = vcmp.eq.s32.totalorder %v7806_v17, 33  ;;  %v10056_v5 = vstv %s6999_s1  ;;  %vm9657_vm7 = vcmp.eq.s32.totalorder %v7806_v17, 34  ;;  %s7885_s1 = sld [smem:[#allocation2 + $0x281]] }
 0x217   : > { %v2333_v18 = vsel %vm9630_vm5, %v10056_v5, %v2323_v61  ;;  %vm9653_vm15 = vcmp.eq.s32.totalorder %v7806_v17, 35  ;;  %vm9652_vm2 = vcmp.eq.s32.totalorder %v7806_v17, 36  ;;  %v10058_v7 = vstv %s7005_s12  ;;  %v7897_v24 = vpop.eup %4200  ;;  %s7910_s12 = sld [smem:[#allocation2 + $0x282]] }
 0x218   : > { %10053 = sst [smem:[#allocation30_spill]] %s7857_s23  ;;  %v2343_v32 = vsel %vm9633_vm3, %v10058_v7, %v2333_v18  ;;  %vm9651_vm5 = vcmp.eq.s32.totalorder %v7806_v17, 37  ;;  %vm9644_vm13 = vcmp.eq.s32.totalorder %v7806_v17, 38  ;;  %v10059_v61 = vstv %s10006_s3  ;;  %10062 = vst [vmem:[#allocation83_spill] sm:$0xff] %v7897_v24 }
 0x219   : > { %v2353_v5 = vsel %vm9638_vm8, %v10059_v61, %v2343_v32  ;;  %vm9646_vm1 = vcmp.eq.s32.totalorder %v7806_v17, 40  ;;  %v10060_v27 = vstv %s7269_s20  ;;  %vm10061_vm3 = vcmp.eq.s32.totalorder %v7306_v29, 27  ;;  %s7923_s3 = sld [smem:[#allocation2 + $0x283]] }
 0x21a   : > { %10055 = sst [smem:[#allocation19_spill]] %s7866_s21  ;;  %v2326_v18 = vsel %vm10061_vm3, %v10060_v27, %v2316_v0  ;;  %vm2169_vm12 = vcmp.ge.f32.partialorder %v7789_v47, 0.0  ;;  %v10063_v39 = vstv %s10008_s14  ;;  %v10064_v32 = vstv %s7696_s28 }
 0x21b   : > { %10057 = sst [smem:[#allocation31_spill]] %s7875_s13  ;;  %v2363_v44 = vsel %vm9640_vm11, %v10063_v39, %v2353_v5  ;;  %vm10065_vm8 = vcmp.eq.s32.totalorder %v7306_v29, 28  ;;  %v2874_v0 = vmul.f32 %v7897_v24, %v2872_v8  ;;  %vm2175_vm3 = vcmp.lt.f32.partialorder %v7768_v13, 0.0 }
 0x21c   : > { %v2336_v61 = vsel %vm10065_vm8, %v10064_v32, %v2326_v18  ;;  %v10066_v7 = vstv %s7023_s15  ;;  %v10067_v5 = vstv %s7714_s7  ;;  %vm10068_vm11 = vcmp.eq.s32.totalorder %v7306_v29, 29  ;;  %s7935_s15 = sld [smem:[#allocation2 + $0x284]] }
 0x21d   : > { %v2373_v39 = vsel %vm2369_vm9, %v10066_v7, %v2363_v44  ;;  %v2346_v18 = vsel %vm10068_vm11, %v10067_v5, %v2336_v61  ;;  %v10069_v27 = vstv %s7029_s16  ;;  %v10070_v26 = vstv %s7772_s2  ;;  %2958 = vst [vmem:[%s6874_s27 + $0x10] sm:$0xff] %v2874_v0  ;;  %s7948_s16 = sld [smem:[#allocation2 + $0x285]] }
 0x21e   : > { %v2383_v8 = vsel %vm2379_vm0, %v10069_v27, %v2373_v39  ;;  %v2356_v63 = vsel %vm2348_vm4, %v10070_v26, %v2346_v18  ;;  %v10071_v61 = vstv %s7035_s24  ;;  %v10072_v32 = vstv %s7783_s17  ;;  %v4203_v18 = vpop.eup %4202  ;;  %s8273_s24 = sld [smem:[#allocation2 + $0x286]] }
 0x21f   : > { %v2393_v5 = vsel %vm9657_vm7, %v10071_v61, %v2383_v8  ;;  %vm10073_vm8 = vcmp.eq.s32.totalorder %v7306_v29, 31  ;;  %v10074_v7 = vstv %s10018_s9  ;;  %v10075_v44 = vstv %s7792_s19  ;;  %s8323_s14 = sld [smem:[#allocation2 + $0x28b]] }
 0x220   : > { %v2366_v27 = vsel %vm10073_vm8, %v10072_v32, %v2356_v63  ;;  %v2403_v0 = vsel %vm9653_vm15, %v10074_v7, %v2393_v5  ;;  %vm10076_vm4 = vcmp.eq.s32.totalorder %v7306_v29, 32  ;;  %v2157_v32 = vmul.f32 %v4203_v18, %v7789_v47  ;;  %s8333_s9 = sld [smem:[#allocation2 + $0x28c]] }
 0x221   : > { %v2376_v8 = vsel %vm10076_vm4, %v10075_v44, %v2366_v27  ;;  %v10077_v39 = vstv %s7047_s30  ;;  %v10078_v48 = vstv %s7804_s0  ;;  %v10079_v5 = vstv %s10027_s5  ;;  %s8283_s30 = sld [smem:[#allocation2 + $0x287]] }
 0x222   : > { %v2413_v26 = vsel %vm9652_vm2, %v10077_v39, %v2403_v0  ;;  %v2386_v16 = vsel %vm2378_vm14, %v10078_v48, %v2376_v8  ;;  %v10080_v27 = vstv %s7810_s22  ;;  %v7979_v18 = vstv %s7764_s8  ;;  %s8343_s5 = sld [smem:[#allocation2 + $0x28d]] }
 0x223   : > { %v2423_v44 = vsel %vm9651_vm5, %v10079_v5, %v2413_v26  ;;  %v2396_v63 = vsel %vm2388_vm6, %v10080_v27, %v2386_v16  ;;  %v7982_v61 = vstv %s7885_s1  ;;  %vm2159_vm11 = vcmp.le.f32.partialorder %v2157_v32, 1.0  ;;  %s8353_s8 = sld [smem:[#allocation2 + $0x28e]] }
 0x224   : > { %vm2161_vm8 = vcmp.gt.f32.partialorder %v2157_v32, -1.0  ;;  %v10081_v48 = vstv %s7059_s11  ;;  %v10082_v0 = vstv %s7825_s10  ;;  %v10085_v8 = vstv %s7065_s25  ;;  %s8293_s11 = sld [smem:[#allocation2 + $0x288]] }
 0x225   : > { %v2433_v39 = vsel %vm9644_vm13, %v10081_v48, %v2423_v44  ;;  %v2406_v26 = vsel %vm2398_vm10, %v10082_v0, %v2396_v63  ;;  %vm7992_vm14 = vmand %vm2159_vm11, %vm2161_vm8  ;;  %vm10086_vm6 = vcmp.eq.s32.totalorder %v7806_v17, 39  ;;  %v10087_v32 = vstv %s7833_s29  ;;  %s8303_s25 = sld [smem:[#allocation2 + $0x289]] }
 0x226   : > { %v2443_v5 = vsel %vm10086_vm6, %v10085_v8, %v2433_v39  ;;  %vm10088_vm4 = vcmp.eq.s32.totalorder %v7306_v29, 36  ;;  %vm10089_vm13 = vcmp.eq.s32.totalorder %v7471_v4, 0  ;;  %vm10090_vm10 = vcmp.eq.s32.totalorder %v7475_v59, 0  ;;  %s8363_s1 = sld [smem:[#allocation2 + $0x28f]] }
 0x227   : > { %v2416_v27 = vsel %vm10088_vm4, %v10087_v32, %v2406_v26  ;;  %v2468_v44 = vsel %vm10089_vm13, %v7979_v18, 0.0  ;;  %v2472_v63 = vsel %vm10090_vm10, %v7979_v18, 0.0  ;;  %vm10091_vm11 = vcmp.ge.f32.partialorder %v7768_v13, 0.0 }
 0x228   : > { %vm8014_vm8 = vmand %vm10091_vm11, %vm7992_vm14  ;;  %v10094_v39 = vstv %s7071_s26  ;;  %v10095_v26 = vstv %s7842_s4  ;;  %vm10096_vm13 = vcmp.eq.s32.totalorder %v7306_v29, 37  ;;  %vm10097_vm6 = vcmp.eq.s32.totalorder %v7471_v4, 1  ;;  %s8313_s26 = sld [smem:[#allocation2 + $0x28a]] }
 0x229   : > { %v8022_v0 = vsel %vm9646_vm1, %v10094_v39, %v2443_v5  ;;  %v2426_v8 = vsel %vm10096_vm13, %v10095_v26, %v2416_v27  ;;  %v2484_v32 = vsel %vm10097_vm6, %v7982_v61, %v2468_v44  ;;  %vm10098_vm4 = vcmp.eq.s32.totalorder %v7475_v59, 1  ;;  %s8455_s4 = sld [smem:[#allocation2 + $0x297]] }
 0x22a   : > { %v2488_v7 = vsel %vm10098_vm4, %v7982_v61, %v2472_v63  ;;  %vm10099_vm10 = vmmov 1   ;;  %v10100_v60 = vstv %s7857_s23  ;;  %vm10101_vm1 = vcmp.eq.s32.totalorder %v7306_v29, 38  ;;  %s8441_s23 = sld [smem:[#allocation2 + $0x296]] }
 0x22b   : > { %vm2171_vm11 = vmxor %vm7992_vm14, %vm10099_vm10  ;;  %v2436_v5 = vsel %vm10101_vm1, %v10100_v60, %v2426_v8  ;;  %v8042_v39 = vstv %s7910_s12  ;;  %v8045_v27 = vstv %s7923_s3  ;;  %v8048_v26 = vstv %s7935_s15  ;;  %s8373_s12 = sld [smem:[#allocation2 + $0x290]] }
 0x22c   : > { %vm8052_vm13 = vmand %vm2169_vm12, %vm2171_vm11  ;;  %v10104_v63 = vstv %s7866_s21  ;;  %vm10105_vm6 = vcmp.eq.s32.totalorder %v7306_v29, 39  ;;  %vm10106_vm4 = vcmp.eq.s32.totalorder %v7471_v4, 2  ;;  %vm10107_vm1 = vcmp.eq.s32.totalorder %v7475_v59, 2  ;;  %s8383_s3 = sld [smem:[#allocation2 + $0x291]] }
 0x22d   : > { %v2446_v45 = vsel %vm10105_vm6, %v10104_v63, %v2436_v5  ;;  %v2500_v60 = vsel %vm10106_vm4, %v8042_v39, %v2484_v32  ;;  %v8066_v8 = vsel %vm10107_vm1, %v8042_v39, %v2488_v7  ;;  %v8069_v24 = vstv %s7948_s16  ;;  %vm8075_vm12 = vmand %vm2175_vm3, %vm7992_vm14  ;;  %s8394_s15 = sld [smem:[#allocation2 + $0x292]] }
 0x22e   : > { %v2243_v32 = vsel %vm8052_vm13, %v7802_v22, %v7819_v21  ;;  %v2247_v7 = vsel %vm8052_vm13, %v7816_v50, %v7800_v30  ;;  %v10110_v5 = vstv %s7875_s13  ;;  %vm10111_vm10 = vcmp.eq.s32.totalorder %v7306_v29, 40  ;;  %s8408_s16 = sld [smem:[#allocation2 + $0x293]] }
 0x22f   : > { %v8091_v16 = vsel %vm10111_vm10, %v10110_v5, %v2446_v45  ;;  %vm10112_vm3 = vcmp.eq.s32.totalorder %v7471_v4, 3  ;;  %v2199_v63 = vsel %vm8075_vm12, %v7798_v23, %v7813_v43  ;;  %v2205_v28 = vsel %vm8075_vm12, %v7774_v51, %v7798_v23  ;;  %s8417_s13 = sld [smem:[#allocation2 + $0x294]] }
 0x230   : > { %v8096_v13 = vsel %vm10112_vm3, %v8045_v27, %v2500_v60  ;;  %v2237_v45 = vsel %vm8075_vm12, %v7800_v30, %v7816_v50  ;;  %v8113_v29 = vsel %vm8014_vm8, %v7802_v22, %v2243_v32  ;;  %v2201_v60 = vsel %vm8052_vm13, %v7774_v51, %v2199_v63  ;;  %s8433_s21 = sld [smem:[#allocation2 + $0x295]] }
 0x231   : > { %v2207_v5 = vsel %vm8052_vm13, %v7795_v15, %v2205_v28  ;;  %v2239_v23 = vsel %vm8052_vm13, %v7800_v30, %v2237_v45  ;;  %v8127_v25 = vsel %vm8014_vm8, %v7816_v50, %v2247_v7  ;;  %v8132_v32 = vsel %vm8014_vm8, %v7795_v15, %v2201_v60 }
 0x232   : > { %v8137_v51 = vsel %vm8014_vm8, %v7813_v43, %v2207_v5  ;;  %v8142_v28 = vsel %vm8014_vm8, %v7816_v50, %v2239_v23  ;;  %v2251_v30 = vsel %vm8075_vm12, %v7802_v22, %v7819_v21  ;;  %v2263_v43 = vsub.f32 %v7206_v38, %v8113_v29 }
 0x233   : > { %v2253_v15 = vsel %vm8052_vm13, %v7802_v22, %v2251_v30  ;;  %v2257_v7 = vsub.f32 %v7272_v1, %v8142_v28  ;;  %v2265_v63 = vsub.f32 %v7272_v1, %v8127_v25  ;;  %vm2461_vm14 = vcmp.eq.s32.totalorder %v8132_v32, 0 }
 0x234   : > { %v8160_v50 = vsel %vm8014_vm8, %v7819_v21, %v2253_v15  ;;  %vm2463_vm11 = vcmp.eq.s32.totalorder %v8137_v51, 0  ;;  %vm2477_vm13 = vcmp.eq.s32.totalorder %v8132_v32, 1  ;;  %v2289_v45 = vmul.f32 %v7846_v49, %v2263_v43 }
 0x235   : > { %v2259_v22 = vsub.f32 %v7206_v38, %v8160_v50  ;;  %v2267_v44 = vmul.f32 %v2265_v63, %v2263_v43  ;;  %v2281_v47 = vmul.f32 %v7850_v58, %v2265_v63  ;;  %v2291_v1 = vmul.f32 %v7850_v58, %v2257_v7 }
 0x236   : > { %v2466_v21 = vsel %vm2461_vm14, %v7165_v53, 0.0  ;;  %v2471_v48 = vsel %vm2463_vm11, %v7165_v53, 0.0  ;;  %vm2479_vm8 = vcmp.eq.s32.totalorder %v8137_v51, 1  ;;  %vm2493_vm6 = vcmp.eq.s32.totalorder %v8132_v32, 2 }
 0x237   : > { %v2261_v60 = vmul.f32 %v2259_v22, %v2257_v7  ;;  %v2277_v38 = vmul.f32 %v7846_v49, %v2259_v22  ;;  %v2482_v5 = vsel %vm2477_vm13, %v7171_v55, %v2466_v21  ;;  %v2487_v58 = vsel %vm2479_vm8, %v7171_v55, %v2471_v48 }
 0x238   : > { %v2293_v23 = vsub.f32 %v2289_v45, %v2291_v1  ;;  %vm2495_vm4 = vcmp.eq.s32.totalorder %v8137_v51, 2  ;;  %vm2509_vm1 = vcmp.eq.s32.totalorder %v8132_v32, 3  ;;  %v2498_v49 = vsel %vm2493_vm6, %v7174_v52, %v2482_v5 }
 0x239   : > { %v2269_v53 = vsub.f32 %v2261_v60, %v2267_v44  ;;  %v2283_v30 = vsub.f32 %v2277_v38, %v2281_v47  ;;  %v2503_v15 = vsel %vm2495_vm4, %v7174_v52, %v2487_v58  ;;  %vm2511_vm12 = vcmp.eq.s32.totalorder %v8137_v51, 3 }
 0x23a   : > { %v2295_v7 = vand.u32 2147483647, %v2293_v23  ;;  %v2514_v55 = vsel %vm2509_vm1, %v7179_v12, %v2498_v49  ;;  %vm9655_vm10 = vcmp.eq.s32.totalorder %v8132_v32, 4  ;;  %v2519_v22 = vsel %vm2511_vm12, %v7179_v12, %v2503_v15 }
 0x23b   : > { %v2271_v43 = vand.u32 2147483647, %v2269_v53  ;;  %v2285_v63 = vand.u32 2147483647, %v2283_v30  ;;  %vm9654_vm3 = vcmp.eq.s32.totalorder %v8137_v51, 4  ;;  %v2530_v52 = vsel %vm9655_vm10, %v7182_v6, %v2514_v55 }
 0x23c   : > { %v8202_v44 = vmul.f32 0.5, %v2295_v7  ;;  %v2535_v47 = vsel %vm9654_vm3, %v7182_v6, %v2519_v22  ;;  %vm9656_vm5 = vcmp.eq.s32.totalorder %v8132_v32, 5  ;;  %vm9658_vm2 = vcmp.eq.s32.totalorder %v8137_v51, 5 }
 0x23d   : > { %v8211_v45 = vmul.f32 0.5, %v2271_v43  ;;  %v8213_v1 = vmul.f32 0.5, %v2285_v63  ;;  %v2546_v12 = vsel %vm9656_vm5, %v7185_v57, %v2530_v52  ;;  %v2551_v21 = vsel %vm9658_vm2, %v7185_v57, %v2535_v47 }
 0x23e   : > { %vm9659_vm15 = vcmp.eq.s32.totalorder %v8132_v32, 6  ;;  %vm9660_vm3 = vcmp.eq.s32.totalorder %v8137_v51, 6  ;;  %vm9661_vm10 = vcmp.eq.s32.totalorder %v8132_v32, 7  ;;  %vm9662_vm5 = vcmp.eq.s32.totalorder %v8137_v51, 7 }
 0x23f   : > { %v2562_v6 = vsel %vm9659_vm15, %v7188_v35, %v2546_v12  ;;  %v2567_v48 = vsel %vm9660_vm3, %v7188_v35, %v2551_v21  ;;  %vm9663_vm7 = vcmp.eq.s32.totalorder %v8132_v32, 8  ;;  %vm9664_vm2 = vcmp.eq.s32.totalorder %v8137_v51, 8 }
 0x240   : > { %v2578_v57 = vsel %vm9661_vm10, %v7193_v9, %v2562_v6  ;;  %v2583_v60 = vsel %vm9662_vm5, %v7193_v9, %v2567_v48  ;;  %vm9665_vm15 = vcmp.eq.s32.totalorder %v8132_v32, 9  ;;  %vm9666_vm3 = vcmp.eq.s32.totalorder %v8137_v51, 9 }
 0x241   : > { %v2594_v35 = vsel %vm9663_vm7, %v7199_v41, %v2578_v57  ;;  %v2599_v38 = vsel %vm9664_vm2, %v7199_v41, %v2583_v60  ;;  %vm9667_vm10 = vcmp.eq.s32.totalorder %v8132_v32, 10  ;;  %vm9669_vm5 = vcmp.eq.s32.totalorder %v8137_v51, 10 }
 0x242   : > { %v2610_v9 = vsel %vm9665_vm15, %v7202_v42, %v2594_v35  ;;  %v2615_v5 = vsel %vm9666_vm3, %v7202_v42, %v2599_v38  ;;  %vm9668_vm7 = vcmp.eq.s32.totalorder %v8132_v32, 11  ;;  %vm9671_vm2 = vcmp.eq.s32.totalorder %v8137_v51, 11 }
 0x243   : > { %v2626_v41 = vsel %vm9667_vm10, %v7209_v40, %v2610_v9  ;;  %v2631_v58 = vsel %vm9669_vm5, %v7209_v40, %v2615_v5  ;;  %vm9670_vm15 = vcmp.eq.s32.totalorder %v8132_v32, 12  ;;  %vm9673_vm3 = vcmp.eq.s32.totalorder %v8137_v51, 12 }
 0x244   : > { %v2642_v42 = vsel %vm9668_vm7, %v7212_v46, %v2626_v41  ;;  %v2647_v23 = vsel %vm9671_vm2, %v7212_v46, %v2631_v58  ;;  %vm9672_vm10 = vcmp.eq.s32.totalorder %v8132_v32, 13  ;;  %vm9675_vm7 = vcmp.eq.s32.totalorder %v8137_v51, 13 }
 0x245   : > { %v2658_v40 = vsel %vm9670_vm15, %v7215_v31, %v2642_v42  ;;  %v2663_v53 = vsel %vm9673_vm3, %v7215_v31, %v2647_v23  ;;  %vm9674_vm5 = vcmp.eq.s32.totalorder %v8132_v32, 14  ;;  %vm9677_vm15 = vcmp.eq.s32.totalorder %v8137_v51, 14 }
 0x246   : > { %v2674_v46 = vsel %vm9672_vm10, %v7229_v56, %v2658_v40  ;;  %v2679_v30 = vsel %vm9675_vm7, %v7229_v56, %v2663_v53  ;;  %vm9676_vm2 = vcmp.eq.s32.totalorder %v8132_v32, 15  ;;  %vm9679_vm10 = vcmp.eq.s32.totalorder %v8137_v51, 15 }
 0x247   : > { %v2690_v31 = vsel %vm9674_vm5, %v7232_v62, %v2674_v46  ;;  %v2695_v49 = vsel %vm9677_vm15, %v7232_v62, %v2679_v30  ;;  %vm9678_vm3 = vcmp.eq.s32.totalorder %v8132_v32, 16  ;;  %vm9681_vm5 = vcmp.eq.s32.totalorder %v8137_v51, 16 }
 0x248   : > { %v2706_v56 = vsel %vm9676_vm2, %v7235_v11, %v2690_v31  ;;  %v2711_v15 = vsel %vm9679_vm10, %v7235_v11, %v2695_v49  ;;  %vm9680_vm7 = vcmp.eq.s32.totalorder %v8132_v32, 17  ;;  %vm9683_vm2 = vcmp.eq.s32.totalorder %v8137_v51, 17 }
 0x249   : > { %v2722_v62 = vsel %vm9678_vm3, %v7238_v33, %v2706_v56  ;;  %v2727_v7 = vsel %vm9681_vm5, %v7238_v33, %v2711_v15  ;;  %vm9682_vm15 = vcmp.eq.s32.totalorder %v8132_v32, 18  ;;  %vm9685_vm3 = vcmp.eq.s32.totalorder %v8137_v51, 18 }
 0x24a   : > { %v2738_v11 = vsel %vm9680_vm7, %v7250_v36, %v2722_v62  ;;  %v2743_v55 = vsel %vm9683_vm2, %v7250_v36, %v2727_v7  ;;  %vm9684_vm10 = vcmp.eq.s32.totalorder %v8132_v32, 19  ;;  %vm9687_vm7 = vcmp.eq.s32.totalorder %v8137_v51, 19 }
 0x24b   : > { %v2754_v33 = vsel %vm9682_vm15, %v7253_v34, %v2738_v11  ;;  %v2759_v43 = vsel %vm9685_vm3, %v7253_v34, %v2743_v55  ;;  %vm9686_vm5 = vcmp.eq.s32.totalorder %v8132_v32, 20  ;;  %vm9689_vm15 = vcmp.eq.s32.totalorder %v8137_v51, 20 }
 0x24c   : > { %v2770_v36 = vsel %vm9684_vm10, %v7261_v14, %v2754_v33  ;;  %v2775_v63 = vsel %vm9687_vm7, %v7261_v14, %v2759_v43  ;;  %vm9688_vm2 = vcmp.eq.s32.totalorder %v8132_v32, 21  ;;  %vm2799_vm10 = vcmp.eq.s32.totalorder %v8137_v51, 21 }
 0x24d   : > { %v2786_v34 = vsel %vm9686_vm5, %v7264_v20, %v2770_v36  ;;  %v2791_v22 = vsel %vm9689_vm15, %v7264_v20, %v2775_v63  ;;  %vm9690_vm3 = vcmp.eq.s32.totalorder %v8132_v32, 22  ;;  %vm2815_vm5 = vcmp.eq.s32.totalorder %v8137_v51, 22 }
 0x24e   : > { %v2802_v14 = vsel %vm9688_vm2, %v7267_v2, %v2786_v34  ;;  %v2807_v52 = vsel %vm2799_vm10, %v7267_v2, %v2791_v22  ;;  %vm9696_vm7 = vcmp.eq.s32.totalorder %v8132_v32, 23  ;;  %vm9695_vm2 = vcmp.eq.s32.totalorder %v8137_v51, 23 }
 0x24f   : > { %v2818_v20 = vsel %vm9690_vm3, %v7283_v54, %v2802_v14  ;;  %v2823_v47 = vsel %vm2815_vm5, %v7283_v54, %v2807_v52  ;;  %vm9693_vm15 = vcmp.eq.s32.totalorder %v8132_v32, 24  ;;  %vm9692_vm3 = vcmp.eq.s32.totalorder %v8137_v51, 24 }
 0x250   : > { %v2834_v2 = vsel %vm9696_vm7, %v7286_v37, %v2818_v20  ;;  %v2839_v12 = vsel %vm9695_vm2, %v7286_v37, %v2823_v47  ;;  %v2859_v21 = vadd.f32 %v8213_v1, %v8211_v45  ;;  %v2865_v48 = vmul.f32 %v8022_v0, %v8211_v45 }
 0x251   : > { %v2850_v54 = vsel %vm9693_vm15, %v7289_v10, %v2834_v2  ;;  %v2855_v6 = vsel %vm9692_vm3, %v7289_v10, %v2839_v12  ;;  %v8406_v37 = vsub.f32 %v8142_v28, %v7827_v3  ;;  %v8415_v10 = vsub.f32 %v8127_v25, %v7827_v3 }
 0x252   : > { %v2861_v57 = vadd.f32 %v2859_v21, %v8202_v44  ;;  %v2867_v60 = vmul.f32 %v2850_v54, %v8213_v1  ;;  %v2871_v35 = vmul.f32 %v2855_v6, %v8202_v44  ;;  %v8420_v28 = vsub.f32 %v2850_v54, %v8022_v0 }
 0x253   : > { %v8423_v38 = vsub.f32 %v2855_v6, %v8022_v0  ;;  %vm10113_vm3 = vcmp.eq.s32.totalorder %v7475_v59, 3  ;;  %vm10114_vm15 = vcmp.eq.s32.totalorder %v7471_v4, 4  ;;  %vm10115_vm2 = vcmp.eq.s32.totalorder %v7475_v59, 4 }
 0x254   : > { %v2520_v9 = vsel %vm10113_vm3, %v8045_v27, %v8066_v8  ;;  %v2532_v25 = vsel %vm10114_vm15, %v8048_v26, %v8096_v13  ;;  %4204 = vrcp.f32 %v2861_v57  ;;  %v2869_v3 = vadd.f32 %v2867_v60, %v2865_v48 }
 0x255   : > { %v2536_v0 = vsel %vm10115_vm2, %v8048_v26, %v2520_v9  ;;  %vm10116_vm7 = vcmp.eq.s32.totalorder %v7471_v4, 5  ;;  %vm10117_vm3 = vcmp.eq.s32.totalorder %v7475_v59, 5  ;;  %v8447_v5 = vstv %s8273_s24  ;;  %s8466_s24 = sld [smem:[#allocation2 + $0x298]] }
 0x256   : > { %v2548_v8 = vsel %vm10116_vm7, %v8069_v24, %v2532_v25  ;;  %v2552_v13 = vsel %vm10117_vm3, %v8069_v24, %v2536_v0  ;;  %v8450_v41 = vstv %s8283_s30  ;;  %v8453_v58 = vstv %s8293_s11 }
 0x257   : > { %v2873_v42 = vadd.f32 %v2871_v35, %v2869_v3  ;;  %vm10118_vm7 = vcmp.eq.s32.totalorder %v7471_v4, 6  ;;  %vm10119_vm2 = vcmp.eq.s32.totalorder %v7475_v59, 6  ;;  %v8464_v53 = vstv %s8303_s25 }
 0x258   : > { %v2564_v23 = vsel %vm10118_vm7, %v8447_v5, %v2548_v8  ;;  %v2568_v40 = vsel %vm10119_vm2, %v8447_v5, %v2552_v13  ;;  %vm10120_vm15 = vcmp.eq.s32.totalorder %v7471_v4, 7  ;;  %vm10121_vm3 = vcmp.eq.s32.totalorder %v7475_v59, 7 }
 0x259   : > { %v2580_v46 = vsel %vm10120_vm15, %v8450_v41, %v2564_v23  ;;  %v2584_v30 = vsel %vm10121_vm3, %v8450_v41, %v2568_v40  ;;  %v8475_v31 = vstv %s8313_s26  ;;  %v8478_v49 = vstv %s8323_s14 }
 0x25a   : > { %vm10122_vm7 = vcmp.eq.s32.totalorder %v7471_v4, 8  ;;  %vm10123_vm2 = vcmp.eq.s32.totalorder %v7475_v59, 8  ;;  %v8487_v62 = vstv %s8333_s9  ;;  %v8490_v7 = vstv %s8343_s5 }
 0x25b   : > { %v2596_v56 = vsel %vm10122_vm7, %v8453_v58, %v2580_v46  ;;  %v2600_v15 = vsel %vm10123_vm2, %v8453_v58, %v2584_v30  ;;  %vm10124_vm15 = vcmp.eq.s32.totalorder %v7471_v4, 9  ;;  %vm10125_vm3 = vcmp.eq.s32.totalorder %v7475_v59, 9 }
 0x25c   : > { %v2612_v11 = vsel %vm10124_vm15, %v8464_v53, %v2596_v56  ;;  %v2616_v55 = vsel %vm10125_vm3, %v8464_v53, %v2600_v15  ;;  %v8499_v33 = vstv %s8353_s8  ;;  %v8502_v43 = vstv %s8363_s1 }
 0x25d   : > { %vm10126_vm7 = vcmp.eq.s32.totalorder %v7471_v4, 10  ;;  %vm10127_vm2 = vcmp.eq.s32.totalorder %v7475_v59, 10  ;;  %v8511_v34 = vstv %s8373_s12  ;;  %v8514_v22 = vstv %s8383_s3 }
 0x25e   : > { %v2628_v36 = vsel %vm10126_vm7, %v8475_v31, %v2612_v11  ;;  %v2632_v63 = vsel %vm10127_vm2, %v8475_v31, %v2616_v55  ;;  %vm10128_vm15 = vcmp.eq.s32.totalorder %v7471_v4, 11  ;;  %vm10129_vm3 = vcmp.eq.s32.totalorder %v7475_v59, 11 }
 0x25f   : > { %v2644_v14 = vsel %vm10128_vm15, %v8478_v49, %v2628_v36  ;;  %v2648_v52 = vsel %vm10129_vm3, %v8478_v49, %v2632_v63  ;;  %v8523_v20 = vstv %s8394_s15  ;;  %v8526_v47 = vstv %s8408_s16 }
 0x260   : > { %vm10130_vm7 = vcmp.eq.s32.totalorder %v7471_v4, 12  ;;  %vm10131_vm2 = vcmp.eq.s32.totalorder %v7475_v59, 12  ;;  %v8535_v21 = vstv %s8417_s13  ;;  %v8538_v54 = vstv %s8433_s21 }
 0x261   : > { %v2660_v2 = vsel %vm10130_vm7, %v8487_v62, %v2644_v14  ;;  %v2664_v12 = vsel %vm10131_vm2, %v8487_v62, %v2648_v52  ;;  %vm10132_vm15 = vcmp.eq.s32.totalorder %v7471_v4, 13  ;;  %vm10133_vm3 = vcmp.eq.s32.totalorder %v7475_v59, 13  ;;  %v8589_v11 = vpop.eup %4204 }
 0x262   : > { %v2676_v6 = vsel %vm10132_vm15, %v8490_v7, %v2660_v2  ;;  %v2680_v48 = vsel %vm10133_vm3, %v8490_v7, %v2664_v12  ;;  %v8547_v57 = vstv %s8441_s23  ;;  %v8550_v60 = vstv %s8455_s4 }
 0x263   : > { %vm10134_vm7 = vcmp.eq.s32.totalorder %v7471_v4, 14  ;;  %vm10135_vm2 = vcmp.eq.s32.totalorder %v7475_v59, 14  ;;  %v8559_v25 = vstv %s8466_s24  ;;  %v2876_v3 = vmul.f32 %v8091_v16, %v7560_v19 }
 0x264   : > { %v2692_v35 = vsel %vm10134_vm7, %v8499_v33, %v2676_v6  ;;  %v2696_v9 = vsel %vm10135_vm2, %v8499_v33, %v2680_v48  ;;  %vm10136_vm15 = vcmp.eq.s32.totalorder %v7471_v4, 15  ;;  %vm10137_vm3 = vcmp.eq.s32.totalorder %v7475_v59, 15 }
 0x265   : > { %v2708_v0 = vsel %vm10136_vm15, %v8502_v43, %v2692_v35  ;;  %v2712_v8 = vsel %vm10137_vm3, %v8502_v43, %v2696_v9  ;;  %v10138_v13 = vstv %s7255_s18  ;;  %vm10139_vm7 = vcmp.eq.s32.totalorder %v7806_v17, 25  ;;  %s10171_s18 = sld [smem:[#allocation29_spill]] }
 0x266   : > { %v2307_v23 = vsel %vm10139_vm7, %v10138_v13, 0.0  ;;  %v2469_v40 = vsel %vm2461_vm14, %v7979_v18, 0.0  ;;  %vm10140_vm2 = vcmp.eq.s32.totalorder %v7471_v4, 16  ;;  %vm10141_vm15 = vcmp.eq.s32.totalorder %v7475_v59, 16 }
 0x267   : > { %v2724_v19 = vsel %vm10140_vm2, %v8511_v34, %v2708_v0  ;;  %v2728_v46 = vsel %vm10141_vm15, %v8511_v34, %v2712_v8  ;;  %v10142_v30 = vstv %s7258_s6  ;;  %vm10143_vm3 = vcmp.eq.s32.totalorder %v7806_v17, 26  ;;  %s10178_s6 = sld [smem:[#allocation30_spill]] }
 0x268   : > { %v2317_v56 = vsel %vm10143_vm3, %v10142_v30, %v2307_v23  ;;  %v2473_v15 = vsel %vm2463_vm11, %v7979_v18, 0.0  ;;  %vm10144_vm14 = vcmp.eq.s32.totalorder %v7471_v4, 17  ;;  %vm10145_vm7 = vcmp.eq.s32.totalorder %v7475_v59, 17 }
 0x269   : > { %v2740_v55 = vsel %vm10144_vm14, %v8514_v22, %v2724_v19  ;;  %v2744_v36 = vsel %vm10145_vm7, %v8514_v22, %v2728_v46  ;;  %v10146_v63 = vstv %s7269_s20  ;;  %vm10147_vm2 = vcmp.eq.s32.totalorder %v7806_v17, 27  ;;  %s10189_s20 = sld [smem:[#allocation19_spill]] }
 0x26a   : > { %v2327_v14 = vsel %vm10147_vm2, %v10146_v63, %v2317_v56  ;;  %v2485_v52 = vsel %vm2477_vm13, %v7982_v61, %v2469_v40  ;;  %v2875_v18 = vmul.f32 %v8589_v11, %v2873_v42  ;;  %vm10148_vm11 = vcmp.eq.s32.totalorder %v7471_v4, 18 }
 0x26b   : > { %v2756_v2 = vsel %vm10148_vm11, %v8523_v20, %v2740_v55  ;;  %vm10149_vm15 = vcmp.eq.s32.totalorder %v7475_v59, 18  ;;  %v10150_v6 = vstv %s7696_s28  ;;  %vm10151_vm3 = vcmp.eq.s32.totalorder %v7806_v17, 28  ;;  %s10205_s28 = sld [smem:[#allocation31_spill]] }
 0x26c   : > { %v2760_v12 = vsel %vm10149_vm15, %v8523_v20, %v2744_v36  ;;  %v2337_v48 = vsel %vm10151_vm3, %v10150_v6, %v2327_v14  ;;  %vm10152_vm14 = vcmp.eq.s32.totalorder %v7471_v4, 19  ;;  %vm10153_vm13 = vcmp.eq.s32.totalorder %v7475_v59, 19  ;;  %2959 = vst [vmem:[%s6874_s27 + $0x18] sm:$0xff] %v2875_v18 }
 0x26d   : > { %v2772_v35 = vsel %vm10152_vm14, %v8526_v47, %v2756_v2  ;;  %v2776_v42 = vsel %vm10153_vm13, %v8526_v47, %v2760_v12  ;;  %v10154_v9 = vstv %s7714_s7  ;;  %vm10155_vm7 = vcmp.eq.s32.totalorder %v7806_v17, 29  ;;  %s10248_s7 = sld [smem:[#allocation18_spill]] }
 0x26e   : > { %v2347_v0 = vsel %vm10155_vm7, %v10154_v9, %v2337_v48  ;;  %v2489_v8 = vsel %vm2479_vm8, %v7982_v61, %v2473_v15  ;;  %vm10156_vm2 = vcmp.eq.s32.totalorder %v7471_v4, 20  ;;  %vm10157_vm11 = vcmp.eq.s32.totalorder %v7475_v59, 20 }
 0x26f   : > { %v2788_v13 = vsel %vm10156_vm2, %v8535_v21, %v2772_v35  ;;  %v2792_v23 = vsel %vm10157_vm11, %v8535_v21, %v2776_v42  ;;  %v10158_v40 = vstv %s7772_s2  ;;  %vm10159_vm15 = vcmp.eq.s32.totalorder %v7806_v17, 30 }
 0x270   : > { %v2357_v19 = vsel %vm10159_vm15, %v10158_v40, %v2347_v0  ;;  %v2501_v46 = vsel %vm2493_vm6, %v8042_v39, %v2485_v52  ;;  %vm10160_vm8 = vcmp.eq.s32.totalorder %v7471_v4, 21  ;;  %vm10161_vm3 = vcmp.eq.s32.totalorder %v7475_v59, 21 }
 0x271   : > { %v2804_v61 = vsel %vm10160_vm8, %v8538_v54, %v2788_v13  ;;  %v2808_v30 = vsel %vm10161_vm3, %v8538_v54, %v2792_v23  ;;  %v10162_v56 = vstv %s7783_s17  ;;  %vm10163_vm14 = vcmp.eq.s32.totalorder %v7806_v17, 31  ;;  %v10176_v13 = vld [vmem:[#allocation77_spill] sm:$0xff] }
 0x272   : > { %v2367_v15 = vsel %vm10163_vm14, %v10162_v56, %v2357_v19  ;;  %v2505_v55 = vsel %vm2495_vm4, %v8042_v39, %v2489_v8  ;;  %vm10164_vm13 = vcmp.eq.s32.totalorder %v7471_v4, 22  ;;  %vm10165_vm6 = vcmp.eq.s32.totalorder %v7475_v59, 22 }
 0x273   : > { %v2820_v36 = vsel %vm10164_vm13, %v8547_v57, %v2804_v61  ;;  %v2824_v63 = vsel %vm10165_vm6, %v8547_v57, %v2808_v30  ;;  %v10166_v14 = vstv %s7792_s19  ;;  %v2517_v18 = vsel %vm2509_vm1, %v8045_v27, %v2501_v46  ;;  %s8922_s2 = sshll.u32 %s10248_s7, 6  ;;  %s4121_s19 = smul.u32 144, %s10248_s7 }
 0x274   : > { %v2377_v52 = vsel %vm2369_vm9, %v10166_v14, %v2367_v15  ;;  %vm10167_vm4 = vcmp.eq.s32.totalorder %v7471_v4, 23  ;;  %vm10168_vm7 = vcmp.eq.s32.totalorder %v7475_v59, 23  ;;  %v10169_v12 = vstv %s7804_s0  ;;  %s8948_s17 = scalar_lea.vmem [#allocation8], %s8922_s2  ;;  %s9108_s0 = scalar_lea.vmem [#allocation9], %s8922_s2 }
 0x275   : > { %v2836_v39 = vsel %vm10167_vm4, %v8550_v60, %v2820_v36  ;;  %v2840_v2 = vsel %vm10168_vm7, %v8550_v60, %v2824_v63  ;;  %v2387_v6 = vsel %vm2379_vm0, %v10169_v12, %v2377_v52  ;;  %v2521_v48 = vsel %vm2511_vm12, %v8045_v27, %v2505_v55  ;;  %v10177_v27 = vld [vmem:[#allocation76_spill] sm:$0xff]  ;;  %v10192_v52 = vld [vmem:[#allocation23_spill] sm:$0xff] }
 0x276   : > { %vm10170_vm9 = vcmp.eq.s32.totalorder %v7471_v4, 24  ;;  %vm10172_vm1 = vcmp.eq.s32.totalorder %v7475_v59, 24  ;;  %v10173_v9 = vstv %s7810_s22  ;;  %vm10174_vm2 = vcmp.eq.s32.totalorder %v7806_v17, 34  ;;  %s9115_s22 = scalar_lea.vmem [#allocation11], %s4121_s19 }
 0x277   : > { %v2852_v35 = vsel %vm10170_vm9, %v8559_v25, %v2836_v39  ;;  %v2856_v42 = vsel %vm10172_vm1, %v8559_v25, %v2840_v2  ;;  %v2397_v0 = vsel %vm10174_vm2, %v10173_v9, %v2387_v6  ;;  %vm10175_vm0 = vcmp.eq.s32.totalorder %v8132_v32, 4 }
 0x278   : > { %v2533_v8 = vsel %vm10175_vm0, %v8048_v26, %v2517_v18  ;;  %v2878_v23 = vmul.f32 %v2852_v35, %v10176_v13  ;;  %v2882_v40 = vmul.f32 %v2856_v42, %v10177_v27  ;;  %v8697_v4 = vsub.f32 %v2852_v35, %v8091_v16  ;;  %v10193_v18 = vld [vmem:[#allocation37_spill] sm:$0xff] }
 0x279   : > { %v8700_v19 = vsub.f32 %v2856_v42, %v8091_v16  ;;  %v10179_v59 = vstv %s7825_s10  ;;  %vm10180_vm12 = vcmp.eq.s32.totalorder %v7806_v17, 35  ;;  %vm10181_vm11 = vcmp.eq.s32.totalorder %v8137_v51, 4  ;;  %v10200_v42 = vld [vmem:[#allocation36_spill] sm:$0xff]  ;;  %s9135_s10 = scalar_lea.vmem [#allocation10], %s8922_s2 }
 0x27a   : > { %v2407_v46 = vsel %vm10180_vm12, %v10179_v59, %v2397_v0  ;;  %v2537_v61 = vsel %vm10181_vm11, %v8048_v26, %v2521_v48  ;;  %vm10182_vm15 = vcmp.eq.s32.totalorder %v8132_v32, 5  ;;  %v2880_v56 = vadd.f32 %v2878_v23, %v2876_v3  ;;  %v10201_v0 = vld [vmem:[#allocation25_spill] sm:$0xff] }
 0x27b   : > { %v2549_v30 = vsel %vm10182_vm15, %v8069_v24, %v2533_v8  ;;  %v10183_v15 = vstv %s7833_s29  ;;  %vm10184_vm8 = vcmp.eq.s32.totalorder %v7806_v17, 36  ;;  %vm10185_vm3 = vcmp.eq.s32.totalorder %v8137_v51, 5  ;;  %v10202_v8 = vld [vmem:[#allocation35_spill] sm:$0xff]  ;;  %s10286_s29 = sld [smem:[#allocation17_spill]] }
 0x27c   : > { %v2417_v55 = vsel %vm10184_vm8, %v10183_v15, %v2407_v46  ;;  %v2553_v16 = vsel %vm10185_vm3, %v8069_v24, %v2537_v61  ;;  %vm10186_vm14 = vcmp.eq.s32.totalorder %v8132_v32, 6  ;;  %v10187_v63 = vstv %s10171_s18 }
 0x27d   : > { %v2565_v36 = vsel %vm10186_vm14, %v8447_v5, %v2549_v30  ;;  %vm10188_vm13 = vcmp.eq.s32.totalorder %v7806_v17, 37  ;;  %vm10190_vm6 = vcmp.eq.s32.totalorder %v8137_v51, 6  ;;  %vm10191_vm4 = vcmp.eq.s32.totalorder %v8132_v32, 7  ;;  %v10211_v30 = vld [vmem:[#allocation38_spill] sm:$0xff] }
 0x27e   : > { %v2427_v26 = vsel %vm10188_vm13, %v10187_v63, %v2417_v55  ;;  %v2569_v3 = vsel %vm10190_vm6, %v8447_v5, %v2553_v16  ;;  %v2581_v14 = vsel %vm10191_vm4, %v8450_v41, %v2565_v36  ;;  %v8734_v24 = vsub.f32 %v10193_v18, %v10192_v52  ;;  %v10214_v55 = vld [vmem:[#allocation39_spill] sm:$0xff]  ;;  %v10216_v36 = vld [vmem:[#allocation62_spill] sm:$0xff] }
 0x27f   : > { %v2884_v39 = vadd.f32 %v2882_v40, %v2880_v56  ;;  %v10194_v2 = vstv %s10178_s6  ;;  %vm10195_vm7 = vcmp.eq.s32.totalorder %v7806_v17, 38  ;;  %vm10196_vm9 = vcmp.eq.s32.totalorder %v8137_v51, 7  ;;  %v10215_v16 = vld [vmem:[#allocation60_spill] sm:$0xff] }
 0x280   : > { %v2437_v12 = vsel %vm10195_vm7, %v10194_v2, %v2427_v26  ;;  %v2585_v6 = vsel %vm10196_vm9, %v8450_v41, %v2569_v3  ;;  %vm10197_vm1 = vcmp.eq.s32.totalorder %v8132_v32, 8  ;;  %vm10198_vm2 = vcmp.eq.s32.totalorder %v8137_v51, 8  ;;  %v10203_v41 = vld [vmem:[#allocation83_spill] sm:$0xff] }
 0x281   : > { %v2597_v5 = vsel %vm10197_vm1, %v8453_v58, %v2581_v14  ;;  %v2601_v48 = vsel %vm10198_vm2, %v8453_v58, %v2585_v6  ;;  %vm10199_vm0 = vcmp.eq.s32.totalorder %v8132_v32, 9  ;;  %v8754_v9 = vsub.f32 %v10200_v42, %v10192_v52  ;;  %v10228_v42 = vld [vmem:[#allocation73_spill] sm:$0xff]  ;;  %p10287_p4 = scmp.ne.s32.totalorder %s10286_s29, 0 }
 0x282   : > { %v2613_v35 = vsel %vm10199_vm0, %v8464_v53, %v2597_v5  ;;  %v8758_v13 = vsub.f32 %v10202_v8, %v10201_v0  ;;  %v2886_v23 = vmul.f32 %v10203_v41, %v2884_v39  ;;  %vm10204_vm12 = vcmp.eq.s32.totalorder %v8137_v51, 9  ;;  %s10288_s4 = sld [smem:[#allocation14_spill]] (%p10287_p4) }
 0x283   : > { %v2617_v27 = vsel %vm10204_vm12, %v8464_v53, %v2601_v48  ;;  %vm10206_vm11 = vcmp.eq.s32.totalorder %v8132_v32, 10  ;;  %v10207_v40 = vstv %s10189_s20  ;;  %vm10208_vm15 = vcmp.eq.s32.totalorder %v7806_v17, 39  ;;  %s10289_s23 = sld [smem:[#allocation40_spill]] (%p10287_p4) }
 0x284   : > { %v2629_v58 = vsel %vm10206_vm11, %v8475_v31, %v2613_v35  ;;  %v2447_v59 = vsel %vm10208_vm15, %v10207_v40, %v2437_v12  ;;  %vm10209_vm8 = vcmp.eq.s32.totalorder %v8137_v51, 10  ;;  %vm10210_vm3 = vcmp.eq.s32.totalorder %v8132_v32, 11  ;;  %2960 = vst [vmem:[%s6874_s27 + $0x20] sm:$0xff] %v2886_v23  ;;  %v10227_v35 = vld [vmem:[#allocation66_spill] sm:$0xff]  ;;  %s10290_s11 = sld [smem:[#allocation92_spill]] (%p10287_p4) }
 0x285   : > { %v2633_v46 = vsel %vm10209_vm8, %v8475_v31, %v2617_v27  ;;  %v2645_v61 = vsel %vm10210_vm3, %v8478_v49, %v2629_v58  ;;  %v8779_v56 = vsub.f32 %v10211_v30, %v10201_v0  ;;  %vm10212_vm14 = vcmp.eq.s32.totalorder %v8137_v51, 11  ;;  %v10233_v27 = vld [vmem:[#allocation71_spill] sm:$0xff]  ;;  %v10238_v30 = vld [vmem:[#allocation42_spill] sm:$0xff] }
 0x286   : > { %v2649_v53 = vsel %vm10212_vm14, %v8478_v49, %v2633_v46  ;;  %vm10213_vm13 = vcmp.eq.s32.totalorder %v8132_v32, 12  ;;  %v1216_v31 = vsub.f32 %v10215_v16, %v10214_v55  ;;  %v1218_v63 = vsub.f32 %v10216_v36, %v10214_v55  ;;  %v10236_v46 = vld [vmem:[#allocation74_spill] sm:$0xff] }
 0x287   : > { %v2661_v15 = vsel %vm10213_vm13, %v8487_v62, %v2645_v61  ;;  %vm10217_vm6 = vcmp.eq.s32.totalorder %v8137_v51, 12  ;;  %vm10218_vm4 = vcmp.eq.s32.totalorder %v8132_v32, 13  ;;  %v1224_v49 = vmul.f32 %v8779_v56, %v8734_v24 }
 0x288   : > { %v2665_v26 = vsel %vm10217_vm6, %v8487_v62, %v2649_v53  ;;  %v2677_v3 = vsel %vm10218_vm4, %v8490_v7, %v2661_v15  ;;  %v1226_v14 = vmul.f32 %v8758_v13, %v8754_v9  ;;  %v10219_v52 = vstv %s10205_s28  ;;  %s4112_s21 = sshll.u32 (%p10287_p4), %s10288_s4, 4 }
 0x289   : > { %vm10220_vm7 = vcmp.eq.s32.totalorder %v7806_v17, 40  ;;  %vm10221_vm9 = vcmp.eq.s32.totalorder %v8137_v51, 13  ;;  %vm10222_vm1 = vcmp.eq.s32.totalorder %v8132_v32, 14  ;;  %v8815_v2 = vmul.f32 %v1216_v31, %v8779_v56 }
 0x28a   : > { %v8806_v18 = vsel %vm10220_vm7, %v10219_v52, %v2447_v59  ;;  %v2681_v39 = vsel %vm10221_vm9, %v8490_v7, %v2665_v26  ;;  %v2693_v62 = vsel %vm10222_vm1, %v8499_v33, %v2677_v3  ;;  %vm10223_vm2 = vcmp.eq.s32.totalorder %v8137_v51, 14  ;;  %s3073_s25 = scalar_lea.vmem (%p10287_p4), %s10290_s11, %s4112_s21 }
 0x28b   : > { %v2697_v12 = vsel %vm10223_vm2, %v8499_v33, %v2681_v39  ;;  %vm10224_vm0 = vcmp.eq.s32.totalorder %v8132_v32, 15  ;;  %v1228_v6 = vsub.f32 %v1224_v49, %v1226_v14  ;;  %v8824_v5 = vmul.f32 %v1218_v63, %v8758_v13  ;;  %v10229_v33 = vld [vmem:[#allocation72_spill] sm:$0xff] }
 0x28c   : > { %v2709_v17 = vsel %vm10224_vm0, %v8502_v43, %v2693_v62  ;;  %vm10225_vm12 = vcmp.eq.s32.totalorder %v8137_v51, 15  ;;  %vm10226_vm11 = vcmp.eq.s32.totalorder %v8132_v32, 16  ;;  %v1209_v0 = vsub.f32 %v10228_v42, %v10227_v35 }
 0x28d   : > { %v2713_v7 = vsel %vm10225_vm12, %v8502_v43, %v2697_v12  ;;  %v2725_v48 = vsel %vm10226_vm11, %v8511_v34, %v2709_v17  ;;  %v1211_v8 = vsub.f32 %v10229_v33, %v10227_v35  ;;  %vm10230_vm15 = vcmp.eq.s32.totalorder %v8137_v51, 16  ;;  %v10232_v43 = vld [vmem:[#allocation67_spill] sm:$0xff] }
 0x28e   : > { %v2729_v41 = vsel %vm10230_vm15, %v8511_v34, %v2713_v7  ;;  %vm10231_vm8 = vcmp.eq.s32.totalorder %v8132_v32, 17  ;;  %4206 = vrcp.f32 %v1228_v6  ;;  %v1213_v58 = vsub.f32 %v10233_v27, %v10232_v43  ;;  %v10237_v34 = vld [vmem:[#allocation70_spill] sm:$0xff]  ;;  %v10256_v27 = vld [vmem:[#allocation43_spill] sm:$0xff] }
 0x28f   : > { %v2741_v23 = vsel %vm10231_vm8, %v8514_v22, %v2725_v48  ;;  %vm10234_vm3 = vcmp.eq.s32.totalorder %v8137_v51, 17  ;;  %vm10235_vm14 = vcmp.eq.s32.totalorder %v8132_v32, 18  ;;  %v1215_v61 = vsub.f32 %v10236_v46, %v10232_v43 }
 0x290   : > { %v2745_v40 = vsel %vm10234_vm3, %v8514_v22, %v2729_v41  ;;  %v2757_v59 = vsel %vm10235_vm14, %v8523_v20, %v2741_v23  ;;  %v1217_v53 = vsub.f32 %v10238_v30, %v10237_v34  ;;  %vm10239_vm13 = vcmp.eq.s32.totalorder %v8137_v51, 18  ;;  %v10241_v22 = vld [vmem:[#allocation44_spill] sm:$0xff]  ;;  %v10252_v41 = vld [vmem:[#allocation63_spill] sm:$0xff] }
 0x291   : > { %v2761_v15 = vsel %vm10239_vm13, %v8523_v20, %v2745_v40  ;;  %vm10240_vm6 = vcmp.eq.s32.totalorder %v8132_v32, 19  ;;  %v1219_v16 = vsub.f32 %v10241_v22, %v10237_v34  ;;  %v1227_v36 = vmul.f32 %v1213_v58, %v1211_v8  ;;  %v10253_v23 = vld [vmem:[#allocation64_spill] sm:$0xff] }
 0x292   : > { %v2773_v55 = vsel %vm10240_vm6, %v8526_v47, %v2757_v59  ;;  %vm10242_vm4 = vcmp.eq.s32.totalorder %v8137_v51, 19  ;;  %vm10243_vm7 = vcmp.eq.s32.totalorder %v8132_v32, 20  ;;  %v1225_v49 = vmul.f32 %v1215_v61, %v1209_v0  ;;  %v10257_v59 = vld [vmem:[#allocation45_spill] sm:$0xff] }
 0x293   : > { %v2777_v26 = vsel %vm10242_vm4, %v8526_v47, %v2761_v15  ;;  %v2789_v3 = vsel %vm10243_vm7, %v8535_v21, %v2773_v55  ;;  %v8868_v14 = vmul.f32 %v1217_v53, %v1215_v61  ;;  %vm10244_vm9 = vcmp.eq.s32.totalorder %v8137_v51, 20 }
 0x294   : > { %v2793_v20 = vsel %vm10244_vm9, %v8535_v21, %v2777_v26  ;;  %vm10245_vm1 = vcmp.eq.s32.totalorder %v8132_v32, 21  ;;  %v8876_v39 = vmul.f32 %v1219_v16, %v1213_v58  ;;  %v1240_v62 = vmul.f32 %v1218_v63, %v8734_v24 }
 0x295   : > { %v2805_v52 = vsel %vm10245_vm1, %v8538_v54, %v2789_v3  ;;  %v2809_v47 = vsel %vm2799_vm10, %v8538_v54, %v2793_v20  ;;  %vm10246_vm2 = vcmp.eq.s32.totalorder %v8132_v32, 22  ;;  %v1229_v17 = vsub.f32 %v1225_v49, %v1227_v36  ;;  %v10259_v20 = vld [vmem:[#allocation48_spill] sm:$0xff] }
 0x296   : > { %v2821_v12 = vsel %vm10246_vm2, %v8547_v57, %v2805_v52  ;;  %v1242_v6 = vmul.f32 %v1216_v31, %v8754_v9  ;;  %v2825_v21 = vsel %vm2815_vm5, %v8547_v57, %v2809_v47  ;;  %vm10247_vm0 = vcmp.eq.s32.totalorder %v8132_v32, 23  ;;  %v10262_v47 = vld [vmem:[#allocation88_spill] sm:$0xff] }
 0x297   : > { %v2837_v7 = vsel %vm10247_vm0, %v8550_v60, %v2821_v12  ;;  %v2877_v63 = vmul.f32 %v8806_v18, %v8211_v45  ;;  %v8894_v54 = vmul.f32 %v1219_v16, %v1209_v0  ;;  %vm10249_vm10 = vcmp.eq.s32.totalorder %v8137_v51, 23 }
 0x298   : > { %v2841_v48 = vsel %vm10249_vm10, %v8550_v60, %v2825_v21  ;;  %vm10250_vm12 = vcmp.eq.s32.totalorder %v8132_v32, 24  ;;  %v1236_v57 = vsub.f32 %v8815_v2, %v8824_v5  ;;  %4208 = vrcp.f32 %v1229_v17  ;;  %v10254_v5 = vld [vmem:[#allocation65_spill] sm:$0xff]  ;;  %v10263_v17 = vld [vmem:[#allocation47_spill] sm:$0xff] }
 0x299   : > { %v8902_v31 = vsel %vm10250_vm12, %v8559_v25, %v2837_v7  ;;  %vm10251_vm5 = vcmp.eq.s32.totalorder %v8137_v51, 24  ;;  %v1237_v60 = vsub.f32 %v8868_v14, %v8876_v39  ;;  %v1243_v42 = vmul.f32 %v1217_v53, %v1211_v8  ;;  %v10258_v14 = vld [vmem:[#allocation46_spill] sm:$0xff] }
 0x29a   : > { %v8909_v35 = vsel %vm10251_vm5, %v8559_v25, %v2841_v48  ;;  %v2879_v45 = vmul.f32 %v8902_v31, %v8213_v1  ;;  %v1244_v33 = vsub.f32 %v1240_v62, %v1242_v6  ;;  %v1220_v2 = vsub.f32 %v10253_v23, %v10252_v41  ;;  %v10255_v1 = vld [vmem:[#allocation75_spill] sm:$0xff]  ;;  %v10264_v6 = vld [vmem:[#allocation53_spill] sm:$0xff]  ;;  %v10265_v7 = vld [vmem:[#allocation54_spill] sm:$0xff] }
 0x29b   : > { %v2883_v32 = vmul.f32 %v8909_v35, %v8202_v44  ;;  %v1222_v43 = vsub.f32 %v10254_v5, %v10252_v41  ;;  %v1245_v25 = vsub.f32 %v8894_v54, %v1243_v42  ;;  %v1221_v40 = vsub.f32 %v10256_v27, %v10255_v1  ;;  %v4207_v36 = vpop.eup %4206  ;;  %v10266_v54 = vld [vmem:[#allocation50_spill] sm:$0xff]  ;;  %v10269_v23 = vld [vmem:[#allocation56_spill] sm:$0xff]  ;;  %v10270_v5 = vld [vmem:[#allocation59_spill] sm:$0xff] }
 0x29c   : > { %v2881_v51 = vadd.f32 %v2879_v45, %v2877_v63  ;;  %v1223_v46 = vsub.f32 %v10257_v59, %v10255_v1  ;;  %v1248_v44 = vmul.f32 %v1220_v2, %v8779_v56  ;;  %v1258_v53 = vmul.f32 %v1220_v2, %v8754_v9 }
 0x29d   : > { %v1250_v34 = vmul.f32 %v1222_v43, %v8758_v13  ;;  %v1256_v30 = vmul.f32 %v1222_v43, %v8734_v24  ;;  %v1249_v55 = vmul.f32 %v1221_v40, %v1215_v61  ;;  %v1259_v49 = vmul.f32 %v1221_v40, %v1211_v8 }
 0x29e   : > { %v2885_v15 = vadd.f32 %v2883_v32, %v2881_v51  ;;  %v1251_v22 = vmul.f32 %v1223_v46, %v1213_v58  ;;  %v1257_v16 = vmul.f32 %v1223_v46, %v1209_v0  ;;  %v2052_v52 = vsub.f32 %v10259_v20, %v10258_v14  ;;  %v10260_v0 = vld [vmem:[#allocation49_spill] sm:$0xff]  ;;  %v10274_v20 = vld [vmem:[#allocation86_spill] sm:$0xff] }
 0x29f   : > { %v1252_v26 = vsub.f32 %v1248_v44, %v1250_v34  ;;  %v1260_v3 = vsub.f32 %v1256_v30, %v1258_v53  ;;  %v8936_v13 = vmul.f32 %v4207_v36, %v1236_v57  ;;  %v8938_v24 = vmul.f32 %v4207_v36, %v1244_v33  ;;  %v10267_v57 = vld [vmem:[#allocation87_spill] sm:$0xff]  ;;  %v10271_v51 = vld [vmem:[#allocation61_spill] sm:$0xff] }
 0x2a0   : > { %v2887_v56 = vmul.f32 %v8589_v11, %v2885_v15  ;;  %v1253_v9 = vsub.f32 %v1249_v55, %v1251_v22  ;;  %v1261_v58 = vsub.f32 %v1257_v16, %v1259_v49  ;;  %v2054_v62 = vsub.f32 %v10260_v0, %v10258_v14  ;;  %v10261_v11 = vld [vmem:[#allocation51_spill] sm:$0xff]  ;;  %v10272_v15 = vld [vmem:[#allocation52_spill] sm:$0xff]  ;;  %v10273_v55 = vld [vmem:[#allocation85_spill] sm:$0xff] }
 0x2a1   : > { %v8940_v39 = vmul.f32 %v4207_v36, %v1252_v26  ;;  %v8942_v61 = vmul.f32 %v4207_v36, %v1260_v3  ;;  %2962 = vst [vmem:[%s8948_s17] sm:$0xff] %v8936_v13  ;;  %2964 = vst [vmem:[%s8948_s17 + $0x10] sm:$0xff] %v8938_v24  ;;  %v2066_v8 = vmul.f32 %v2052_v52, %v10261_v11  ;;  %v10268_v33 = vld [vmem:[#allocation55_spill] sm:$0xff] }
 0x2a2   : > { %2961 = vst [vmem:[%s6874_s27 + $0x28] sm:$0xff] %v2887_v56  ;;  %v8956_v12 = vmul.f32 %v10262_v47, %v2052_v52  ;;  %v2053_v21 = vsub.f32 %v10264_v6, %v10263_v17  ;;  %v2055_v63 = vsub.f32 %v10265_v7, %v10263_v17  ;;  %v2064_v48 = vmul.f32 %v2054_v62, %v10266_v54  ;;  %v10278_v17 = vld [vmem:[#allocation41_spill] sm:$0xff] }
 0x2a3   : > { %2966 = vst [vmem:[%s8948_s17 + $0x20] sm:$0xff] %v8940_v39  ;;  %2968 = vst [vmem:[%s8948_s17 + $0x30] sm:$0xff] %v8942_v61  ;;  %v8968_v45 = vmul.f32 %v10267_v57, %v2054_v62  ;;  %v8972_v42 = vmul.f32 %v10262_v47, %v10266_v54  ;;  %v8976_v32 = vmul.f32 %v10267_v57, %v10261_v11  ;;  %v10279_v6 = vld [vmem:[#allocation69_spill] sm:$0xff] }
 0x2a4   : > { %v2065_v41 = vmul.f32 %v2055_v63, %v10268_v33  ;;  %v2067_v2 = vmul.f32 %v2053_v21, %v10269_v23  ;;  %v8981_v43 = vmul.f32 %v10270_v5, %v2055_v63  ;;  %v8984_v1 = vmul.f32 %v10271_v51, %v2053_v21 }
 0x2a5   : > { %v2068_v27 = vsub.f32 %v2064_v48, %v2066_v8  ;;  %v2076_v40 = vsub.f32 %v8968_v45, %v8956_v12  ;;  %v2084_v59 = vsub.f32 %v8972_v42, %v8976_v32  ;;  %v8992_v46 = vmul.f32 %v10271_v51, %v10268_v33  ;;  %v4209_v44 = vpop.eup %4208  ;;  %v10280_v48 = vld [vmem:[#allocation68_spill] sm:$0xff] }
 0x2a6   : > { %v2069_v34 = vsub.f32 %v2065_v41, %v2067_v2  ;;  %v2077_v30 = vsub.f32 %v8981_v43, %v8984_v1  ;;  %v8998_v53 = vmul.f32 %v10270_v5, %v10269_v23  ;;  %v2060_v22 = vsub.f32 %v10273_v55, %v10272_v15  ;;  %v10284_v55 = vld [vmem:[#allocation81_spill] sm:$0xff] }
 0x2a7   : > { %v9002_v16 = vmul.f32 %v4209_v44, %v1237_v60  ;;  %v9004_v36 = vmul.f32 %v4209_v44, %v1245_v25  ;;  %v9006_v26 = vmul.f32 %v4209_v44, %v1253_v9  ;;  %v9008_v3 = vmul.f32 %v4209_v44, %v1261_v58  ;;  %v10275_v60 = vld [vmem:[#allocation89_spill] sm:$0xff]  ;;  %v10277_v9 = vld [vmem:[#allocation58_spill] sm:$0xff] }
 0x2a8   : > { %v9012_v49 = vsub.f32 %v8902_v31, %v8806_v18  ;;  %4210 = vrcp.f32 %v2068_v27  ;;  %v2085_v14 = vsub.f32 %v8992_v46, %v8998_v53  ;;  %v2062_v56 = vsub.f32 %v10274_v20, %v10272_v15  ;;  %v10276_v25 = vld [vmem:[#allocation57_spill] sm:$0xff]  ;;  %v10281_v46 = vld [vmem:[#allocation78_spill] sm:$0xff]  ;;  %v10283_v53 = vld [vmem:[#allocation80_spill] sm:$0xff] }
 0x2a9   : > { %2963 = vst [vmem:[%s8948_s17 + $0x8] sm:$0xff] %v9002_v16  ;;  %2965 = vst [vmem:[%s8948_s17 + $0x18] sm:$0xff] %v9004_v36  ;;  %4212 = vrcp.f32 %v2069_v34  ;;  %v2061_v31 = vsub.f32 %v10276_v25, %v10275_v60  ;;  %v2063_v58 = vsub.f32 %v10277_v9, %v10275_v60  ;;  %v2098_v0 = vmul.f32 %v2060_v22, %v10261_v11 }
 0x2aa   : > { %2967 = vst [vmem:[%s8948_s17 + $0x28] sm:$0xff] %v9006_v26  ;;  %2969 = vst [vmem:[%s8948_s17 + $0x38] sm:$0xff] %v9008_v3  ;;  %v9033_v8 = vsub.f32 %v8909_v35, %v8806_v18  ;;  %v2096_v47 = vmul.f32 %v2062_v56, %v10266_v54  ;;  %v2892_v7 = vsub.f32 %v10279_v6, %v10278_v17  ;;  %v10282_v18 = vld [vmem:[#allocation79_spill] sm:$0xff] }
 0x2ab   : > { %v2894_v57 = vsub.f32 %v10280_v48, %v10278_v17  ;;  %v2088_v41 = vmul.f32 %v2060_v22, %v2054_v62  ;;  %v2090_v2 = vmul.f32 %v2062_v56, %v2052_v52  ;;  %v2097_v5 = vmul.f32 %v2063_v58, %v10268_v33  ;;  %v10285_v52 = vld [vmem:[#allocation82_spill] sm:$0xff] }
 0x2ac   : > { %v2099_v51 = vmul.f32 %v2061_v31, %v10269_v23  ;;  %v2089_v27 = vmul.f32 %v2061_v31, %v2055_v63  ;;  %v2100_v11 = vsub.f32 %v2096_v47, %v2098_v0  ;;  %v2906_v35 = vmul.f32 %v2892_v7, %v10282_v18 }
 0x2ad   : > { %v2904_v44 = vmul.f32 %v2894_v57, %v10281_v46  ;;  %v2091_v34 = vmul.f32 %v2063_v58, %v2053_v21  ;;  %v9045_v15 = vmul.f32 %v10283_v53, %v2894_v57  ;;  %v9048_v20 = vmul.f32 %v10284_v55, %v2892_v7 }
 0x2ae   : > { %v2101_v54 = vsub.f32 %v2097_v5, %v2099_v51  ;;  %v2893_v33 = vsub.f32 %v8113_v29, %v10285_v52  ;;  %v2895_v63 = vsub.f32 %v8160_v50, %v10285_v52  ;;  %v9056_v23 = vmul.f32 %v10284_v55, %v10281_v46 }
 0x2af   : > { %v2908_v62 = vsub.f32 %v2904_v44, %v2906_v35  ;;  %v2916_v21 = vsub.f32 %v9045_v15, %v9048_v20  ;;  %v2922_v22 = vmul.f32 %v10283_v53, %v10282_v18  ;;  %v9064_v56 = vmul.f32 %v8423_v38, %v8406_v37 }
 0x2b0   : > { %v9068_v29 = vmul.f32 %v8420_v28, %v8415_v10  ;;  %v2905_v50 = vmul.f32 %v2895_v63, %v8406_v37  ;;  %v2907_v60 = vmul.f32 %v2893_v33, %v8415_v10  ;;  %v9073_v25 = vmul.f32 %v8420_v28, %v2895_v63 }
 0x2b1   : > { %4214 = vrcp.f32 %v2908_v62  ;;  %v9076_v31 = vmul.f32 %v8423_v38, %v2893_v33  ;;  %v2924_v9 = vsub.f32 %v9056_v23, %v2922_v22  ;;  %v2928_v0 = vmul.f32 %v8697_v4, %v2894_v57 }
 0x2b2   : > { %v2925_v58 = vsub.f32 %v9064_v56, %v9068_v29  ;;  %v2092_v47 = vsub.f32 %v2088_v41, %v2090_v2  ;;  %v2909_v17 = vsub.f32 %v2905_v50, %v2907_v60  ;;  %v2930_v6 = vmul.f32 %v8700_v19, %v2892_v7 }
 0x2b3   : > { %v2093_v48 = vsub.f32 %v2089_v27, %v2091_v34  ;;  %v2917_v28 = vsub.f32 %v9073_v25, %v9076_v31  ;;  %v2936_v38 = vmul.f32 %v8700_v19, %v10281_v46  ;;  %v2938_v5 = vmul.f32 %v8697_v4, %v10282_v18 }
 0x2b4   : > { %4216 = vrcp.f32 %v2909_v17  ;;  %v2932_v51 = vsub.f32 %v2928_v0, %v2930_v6  ;;  %v2937_v57 = vmul.f32 %v9033_v8, %v8406_v37  ;;  %v2939_v41 = vmul.f32 %v9012_v49, %v8415_v10 }
 0x2b5   : > { %v4211_v7 = vpop.eup %4210  ;;  %v2940_v2 = vsub.f32 %v2936_v38, %v2938_v5  ;;  %v2929_v32 = vmul.f32 %v9012_v49, %v2895_v63  ;;  %v2931_v43 = vmul.f32 %v9033_v8, %v2893_v33 }
 0x2b6   : > { %v4213_v27 = vpop.eup %4212  ;;  %v2078_v44 = vmul.f32 %v4211_v7, %v2076_v40  ;;  %v2086_v4 = vmul.f32 %v4211_v7, %v2084_v59  ;;  %v2094_v19 = vmul.f32 %v4211_v7, %v2092_v47  ;;  %v2102_v46 = vmul.f32 %v4211_v7, %v2100_v11  ;;  %v3118_v7 = vld [vmem:[%s10289_s23 + $0x18] sm:$0xff] (%p10287_p4) }
 0x2b7   : > { %v2079_v37 = vmul.f32 %v4213_v27, %v2077_v30  ;;  %v2087_v18 = vmul.f32 %v4213_v27, %v2085_v14  ;;  %v9103_v35 = vmul.f32 %v4213_v27, %v2093_v48  ;;  %v9105_v10 = vmul.f32 %v4213_v27, %v2101_v54  ;;  %v3122_v27 = vld [vmem:[%s10289_s23 + $0x28] sm:$0xff] (%p10287_p4)  ;;  %3119 = vst [vmem:[%s3073_s25 + $0x28] sm:$0xff] (%p10287_p4), %v3118_v7 }
 0x2b8   : > { %2970 = vst [vmem:[%s9108_s0] sm:$0xff] %v2078_v44  ;;  %2972 = vst [vmem:[%s9108_s0 + $0x10] sm:$0xff] %v2086_v4  ;;  %v2941_v12 = vsub.f32 %v2937_v57, %v2939_v41  ;;  %v2986_v45 = vmul.f32 %v2078_v44, %v8936_v13  ;;  %v2988_v42 = vmul.f32 %v2078_v44, %v8938_v24 }
 0x2b9   : > { %2974 = vst [vmem:[%s9108_s0 + $0x20] sm:$0xff] %v2094_v19  ;;  %2976 = vst [vmem:[%s9108_s0 + $0x30] sm:$0xff] %v2102_v46  ;;  %v2987_v1 = vmul.f32 %v2079_v37, %v9002_v16  ;;  %v2989_v40 = vmul.f32 %v2079_v37, %v9004_v36  ;;  %v2933_v30 = vsub.f32 %v2929_v32, %v2931_v43 }
 0x2ba   : > { %3026 = vst [vmem:[%s9115_s22 + $0x20] sm:$0xff] %v2086_v4  ;;  %2971 = vst [vmem:[%s9108_s0 + $0x8] sm:$0xff] %v2079_v37 }
 0x2bb   : > { %2973 = vst [vmem:[%s9108_s0 + $0x18] sm:$0xff] %v2087_v18  ;;  %2975 = vst [vmem:[%s9108_s0 + $0x28] sm:$0xff] %v9103_v35 }
 0x2bc   : > { %2977 = vst [vmem:[%s9108_s0 + $0x38] sm:$0xff] %v9105_v10  ;;  %3027 = vst [vmem:[%s9115_s22 + $0x28] sm:$0xff] %v2087_v18 }
 0x2bd   : > { %3022 = vst [vmem:[%s9115_s22] sm:$0xff] %v2986_v45  ;;  %3024 = vst [vmem:[%s9115_s22 + $0x10] sm:$0xff] %v2988_v42 }
 0x2be   : > { %3023 = vst [vmem:[%s9115_s22 + $0x8] sm:$0xff] %v2987_v1  ;;  %3025 = vst [vmem:[%s9115_s22 + $0x18] sm:$0xff] %v2989_v40  ;;  %v4215_v59 = vpop.eup %4214 }
 0x2bf   : > { %v2918_v14 = vmul.f32 %v4215_v59, %v2916_v21  ;;  %v2926_v11 = vmul.f32 %v4215_v59, %v2924_v9  ;;  %v2934_v34 = vmul.f32 %v4215_v59, %v2932_v51  ;;  %v2942_v54 = vmul.f32 %v4215_v59, %v2940_v2  ;;  %v3120_v2 = vld [vmem:[%s10289_s23 + $0x20] sm:$0xff] (%p10287_p4)  ;;  %3123 = vst [vmem:[%s3073_s25 + $0x48] sm:$0xff] (%p10287_p4), %v3122_v27 }
 0x2c0   : > { %3121 = vst [vmem:[%s3073_s25 + $0x40] sm:$0xff] (%p10287_p4), %v3120_v2 }
 0x2c1   : > { %2978 = vst [vmem:[%s9135_s10] sm:$0xff] %v2918_v14  ;;  %2980 = vst [vmem:[%s9135_s10 + $0x10] sm:$0xff] %v2926_v11  ;;  %v2990_v49 = vmul.f32 %v2918_v14, %v8940_v39  ;;  %v2992_v8 = vmul.f32 %v2926_v11, %v2094_v19  ;;  %v2998_v53 = vmul.f32 %v2918_v14, %v8942_v61  ;;  %v4217_v55 = vpop.eup %4216 }
 0x2c2   : > { %2982 = vst [vmem:[%s9135_s10 + $0x20] sm:$0xff] %v2934_v34  ;;  %2984 = vst [vmem:[%s9135_s10 + $0x30] sm:$0xff] %v2942_v54  ;;  %v3004_v15 = vmul.f32 %v2926_v11, %v2102_v46  ;;  %v3006_v20 = vmul.f32 %v2934_v34, %v8940_v39  ;;  %v3008_v62 = vmul.f32 %v2942_v54, %v2094_v19 }
 0x2c3   : > { %v3014_v52 = vmul.f32 %v2934_v34, %v8942_v61  ;;  %v3020_v33 = vmul.f32 %v2942_v54, %v2102_v46  ;;  %v2919_v63 = vmul.f32 %v4217_v55, %v2917_v28  ;;  %v2927_v23 = vmul.f32 %v4217_v55, %v2925_v58 }
 0x2c4   : > { %v2935_v21 = vmul.f32 %v4217_v55, %v2933_v30  ;;  %v2943_v22 = vmul.f32 %v4217_v55, %v2941_v12  ;;  %3032 = vst [vmem:[%s9115_s22 + $0x50] sm:$0xff] %v3004_v15  ;;  %v2994_v50 = vmul.f32 %v2992_v8, %v8936_v13  ;;  %v3000_v60 = vmul.f32 %v2992_v8, %v8938_v24 }
 0x2c5   : > { %v3010_v39 = vmul.f32 %v3008_v62, %v8936_v13  ;;  %v3016_v25 = vmul.f32 %v3008_v62, %v8938_v24  ;;  %3038 = vst [vmem:[%s9115_s22 + $0x80] sm:$0xff] %v3020_v33  ;;  %2979 = vst [vmem:[%s9135_s10 + $0x8] sm:$0xff] %v2919_v63  ;;  %v2991_v61 = vmul.f32 %v2919_v63, %v9006_v26 }
 0x2c6   : > { %2981 = vst [vmem:[%s9135_s10 + $0x18] sm:$0xff] %v2927_v23  ;;  %2983 = vst [vmem:[%s9135_s10 + $0x28] sm:$0xff] %v2935_v21  ;;  %v2993_v56 = vmul.f32 %v2927_v23, %v9103_v35  ;;  %v2999_v29 = vmul.f32 %v2919_v63, %v9008_v3  ;;  %v3005_v31 = vmul.f32 %v2927_v23, %v9105_v10 }
 0x2c7   : > { %2985 = vst [vmem:[%s9135_s10 + $0x38] sm:$0xff] %v2943_v22  ;;  %v2996_v13 = vadd.f32 %v2994_v50, %v2990_v49  ;;  %v3002_v9 = vadd.f32 %v3000_v60, %v2998_v53  ;;  %v3012_v24 = vadd.f32 %v3010_v39, %v3006_v20  ;;  %v3007_v58 = vmul.f32 %v2935_v21, %v9006_v26 }
 0x2c8   : > { %v2995_v0 = vmul.f32 %v2993_v56, %v9002_v16  ;;  %v3001_v47 = vmul.f32 %v2993_v56, %v9004_v36  ;;  %3033 = vst [vmem:[%s9115_s22 + $0x58] sm:$0xff] %v3005_v31  ;;  %v3009_v17 = vmul.f32 %v2943_v22, %v9103_v35  ;;  %v3018_v6 = vadd.f32 %v3016_v25, %v3014_v52 }
 0x2c9   : > { %3028 = vst [vmem:[%s9115_s22 + $0x30] sm:$0xff] %v2996_v13  ;;  %3030 = vst [vmem:[%s9115_s22 + $0x40] sm:$0xff] %v3002_v9  ;;  %v3015_v48 = vmul.f32 %v2935_v21, %v9008_v3  ;;  %v3021_v26 = vmul.f32 %v2943_v22, %v9105_v10  ;;  %v3116_v3 = vld [vmem:[%s10289_s23 + $0x10] sm:$0xff] (%p10287_p4) }
 0x2ca   : > { %3034 = vst [vmem:[%s9115_s22 + $0x60] sm:$0xff] %v3012_v24  ;;  %v2997_v28 = vadd.f32 %v2995_v0, %v2991_v61  ;;  %v3003_v38 = vadd.f32 %v3001_v47, %v2999_v29  ;;  %v3011_v5 = vmul.f32 %v3009_v17, %v9002_v16  ;;  %3036 = vst [vmem:[%s9115_s22 + $0x70] sm:$0xff] %v3018_v6  ;;  %v3112_v16 = vld [vmem:[%s10289_s23] sm:$0xff] (%p10287_p4) }
 0x2cb   : > { %v3017_v51 = vmul.f32 %v3009_v17, %v9004_v36  ;;  %3039 = vst [vmem:[%s9115_s22 + $0x88] sm:$0xff] %v3021_v26  ;;  %3070 = sbr.rel (!%p10287_p4) target bundleno = 720 (0x2d0), region = 74  ;;  %v3114_v36 = vld [vmem:[%s10289_s23 + $0x8] sm:$0xff] (%p10287_p4)  ;;  %3113 = vst [vmem:[%s3073_s25] sm:$0xff] (%p10287_p4), %v3112_v16 }
 0x2cc   : > { %3029 = vst [vmem:[%s9115_s22 + $0x38] sm:$0xff] %v2997_v28  ;;  %3031 = vst [vmem:[%s9115_s22 + $0x48] sm:$0xff] %v3003_v38  ;;  %v3013_v57 = vadd.f32 %v3011_v5, %v3007_v58 }
 0x2cd   : > { %v3019_v41 = vadd.f32 %v3017_v51, %v3015_v48  ;;  %3115 = vst [vmem:[%s3073_s25 + $0x8] sm:$0xff] (%p10287_p4), %v3114_v36  ;;  %3117 = vst [vmem:[%s3073_s25 + $0x20] sm:$0xff] (%p10287_p4), %v3116_v3 }
 0x2ce   : > { %3035 = vst [vmem:[%s9115_s22 + $0x68] sm:$0xff] %v3013_v57 }
 0x2cf   : > { %3037 = vst [vmem:[%s9115_s22 + $0x78] sm:$0xff] %v3019_v41 }
 0x2d0 PF: > { %s10291_s26 = sld [smem:[#allocation17_spill]] }
 0x2d6   : > { %p10292_p5 = scmp.ne.s32.totalorder %s10291_s26, 0 }
 0x2d7   : > { %s10293_s14 = sld [smem:[#allocation14_spill]] (%p10292_p5) }
 0x2d8   : > { %3129 = sbr.rel (!%p10292_p5) target bundleno = 739 (0x2e3), region = 112  ;;  %s10294_s9 = sld [smem:[#allocation20_spill]] (%p10292_p5) }
 0x2d9   : > { %s10295_s12 = sld [smem:[#allocation93_spill]] (%p10292_p5) }
 0x2dd   : > { %s4113_s5 = sshll.u32 %s10293_s14, 4 }
 0x2de   : > { %v3171_v44 = vld [vmem:[%s10294_s9] sm:$0xff]  ;;  %v3173_v4 = vld [vmem:[%s10294_s9 + $0x8] sm:$0xff]  ;;  %v3175_v19 = vld [vmem:[%s10294_s9 + $0x10] sm:$0xff] }
 0x2df   : > { %s3132_s3 = scalar_lea.vmem %s10295_s12, %s4113_s5  ;;  %v3177_v46 = vld [vmem:[%s10294_s9 + $0x18] sm:$0xff]  ;;  %v3179_v37 = vld [vmem:[%s10294_s9 + $0x20] sm:$0xff]  ;;  %v3181_v18 = vld [vmem:[%s10294_s9 + $0x28] sm:$0xff] }
 0x2e0   : > { %3172 = vst [vmem:[%s3132_s3] sm:$0xff] %v3171_v44  ;;  %3174 = vst [vmem:[%s3132_s3 + $0x8] sm:$0xff] %v3173_v4 }
 0x2e1   : > { %3176 = vst [vmem:[%s3132_s3 + $0x20] sm:$0xff] %v3175_v19  ;;  %3178 = vst [vmem:[%s3132_s3 + $0x28] sm:$0xff] %v3177_v46 }
 0x2e2   : > { %3180 = vst [vmem:[%s3132_s3 + $0x40] sm:$0xff] %v3179_v37  ;;  %3182 = vst [vmem:[%s3132_s3 + $0x48] sm:$0xff] %v3181_v18 }
 0x2e3 PF: > { %s10296_s15 = sld [smem:[#allocation17_spill]] }
 0x2e9   : > { %p10297_p8 = scmp.ne.s32.totalorder %s10296_s15, 0 }
 0x2ea   : > { %s10298_s16 = sld [smem:[#allocation14_spill]] (%p10297_p8)  ;;  %v3230_v35 = vld [vmem:[%s6874_s27] sm:$0xff] (%p10297_p8)  ;;  %v3232_v10 = vld [vmem:[%s6874_s27 + $0x8] sm:$0xff] (%p10297_p8)  ;;  %v3234_v12 = vld [vmem:[%s6874_s27 + $0x10] sm:$0xff] (%p10297_p8) }
 0x2eb   : > { %3188 = sbr.rel (!%p10297_p8) target bundleno = 757 (0x2f5), region = 150  ;;  %s10299_s20 = sld [smem:[#allocation94_spill]] (%p10297_p8)  ;;  %v3236_v45 = vld [vmem:[%s6874_s27 + $0x18] sm:$0xff] (%p10297_p8)  ;;  %v3238_v42 = vld [vmem:[%s6874_s27 + $0x20] sm:$0xff] (%p10297_p8)  ;;  %v3240_v32 = vld [vmem:[%s6874_s27 + $0x28] sm:$0xff] (%p10297_p8) }
 0x2f0   : > { %s4114_s24 = sshll.u32 %s10298_s16, 4 }
 0x2f1   : > { %s3191_s28 = scalar_lea.vmem %s10299_s20, %s4114_s24 }
 0x2f2   : > { %3231 = vst [vmem:[%s3191_s28] sm:$0xff] %v3230_v35  ;;  %3233 = vst [vmem:[%s3191_s28 + $0x8] sm:$0xff] %v3232_v10 }
 0x2f3   : > { %3235 = vst [vmem:[%s3191_s28 + $0x20] sm:$0xff] %v3234_v12  ;;  %3237 = vst [vmem:[%s3191_s28 + $0x28] sm:$0xff] %v3236_v45 }
 0x2f4   : > { %3239 = vst [vmem:[%s3191_s28 + $0x40] sm:$0xff] %v3238_v42  ;;  %3241 = vst [vmem:[%s3191_s28 + $0x48] sm:$0xff] %v3240_v32 }
 0x2f5 PF: > { %s10300_s7 = sld [smem:[#allocation17_spill]] }
 0x2fb   : > { %p10301_p9 = scmp.ne.s32.totalorder %s10300_s7, 0 }
 0x2fc   : > { %s10302_s2 = sld [smem:[#allocation14_spill]] (%p10301_p9)  ;;  %v3293_v43 = vld [vmem:[%s8948_s17] sm:$0xff] (%p10301_p9)  ;;  %v3295_v1 = vld [vmem:[%s8948_s17 + $0x8] sm:$0xff] (%p10301_p9)  ;;  %v3297_v40 = vld [vmem:[%s8948_s17 + $0x10] sm:$0xff] (%p10301_p9) }
 0x2fd   : > { %3247 = sbr.rel (!%p10301_p9) target bundleno = 776 (0x308), region = 188  ;;  %s10303_s4 = sld [smem:[#allocation95_spill]] (%p10301_p9)  ;;  %v3299_v59 = vld [vmem:[%s8948_s17 + $0x18] sm:$0xff] (%p10301_p9)  ;;  %v3301_v30 = vld [vmem:[%s8948_s17 + $0x20] sm:$0xff] (%p10301_p9)  ;;  %v3303_v14 = vld [vmem:[%s8948_s17 + $0x28] sm:$0xff] (%p10301_p9) }
 0x2fe   : > { %v3305_v11 = vld [vmem:[%s8948_s17 + $0x30] sm:$0xff] (%p10301_p9)  ;;  %v3307_v34 = vld [vmem:[%s8948_s17 + $0x38] sm:$0xff] (%p10301_p9) }
 0x302   : > { %s4115_s27 = sshll.u32 %s10302_s2, 4 }
 0x303   : > { %s3250_s23 = scalar_lea.vmem %s10303_s4, %s4115_s27 }
 0x304   : > { %3294 = vst [vmem:[%s3250_s23] sm:$0xff] %v3293_v43  ;;  %3296 = vst [vmem:[%s3250_s23 + $0x8] sm:$0xff] %v3295_v1 }
 0x305   : > { %3298 = vst [vmem:[%s3250_s23 + $0x20] sm:$0xff] %v3297_v40  ;;  %3300 = vst [vmem:[%s3250_s23 + $0x28] sm:$0xff] %v3299_v59 }
 0x306   : > { %3302 = vst [vmem:[%s3250_s23 + $0x40] sm:$0xff] %v3301_v30  ;;  %3304 = vst [vmem:[%s3250_s23 + $0x48] sm:$0xff] %v3303_v14 }
 0x307   : > { %3306 = vst [vmem:[%s3250_s23 + $0x60] sm:$0xff] %v3305_v11  ;;  %3308 = vst [vmem:[%s3250_s23 + $0x68] sm:$0xff] %v3307_v34 }
 0x308 PF: > { %s10304_s21 = sld [smem:[#allocation17_spill]] }
 0x30e   : > { %p10305_p10 = scmp.ne.s32.totalorder %s10304_s21, 0 }
 0x30f   : > { %s10306_s13 = sld [smem:[#allocation14_spill]] (%p10305_p10)  ;;  %v3360_v54 = vld [vmem:[%s9108_s0] sm:$0xff] (%p10305_p10)  ;;  %v3362_v49 = vld [vmem:[%s9108_s0 + $0x8] sm:$0xff] (%p10305_p10)  ;;  %v3364_v8 = vld [vmem:[%s9108_s0 + $0x10] sm:$0xff] (%p10305_p10) }
 0x310   : > { %3314 = sbr.rel (!%p10305_p10) target bundleno = 795 (0x31b), region = 226  ;;  %s10307_s25 = sld [smem:[#allocation96_spill]] (%p10305_p10)  ;;  %v3366_v53 = vld [vmem:[%s9108_s0 + $0x18] sm:$0xff] (%p10305_p10)  ;;  %v3368_v15 = vld [vmem:[%s9108_s0 + $0x20] sm:$0xff] (%p10305_p10)  ;;  %v3370_v55 = vld [vmem:[%s9108_s0 + $0x28] sm:$0xff] (%p10305_p10) }
 0x311   : > { %v3372_v20 = vld [vmem:[%s9108_s0 + $0x30] sm:$0xff] (%p10305_p10)  ;;  %v3374_v62 = vld [vmem:[%s9108_s0 + $0x38] sm:$0xff] (%p10305_p10) }
 0x315   : > { %s4116_s30 = sshll.u32 %s10306_s13, 4 }
 0x316   : > { %s3317_s26 = scalar_lea.vmem %s10307_s25, %s4116_s30 }
 0x317   : > { %3361 = vst [vmem:[%s3317_s26] sm:$0xff] %v3360_v54  ;;  %3363 = vst [vmem:[%s3317_s26 + $0x8] sm:$0xff] %v3362_v49 }
 0x318   : > { %3365 = vst [vmem:[%s3317_s26 + $0x20] sm:$0xff] %v3364_v8  ;;  %3367 = vst [vmem:[%s3317_s26 + $0x28] sm:$0xff] %v3366_v53 }
 0x319   : > { %3369 = vst [vmem:[%s3317_s26 + $0x40] sm:$0xff] %v3368_v15  ;;  %3371 = vst [vmem:[%s3317_s26 + $0x48] sm:$0xff] %v3370_v55 }
 0x31a   : > { %3373 = vst [vmem:[%s3317_s26 + $0x60] sm:$0xff] %v3372_v20  ;;  %3375 = vst [vmem:[%s3317_s26 + $0x68] sm:$0xff] %v3374_v62 }
 0x31b PF: > { %s10308_s14 = sld [smem:[#allocation17_spill]] }
 0x321   : > { %p10309_p11 = scmp.ne.s32.totalorder %s10308_s14, 0 }
 0x322   : > { %s10310_s9 = sld [smem:[#allocation14_spill]] (%p10309_p11)  ;;  %v3427_v52 = vld [vmem:[%s9135_s10] sm:$0xff] (%p10309_p11)  ;;  %v3429_v33 = vld [vmem:[%s9135_s10 + $0x8] sm:$0xff] (%p10309_p11)  ;;  %v3431_v63 = vld [vmem:[%s9135_s10 + $0x10] sm:$0xff] (%p10309_p11) }
 0x323   : > { %3381 = sbr.rel (!%p10309_p11) target bundleno = 814 (0x32e), region = 264  ;;  %s10311_s1 = sld [smem:[#allocation97_spill]] (%p10309_p11)  ;;  %v3433_v23 = vld [vmem:[%s9135_s10 + $0x18] sm:$0xff] (%p10309_p11)  ;;  %v3435_v21 = vld [vmem:[%s9135_s10 + $0x20] sm:$0xff] (%p10309_p11)  ;;  %v3437_v22 = vld [vmem:[%s9135_s10 + $0x28] sm:$0xff] (%p10309_p11) }
 0x324   : > { %v3439_v50 = vld [vmem:[%s9135_s10 + $0x30] sm:$0xff] (%p10309_p11)  ;;  %v3441_v60 = vld [vmem:[%s9135_s10 + $0x38] sm:$0xff] (%p10309_p11) }
 0x328   : > { %s4117_s5 = sshll.u32 %s10310_s9, 4 }
 0x329   : > { %s3384_s12 = scalar_lea.vmem %s10311_s1, %s4117_s5 }
 0x32a   : > { %3428 = vst [vmem:[%s3384_s12] sm:$0xff] %v3427_v52  ;;  %3430 = vst [vmem:[%s3384_s12 + $0x8] sm:$0xff] %v3429_v33 }
 0x32b   : > { %3432 = vst [vmem:[%s3384_s12 + $0x20] sm:$0xff] %v3431_v63  ;;  %3434 = vst [vmem:[%s3384_s12 + $0x28] sm:$0xff] %v3433_v23 }
 0x32c   : > { %3436 = vst [vmem:[%s3384_s12 + $0x40] sm:$0xff] %v3435_v21  ;;  %3438 = vst [vmem:[%s3384_s12 + $0x48] sm:$0xff] %v3437_v22 }
 0x32d   : > { %3440 = vst [vmem:[%s3384_s12 + $0x60] sm:$0xff] %v3439_v50  ;;  %3442 = vst [vmem:[%s3384_s12 + $0x68] sm:$0xff] %v3441_v60 }
 0x32e PF: > { %s10312_s3 = sld [smem:[#allocation17_spill]] }
 0x334   : > { %p10313_p12 = scmp.ne.s32.totalorder %s10312_s3, 0 }
 0x335   : > { %s10314_s15 = sld [smem:[#allocation14_spill]] (%p10313_p12)  ;;  %v3514_v39 = vld [vmem:[%s9115_s22] sm:$0xff] (%p10313_p12)  ;;  %v3516_v25 = vld [vmem:[%s9115_s22 + $0x8] sm:$0xff] (%p10313_p12)  ;;  %v3518_v61 = vld [vmem:[%s9115_s22 + $0x10] sm:$0xff] (%p10313_p12) }
 0x336   : > { %3448 = sbr.rel (!%p10313_p12) target bundleno = 838 (0x346), region = 302  ;;  %s10315_s18 = sld [smem:[#allocation98_spill]] (%p10313_p12)  ;;  %v3520_v56 = vld [vmem:[%s9115_s22 + $0x18] sm:$0xff] (%p10313_p12)  ;;  %v3522_v29 = vld [vmem:[%s9115_s22 + $0x20] sm:$0xff] (%p10313_p12)  ;;  %v3524_v31 = vld [vmem:[%s9115_s22 + $0x28] sm:$0xff] (%p10313_p12) }
 0x337   : > { %v3526_v13 = vld [vmem:[%s9115_s22 + $0x30] sm:$0xff] (%p10313_p12)  ;;  %v3528_v9 = vld [vmem:[%s9115_s22 + $0x38] sm:$0xff] (%p10313_p12)  ;;  %v3530_v24 = vld [vmem:[%s9115_s22 + $0x40] sm:$0xff] (%p10313_p12) }
 0x338   : > { %v3532_v58 = vld [vmem:[%s9115_s22 + $0x48] sm:$0xff] (%p10313_p12)  ;;  %v3534_v0 = vld [vmem:[%s9115_s22 + $0x50] sm:$0xff] (%p10313_p12)  ;;  %v3536_v47 = vld [vmem:[%s9115_s22 + $0x58] sm:$0xff] (%p10313_p12) }
 0x339   : > { %v3538_v17 = vld [vmem:[%s9115_s22 + $0x60] sm:$0xff] (%p10313_p12)  ;;  %v3540_v6 = vld [vmem:[%s9115_s22 + $0x68] sm:$0xff] (%p10313_p12)  ;;  %v3542_v48 = vld [vmem:[%s9115_s22 + $0x70] sm:$0xff] (%p10313_p12) }
 0x33a   : > { %v3544_v26 = vld [vmem:[%s9115_s22 + $0x78] sm:$0xff] (%p10313_p12)  ;;  %v3546_v28 = vld [vmem:[%s9115_s22 + $0x80] sm:$0xff] (%p10313_p12)  ;;  %v3548_v38 = vld [vmem:[%s9115_s22 + $0x88] sm:$0xff] (%p10313_p12) }
 0x33b   : > { %s4118_s16 = sshll.u32 %s10314_s15, 4 }
 0x33c   : > { %s9267_s6 = scalar_lea.vmem %s10315_s18, %s4118_s16 }
 0x33d   : > { %3515 = vst [vmem:[%s9267_s6] sm:$0xff] %v3514_v39  ;;  %3517 = vst [vmem:[%s9267_s6 + $0x8] sm:$0xff] %v3516_v25 }
 0x33e   : > { %3519 = vst [vmem:[%s9267_s6 + $0x20] sm:$0xff] %v3518_v61  ;;  %3521 = vst [vmem:[%s9267_s6 + $0x28] sm:$0xff] %v3520_v56 }
 0x33f   : > { %3523 = vst [vmem:[%s9267_s6 + $0x40] sm:$0xff] %v3522_v29  ;;  %3525 = vst [vmem:[%s9267_s6 + $0x48] sm:$0xff] %v3524_v31 }
 0x340   : > { %3527 = vst [vmem:[%s9267_s6 + $0x60] sm:$0xff] %v3526_v13  ;;  %3529 = vst [vmem:[%s9267_s6 + $0x68] sm:$0xff] %v3528_v9 }
 0x341   : > { %3531 = vst [vmem:[%s9267_s6 + $0x80] sm:$0xff] %v3530_v24  ;;  %3533 = vst [vmem:[%s9267_s6 + $0x88] sm:$0xff] %v3532_v58 }
 0x342   : > { %3535 = vst [vmem:[%s9267_s6 + $0xa0] sm:$0xff] %v3534_v0  ;;  %3537 = vst [vmem:[%s9267_s6 + $0xa8] sm:$0xff] %v3536_v47 }
 0x343   : > { %3539 = vst [vmem:[%s9267_s6 + $0xc0] sm:$0xff] %v3538_v17  ;;  %3541 = vst [vmem:[%s9267_s6 + $0xc8] sm:$0xff] %v3540_v6 }
 0x344   : > { %3543 = vst [vmem:[%s9267_s6 + $0xe0] sm:$0xff] %v3542_v48  ;;  %3545 = vst [vmem:[%s9267_s6 + $0xe8] sm:$0xff] %v3544_v26 }
 0x345   : > { %3547 = vst [vmem:[%s9267_s6 + $0x100] sm:$0xff] %v3546_v28  ;;  %3549 = vst [vmem:[%s9267_s6 + $0x108] sm:$0xff] %v3548_v38 }
 0x346 PF: > { %s10316_s29 = sld [smem:[#allocation15_spill]] }
 0x347   : > { %s10317_s27 = sld [smem:[#allocation13_spill]] }
 0x348   : > { %s10318_s28 = sld [smem:[#allocation16_spill]] }
 0x34c   : > { %p17_p13 = scmp.ge.s32.totalorder %s10316_s29, 4  }
 0x34e   :  { %19 = sbr.rel (!%p17_p13) target bundleno = 12 (0xc), region = 446 }
 0x353   :  { %3607 = vsyncpa [#allocation3], 1 }
 0x354   :  { %3609 = vsyncpa [#allocation3 + $0x1], 1 }

</bundles_post_ra>
